<compile_context>
chip_gen: v6e
topology: v6e:2x2x1
jax: 0.10.0
libtpu: 0.0.40
codegen_flags: <defaults>
</compile_context>

<pallas_src>
import math

import jax
import jax.numpy as jnp
from jax.experimental import pallas as pl
from jax.experimental.pallas import tpu as pltpu

# Hyperparameters (VariableAggregation defaults)
BLOCKS = 3
VARIABLES = 3
DIM = 64
NUM_HEAD = 3
HEAD_DIM = DIM                      # hidden_dim == dim; per-head width = C // num_head
PROJ_IN = NUM_HEAD * HEAD_DIM       # 192: projection contraction dim
QKV_DIM = 3 * PROJ_IN               # 576: fused Q|K|V output lanes
SDK = math.sqrt(DIM)                # sqrt(hidden_dim), exactly as in the PyTorch module
LN_EPS = 1e-5


def _round_up(n, m):
    return ((n + m - 1) // m) * m


def _cdiv(a, b):
    return -(-a // b)


def _var_agg_kernel(x_ref, wqkv_ref, bqkv_ref, wp_ref, bp_ref, bpar_ref,
                    lnw_ref, lnb_ref, out_ref):
    """One grid step: (VARIABLES, TB, DIM) activation slab -> (TB, DIM) output slab."""
    tb = x_ref.shape[1]
    cdt = wqkv_ref.dtype                       # matmul compute dtype (f32 or bf16)
    inv_vd = jnp.float32(1.0 / (VARIABLES * DIM))

    # Single (V*TB, D) working activation.  Merging (V, TB) on the sublane axis is a
    # layout-preserving reshape (TB % 8 == 0), not a copy.
    xall = x_ref[...].reshape(VARIABLES * tb, DIM).astype(jnp.float32)

    ys = None
    for blk in range(BLOCKS):
        # 3x3 attention-bias scalars for this block (cheap SMEM reads, hoisted).
        bpar = [[bpar_ref[(blk * VARIABLES + i) * VARIABLES + j]
                 for j in range(VARIABLES)] for i in range(VARIABLES)]

        # Fused Q/K/V over all heads: one (V*TB, 64) @ (64, 576) MXU matmul.
        # The 1/sqrt(hidden) attention scale is pre-folded into the Q columns / bias.
        qkv = jnp.dot(xall.astype(cdt), wqkv_ref[blk],
                      preferred_element_type=jnp.float32) + bqkv_ref[blk]

        def sl(var, col):
            # sublane-aligned (variable) and 64-lane-aligned (column) static slice.
            return qkv[var * tb:(var + 1) * tb, col:col + HEAD_DIM]

        proj = []
        for i in range(VARIABLES):
            heads_out = []
            for h in range(NUM_HEAD):
                qi = sl(i, h * HEAD_DIM)
                # scores of query-variable i vs. the 3 key variables: (TB, 1) each.
                s = [jnp.sum(qi * sl(j, PROJ_IN + h * HEAD_DIM),
                             axis=-1, keepdims=True) + bpar[i][j]
                     for j in range(VARIABLES)]
                m = s[0]
                for sj in s[1:]:
                    m = jnp.maximum(m, sj)
                e = [jnp.exp(sj - m) for sj in s]
                den = e[0]
                for ej in e[1:]:
                    den = den + ej
                r = pl.reciprocal(den, approx=True)          # EUP slot, ~free
                acc = e[0] * sl(0, 2 * PROJ_IN + h * HEAD_DIM)
                for j in range(1, VARIABLES):
                    acc = acc + e[j] * sl(j, 2 * PROJ_IN + h * HEAD_DIM)
                heads_out.append((acc * r).astype(cdt))      # (TB, 64)
            # Lane-concat heads -> (TB, 192): single K=192 output-projection matmul.
            o_i = jnp.concatenate(heads_out, axis=1)
            proj.append(jnp.dot(o_i, wp_ref[blk],
                                preferred_element_type=jnp.float32) + bp_ref[blk])

        # Residual + LayerNorm([variables, dim]): stats over (V, D) per batch row.
        xrs = [proj[i] + xall[i * tb:(i + 1) * tb, :] for i in range(VARIABLES)]
        total = jnp.sum(xrs[0], axis=-1, keepdims=True)
        for xr in xrs[1:]:
            total = total + jnp.sum(xr, axis=-1, keepdims=True)
        mean = total * inv_vd                                # (TB, 1)
        xcs = [xr - mean for xr in xrs]
        var = jnp.sum(xcs[0] * xcs[0], axis=-1, keepdims=True)
        for xc in xcs[1:]:
            var = var + jnp.sum(xc * xc, axis=-1, keepdims=True)
        var = var * inv_vd
        rstd = jax.lax.rsqrt(var + LN_EPS)                   # (TB, 1)
        ys = [xcs[i] * rstd * lnw_ref[blk, i] + lnb_ref[blk, i]
              for i in range(VARIABLES)]

        if blk + 1 < BLOCKS:
            # One sublane-aligned concat per block transition (f32 working array).
            xall = jnp.concatenate(ys, axis=0)

    # torch.mean(x1, dim=1): mean over the variables axis -> (TB, D) slab store.
    out = ys[0]
    for yv in ys[1:]:
        out = out + yv
    out_ref[...] = (out * jnp.float32(1.0 / VARIABLES)).astype(out_ref.dtype)


def _choose_tiling(batch, max_tb):
    """Balanced batch tiles: round to 8, cap at max_tb, prefer an even tile count
    (v7x has 2 TensorCores) when tiles stay MXU-friendly (>= 256 rows each)."""
    b8 = _round_up(max(batch, 1), 8)
    n_tiles = max(1, _cdiv(b8, max_tb))
    if n_tiles % 2 == 1 and b8 // (n_tiles + 1) >= 256:
        n_tiles += 1
    tb = _round_up(_cdiv(b8, n_tiles), 8)
    return tb, n_tiles * tb


def variable_aggregation(x, params, *, max_tile_b=512, compute_dtype=jnp.bfloat16):
    """x: (B, VARIABLES, DIM) float32 -> (B, DIM)."""
    WQ, BQ, WK, BK, WV, BV, WP, BP, BPAR, LNW, LNB = params
    B = x.shape[0]

    TB, B_pad = _choose_tiling(B, max_tile_b)
    n_tiles = B_pad // TB

    # Variable-major activation layout (V, B_pad, D): each per-variable slab in a grid
    # step is a sublane-dense (TB, D) tile.  Pad the batch with zeros (rows discarded).
    xt = jnp.transpose(x, (1, 0, 2))
    if B_pad != B:
        xt = jnp.pad(xt, ((0, 0), (0, B_pad - B), (0, 0)))

    # Plain-JAX glue: fuse Q|K|V along output lanes (heads are already column-major in
    # the PyTorch layout), fold the 1/sqrt(hidden) scale into the Q part, cast matmul
    # weights to the compute dtype once (biases / LN params stay f32).
    inv_sdk = jnp.float32(1.0 / SDK)
    wqkv = jnp.concatenate([WQ * inv_sdk, WK, WV], axis=-1).astype(compute_dtype)
    bqkv = jnp.concatenate([BQ * inv_sdk, BK, BV], axis=-1).reshape(BLOCKS, 1, QKV_DIM)
    wp = WP.astype(compute_dtype)                      # (BLOCKS, 192, 64)
    bp = BP.reshape(BLOCKS, 1, DIM)
    bpar = BPAR.reshape(-1).astype(jnp.float32)        # (BLOCKS*V*V,) scalars -> SMEM
    lnw = LNW.reshape(BLOCKS, VARIABLES, 1, DIM)
    lnb = LNB.reshape(BLOCKS, VARIABLES, 1, DIM)

    vmem_weights = [wqkv, bqkv, wp, bp]
    ln_weights = [lnw, lnb]

    def full_spec(a):
        r = a.ndim
        return pl.BlockSpec(a.shape, lambda b, _r=r: (0,) * _r)

    in_specs = ([pl.BlockSpec((VARIABLES, TB, DIM), lambda b: (0, b, 0))]
                + [full_spec(w) for w in vmem_weights]
                + [pl.BlockSpec(memory_space=pltpu.MemorySpace.SMEM)]
                + [full_spec(w) for w in ln_weights])

    out = pl.pallas_call(
        _var_agg_kernel,
        out_shape=jax.ShapeDtypeStruct((B_pad, DIM), x.dtype),
        grid=(n_tiles,),
        in_specs=in_specs,
        out_specs=pl.BlockSpec((TB, DIM), lambda b: (b, 0)),
        compiler_params=pltpu.CompilerParams(
            dimension_semantics=("parallel",),
            vmem_limit_bytes=32 * 1024 * 1024,
        ),
    )(xt, wqkv, bqkv, wp, bp, bpar, lnw, lnb)
    return out[:B]


def reference(x, params):
    """Pure-JAX mirror of the PyTorch forward (for validation)."""
    WQ, BQ, WK, BK, WV, BV, WP, BP, BPAR, LNW, LNB = params
    x1 = x
    for i in range(BLOCKS):
        q = x @ WQ[i] + BQ[i]
        k = x @ WK[i] + BK[i]
        v = x @ WV[i] + BV[i]
        Bsz, N, C = q.shape
        hd = C // NUM_HEAD

        def heads(t):
            return t.reshape(Bsz, N, NUM_HEAD, hd).transpose(0, 2, 1, 3)

        qh, kh, vh = heads(q), heads(k), heads(v)
        att = qh @ jnp.swapaxes(kh, -2, -1)
        att = jax.nn.softmax(att / SDK + BPAR[i], axis=-1)
        o = att @ vh
        o = o.transpose(0, 2, 1, 3).reshape(Bsz, N, C)
        o = o @ WP[i] + BP[i]
        xo = o + x1
        mean = xo.mean(axis=(1, 2), keepdims=True)
        var = ((xo - mean) ** 2).mean(axis=(1, 2), keepdims=True)
        xo = (xo - mean) / jnp.sqrt(var + LN_EPS)
        xo = xo * LNW[i] + LNB[i]
        x = xo
        x1 = xo
    return x1.mean(axis=1)


def make_params(key):
    ks = jax.random.split(key, 11)
    s = 1.0 / math.sqrt(DIM)
    WQ = jax.random.normal(ks[0], (BLOCKS, DIM, NUM_HEAD * HEAD_DIM), jnp.float32) * s
    BQ = jax.random.normal(ks[1], (BLOCKS, NUM_HEAD * HEAD_DIM), jnp.float32) * s
    WK = jax.random.normal(ks[2], (BLOCKS, DIM, NUM_HEAD * HEAD_DIM), jnp.float32) * s
    BK = jax.random.normal(ks[3], (BLOCKS, NUM_HEAD * HEAD_DIM), jnp.float32) * s
    WV = jax.random.normal(ks[4], (BLOCKS, DIM, NUM_HEAD * HEAD_DIM), jnp.float32) * s
    BV = jax.random.normal(ks[5], (BLOCKS, NUM_HEAD * HEAD_DIM), jnp.float32) * s
    WP = jax.random.normal(ks[6], (BLOCKS, NUM_HEAD * HEAD_DIM, DIM), jnp.float32) * s
    BP = jax.random.normal(ks[7], (BLOCKS, DIM), jnp.float32) * s
    BPAR = jax.random.normal(ks[8], (BLOCKS, VARIABLES, VARIABLES), jnp.float32)
    LNW = 1.0 + 0.1 * jax.random.normal(ks[9], (BLOCKS, VARIABLES, DIM), jnp.float32)
    LNB = 0.1 * jax.random.normal(ks[10], (BLOCKS, VARIABLES, DIM), jnp.float32)
    return (WQ, BQ, WK, BK, WV, BV, WP, BP, BPAR, LNW, LNB)


if __name__ == "__main__":
    key = jax.random.PRNGKey(0)
    kx1, kx2, kp = jax.random.split(key, 3)
    params = make_params(kp)

    # 1) Small batch, f32 matmul path -> near-exact check against the JAX reference
    #    (tolerance covers the approx-reciprocal softmax denominator, ~2^-12 rel).
    B1 = 2
    x_small = jax.random.normal(kx1, (B1, VARIABLES, DIM), jnp.float32)
    out1 = jax.block_until_ready(
        variable_aggregation(x_small, params, compute_dtype=jnp.float32))
    ref1 = jax.block_until_ready(reference(x_small, params))
    assert out1.shape == (B1, DIM), out1.shape
    err1 = float(jnp.max(jnp.abs(out1 - ref1)))
    assert err1 < 5e-3, f"f32 max abs err {err1}"

    # 2) Larger batch, default bf16 MXU inputs: exercises the balanced batch tiling
    #    (2 tiles of 304 rows, only 8 zero-padded rows), and the parallel grid.
    B2 = 600
    x_big = jax.random.normal(kx2, (B2, VARIABLES, DIM), jnp.float32)
    out2 = jax.block_until_ready(
        variable_aggregation(x_big, params, compute_dtype=jnp.bfloat16))
    ref2 = jax.block_until_ready(reference(x_big, params))
    assert out2.shape == (B2, DIM), out2.shape
    rel2 = float(jnp.linalg.norm(out2 - ref2) / jnp.linalg.norm(ref2))
    assert rel2 < 5e-2, f"bf16 relative L2 err {rel2}"

    print("KERNEL_OK")
</pallas_src>

<mosaic_0001>
module attributes {stable_mosaic.version = 11 : i64} {
  func.func @_var_agg_kernel(%arg0: i32, %arg1: memref<3x8x64xf32, #tpu.memory_space<vmem>>, %arg2: memref<3x64x576xf32, #tpu.memory_space<vmem>>, %arg3: memref<3x1x576xf32, #tpu.memory_space<vmem>>, %arg4: memref<3x192x64xf32, #tpu.memory_space<vmem>>, %arg5: memref<3x1x64xf32, #tpu.memory_space<vmem>>, %arg6: memref<27xf32, #tpu.memory_space<smem>>, %arg7: memref<3x3x1x64xf32, #tpu.memory_space<vmem>>, %arg8: memref<3x3x1x64xf32, #tpu.memory_space<vmem>>, %arg9: memref<8x64xf32, #tpu.memory_space<vmem>>) attributes {dimension_semantics = [#tpu.dimension_semantics<parallel>], iteration_bounds = array<i64: 1>, scalar_prefetch = 0 : i64, scratch_operands = 0 : i64, tpu.core_type = #tpu.core_type<tc>, window_params = [{transform_indices = @transform_0, window_bounds = array<i64: 3, 8, 64>}, {pipeline_mode = #tpu.pipeline_mode<synchronous>, transform_indices = @transform_1, window_bounds = array<i64: 3, 64, 576>}, {pipeline_mode = #tpu.pipeline_mode<synchronous>, transform_indices = @transform_2, window_bounds = array<i64: 3, 1, 576>}, {pipeline_mode = #tpu.pipeline_mode<synchronous>, transform_indices = @transform_3, window_bounds = array<i64: 3, 192, 64>}, {pipeline_mode = #tpu.pipeline_mode<synchronous>, transform_indices = @transform_4, window_bounds = array<i64: 3, 1, 64>}, {transform_indices = @transform_5, window_bounds = array<i64: 27>}, {pipeline_mode = #tpu.pipeline_mode<synchronous>, transform_indices = @transform_6, window_bounds = array<i64: 3, 3, 1, 64>}, {pipeline_mode = #tpu.pipeline_mode<synchronous>, transform_indices = @transform_7, window_bounds = array<i64: 3, 3, 1, 64>}, {transform_indices = @transform_8, window_bounds = array<i64: 8, 64>}]} {
    %c0 = arith.constant 0 : index
    %c0_0 = arith.constant 0 : index
    %c0_1 = arith.constant 0 : index
    %0 = vector.load %arg1[%c0, %c0_0, %c0_1] : memref<3x8x64xf32, #tpu.memory_space<vmem>>, vector<3x8x64xf32>
    %1 = vector.shape_cast %0 : vector<3x8x64xf32> to vector<24x64xf32>
    %c0_2 = arith.constant 0 : index
    %2 = memref.load %arg6[%c0_2] : memref<27xf32, #tpu.memory_space<smem>>
    %c1 = arith.constant 1 : index
    %3 = memref.load %arg6[%c1] : memref<27xf32, #tpu.memory_space<smem>>
    %c2 = arith.constant 2 : index
    %4 = memref.load %arg6[%c2] : memref<27xf32, #tpu.memory_space<smem>>
    %c3 = arith.constant 3 : index
    %5 = memref.load %arg6[%c3] : memref<27xf32, #tpu.memory_space<smem>>
    %c4 = arith.constant 4 : index
    %6 = memref.load %arg6[%c4] : memref<27xf32, #tpu.memory_space<smem>>
    %c5 = arith.constant 5 : index
    %7 = memref.load %arg6[%c5] : memref<27xf32, #tpu.memory_space<smem>>
    %c6 = arith.constant 6 : index
    %8 = memref.load %arg6[%c6] : memref<27xf32, #tpu.memory_space<smem>>
    %c7 = arith.constant 7 : index
    %9 = memref.load %arg6[%c7] : memref<27xf32, #tpu.memory_space<smem>>
    %c8 = arith.constant 8 : index
    %10 = memref.load %arg6[%c8] : memref<27xf32, #tpu.memory_space<smem>>
    %c0_3 = arith.constant 0 : index
    %c0_4 = arith.constant 0 : index
    %c0_5 = arith.constant 0 : index
    %11 = vector.load %arg2[%c0_3, %c0_4, %c0_5] : memref<3x64x576xf32, #tpu.memory_space<vmem>>, vector<1x64x576xf32>
    %12 = vector.shape_cast %11 : vector<1x64x576xf32> to vector<64x576xf32>
    %cst = arith.constant dense<0.000000e+00> : vector<24x576xf32>
    %13 = tpu.matmul %1, %12, %cst {dimension_numbers = #tpu.dot_dimension_numbers<[1], [0], [0], [1], [0, 0, 1, 1], [], []>} : vector<24x64xf32>, vector<64x576xf32>, vector<24x576xf32> -> vector<24x576xf32>
    %c0_6 = arith.constant 0 : index
    %c0_7 = arith.constant 0 : index
    %c0_8 = arith.constant 0 : index
    %14 = vector.load %arg3[%c0_6, %c0_7, %c0_8] : memref<3x1x576xf32, #tpu.memory_space<vmem>>, vector<1x1x576xf32>
    %15 = vector.shape_cast %14 : vector<1x1x576xf32> to vector<1x576xf32>
    %16 = vector.broadcast %15 : vector<1x576xf32> to vector<24x576xf32>
    %17 = arith.addf %13, %16 : vector<24x576xf32>
    %18 = vector.extract_strided_slice %17 {offsets = [0, 0], sizes = [8, 64], strides = [1, 1]} : vector<24x576xf32> to vector<8x64xf32>
    %19 = vector.extract_strided_slice %17 {offsets = [0, 192], sizes = [8, 64], strides = [1, 1]} : vector<24x576xf32> to vector<8x64xf32>
    %20 = arith.mulf %18, %19 : vector<8x64xf32>
    %cst_9 = arith.constant dense<0.000000e+00> : vector<8xf32>
    %21 = vector.multi_reduction <add>, %20, %cst_9 [1] : vector<8x64xf32> to vector<8xf32>
    %22 = vector.shape_cast %21 : vector<8xf32> to vector<8x1xf32>
    %23 = vector.broadcast %2 : f32 to vector<8x1xf32>
    %24 = arith.addf %22, %23 : vector<8x1xf32>
    %25 = vector.extract_strided_slice %17 {offsets = [8, 192], sizes = [8, 64], strides = [1, 1]} : vector<24x576xf32> to vector<8x64xf32>
    %26 = arith.mulf %18, %25 : vector<8x64xf32>
    %cst_10 = arith.constant dense<0.000000e+00> : vector<8xf32>
    %27 = vector.multi_reduction <add>, %26, %cst_10 [1] : vector<8x64xf32> to vector<8xf32>
    %28 = vector.shape_cast %27 : vector<8xf32> to vector<8x1xf32>
    %29 = vector.broadcast %3 : f32 to vector<8x1xf32>
    %30 = arith.addf %28, %29 : vector<8x1xf32>
    %31 = vector.extract_strided_slice %17 {offsets = [16, 192], sizes = [8, 64], strides = [1, 1]} : vector<24x576xf32> to vector<8x64xf32>
    %32 = arith.mulf %18, %31 : vector<8x64xf32>
    %cst_11 = arith.constant dense<0.000000e+00> : vector<8xf32>
    %33 = vector.multi_reduction <add>, %32, %cst_11 [1] : vector<8x64xf32> to vector<8xf32>
    %34 = vector.shape_cast %33 : vector<8xf32> to vector<8x1xf32>
    %35 = vector.broadcast %4 : f32 to vector<8x1xf32>
    %36 = arith.addf %34, %35 : vector<8x1xf32>
    %37 = arith.maximumf %24, %30 : vector<8x1xf32>
    %38 = arith.maximumf %37, %36 : vector<8x1xf32>
    %39 = arith.subf %24, %38 : vector<8x1xf32>
    %40 = math.exp %39 : vector<8x1xf32>
    %41 = arith.subf %30, %38 : vector<8x1xf32>
    %42 = math.exp %41 : vector<8x1xf32>
    %43 = arith.subf %36, %38 : vector<8x1xf32>
    %44 = math.exp %43 : vector<8x1xf32>
    %45 = arith.addf %40, %42 : vector<8x1xf32>
    %46 = arith.addf %45, %44 : vector<8x1xf32>
    %47 = tpu.reciprocal %46 {approx = true} : vector<8x1xf32> -> vector<8x1xf32>
    %48 = vector.extract_strided_slice %17 {offsets = [0, 384], sizes = [8, 64], strides = [1, 1]} : vector<24x576xf32> to vector<8x64xf32>
    %49 = vector.broadcast %40 : vector<8x1xf32> to vector<8x64xf32>
    %50 = arith.mulf %49, %48 : vector<8x64xf32>
    %51 = vector.extract_strided_slice %17 {offsets = [8, 384], sizes = [8, 64], strides = [1, 1]} : vector<24x576xf32> to vector<8x64xf32>
    %52 = vector.broadcast %42 : vector<8x1xf32> to vector<8x64xf32>
    %53 = arith.mulf %52, %51 : vector<8x64xf32>
    %54 = arith.addf %50, %53 : vector<8x64xf32>
    %55 = vector.extract_strided_slice %17 {offsets = [16, 384], sizes = [8, 64], strides = [1, 1]} : vector<24x576xf32> to vector<8x64xf32>
    %56 = vector.broadcast %44 : vector<8x1xf32> to vector<8x64xf32>
    %57 = arith.mulf %56, %55 : vector<8x64xf32>
    %58 = arith.addf %54, %57 : vector<8x64xf32>
    %59 = vector.broadcast %47 : vector<8x1xf32> to vector<8x64xf32>
    %60 = arith.mulf %58, %59 : vector<8x64xf32>
    %61 = vector.extract_strided_slice %17 {offsets = [0, 64], sizes = [8, 64], strides = [1, 1]} : vector<24x576xf32> to vector<8x64xf32>
    %62 = vector.extract_strided_slice %17 {offsets = [0, 256], sizes = [8, 64], strides = [1, 1]} : vector<24x576xf32> to vector<8x64xf32>
    %63 = arith.mulf %61, %62 : vector<8x64xf32>
    %cst_12 = arith.constant dense<0.000000e+00> : vector<8xf32>
    %64 = vector.multi_reduction <add>, %63, %cst_12 [1] : vector<8x64xf32> to vector<8xf32>
    %65 = vector.shape_cast %64 : vector<8xf32> to vector<8x1xf32>
    %66 = vector.broadcast %2 : f32 to vector<8x1xf32>
    %67 = arith.addf %65, %66 : vector<8x1xf32>
    %68 = vector.extract_strided_slice %17 {offsets = [8, 256], sizes = [8, 64], strides = [1, 1]} : vector<24x576xf32> to vector<8x64xf32>
    %69 = arith.mulf %61, %68 : vector<8x64xf32>
    %cst_13 = arith.constant dense<0.000000e+00> : vector<8xf32>
    %70 = vector.multi_reduction <add>, %69, %cst_13 [1] : vector<8x64xf32> to vector<8xf32>
    %71 = vector.shape_cast %70 : vector<8xf32> to vector<8x1xf32>
    %72 = vector.broadcast %3 : f32 to vector<8x1xf32>
    %73 = arith.addf %71, %72 : vector<8x1xf32>
    %74 = vector.extract_strided_slice %17 {offsets = [16, 256], sizes = [8, 64], strides = [1, 1]} : vector<24x576xf32> to vector<8x64xf32>
    %75 = arith.mulf %61, %74 : vector<8x64xf32>
    %cst_14 = arith.constant dense<0.000000e+00> : vector<8xf32>
    %76 = vector.multi_reduction <add>, %75, %cst_14 [1] : vector<8x64xf32> to vector<8xf32>
    %77 = vector.shape_cast %76 : vector<8xf32> to vector<8x1xf32>
    %78 = vector.broadcast %4 : f32 to vector<8x1xf32>
    %79 = arith.addf %77, %78 : vector<8x1xf32>
    %80 = arith.maximumf %67, %73 : vector<8x1xf32>
    %81 = arith.maximumf %80, %79 : vector<8x1xf32>
    %82 = arith.subf %67, %81 : vector<8x1xf32>
    %83 = math.exp %82 : vector<8x1xf32>
    %84 = arith.subf %73, %81 : vector<8x1xf32>
    %85 = math.exp %84 : vector<8x1xf32>
    %86 = arith.subf %79, %81 : vector<8x1xf32>
    %87 = math.exp %86 : vector<8x1xf32>
    %88 = arith.addf %83, %85 : vector<8x1xf32>
    %89 = arith.addf %88, %87 : vector<8x1xf32>
    %90 = tpu.reciprocal %89 {approx = true} : vector<8x1xf32> -> vector<8x1xf32>
    %91 = vector.extract_strided_slice %17 {offsets = [0, 448], sizes = [8, 64], strides = [1, 1]} : vector<24x576xf32> to vector<8x64xf32>
    %92 = vector.broadcast %83 : vector<8x1xf32> to vector<8x64xf32>
    %93 = arith.mulf %92, %91 : vector<8x64xf32>
    %94 = vector.extract_strided_slice %17 {offsets = [8, 448], sizes = [8, 64], strides = [1, 1]} : vector<24x576xf32> to vector<8x64xf32>
    %95 = vector.broadcast %85 : vector<8x1xf32> to vector<8x64xf32>
    %96 = arith.mulf %95, %94 : vector<8x64xf32>
    %97 = arith.addf %93, %96 : vector<8x64xf32>
    %98 = vector.extract_strided_slice %17 {offsets = [16, 448], sizes = [8, 64], strides = [1, 1]} : vector<24x576xf32> to vector<8x64xf32>
    %99 = vector.broadcast %87 : vector<8x1xf32> to vector<8x64xf32>
    %100 = arith.mulf %99, %98 : vector<8x64xf32>
    %101 = arith.addf %97, %100 : vector<8x64xf32>
    %102 = vector.broadcast %90 : vector<8x1xf32> to vector<8x64xf32>
    %103 = arith.mulf %101, %102 : vector<8x64xf32>
    %104 = vector.extract_strided_slice %17 {offsets = [0, 128], sizes = [8, 64], strides = [1, 1]} : vector<24x576xf32> to vector<8x64xf32>
    %105 = vector.extract_strided_slice %17 {offsets = [0, 320], sizes = [8, 64], strides = [1, 1]} : vector<24x576xf32> to vector<8x64xf32>
    %106 = arith.mulf %104, %105 : vector<8x64xf32>
    %cst_15 = arith.constant dense<0.000000e+00> : vector<8xf32>
    %107 = vector.multi_reduction <add>, %106, %cst_15 [1] : vector<8x64xf32> to vector<8xf32>
    %108 = vector.shape_cast %107 : vector<8xf32> to vector<8x1xf32>
    %109 = vector.broadcast %2 : f32 to vector<8x1xf32>
    %110 = arith.addf %108, %109 : vector<8x1xf32>
    %111 = vector.extract_strided_slice %17 {offsets = [8, 320], sizes = [8, 64], strides = [1, 1]} : vector<24x576xf32> to vector<8x64xf32>
    %112 = arith.mulf %104, %111 : vector<8x64xf32>
    %cst_16 = arith.constant dense<0.000000e+00> : vector<8xf32>
    %113 = vector.multi_reduction <add>, %112, %cst_16 [1] : vector<8x64xf32> to vector<8xf32>
    %114 = vector.shape_cast %113 : vector<8xf32> to vector<8x1xf32>
    %115 = vector.broadcast %3 : f32 to vector<8x1xf32>
    %116 = arith.addf %114, %115 : vector<8x1xf32>
    %117 = vector.extract_strided_slice %17 {offsets = [16, 320], sizes = [8, 64], strides = [1, 1]} : vector<24x576xf32> to vector<8x64xf32>
    %118 = arith.mulf %104, %117 : vector<8x64xf32>
    %cst_17 = arith.constant dense<0.000000e+00> : vector<8xf32>
    %119 = vector.multi_reduction <add>, %118, %cst_17 [1] : vector<8x64xf32> to vector<8xf32>
    %120 = vector.shape_cast %119 : vector<8xf32> to vector<8x1xf32>
    %121 = vector.broadcast %4 : f32 to vector<8x1xf32>
    %122 = arith.addf %120, %121 : vector<8x1xf32>
    %123 = arith.maximumf %110, %116 : vector<8x1xf32>
    %124 = arith.maximumf %123, %122 : vector<8x1xf32>
    %125 = arith.subf %110, %124 : vector<8x1xf32>
    %126 = math.exp %125 : vector<8x1xf32>
    %127 = arith.subf %116, %124 : vector<8x1xf32>
    %128 = math.exp %127 : vector<8x1xf32>
    %129 = arith.subf %122, %124 : vector<8x1xf32>
    %130 = math.exp %129 : vector<8x1xf32>
    %131 = arith.addf %126, %128 : vector<8x1xf32>
    %132 = arith.addf %131, %130 : vector<8x1xf32>
    %133 = tpu.reciprocal %132 {approx = true} : vector<8x1xf32> -> vector<8x1xf32>
    %134 = vector.extract_strided_slice %17 {offsets = [0, 512], sizes = [8, 64], strides = [1, 1]} : vector<24x576xf32> to vector<8x64xf32>
    %135 = vector.broadcast %126 : vector<8x1xf32> to vector<8x64xf32>
    %136 = arith.mulf %135, %134 : vector<8x64xf32>
    %137 = vector.extract_strided_slice %17 {offsets = [8, 512], sizes = [8, 64], strides = [1, 1]} : vector<24x576xf32> to vector<8x64xf32>
    %138 = vector.broadcast %128 : vector<8x1xf32> to vector<8x64xf32>
    %139 = arith.mulf %138, %137 : vector<8x64xf32>
    %140 = arith.addf %136, %139 : vector<8x64xf32>
    %141 = vector.extract_strided_slice %17 {offsets = [16, 512], sizes = [8, 64], strides = [1, 1]} : vector<24x576xf32> to vector<8x64xf32>
    %142 = vector.broadcast %130 : vector<8x1xf32> to vector<8x64xf32>
    %143 = arith.mulf %142, %141 : vector<8x64xf32>
    %144 = arith.addf %140, %143 : vector<8x64xf32>
    %145 = vector.broadcast %133 : vector<8x1xf32> to vector<8x64xf32>
    %146 = arith.mulf %144, %145 : vector<8x64xf32>
    %147 = tpu.concatenate %60, %103, %146 in 1 : vector<8x64xf32>, vector<8x64xf32>, vector<8x64xf32> -> vector<8x192xf32>
    %c0_18 = arith.constant 0 : index
    %c0_19 = arith.constant 0 : index
    %c0_20 = arith.constant 0 : index
    %148 = vector.load %arg4[%c0_18, %c0_19, %c0_20] : memref<3x192x64xf32, #tpu.memory_space<vmem>>, vector<1x192x64xf32>
    %149 = vector.shape_cast %148 : vector<1x192x64xf32> to vector<192x64xf32>
    %cst_21 = arith.constant dense<0.000000e+00> : vector<8x64xf32>
    %150 = tpu.matmul %147, %149, %cst_21 {dimension_numbers = #tpu.dot_dimension_numbers<[1], [0], [0], [1], [0, 0, 1, 1], [], []>} : vector<8x192xf32>, vector<192x64xf32>, vector<8x64xf32> -> vector<8x64xf32>
    %c0_22 = arith.constant 0 : index
    %c0_23 = arith.constant 0 : index
    %c0_24 = arith.constant 0 : index
    %151 = vector.load %arg5[%c0_22, %c0_23, %c0_24] : memref<3x1x64xf32, #tpu.memory_space<vmem>>, vector<1x1x64xf32>
    %152 = vector.shape_cast %151 : vector<1x1x64xf32> to vector<1x64xf32>
    %153 = vector.broadcast %152 : vector<1x64xf32> to vector<8x64xf32>
    %154 = arith.addf %150, %153 : vector<8x64xf32>
    %155 = vector.extract_strided_slice %17 {offsets = [8, 0], sizes = [8, 64], strides = [1, 1]} : vector<24x576xf32> to vector<8x64xf32>
    %156 = vector.extract_strided_slice %17 {offsets = [0, 192], sizes = [8, 64], strides = [1, 1]} : vector<24x576xf32> to vector<8x64xf32>
    %157 = arith.mulf %155, %156 : vector<8x64xf32>
    %cst_25 = arith.constant dense<0.000000e+00> : vector<8xf32>
    %158 = vector.multi_reduction <add>, %157, %cst_25 [1] : vector<8x64xf32> to vector<8xf32>
    %159 = vector.shape_cast %158 : vector<8xf32> to vector<8x1xf32>
    %160 = vector.broadcast %5 : f32 to vector<8x1xf32>
    %161 = arith.addf %159, %160 : vector<8x1xf32>
    %162 = vector.extract_strided_slice %17 {offsets = [8, 192], sizes = [8, 64], strides = [1, 1]} : vector<24x576xf32> to vector<8x64xf32>
    %163 = arith.mulf %155, %162 : vector<8x64xf32>
    %cst_26 = arith.constant dense<0.000000e+00> : vector<8xf32>
    %164 = vector.multi_reduction <add>, %163, %cst_26 [1] : vector<8x64xf32> to vector<8xf32>
    %165 = vector.shape_cast %164 : vector<8xf32> to vector<8x1xf32>
    %166 = vector.broadcast %6 : f32 to vector<8x1xf32>
    %167 = arith.addf %165, %166 : vector<8x1xf32>
    %168 = vector.extract_strided_slice %17 {offsets = [16, 192], sizes = [8, 64], strides = [1, 1]} : vector<24x576xf32> to vector<8x64xf32>
    %169 = arith.mulf %155, %168 : vector<8x64xf32>
    %cst_27 = arith.constant dense<0.000000e+00> : vector<8xf32>
    %170 = vector.multi_reduction <add>, %169, %cst_27 [1] : vector<8x64xf32> to vector<8xf32>
    %171 = vector.shape_cast %170 : vector<8xf32> to vector<8x1xf32>
    %172 = vector.broadcast %7 : f32 to vector<8x1xf32>
    %173 = arith.addf %171, %172 : vector<8x1xf32>
    %174 = arith.maximumf %161, %167 : vector<8x1xf32>
    %175 = arith.maximumf %174, %173 : vector<8x1xf32>
    %176 = arith.subf %161, %175 : vector<8x1xf32>
    %177 = math.exp %176 : vector<8x1xf32>
    %178 = arith.subf %167, %175 : vector<8x1xf32>
    %179 = math.exp %178 : vector<8x1xf32>
    %180 = arith.subf %173, %175 : vector<8x1xf32>
    %181 = math.exp %180 : vector<8x1xf32>
    %182 = arith.addf %177, %179 : vector<8x1xf32>
    %183 = arith.addf %182, %181 : vector<8x1xf32>
    %184 = tpu.reciprocal %183 {approx = true} : vector<8x1xf32> -> vector<8x1xf32>
    %185 = vector.extract_strided_slice %17 {offsets = [0, 384], sizes = [8, 64], strides = [1, 1]} : vector<24x576xf32> to vector<8x64xf32>
    %186 = vector.broadcast %177 : vector<8x1xf32> to vector<8x64xf32>
    %187 = arith.mulf %186, %185 : vector<8x64xf32>
    %188 = vector.extract_strided_slice %17 {offsets = [8, 384], sizes = [8, 64], strides = [1, 1]} : vector<24x576xf32> to vector<8x64xf32>
    %189 = vector.broadcast %179 : vector<8x1xf32> to vector<8x64xf32>
    %190 = arith.mulf %189, %188 : vector<8x64xf32>
    %191 = arith.addf %187, %190 : vector<8x64xf32>
    %192 = vector.extract_strided_slice %17 {offsets = [16, 384], sizes = [8, 64], strides = [1, 1]} : vector<24x576xf32> to vector<8x64xf32>
    %193 = vector.broadcast %181 : vector<8x1xf32> to vector<8x64xf32>
    %194 = arith.mulf %193, %192 : vector<8x64xf32>
    %195 = arith.addf %191, %194 : vector<8x64xf32>
    %196 = vector.broadcast %184 : vector<8x1xf32> to vector<8x64xf32>
    %197 = arith.mulf %195, %196 : vector<8x64xf32>
    %198 = vector.extract_strided_slice %17 {offsets = [8, 64], sizes = [8, 64], strides = [1, 1]} : vector<24x576xf32> to vector<8x64xf32>
    %199 = vector.extract_strided_slice %17 {offsets = [0, 256], sizes = [8, 64], strides = [1, 1]} : vector<24x576xf32> to vector<8x64xf32>
    %200 = arith.mulf %198, %199 : vector<8x64xf32>
    %cst_28 = arith.constant dense<0.000000e+00> : vector<8xf32>
    %201 = vector.multi_reduction <add>, %200, %cst_28 [1] : vector<8x64xf32> to vector<8xf32>
    %202 = vector.shape_cast %201 : vector<8xf32> to vector<8x1xf32>
    %203 = vector.broadcast %5 : f32 to vector<8x1xf32>
    %204 = arith.addf %202, %203 : vector<8x1xf32>
    %205 = vector.extract_strided_slice %17 {offsets = [8, 256], sizes = [8, 64], strides = [1, 1]} : vector<24x576xf32> to vector<8x64xf32>
    %206 = arith.mulf %198, %205 : vector<8x64xf32>
    %cst_29 = arith.constant dense<0.000000e+00> : vector<8xf32>
    %207 = vector.multi_reduction <add>, %206, %cst_29 [1] : vector<8x64xf32> to vector<8xf32>
    %208 = vector.shape_cast %207 : vector<8xf32> to vector<8x1xf32>
    %209 = vector.broadcast %6 : f32 to vector<8x1xf32>
    %210 = arith.addf %208, %209 : vector<8x1xf32>
    %211 = vector.extract_strided_slice %17 {offsets = [16, 256], sizes = [8, 64], strides = [1, 1]} : vector<24x576xf32> to vector<8x64xf32>
    %212 = arith.mulf %198, %211 : vector<8x64xf32>
    %cst_30 = arith.constant dense<0.000000e+00> : vector<8xf32>
    %213 = vector.multi_reduction <add>, %212, %cst_30 [1] : vector<8x64xf32> to vector<8xf32>
    %214 = vector.shape_cast %213 : vector<8xf32> to vector<8x1xf32>
    %215 = vector.broadcast %7 : f32 to vector<8x1xf32>
    %216 = arith.addf %214, %215 : vector<8x1xf32>
    %217 = arith.maximumf %204, %210 : vector<8x1xf32>
    %218 = arith.maximumf %217, %216 : vector<8x1xf32>
    %219 = arith.subf %204, %218 : vector<8x1xf32>
    %220 = math.exp %219 : vector<8x1xf32>
    %221 = arith.subf %210, %218 : vector<8x1xf32>
    %222 = math.exp %221 : vector<8x1xf32>
    %223 = arith.subf %216, %218 : vector<8x1xf32>
    %224 = math.exp %223 : vector<8x1xf32>
    %225 = arith.addf %220, %222 : vector<8x1xf32>
    %226 = arith.addf %225, %224 : vector<8x1xf32>
    %227 = tpu.reciprocal %226 {approx = true} : vector<8x1xf32> -> vector<8x1xf32>
    %228 = vector.extract_strided_slice %17 {offsets = [0, 448], sizes = [8, 64], strides = [1, 1]} : vector<24x576xf32> to vector<8x64xf32>
    %229 = vector.broadcast %220 : vector<8x1xf32> to vector<8x64xf32>
    %230 = arith.mulf %229, %228 : vector<8x64xf32>
    %231 = vector.extract_strided_slice %17 {offsets = [8, 448], sizes = [8, 64], strides = [1, 1]} : vector<24x576xf32> to vector<8x64xf32>
    %232 = vector.broadcast %222 : vector<8x1xf32> to vector<8x64xf32>
    %233 = arith.mulf %232, %231 : vector<8x64xf32>
    %234 = arith.addf %230, %233 : vector<8x64xf32>
    %235 = vector.extract_strided_slice %17 {offsets = [16, 448], sizes = [8, 64], strides = [1, 1]} : vector<24x576xf32> to vector<8x64xf32>
    %236 = vector.broadcast %224 : vector<8x1xf32> to vector<8x64xf32>
    %237 = arith.mulf %236, %235 : vector<8x64xf32>
    %238 = arith.addf %234, %237 : vector<8x64xf32>
    %239 = vector.broadcast %227 : vector<8x1xf32> to vector<8x64xf32>
    %240 = arith.mulf %238, %239 : vector<8x64xf32>
    %241 = vector.extract_strided_slice %17 {offsets = [8, 128], sizes = [8, 64], strides = [1, 1]} : vector<24x576xf32> to vector<8x64xf32>
    %242 = vector.extract_strided_slice %17 {offsets = [0, 320], sizes = [8, 64], strides = [1, 1]} : vector<24x576xf32> to vector<8x64xf32>
    %243 = arith.mulf %241, %242 : vector<8x64xf32>
    %cst_31 = arith.constant dense<0.000000e+00> : vector<8xf32>
    %244 = vector.multi_reduction <add>, %243, %cst_31 [1] : vector<8x64xf32> to vector<8xf32>
    %245 = vector.shape_cast %244 : vector<8xf32> to vector<8x1xf32>
    %246 = vector.broadcast %5 : f32 to vector<8x1xf32>
    %247 = arith.addf %245, %246 : vector<8x1xf32>
    %248 = vector.extract_strided_slice %17 {offsets = [8, 320], sizes = [8, 64], strides = [1, 1]} : vector<24x576xf32> to vector<8x64xf32>
    %249 = arith.mulf %241, %248 : vector<8x64xf32>
    %cst_32 = arith.constant dense<0.000000e+00> : vector<8xf32>
    %250 = vector.multi_reduction <add>, %249, %cst_32 [1] : vector<8x64xf32> to vector<8xf32>
    %251 = vector.shape_cast %250 : vector<8xf32> to vector<8x1xf32>
    %252 = vector.broadcast %6 : f32 to vector<8x1xf32>
    %253 = arith.addf %251, %252 : vector<8x1xf32>
    %254 = vector.extract_strided_slice %17 {offsets = [16, 320], sizes = [8, 64], strides = [1, 1]} : vector<24x576xf32> to vector<8x64xf32>
    %255 = arith.mulf %241, %254 : vector<8x64xf32>
    %cst_33 = arith.constant dense<0.000000e+00> : vector<8xf32>
    %256 = vector.multi_reduction <add>, %255, %cst_33 [1] : vector<8x64xf32> to vector<8xf32>
    %257 = vector.shape_cast %256 : vector<8xf32> to vector<8x1xf32>
    %258 = vector.broadcast %7 : f32 to vector<8x1xf32>
    %259 = arith.addf %257, %258 : vector<8x1xf32>
    %260 = arith.maximumf %247, %253 : vector<8x1xf32>
    %261 = arith.maximumf %260, %259 : vector<8x1xf32>
    %262 = arith.subf %247, %261 : vector<8x1xf32>
    %263 = math.exp %262 : vector<8x1xf32>
    %264 = arith.subf %253, %261 : vector<8x1xf32>
    %265 = math.exp %264 : vector<8x1xf32>
    %266 = arith.subf %259, %261 : vector<8x1xf32>
    %267 = math.exp %266 : vector<8x1xf32>
    %268 = arith.addf %263, %265 : vector<8x1xf32>
    %269 = arith.addf %268, %267 : vector<8x1xf32>
    %270 = tpu.reciprocal %269 {approx = true} : vector<8x1xf32> -> vector<8x1xf32>
    %271 = vector.extract_strided_slice %17 {offsets = [0, 512], sizes = [8, 64], strides = [1, 1]} : vector<24x576xf32> to vector<8x64xf32>
    %272 = vector.broadcast %263 : vector<8x1xf32> to vector<8x64xf32>
    %273 = arith.mulf %272, %271 : vector<8x64xf32>
    %274 = vector.extract_strided_slice %17 {offsets = [8, 512], sizes = [8, 64], strides = [1, 1]} : vector<24x576xf32> to vector<8x64xf32>
    %275 = vector.broadcast %265 : vector<8x1xf32> to vector<8x64xf32>
    %276 = arith.mulf %275, %274 : vector<8x64xf32>
    %277 = arith.addf %273, %276 : vector<8x64xf32>
    %278 = vector.extract_strided_slice %17 {offsets = [16, 512], sizes = [8, 64], strides = [1, 1]} : vector<24x576xf32> to vector<8x64xf32>
    %279 = vector.broadcast %267 : vector<8x1xf32> to vector<8x64xf32>
    %280 = arith.mulf %279, %278 : vector<8x64xf32>
    %281 = arith.addf %277, %280 : vector<8x64xf32>
    %282 = vector.broadcast %270 : vector<8x1xf32> to vector<8x64xf32>
    %283 = arith.mulf %281, %282 : vector<8x64xf32>
    %284 = tpu.concatenate %197, %240, %283 in 1 : vector<8x64xf32>, vector<8x64xf32>, vector<8x64xf32> -> vector<8x192xf32>
    %c0_34 = arith.constant 0 : index
    %c0_35 = arith.constant 0 : index
    %c0_36 = arith.constant 0 : index
    %285 = vector.load %arg4[%c0_34, %c0_35, %c0_36] : memref<3x192x64xf32, #tpu.memory_space<vmem>>, vector<1x192x64xf32>
    %286 = vector.shape_cast %285 : vector<1x192x64xf32> to vector<192x64xf32>
    %cst_37 = arith.constant dense<0.000000e+00> : vector<8x64xf32>
    %287 = tpu.matmul %284, %286, %cst_37 {dimension_numbers = #tpu.dot_dimension_numbers<[1], [0], [0], [1], [0, 0, 1, 1], [], []>} : vector<8x192xf32>, vector<192x64xf32>, vector<8x64xf32> -> vector<8x64xf32>
    %c0_38 = arith.constant 0 : index
    %c0_39 = arith.constant 0 : index
    %c0_40 = arith.constant 0 : index
    %288 = vector.load %arg5[%c0_38, %c0_39, %c0_40] : memref<3x1x64xf32, #tpu.memory_space<vmem>>, vector<1x1x64xf32>
    %289 = vector.shape_cast %288 : vector<1x1x64xf32> to vector<1x64xf32>
    %290 = vector.broadcast %289 : vector<1x64xf32> to vector<8x64xf32>
    %291 = arith.addf %287, %290 : vector<8x64xf32>
    %292 = vector.extract_strided_slice %17 {offsets = [16, 0], sizes = [8, 64], strides = [1, 1]} : vector<24x576xf32> to vector<8x64xf32>
    %293 = vector.extract_strided_slice %17 {offsets = [0, 192], sizes = [8, 64], strides = [1, 1]} : vector<24x576xf32> to vector<8x64xf32>
    %294 = arith.mulf %292, %293 : vector<8x64xf32>
    %cst_41 = arith.constant dense<0.000000e+00> : vector<8xf32>
    %295 = vector.multi_reduction <add>, %294, %cst_41 [1] : vector<8x64xf32> to vector<8xf32>
    %296 = vector.shape_cast %295 : vector<8xf32> to vector<8x1xf32>
    %297 = vector.broadcast %8 : f32 to vector<8x1xf32>
    %298 = arith.addf %296, %297 : vector<8x1xf32>
    %299 = vector.extract_strided_slice %17 {offsets = [8, 192], sizes = [8, 64], strides = [1, 1]} : vector<24x576xf32> to vector<8x64xf32>
    %300 = arith.mulf %292, %299 : vector<8x64xf32>
    %cst_42 = arith.constant dense<0.000000e+00> : vector<8xf32>
    %301 = vector.multi_reduction <add>, %300, %cst_42 [1] : vector<8x64xf32> to vector<8xf32>
    %302 = vector.shape_cast %301 : vector<8xf32> to vector<8x1xf32>
    %303 = vector.broadcast %9 : f32 to vector<8x1xf32>
    %304 = arith.addf %302, %303 : vector<8x1xf32>
    %305 = vector.extract_strided_slice %17 {offsets = [16, 192], sizes = [8, 64], strides = [1, 1]} : vector<24x576xf32> to vector<8x64xf32>
    %306 = arith.mulf %292, %305 : vector<8x64xf32>
    %cst_43 = arith.constant dense<0.000000e+00> : vector<8xf32>
    %307 = vector.multi_reduction <add>, %306, %cst_43 [1] : vector<8x64xf32> to vector<8xf32>
    %308 = vector.shape_cast %307 : vector<8xf32> to vector<8x1xf32>
    %309 = vector.broadcast %10 : f32 to vector<8x1xf32>
    %310 = arith.addf %308, %309 : vector<8x1xf32>
    %311 = arith.maximumf %298, %304 : vector<8x1xf32>
    %312 = arith.maximumf %311, %310 : vector<8x1xf32>
    %313 = arith.subf %298, %312 : vector<8x1xf32>
    %314 = math.exp %313 : vector<8x1xf32>
    %315 = arith.subf %304, %312 : vector<8x1xf32>
    %316 = math.exp %315 : vector<8x1xf32>
    %317 = arith.subf %310, %312 : vector<8x1xf32>
    %318 = math.exp %317 : vector<8x1xf32>
    %319 = arith.addf %314, %316 : vector<8x1xf32>
    %320 = arith.addf %319, %318 : vector<8x1xf32>
    %321 = tpu.reciprocal %320 {approx = true} : vector<8x1xf32> -> vector<8x1xf32>
    %322 = vector.extract_strided_slice %17 {offsets = [0, 384], sizes = [8, 64], strides = [1, 1]} : vector<24x576xf32> to vector<8x64xf32>
    %323 = vector.broadcast %314 : vector<8x1xf32> to vector<8x64xf32>
    %324 = arith.mulf %323, %322 : vector<8x64xf32>
    %325 = vector.extract_strided_slice %17 {offsets = [8, 384], sizes = [8, 64], strides = [1, 1]} : vector<24x576xf32> to vector<8x64xf32>
    %326 = vector.broadcast %316 : vector<8x1xf32> to vector<8x64xf32>
    %327 = arith.mulf %326, %325 : vector<8x64xf32>
    %328 = arith.addf %324, %327 : vector<8x64xf32>
    %329 = vector.extract_strided_slice %17 {offsets = [16, 384], sizes = [8, 64], strides = [1, 1]} : vector<24x576xf32> to vector<8x64xf32>
    %330 = vector.broadcast %318 : vector<8x1xf32> to vector<8x64xf32>
    %331 = arith.mulf %330, %329 : vector<8x64xf32>
    %332 = arith.addf %328, %331 : vector<8x64xf32>
    %333 = vector.broadcast %321 : vector<8x1xf32> to vector<8x64xf32>
    %334 = arith.mulf %332, %333 : vector<8x64xf32>
    %335 = vector.extract_strided_slice %17 {offsets = [16, 64], sizes = [8, 64], strides = [1, 1]} : vector<24x576xf32> to vector<8x64xf32>
    %336 = vector.extract_strided_slice %17 {offsets = [0, 256], sizes = [8, 64], strides = [1, 1]} : vector<24x576xf32> to vector<8x64xf32>
    %337 = arith.mulf %335, %336 : vector<8x64xf32>
    %cst_44 = arith.constant dense<0.000000e+00> : vector<8xf32>
    %338 = vector.multi_reduction <add>, %337, %cst_44 [1] : vector<8x64xf32> to vector<8xf32>
    %339 = vector.shape_cast %338 : vector<8xf32> to vector<8x1xf32>
    %340 = vector.broadcast %8 : f32 to vector<8x1xf32>
    %341 = arith.addf %339, %340 : vector<8x1xf32>
    %342 = vector.extract_strided_slice %17 {offsets = [8, 256], sizes = [8, 64], strides = [1, 1]} : vector<24x576xf32> to vector<8x64xf32>
    %343 = arith.mulf %335, %342 : vector<8x64xf32>
    %cst_45 = arith.constant dense<0.000000e+00> : vector<8xf32>
    %344 = vector.multi_reduction <add>, %343, %cst_45 [1] : vector<8x64xf32> to vector<8xf32>
    %345 = vector.shape_cast %344 : vector<8xf32> to vector<8x1xf32>
    %346 = vector.broadcast %9 : f32 to vector<8x1xf32>
    %347 = arith.addf %345, %346 : vector<8x1xf32>
    %348 = vector.extract_strided_slice %17 {offsets = [16, 256], sizes = [8, 64], strides = [1, 1]} : vector<24x576xf32> to vector<8x64xf32>
    %349 = arith.mulf %335, %348 : vector<8x64xf32>
    %cst_46 = arith.constant dense<0.000000e+00> : vector<8xf32>
    %350 = vector.multi_reduction <add>, %349, %cst_46 [1] : vector<8x64xf32> to vector<8xf32>
    %351 = vector.shape_cast %350 : vector<8xf32> to vector<8x1xf32>
    %352 = vector.broadcast %10 : f32 to vector<8x1xf32>
    %353 = arith.addf %351, %352 : vector<8x1xf32>
    %354 = arith.maximumf %341, %347 : vector<8x1xf32>
    %355 = arith.maximumf %354, %353 : vector<8x1xf32>
    %356 = arith.subf %341, %355 : vector<8x1xf32>
    %357 = math.exp %356 : vector<8x1xf32>
    %358 = arith.subf %347, %355 : vector<8x1xf32>
    %359 = math.exp %358 : vector<8x1xf32>
    %360 = arith.subf %353, %355 : vector<8x1xf32>
    %361 = math.exp %360 : vector<8x1xf32>
    %362 = arith.addf %357, %359 : vector<8x1xf32>
    %363 = arith.addf %362, %361 : vector<8x1xf32>
    %364 = tpu.reciprocal %363 {approx = true} : vector<8x1xf32> -> vector<8x1xf32>
    %365 = vector.extract_strided_slice %17 {offsets = [0, 448], sizes = [8, 64], strides = [1, 1]} : vector<24x576xf32> to vector<8x64xf32>
    %366 = vector.broadcast %357 : vector<8x1xf32> to vector<8x64xf32>
    %367 = arith.mulf %366, %365 : vector<8x64xf32>
    %368 = vector.extract_strided_slice %17 {offsets = [8, 448], sizes = [8, 64], strides = [1, 1]} : vector<24x576xf32> to vector<8x64xf32>
    %369 = vector.broadcast %359 : vector<8x1xf32> to vector<8x64xf32>
    %370 = arith.mulf %369, %368 : vector<8x64xf32>
    %371 = arith.addf %367, %370 : vector<8x64xf32>
    %372 = vector.extract_strided_slice %17 {offsets = [16, 448], sizes = [8, 64], strides = [1, 1]} : vector<24x576xf32> to vector<8x64xf32>
    %373 = vector.broadcast %361 : vector<8x1xf32> to vector<8x64xf32>
    %374 = arith.mulf %373, %372 : vector<8x64xf32>
    %375 = arith.addf %371, %374 : vector<8x64xf32>
    %376 = vector.broadcast %364 : vector<8x1xf32> to vector<8x64xf32>
    %377 = arith.mulf %375, %376 : vector<8x64xf32>
    %378 = vector.extract_strided_slice %17 {offsets = [16, 128], sizes = [8, 64], strides = [1, 1]} : vector<24x576xf32> to vector<8x64xf32>
    %379 = vector.extract_strided_slice %17 {offsets = [0, 320], sizes = [8, 64], strides = [1, 1]} : vector<24x576xf32> to vector<8x64xf32>
    %380 = arith.mulf %378, %379 : vector<8x64xf32>
    %cst_47 = arith.constant dense<0.000000e+00> : vector<8xf32>
    %381 = vector.multi_reduction <add>, %380, %cst_47 [1] : vector<8x64xf32> to vector<8xf32>
    %382 = vector.shape_cast %381 : vector<8xf32> to vector<8x1xf32>
    %383 = vector.broadcast %8 : f32 to vector<8x1xf32>
    %384 = arith.addf %382, %383 : vector<8x1xf32>
    %385 = vector.extract_strided_slice %17 {offsets = [8, 320], sizes = [8, 64], strides = [1, 1]} : vector<24x576xf32> to vector<8x64xf32>
    %386 = arith.mulf %378, %385 : vector<8x64xf32>
    %cst_48 = arith.constant dense<0.000000e+00> : vector<8xf32>
    %387 = vector.multi_reduction <add>, %386, %cst_48 [1] : vector<8x64xf32> to vector<8xf32>
    %388 = vector.shape_cast %387 : vector<8xf32> to vector<8x1xf32>
    %389 = vector.broadcast %9 : f32 to vector<8x1xf32>
    %390 = arith.addf %388, %389 : vector<8x1xf32>
    %391 = vector.extract_strided_slice %17 {offsets = [16, 320], sizes = [8, 64], strides = [1, 1]} : vector<24x576xf32> to vector<8x64xf32>
    %392 = arith.mulf %378, %391 : vector<8x64xf32>
    %cst_49 = arith.constant dense<0.000000e+00> : vector<8xf32>
    %393 = vector.multi_reduction <add>, %392, %cst_49 [1] : vector<8x64xf32> to vector<8xf32>
    %394 = vector.shape_cast %393 : vector<8xf32> to vector<8x1xf32>
    %395 = vector.broadcast %10 : f32 to vector<8x1xf32>
    %396 = arith.addf %394, %395 : vector<8x1xf32>
    %397 = arith.maximumf %384, %390 : vector<8x1xf32>
    %398 = arith.maximumf %397, %396 : vector<8x1xf32>
    %399 = arith.subf %384, %398 : vector<8x1xf32>
    %400 = math.exp %399 : vector<8x1xf32>
    %401 = arith.subf %390, %398 : vector<8x1xf32>
    %402 = math.exp %401 : vector<8x1xf32>
    %403 = arith.subf %396, %398 : vector<8x1xf32>
    %404 = math.exp %403 : vector<8x1xf32>
    %405 = arith.addf %400, %402 : vector<8x1xf32>
    %406 = arith.addf %405, %404 : vector<8x1xf32>
    %407 = tpu.reciprocal %406 {approx = true} : vector<8x1xf32> -> vector<8x1xf32>
    %408 = vector.extract_strided_slice %17 {offsets = [0, 512], sizes = [8, 64], strides = [1, 1]} : vector<24x576xf32> to vector<8x64xf32>
    %409 = vector.broadcast %400 : vector<8x1xf32> to vector<8x64xf32>
    %410 = arith.mulf %409, %408 : vector<8x64xf32>
    %411 = vector.extract_strided_slice %17 {offsets = [8, 512], sizes = [8, 64], strides = [1, 1]} : vector<24x576xf32> to vector<8x64xf32>
    %412 = vector.broadcast %402 : vector<8x1xf32> to vector<8x64xf32>
    %413 = arith.mulf %412, %411 : vector<8x64xf32>
    %414 = arith.addf %410, %413 : vector<8x64xf32>
    %415 = vector.extract_strided_slice %17 {offsets = [16, 512], sizes = [8, 64], strides = [1, 1]} : vector<24x576xf32> to vector<8x64xf32>
    %416 = vector.broadcast %404 : vector<8x1xf32> to vector<8x64xf32>
    %417 = arith.mulf %416, %415 : vector<8x64xf32>
    %418 = arith.addf %414, %417 : vector<8x64xf32>
    %419 = vector.broadcast %407 : vector<8x1xf32> to vector<8x64xf32>
    %420 = arith.mulf %418, %419 : vector<8x64xf32>
    %421 = tpu.concatenate %334, %377, %420 in 1 : vector<8x64xf32>, vector<8x64xf32>, vector<8x64xf32> -> vector<8x192xf32>
    %c0_50 = arith.constant 0 : index
    %c0_51 = arith.constant 0 : index
    %c0_52 = arith.constant 0 : index
    %422 = vector.load %arg4[%c0_50, %c0_51, %c0_52] : memref<3x192x64xf32, #tpu.memory_space<vmem>>, vector<1x192x64xf32>
    %423 = vector.shape_cast %422 : vector<1x192x64xf32> to vector<192x64xf32>
    %cst_53 = arith.constant dense<0.000000e+00> : vector<8x64xf32>
    %424 = tpu.matmul %421, %423, %cst_53 {dimension_numbers = #tpu.dot_dimension_numbers<[1], [0], [0], [1], [0, 0, 1, 1], [], []>} : vector<8x192xf32>, vector<192x64xf32>, vector<8x64xf32> -> vector<8x64xf32>
    %c0_54 = arith.constant 0 : index
    %c0_55 = arith.constant 0 : index
    %c0_56 = arith.constant 0 : index
    %425 = vector.load %arg5[%c0_54, %c0_55, %c0_56] : memref<3x1x64xf32, #tpu.memory_space<vmem>>, vector<1x1x64xf32>
    %426 = vector.shape_cast %425 : vector<1x1x64xf32> to vector<1x64xf32>
    %427 = vector.broadcast %426 : vector<1x64xf32> to vector<8x64xf32>
    %428 = arith.addf %424, %427 : vector<8x64xf32>
    %429 = vector.extract_strided_slice %1 {offsets = [0, 0], sizes = [8, 64], strides = [1, 1]} : vector<24x64xf32> to vector<8x64xf32>
    %430 = arith.addf %154, %429 : vector<8x64xf32>
    %431 = vector.extract_strided_slice %1 {offsets = [8, 0], sizes = [8, 64], strides = [1, 1]} : vector<24x64xf32> to vector<8x64xf32>
    %432 = arith.addf %291, %431 : vector<8x64xf32>
    %433 = vector.extract_strided_slice %1 {offsets = [16, 0], sizes = [8, 64], strides = [1, 1]} : vector<24x64xf32> to vector<8x64xf32>
    %434 = arith.addf %428, %433 : vector<8x64xf32>
    %cst_57 = arith.constant dense<0.000000e+00> : vector<8xf32>
    %435 = vector.multi_reduction <add>, %430, %cst_57 [1] : vector<8x64xf32> to vector<8xf32>
    %436 = vector.shape_cast %435 : vector<8xf32> to vector<8x1xf32>
    %cst_58 = arith.constant dense<0.000000e+00> : vector<8xf32>
    %437 = vector.multi_reduction <add>, %432, %cst_58 [1] : vector<8x64xf32> to vector<8xf32>
    %438 = vector.shape_cast %437 : vector<8xf32> to vector<8x1xf32>
    %439 = arith.addf %436, %438 : vector<8x1xf32>
    %cst_59 = arith.constant dense<0.000000e+00> : vector<8xf32>
    %440 = vector.multi_reduction <add>, %434, %cst_59 [1] : vector<8x64xf32> to vector<8xf32>
    %441 = vector.shape_cast %440 : vector<8xf32> to vector<8x1xf32>
    %442 = arith.addf %439, %441 : vector<8x1xf32>
    %cst_60 = arith.constant 0.00520833349 : f32
    %443 = vector.broadcast %cst_60 : f32 to vector<8x1xf32>
    %444 = arith.mulf %442, %443 : vector<8x1xf32>
    %445 = vector.broadcast %444 : vector<8x1xf32> to vector<8x64xf32>
    %446 = arith.subf %430, %445 : vector<8x64xf32>
    %447 = vector.broadcast %444 : vector<8x1xf32> to vector<8x64xf32>
    %448 = arith.subf %432, %447 : vector<8x64xf32>
    %449 = vector.broadcast %444 : vector<8x1xf32> to vector<8x64xf32>
    %450 = arith.subf %434, %449 : vector<8x64xf32>
    %451 = arith.mulf %446, %446 : vector<8x64xf32>
    %cst_61 = arith.constant dense<0.000000e+00> : vector<8xf32>
    %452 = vector.multi_reduction <add>, %451, %cst_61 [1] : vector<8x64xf32> to vector<8xf32>
    %453 = vector.shape_cast %452 : vector<8xf32> to vector<8x1xf32>
    %454 = arith.mulf %448, %448 : vector<8x64xf32>
    %cst_62 = arith.constant dense<0.000000e+00> : vector<8xf32>
    %455 = vector.multi_reduction <add>, %454, %cst_62 [1] : vector<8x64xf32> to vector<8xf32>
    %456 = vector.shape_cast %455 : vector<8xf32> to vector<8x1xf32>
    %457 = arith.addf %453, %456 : vector<8x1xf32>
    %458 = arith.mulf %450, %450 : vector<8x64xf32>
    %cst_63 = arith.constant dense<0.000000e+00> : vector<8xf32>
    %459 = vector.multi_reduction <add>, %458, %cst_63 [1] : vector<8x64xf32> to vector<8xf32>
    %460 = vector.shape_cast %459 : vector<8xf32> to vector<8x1xf32>
    %461 = arith.addf %457, %460 : vector<8x1xf32>
    %cst_64 = arith.constant 0.00520833349 : f32
    %462 = vector.broadcast %cst_64 : f32 to vector<8x1xf32>
    %463 = arith.mulf %461, %462 : vector<8x1xf32>
    %cst_65 = arith.constant 9.99999974E-6 : f32
    %464 = vector.broadcast %cst_65 : f32 to vector<8x1xf32>
    %465 = arith.addf %463, %464 : vector<8x1xf32>
    %466 = math.rsqrt %465 : vector<8x1xf32>
    %467 = vector.broadcast %466 : vector<8x1xf32> to vector<8x64xf32>
    %468 = arith.mulf %446, %467 : vector<8x64xf32>
    %c0_66 = arith.constant 0 : index
    %c0_67 = arith.constant 0 : index
    %c0_68 = arith.constant 0 : index
    %c0_69 = arith.constant 0 : index
    %469 = vector.load %arg7[%c0_66, %c0_67, %c0_68, %c0_69] : memref<3x3x1x64xf32, #tpu.memory_space<vmem>>, vector<1x1x1x64xf32>
    %470 = vector.shape_cast %469 : vector<1x1x1x64xf32> to vector<1x64xf32>
    %471 = vector.broadcast %470 : vector<1x64xf32> to vector<8x64xf32>
    %472 = arith.mulf %468, %471 : vector<8x64xf32>
    %c0_70 = arith.constant 0 : index
    %c0_71 = arith.constant 0 : index
    %c0_72 = arith.constant 0 : index
    %c0_73 = arith.constant 0 : index
    %473 = vector.load %arg8[%c0_70, %c0_71, %c0_72, %c0_73] : memref<3x3x1x64xf32, #tpu.memory_space<vmem>>, vector<1x1x1x64xf32>
    %474 = vector.shape_cast %473 : vector<1x1x1x64xf32> to vector<1x64xf32>
    %475 = vector.broadcast %474 : vector<1x64xf32> to vector<8x64xf32>
    %476 = arith.addf %472, %475 : vector<8x64xf32>
    %477 = vector.broadcast %466 : vector<8x1xf32> to vector<8x64xf32>
    %478 = arith.mulf %448, %477 : vector<8x64xf32>
    %c0_74 = arith.constant 0 : index
    %c1_75 = arith.constant 1 : index
    %c0_76 = arith.constant 0 : index
    %c0_77 = arith.constant 0 : index
    %479 = vector.load %arg7[%c0_74, %c1_75, %c0_76, %c0_77] : memref<3x3x1x64xf32, #tpu.memory_space<vmem>>, vector<1x1x1x64xf32>
    %480 = vector.shape_cast %479 : vector<1x1x1x64xf32> to vector<1x64xf32>
    %481 = vector.broadcast %480 : vector<1x64xf32> to vector<8x64xf32>
    %482 = arith.mulf %478, %481 : vector<8x64xf32>
    %c0_78 = arith.constant 0 : index
    %c1_79 = arith.constant 1 : index
    %c0_80 = arith.constant 0 : index
    %c0_81 = arith.constant 0 : index
    %483 = vector.load %arg8[%c0_78, %c1_79, %c0_80, %c0_81] : memref<3x3x1x64xf32, #tpu.memory_space<vmem>>, vector<1x1x1x64xf32>
    %484 = vector.shape_cast %483 : vector<1x1x1x64xf32> to vector<1x64xf32>
    %485 = vector.broadcast %484 : vector<1x64xf32> to vector<8x64xf32>
    %486 = arith.addf %482, %485 : vector<8x64xf32>
    %487 = vector.broadcast %466 : vector<8x1xf32> to vector<8x64xf32>
    %488 = arith.mulf %450, %487 : vector<8x64xf32>
    %c0_82 = arith.constant 0 : index
    %c2_83 = arith.constant 2 : index
    %c0_84 = arith.constant 0 : index
    %c0_85 = arith.constant 0 : index
    %489 = vector.load %arg7[%c0_82, %c2_83, %c0_84, %c0_85] : memref<3x3x1x64xf32, #tpu.memory_space<vmem>>, vector<1x1x1x64xf32>
    %490 = vector.shape_cast %489 : vector<1x1x1x64xf32> to vector<1x64xf32>
    %491 = vector.broadcast %490 : vector<1x64xf32> to vector<8x64xf32>
    %492 = arith.mulf %488, %491 : vector<8x64xf32>
    %c0_86 = arith.constant 0 : index
    %c2_87 = arith.constant 2 : index
    %c0_88 = arith.constant 0 : index
    %c0_89 = arith.constant 0 : index
    %493 = vector.load %arg8[%c0_86, %c2_87, %c0_88, %c0_89] : memref<3x3x1x64xf32, #tpu.memory_space<vmem>>, vector<1x1x1x64xf32>
    %494 = vector.shape_cast %493 : vector<1x1x1x64xf32> to vector<1x64xf32>
    %495 = vector.broadcast %494 : vector<1x64xf32> to vector<8x64xf32>
    %496 = arith.addf %492, %495 : vector<8x64xf32>
    %497 = tpu.concatenate %476, %486, %496 in 0 : vector<8x64xf32>, vector<8x64xf32>, vector<8x64xf32> -> vector<24x64xf32>
    %c9 = arith.constant 9 : index
    %498 = memref.load %arg6[%c9] : memref<27xf32, #tpu.memory_space<smem>>
    %c10 = arith.constant 10 : index
    %499 = memref.load %arg6[%c10] : memref<27xf32, #tpu.memory_space<smem>>
    %c11 = arith.constant 11 : index
    %500 = memref.load %arg6[%c11] : memref<27xf32, #tpu.memory_space<smem>>
    %c12 = arith.constant 12 : index
    %501 = memref.load %arg6[%c12] : memref<27xf32, #tpu.memory_space<smem>>
    %c13 = arith.constant 13 : index
    %502 = memref.load %arg6[%c13] : memref<27xf32, #tpu.memory_space<smem>>
    %c14 = arith.constant 14 : index
    %503 = memref.load %arg6[%c14] : memref<27xf32, #tpu.memory_space<smem>>
    %c15 = arith.constant 15 : index
    %504 = memref.load %arg6[%c15] : memref<27xf32, #tpu.memory_space<smem>>
    %c16 = arith.constant 16 : index
    %505 = memref.load %arg6[%c16] : memref<27xf32, #tpu.memory_space<smem>>
    %c17 = arith.constant 17 : index
    %506 = memref.load %arg6[%c17] : memref<27xf32, #tpu.memory_space<smem>>
    %c1_90 = arith.constant 1 : index
    %c0_91 = arith.constant 0 : index
    %c0_92 = arith.constant 0 : index
    %507 = vector.load %arg2[%c1_90, %c0_91, %c0_92] : memref<3x64x576xf32, #tpu.memory_space<vmem>>, vector<1x64x576xf32>
    %508 = vector.shape_cast %507 : vector<1x64x576xf32> to vector<64x576xf32>
    %cst_93 = arith.constant dense<0.000000e+00> : vector<24x576xf32>
    %509 = tpu.matmul %497, %508, %cst_93 {dimension_numbers = #tpu.dot_dimension_numbers<[1], [0], [0], [1], [0, 0, 1, 1], [], []>} : vector<24x64xf32>, vector<64x576xf32>, vector<24x576xf32> -> vector<24x576xf32>
    %c1_94 = arith.constant 1 : index
    %c0_95 = arith.constant 0 : index
    %c0_96 = arith.constant 0 : index
    %510 = vector.load %arg3[%c1_94, %c0_95, %c0_96] : memref<3x1x576xf32, #tpu.memory_space<vmem>>, vector<1x1x576xf32>
    %511 = vector.shape_cast %510 : vector<1x1x576xf32> to vector<1x576xf32>
    %512 = vector.broadcast %511 : vector<1x576xf32> to vector<24x576xf32>
    %513 = arith.addf %509, %512 : vector<24x576xf32>
    %514 = vector.extract_strided_slice %513 {offsets = [0, 0], sizes = [8, 64], strides = [1, 1]} : vector<24x576xf32> to vector<8x64xf32>
    %515 = vector.extract_strided_slice %513 {offsets = [0, 192], sizes = [8, 64], strides = [1, 1]} : vector<24x576xf32> to vector<8x64xf32>
    %516 = arith.mulf %514, %515 : vector<8x64xf32>
    %cst_97 = arith.constant dense<0.000000e+00> : vector<8xf32>
    %517 = vector.multi_reduction <add>, %516, %cst_97 [1] : vector<8x64xf32> to vector<8xf32>
    %518 = vector.shape_cast %517 : vector<8xf32> to vector<8x1xf32>
    %519 = vector.broadcast %498 : f32 to vector<8x1xf32>
    %520 = arith.addf %518, %519 : vector<8x1xf32>
    %521 = vector.extract_strided_slice %513 {offsets = [8, 192], sizes = [8, 64], strides = [1, 1]} : vector<24x576xf32> to vector<8x64xf32>
    %522 = arith.mulf %514, %521 : vector<8x64xf32>
    %cst_98 = arith.constant dense<0.000000e+00> : vector<8xf32>
    %523 = vector.multi_reduction <add>, %522, %cst_98 [1] : vector<8x64xf32> to vector<8xf32>
    %524 = vector.shape_cast %523 : vector<8xf32> to vector<8x1xf32>
    %525 = vector.broadcast %499 : f32 to vector<8x1xf32>
    %526 = arith.addf %524, %525 : vector<8x1xf32>
    %527 = vector.extract_strided_slice %513 {offsets = [16, 192], sizes = [8, 64], strides = [1, 1]} : vector<24x576xf32> to vector<8x64xf32>
    %528 = arith.mulf %514, %527 : vector<8x64xf32>
    %cst_99 = arith.constant dense<0.000000e+00> : vector<8xf32>
    %529 = vector.multi_reduction <add>, %528, %cst_99 [1] : vector<8x64xf32> to vector<8xf32>
    %530 = vector.shape_cast %529 : vector<8xf32> to vector<8x1xf32>
    %531 = vector.broadcast %500 : f32 to vector<8x1xf32>
    %532 = arith.addf %530, %531 : vector<8x1xf32>
    %533 = arith.maximumf %520, %526 : vector<8x1xf32>
    %534 = arith.maximumf %533, %532 : vector<8x1xf32>
    %535 = arith.subf %520, %534 : vector<8x1xf32>
    %536 = math.exp %535 : vector<8x1xf32>
    %537 = arith.subf %526, %534 : vector<8x1xf32>
    %538 = math.exp %537 : vector<8x1xf32>
    %539 = arith.subf %532, %534 : vector<8x1xf32>
    %540 = math.exp %539 : vector<8x1xf32>
    %541 = arith.addf %536, %538 : vector<8x1xf32>
    %542 = arith.addf %541, %540 : vector<8x1xf32>
    %543 = tpu.reciprocal %542 {approx = true} : vector<8x1xf32> -> vector<8x1xf32>
    %544 = vector.extract_strided_slice %513 {offsets = [0, 384], sizes = [8, 64], strides = [1, 1]} : vector<24x576xf32> to vector<8x64xf32>
    %545 = vector.broadcast %536 : vector<8x1xf32> to vector<8x64xf32>
    %546 = arith.mulf %545, %544 : vector<8x64xf32>
    %547 = vector.extract_strided_slice %513 {offsets = [8, 384], sizes = [8, 64], strides = [1, 1]} : vector<24x576xf32> to vector<8x64xf32>
    %548 = vector.broadcast %538 : vector<8x1xf32> to vector<8x64xf32>
    %549 = arith.mulf %548, %547 : vector<8x64xf32>
    %550 = arith.addf %546, %549 : vector<8x64xf32>
    %551 = vector.extract_strided_slice %513 {offsets = [16, 384], sizes = [8, 64], strides = [1, 1]} : vector<24x576xf32> to vector<8x64xf32>
    %552 = vector.broadcast %540 : vector<8x1xf32> to vector<8x64xf32>
    %553 = arith.mulf %552, %551 : vector<8x64xf32>
    %554 = arith.addf %550, %553 : vector<8x64xf32>
    %555 = vector.broadcast %543 : vector<8x1xf32> to vector<8x64xf32>
    %556 = arith.mulf %554, %555 : vector<8x64xf32>
    %557 = vector.extract_strided_slice %513 {offsets = [0, 64], sizes = [8, 64], strides = [1, 1]} : vector<24x576xf32> to vector<8x64xf32>
    %558 = vector.extract_strided_slice %513 {offsets = [0, 256], sizes = [8, 64], strides = [1, 1]} : vector<24x576xf32> to vector<8x64xf32>
    %559 = arith.mulf %557, %558 : vector<8x64xf32>
    %cst_100 = arith.constant dense<0.000000e+00> : vector<8xf32>
    %560 = vector.multi_reduction <add>, %559, %cst_100 [1] : vector<8x64xf32> to vector<8xf32>
    %561 = vector.shape_cast %560 : vector<8xf32> to vector<8x1xf32>
    %562 = vector.broadcast %498 : f32 to vector<8x1xf32>
    %563 = arith.addf %561, %562 : vector<8x1xf32>
    %564 = vector.extract_strided_slice %513 {offsets = [8, 256], sizes = [8, 64], strides = [1, 1]} : vector<24x576xf32> to vector<8x64xf32>
    %565 = arith.mulf %557, %564 : vector<8x64xf32>
    %cst_101 = arith.constant dense<0.000000e+00> : vector<8xf32>
    %566 = vector.multi_reduction <add>, %565, %cst_101 [1] : vector<8x64xf32> to vector<8xf32>
    %567 = vector.shape_cast %566 : vector<8xf32> to vector<8x1xf32>
    %568 = vector.broadcast %499 : f32 to vector<8x1xf32>
    %569 = arith.addf %567, %568 : vector<8x1xf32>
    %570 = vector.extract_strided_slice %513 {offsets = [16, 256], sizes = [8, 64], strides = [1, 1]} : vector<24x576xf32> to vector<8x64xf32>
    %571 = arith.mulf %557, %570 : vector<8x64xf32>
    %cst_102 = arith.constant dense<0.000000e+00> : vector<8xf32>
    %572 = vector.multi_reduction <add>, %571, %cst_102 [1] : vector<8x64xf32> to vector<8xf32>
    %573 = vector.shape_cast %572 : vector<8xf32> to vector<8x1xf32>
    %574 = vector.broadcast %500 : f32 to vector<8x1xf32>
    %575 = arith.addf %573, %574 : vector<8x1xf32>
    %576 = arith.maximumf %563, %569 : vector<8x1xf32>
    %577 = arith.maximumf %576, %575 : vector<8x1xf32>
    %578 = arith.subf %563, %577 : vector<8x1xf32>
    %579 = math.exp %578 : vector<8x1xf32>
    %580 = arith.subf %569, %577 : vector<8x1xf32>
    %581 = math.exp %580 : vector<8x1xf32>
    %582 = arith.subf %575, %577 : vector<8x1xf32>
    %583 = math.exp %582 : vector<8x1xf32>
    %584 = arith.addf %579, %581 : vector<8x1xf32>
    %585 = arith.addf %584, %583 : vector<8x1xf32>
    %586 = tpu.reciprocal %585 {approx = true} : vector<8x1xf32> -> vector<8x1xf32>
    %587 = vector.extract_strided_slice %513 {offsets = [0, 448], sizes = [8, 64], strides = [1, 1]} : vector<24x576xf32> to vector<8x64xf32>
    %588 = vector.broadcast %579 : vector<8x1xf32> to vector<8x64xf32>
    %589 = arith.mulf %588, %587 : vector<8x64xf32>
    %590 = vector.extract_strided_slice %513 {offsets = [8, 448], sizes = [8, 64], strides = [1, 1]} : vector<24x576xf32> to vector<8x64xf32>
    %591 = vector.broadcast %581 : vector<8x1xf32> to vector<8x64xf32>
    %592 = arith.mulf %591, %590 : vector<8x64xf32>
    %593 = arith.addf %589, %592 : vector<8x64xf32>
    %594 = vector.extract_strided_slice %513 {offsets = [16, 448], sizes = [8, 64], strides = [1, 1]} : vector<24x576xf32> to vector<8x64xf32>
    %595 = vector.broadcast %583 : vector<8x1xf32> to vector<8x64xf32>
    %596 = arith.mulf %595, %594 : vector<8x64xf32>
    %597 = arith.addf %593, %596 : vector<8x64xf32>
    %598 = vector.broadcast %586 : vector<8x1xf32> to vector<8x64xf32>
    %599 = arith.mulf %597, %598 : vector<8x64xf32>
    %600 = vector.extract_strided_slice %513 {offsets = [0, 128], sizes = [8, 64], strides = [1, 1]} : vector<24x576xf32> to vector<8x64xf32>
    %601 = vector.extract_strided_slice %513 {offsets = [0, 320], sizes = [8, 64], strides = [1, 1]} : vector<24x576xf32> to vector<8x64xf32>
    %602 = arith.mulf %600, %601 : vector<8x64xf32>
    %cst_103 = arith.constant dense<0.000000e+00> : vector<8xf32>
    %603 = vector.multi_reduction <add>, %602, %cst_103 [1] : vector<8x64xf32> to vector<8xf32>
    %604 = vector.shape_cast %603 : vector<8xf32> to vector<8x1xf32>
    %605 = vector.broadcast %498 : f32 to vector<8x1xf32>
    %606 = arith.addf %604, %605 : vector<8x1xf32>
    %607 = vector.extract_strided_slice %513 {offsets = [8, 320], sizes = [8, 64], strides = [1, 1]} : vector<24x576xf32> to vector<8x64xf32>
    %608 = arith.mulf %600, %607 : vector<8x64xf32>
    %cst_104 = arith.constant dense<0.000000e+00> : vector<8xf32>
    %609 = vector.multi_reduction <add>, %608, %cst_104 [1] : vector<8x64xf32> to vector<8xf32>
    %610 = vector.shape_cast %609 : vector<8xf32> to vector<8x1xf32>
    %611 = vector.broadcast %499 : f32 to vector<8x1xf32>
    %612 = arith.addf %610, %611 : vector<8x1xf32>
    %613 = vector.extract_strided_slice %513 {offsets = [16, 320], sizes = [8, 64], strides = [1, 1]} : vector<24x576xf32> to vector<8x64xf32>
    %614 = arith.mulf %600, %613 : vector<8x64xf32>
    %cst_105 = arith.constant dense<0.000000e+00> : vector<8xf32>
    %615 = vector.multi_reduction <add>, %614, %cst_105 [1] : vector<8x64xf32> to vector<8xf32>
    %616 = vector.shape_cast %615 : vector<8xf32> to vector<8x1xf32>
    %617 = vector.broadcast %500 : f32 to vector<8x1xf32>
    %618 = arith.addf %616, %617 : vector<8x1xf32>
    %619 = arith.maximumf %606, %612 : vector<8x1xf32>
    %620 = arith.maximumf %619, %618 : vector<8x1xf32>
    %621 = arith.subf %606, %620 : vector<8x1xf32>
    %622 = math.exp %621 : vector<8x1xf32>
    %623 = arith.subf %612, %620 : vector<8x1xf32>
    %624 = math.exp %623 : vector<8x1xf32>
    %625 = arith.subf %618, %620 : vector<8x1xf32>
    %626 = math.exp %625 : vector<8x1xf32>
    %627 = arith.addf %622, %624 : vector<8x1xf32>
    %628 = arith.addf %627, %626 : vector<8x1xf32>
    %629 = tpu.reciprocal %628 {approx = true} : vector<8x1xf32> -> vector<8x1xf32>
    %630 = vector.extract_strided_slice %513 {offsets = [0, 512], sizes = [8, 64], strides = [1, 1]} : vector<24x576xf32> to vector<8x64xf32>
    %631 = vector.broadcast %622 : vector<8x1xf32> to vector<8x64xf32>
    %632 = arith.mulf %631, %630 : vector<8x64xf32>
    %633 = vector.extract_strided_slice %513 {offsets = [8, 512], sizes = [8, 64], strides = [1, 1]} : vector<24x576xf32> to vector<8x64xf32>
    %634 = vector.broadcast %624 : vector<8x1xf32> to vector<8x64xf32>
    %635 = arith.mulf %634, %633 : vector<8x64xf32>
    %636 = arith.addf %632, %635 : vector<8x64xf32>
    %637 = vector.extract_strided_slice %513 {offsets = [16, 512], sizes = [8, 64], strides = [1, 1]} : vector<24x576xf32> to vector<8x64xf32>
    %638 = vector.broadcast %626 : vector<8x1xf32> to vector<8x64xf32>
    %639 = arith.mulf %638, %637 : vector<8x64xf32>
    %640 = arith.addf %636, %639 : vector<8x64xf32>
    %641 = vector.broadcast %629 : vector<8x1xf32> to vector<8x64xf32>
    %642 = arith.mulf %640, %641 : vector<8x64xf32>
    %643 = tpu.concatenate %556, %599, %642 in 1 : vector<8x64xf32>, vector<8x64xf32>, vector<8x64xf32> -> vector<8x192xf32>
    %c1_106 = arith.constant 1 : index
    %c0_107 = arith.constant 0 : index
    %c0_108 = arith.constant 0 : index
    %644 = vector.load %arg4[%c1_106, %c0_107, %c0_108] : memref<3x192x64xf32, #tpu.memory_space<vmem>>, vector<1x192x64xf32>
    %645 = vector.shape_cast %644 : vector<1x192x64xf32> to vector<192x64xf32>
    %cst_109 = arith.constant dense<0.000000e+00> : vector<8x64xf32>
    %646 = tpu.matmul %643, %645, %cst_109 {dimension_numbers = #tpu.dot_dimension_numbers<[1], [0], [0], [1], [0, 0, 1, 1], [], []>} : vector<8x192xf32>, vector<192x64xf32>, vector<8x64xf32> -> vector<8x64xf32>
    %c1_110 = arith.constant 1 : index
    %c0_111 = arith.constant 0 : index
    %c0_112 = arith.constant 0 : index
    %647 = vector.load %arg5[%c1_110, %c0_111, %c0_112] : memref<3x1x64xf32, #tpu.memory_space<vmem>>, vector<1x1x64xf32>
    %648 = vector.shape_cast %647 : vector<1x1x64xf32> to vector<1x64xf32>
    %649 = vector.broadcast %648 : vector<1x64xf32> to vector<8x64xf32>
    %650 = arith.addf %646, %649 : vector<8x64xf32>
    %651 = vector.extract_strided_slice %513 {offsets = [8, 0], sizes = [8, 64], strides = [1, 1]} : vector<24x576xf32> to vector<8x64xf32>
    %652 = vector.extract_strided_slice %513 {offsets = [0, 192], sizes = [8, 64], strides = [1, 1]} : vector<24x576xf32> to vector<8x64xf32>
    %653 = arith.mulf %651, %652 : vector<8x64xf32>
    %cst_113 = arith.constant dense<0.000000e+00> : vector<8xf32>
    %654 = vector.multi_reduction <add>, %653, %cst_113 [1] : vector<8x64xf32> to vector<8xf32>
    %655 = vector.shape_cast %654 : vector<8xf32> to vector<8x1xf32>
    %656 = vector.broadcast %501 : f32 to vector<8x1xf32>
    %657 = arith.addf %655, %656 : vector<8x1xf32>
    %658 = vector.extract_strided_slice %513 {offsets = [8, 192], sizes = [8, 64], strides = [1, 1]} : vector<24x576xf32> to vector<8x64xf32>
    %659 = arith.mulf %651, %658 : vector<8x64xf32>
    %cst_114 = arith.constant dense<0.000000e+00> : vector<8xf32>
    %660 = vector.multi_reduction <add>, %659, %cst_114 [1] : vector<8x64xf32> to vector<8xf32>
    %661 = vector.shape_cast %660 : vector<8xf32> to vector<8x1xf32>
    %662 = vector.broadcast %502 : f32 to vector<8x1xf32>
    %663 = arith.addf %661, %662 : vector<8x1xf32>
    %664 = vector.extract_strided_slice %513 {offsets = [16, 192], sizes = [8, 64], strides = [1, 1]} : vector<24x576xf32> to vector<8x64xf32>
    %665 = arith.mulf %651, %664 : vector<8x64xf32>
    %cst_115 = arith.constant dense<0.000000e+00> : vector<8xf32>
    %666 = vector.multi_reduction <add>, %665, %cst_115 [1] : vector<8x64xf32> to vector<8xf32>
    %667 = vector.shape_cast %666 : vector<8xf32> to vector<8x1xf32>
    %668 = vector.broadcast %503 : f32 to vector<8x1xf32>
    %669 = arith.addf %667, %668 : vector<8x1xf32>
    %670 = arith.maximumf %657, %663 : vector<8x1xf32>
    %671 = arith.maximumf %670, %669 : vector<8x1xf32>
    %672 = arith.subf %657, %671 : vector<8x1xf32>
    %673 = math.exp %672 : vector<8x1xf32>
    %674 = arith.subf %663, %671 : vector<8x1xf32>
    %675 = math.exp %674 : vector<8x1xf32>
    %676 = arith.subf %669, %671 : vector<8x1xf32>
    %677 = math.exp %676 : vector<8x1xf32>
    %678 = arith.addf %673, %675 : vector<8x1xf32>
    %679 = arith.addf %678, %677 : vector<8x1xf32>
    %680 = tpu.reciprocal %679 {approx = true} : vector<8x1xf32> -> vector<8x1xf32>
    %681 = vector.extract_strided_slice %513 {offsets = [0, 384], sizes = [8, 64], strides = [1, 1]} : vector<24x576xf32> to vector<8x64xf32>
    %682 = vector.broadcast %673 : vector<8x1xf32> to vector<8x64xf32>
    %683 = arith.mulf %682, %681 : vector<8x64xf32>
    %684 = vector.extract_strided_slice %513 {offsets = [8, 384], sizes = [8, 64], strides = [1, 1]} : vector<24x576xf32> to vector<8x64xf32>
    %685 = vector.broadcast %675 : vector<8x1xf32> to vector<8x64xf32>
    %686 = arith.mulf %685, %684 : vector<8x64xf32>
    %687 = arith.addf %683, %686 : vector<8x64xf32>
    %688 = vector.extract_strided_slice %513 {offsets = [16, 384], sizes = [8, 64], strides = [1, 1]} : vector<24x576xf32> to vector<8x64xf32>
    %689 = vector.broadcast %677 : vector<8x1xf32> to vector<8x64xf32>
    %690 = arith.mulf %689, %688 : vector<8x64xf32>
    %691 = arith.addf %687, %690 : vector<8x64xf32>
    %692 = vector.broadcast %680 : vector<8x1xf32> to vector<8x64xf32>
    %693 = arith.mulf %691, %692 : vector<8x64xf32>
    %694 = vector.extract_strided_slice %513 {offsets = [8, 64], sizes = [8, 64], strides = [1, 1]} : vector<24x576xf32> to vector<8x64xf32>
    %695 = vector.extract_strided_slice %513 {offsets = [0, 256], sizes = [8, 64], strides = [1, 1]} : vector<24x576xf32> to vector<8x64xf32>
    %696 = arith.mulf %694, %695 : vector<8x64xf32>
    %cst_116 = arith.constant dense<0.000000e+00> : vector<8xf32>
    %697 = vector.multi_reduction <add>, %696, %cst_116 [1] : vector<8x64xf32> to vector<8xf32>
    %698 = vector.shape_cast %697 : vector<8xf32> to vector<8x1xf32>
    %699 = vector.broadcast %501 : f32 to vector<8x1xf32>
    %700 = arith.addf %698, %699 : vector<8x1xf32>
    %701 = vector.extract_strided_slice %513 {offsets = [8, 256], sizes = [8, 64], strides = [1, 1]} : vector<24x576xf32> to vector<8x64xf32>
    %702 = arith.mulf %694, %701 : vector<8x64xf32>
    %cst_117 = arith.constant dense<0.000000e+00> : vector<8xf32>
    %703 = vector.multi_reduction <add>, %702, %cst_117 [1] : vector<8x64xf32> to vector<8xf32>
    %704 = vector.shape_cast %703 : vector<8xf32> to vector<8x1xf32>
    %705 = vector.broadcast %502 : f32 to vector<8x1xf32>
    %706 = arith.addf %704, %705 : vector<8x1xf32>
    %707 = vector.extract_strided_slice %513 {offsets = [16, 256], sizes = [8, 64], strides = [1, 1]} : vector<24x576xf32> to vector<8x64xf32>
    %708 = arith.mulf %694, %707 : vector<8x64xf32>
    %cst_118 = arith.constant dense<0.000000e+00> : vector<8xf32>
    %709 = vector.multi_reduction <add>, %708, %cst_118 [1] : vector<8x64xf32> to vector<8xf32>
    %710 = vector.shape_cast %709 : vector<8xf32> to vector<8x1xf32>
    %711 = vector.broadcast %503 : f32 to vector<8x1xf32>
    %712 = arith.addf %710, %711 : vector<8x1xf32>
    %713 = arith.maximumf %700, %706 : vector<8x1xf32>
    %714 = arith.maximumf %713, %712 : vector<8x1xf32>
    %715 = arith.subf %700, %714 : vector<8x1xf32>
    %716 = math.exp %715 : vector<8x1xf32>
    %717 = arith.subf %706, %714 : vector<8x1xf32>
    %718 = math.exp %717 : vector<8x1xf32>
    %719 = arith.subf %712, %714 : vector<8x1xf32>
    %720 = math.exp %719 : vector<8x1xf32>
    %721 = arith.addf %716, %718 : vector<8x1xf32>
    %722 = arith.addf %721, %720 : vector<8x1xf32>
    %723 = tpu.reciprocal %722 {approx = true} : vector<8x1xf32> -> vector<8x1xf32>
    %724 = vector.extract_strided_slice %513 {offsets = [0, 448], sizes = [8, 64], strides = [1, 1]} : vector<24x576xf32> to vector<8x64xf32>
    %725 = vector.broadcast %716 : vector<8x1xf32> to vector<8x64xf32>
    %726 = arith.mulf %725, %724 : vector<8x64xf32>
    %727 = vector.extract_strided_slice %513 {offsets = [8, 448], sizes = [8, 64], strides = [1, 1]} : vector<24x576xf32> to vector<8x64xf32>
    %728 = vector.broadcast %718 : vector<8x1xf32> to vector<8x64xf32>
    %729 = arith.mulf %728, %727 : vector<8x64xf32>
    %730 = arith.addf %726, %729 : vector<8x64xf32>
    %731 = vector.extract_strided_slice %513 {offsets = [16, 448], sizes = [8, 64], strides = [1, 1]} : vector<24x576xf32> to vector<8x64xf32>
    %732 = vector.broadcast %720 : vector<8x1xf32> to vector<8x64xf32>
    %733 = arith.mulf %732, %731 : vector<8x64xf32>
    %734 = arith.addf %730, %733 : vector<8x64xf32>
    %735 = vector.broadcast %723 : vector<8x1xf32> to vector<8x64xf32>
    %736 = arith.mulf %734, %735 : vector<8x64xf32>
    %737 = vector.extract_strided_slice %513 {offsets = [8, 128], sizes = [8, 64], strides = [1, 1]} : vector<24x576xf32> to vector<8x64xf32>
    %738 = vector.extract_strided_slice %513 {offsets = [0, 320], sizes = [8, 64], strides = [1, 1]} : vector<24x576xf32> to vector<8x64xf32>
    %739 = arith.mulf %737, %738 : vector<8x64xf32>
    %cst_119 = arith.constant dense<0.000000e+00> : vector<8xf32>
    %740 = vector.multi_reduction <add>, %739, %cst_119 [1] : vector<8x64xf32> to vector<8xf32>
    %741 = vector.shape_cast %740 : vector<8xf32> to vector<8x1xf32>
    %742 = vector.broadcast %501 : f32 to vector<8x1xf32>
    %743 = arith.addf %741, %742 : vector<8x1xf32>
    %744 = vector.extract_strided_slice %513 {offsets = [8, 320], sizes = [8, 64], strides = [1, 1]} : vector<24x576xf32> to vector<8x64xf32>
    %745 = arith.mulf %737, %744 : vector<8x64xf32>
    %cst_120 = arith.constant dense<0.000000e+00> : vector<8xf32>
    %746 = vector.multi_reduction <add>, %745, %cst_120 [1] : vector<8x64xf32> to vector<8xf32>
    %747 = vector.shape_cast %746 : vector<8xf32> to vector<8x1xf32>
    %748 = vector.broadcast %502 : f32 to vector<8x1xf32>
    %749 = arith.addf %747, %748 : vector<8x1xf32>
    %750 = vector.extract_strided_slice %513 {offsets = [16, 320], sizes = [8, 64], strides = [1, 1]} : vector<24x576xf32> to vector<8x64xf32>
    %751 = arith.mulf %737, %750 : vector<8x64xf32>
    %cst_121 = arith.constant dense<0.000000e+00> : vector<8xf32>
    %752 = vector.multi_reduction <add>, %751, %cst_121 [1] : vector<8x64xf32> to vector<8xf32>
    %753 = vector.shape_cast %752 : vector<8xf32> to vector<8x1xf32>
    %754 = vector.broadcast %503 : f32 to vector<8x1xf32>
    %755 = arith.addf %753, %754 : vector<8x1xf32>
    %756 = arith.maximumf %743, %749 : vector<8x1xf32>
    %757 = arith.maximumf %756, %755 : vector<8x1xf32>
    %758 = arith.subf %743, %757 : vector<8x1xf32>
    %759 = math.exp %758 : vector<8x1xf32>
    %760 = arith.subf %749, %757 : vector<8x1xf32>
    %761 = math.exp %760 : vector<8x1xf32>
    %762 = arith.subf %755, %757 : vector<8x1xf32>
    %763 = math.exp %762 : vector<8x1xf32>
    %764 = arith.addf %759, %761 : vector<8x1xf32>
    %765 = arith.addf %764, %763 : vector<8x1xf32>
    %766 = tpu.reciprocal %765 {approx = true} : vector<8x1xf32> -> vector<8x1xf32>
    %767 = vector.extract_strided_slice %513 {offsets = [0, 512], sizes = [8, 64], strides = [1, 1]} : vector<24x576xf32> to vector<8x64xf32>
    %768 = vector.broadcast %759 : vector<8x1xf32> to vector<8x64xf32>
    %769 = arith.mulf %768, %767 : vector<8x64xf32>
    %770 = vector.extract_strided_slice %513 {offsets = [8, 512], sizes = [8, 64], strides = [1, 1]} : vector<24x576xf32> to vector<8x64xf32>
    %771 = vector.broadcast %761 : vector<8x1xf32> to vector<8x64xf32>
    %772 = arith.mulf %771, %770 : vector<8x64xf32>
    %773 = arith.addf %769, %772 : vector<8x64xf32>
    %774 = vector.extract_strided_slice %513 {offsets = [16, 512], sizes = [8, 64], strides = [1, 1]} : vector<24x576xf32> to vector<8x64xf32>
    %775 = vector.broadcast %763 : vector<8x1xf32> to vector<8x64xf32>
    %776 = arith.mulf %775, %774 : vector<8x64xf32>
    %777 = arith.addf %773, %776 : vector<8x64xf32>
    %778 = vector.broadcast %766 : vector<8x1xf32> to vector<8x64xf32>
    %779 = arith.mulf %777, %778 : vector<8x64xf32>
    %780 = tpu.concatenate %693, %736, %779 in 1 : vector<8x64xf32>, vector<8x64xf32>, vector<8x64xf32> -> vector<8x192xf32>
    %c1_122 = arith.constant 1 : index
    %c0_123 = arith.constant 0 : index
    %c0_124 = arith.constant 0 : index
    %781 = vector.load %arg4[%c1_122, %c0_123, %c0_124] : memref<3x192x64xf32, #tpu.memory_space<vmem>>, vector<1x192x64xf32>
    %782 = vector.shape_cast %781 : vector<1x192x64xf32> to vector<192x64xf32>
    %cst_125 = arith.constant dense<0.000000e+00> : vector<8x64xf32>
    %783 = tpu.matmul %780, %782, %cst_125 {dimension_numbers = #tpu.dot_dimension_numbers<[1], [0], [0], [1], [0, 0, 1, 1], [], []>} : vector<8x192xf32>, vector<192x64xf32>, vector<8x64xf32> -> vector<8x64xf32>
    %c1_126 = arith.constant 1 : index
    %c0_127 = arith.constant 0 : index
    %c0_128 = arith.constant 0 : index
    %784 = vector.load %arg5[%c1_126, %c0_127, %c0_128] : memref<3x1x64xf32, #tpu.memory_space<vmem>>, vector<1x1x64xf32>
    %785 = vector.shape_cast %784 : vector<1x1x64xf32> to vector<1x64xf32>
    %786 = vector.broadcast %785 : vector<1x64xf32> to vector<8x64xf32>
    %787 = arith.addf %783, %786 : vector<8x64xf32>
    %788 = vector.extract_strided_slice %513 {offsets = [16, 0], sizes = [8, 64], strides = [1, 1]} : vector<24x576xf32> to vector<8x64xf32>
    %789 = vector.extract_strided_slice %513 {offsets = [0, 192], sizes = [8, 64], strides = [1, 1]} : vector<24x576xf32> to vector<8x64xf32>
    %790 = arith.mulf %788, %789 : vector<8x64xf32>
    %cst_129 = arith.constant dense<0.000000e+00> : vector<8xf32>
    %791 = vector.multi_reduction <add>, %790, %cst_129 [1] : vector<8x64xf32> to vector<8xf32>
    %792 = vector.shape_cast %791 : vector<8xf32> to vector<8x1xf32>
    %793 = vector.broadcast %504 : f32 to vector<8x1xf32>
    %794 = arith.addf %792, %793 : vector<8x1xf32>
    %795 = vector.extract_strided_slice %513 {offsets = [8, 192], sizes = [8, 64], strides = [1, 1]} : vector<24x576xf32> to vector<8x64xf32>
    %796 = arith.mulf %788, %795 : vector<8x64xf32>
    %cst_130 = arith.constant dense<0.000000e+00> : vector<8xf32>
    %797 = vector.multi_reduction <add>, %796, %cst_130 [1] : vector<8x64xf32> to vector<8xf32>
    %798 = vector.shape_cast %797 : vector<8xf32> to vector<8x1xf32>
    %799 = vector.broadcast %505 : f32 to vector<8x1xf32>
    %800 = arith.addf %798, %799 : vector<8x1xf32>
    %801 = vector.extract_strided_slice %513 {offsets = [16, 192], sizes = [8, 64], strides = [1, 1]} : vector<24x576xf32> to vector<8x64xf32>
    %802 = arith.mulf %788, %801 : vector<8x64xf32>
    %cst_131 = arith.constant dense<0.000000e+00> : vector<8xf32>
    %803 = vector.multi_reduction <add>, %802, %cst_131 [1] : vector<8x64xf32> to vector<8xf32>
    %804 = vector.shape_cast %803 : vector<8xf32> to vector<8x1xf32>
    %805 = vector.broadcast %506 : f32 to vector<8x1xf32>
    %806 = arith.addf %804, %805 : vector<8x1xf32>
    %807 = arith.maximumf %794, %800 : vector<8x1xf32>
    %808 = arith.maximumf %807, %806 : vector<8x1xf32>
    %809 = arith.subf %794, %808 : vector<8x1xf32>
    %810 = math.exp %809 : vector<8x1xf32>
    %811 = arith.subf %800, %808 : vector<8x1xf32>
    %812 = math.exp %811 : vector<8x1xf32>
    %813 = arith.subf %806, %808 : vector<8x1xf32>
    %814 = math.exp %813 : vector<8x1xf32>
    %815 = arith.addf %810, %812 : vector<8x1xf32>
    %816 = arith.addf %815, %814 : vector<8x1xf32>
    %817 = tpu.reciprocal %816 {approx = true} : vector<8x1xf32> -> vector<8x1xf32>
    %818 = vector.extract_strided_slice %513 {offsets = [0, 384], sizes = [8, 64], strides = [1, 1]} : vector<24x576xf32> to vector<8x64xf32>
    %819 = vector.broadcast %810 : vector<8x1xf32> to vector<8x64xf32>
    %820 = arith.mulf %819, %818 : vector<8x64xf32>
    %821 = vector.extract_strided_slice %513 {offsets = [8, 384], sizes = [8, 64], strides = [1, 1]} : vector<24x576xf32> to vector<8x64xf32>
    %822 = vector.broadcast %812 : vector<8x1xf32> to vector<8x64xf32>
    %823 = arith.mulf %822, %821 : vector<8x64xf32>
    %824 = arith.addf %820, %823 : vector<8x64xf32>
    %825 = vector.extract_strided_slice %513 {offsets = [16, 384], sizes = [8, 64], strides = [1, 1]} : vector<24x576xf32> to vector<8x64xf32>
    %826 = vector.broadcast %814 : vector<8x1xf32> to vector<8x64xf32>
    %827 = arith.mulf %826, %825 : vector<8x64xf32>
    %828 = arith.addf %824, %827 : vector<8x64xf32>
    %829 = vector.broadcast %817 : vector<8x1xf32> to vector<8x64xf32>
    %830 = arith.mulf %828, %829 : vector<8x64xf32>
    %831 = vector.extract_strided_slice %513 {offsets = [16, 64], sizes = [8, 64], strides = [1, 1]} : vector<24x576xf32> to vector<8x64xf32>
    %832 = vector.extract_strided_slice %513 {offsets = [0, 256], sizes = [8, 64], strides = [1, 1]} : vector<24x576xf32> to vector<8x64xf32>
    %833 = arith.mulf %831, %832 : vector<8x64xf32>
    %cst_132 = arith.constant dense<0.000000e+00> : vector<8xf32>
    %834 = vector.multi_reduction <add>, %833, %cst_132 [1] : vector<8x64xf32> to vector<8xf32>
    %835 = vector.shape_cast %834 : vector<8xf32> to vector<8x1xf32>
    %836 = vector.broadcast %504 : f32 to vector<8x1xf32>
    %837 = arith.addf %835, %836 : vector<8x1xf32>
    %838 = vector.extract_strided_slice %513 {offsets = [8, 256], sizes = [8, 64], strides = [1, 1]} : vector<24x576xf32> to vector<8x64xf32>
    %839 = arith.mulf %831, %838 : vector<8x64xf32>
    %cst_133 = arith.constant dense<0.000000e+00> : vector<8xf32>
    %840 = vector.multi_reduction <add>, %839, %cst_133 [1] : vector<8x64xf32> to vector<8xf32>
    %841 = vector.shape_cast %840 : vector<8xf32> to vector<8x1xf32>
    %842 = vector.broadcast %505 : f32 to vector<8x1xf32>
    %843 = arith.addf %841, %842 : vector<8x1xf32>
    %844 = vector.extract_strided_slice %513 {offsets = [16, 256], sizes = [8, 64], strides = [1, 1]} : vector<24x576xf32> to vector<8x64xf32>
    %845 = arith.mulf %831, %844 : vector<8x64xf32>
    %cst_134 = arith.constant dense<0.000000e+00> : vector<8xf32>
    %846 = vector.multi_reduction <add>, %845, %cst_134 [1] : vector<8x64xf32> to vector<8xf32>
    %847 = vector.shape_cast %846 : vector<8xf32> to vector<8x1xf32>
    %848 = vector.broadcast %506 : f32 to vector<8x1xf32>
    %849 = arith.addf %847, %848 : vector<8x1xf32>
    %850 = arith.maximumf %837, %843 : vector<8x1xf32>
    %851 = arith.maximumf %850, %849 : vector<8x1xf32>
    %852 = arith.subf %837, %851 : vector<8x1xf32>
    %853 = math.exp %852 : vector<8x1xf32>
    %854 = arith.subf %843, %851 : vector<8x1xf32>
    %855 = math.exp %854 : vector<8x1xf32>
    %856 = arith.subf %849, %851 : vector<8x1xf32>
    %857 = math.exp %856 : vector<8x1xf32>
    %858 = arith.addf %853, %855 : vector<8x1xf32>
    %859 = arith.addf %858, %857 : vector<8x1xf32>
    %860 = tpu.reciprocal %859 {approx = true} : vector<8x1xf32> -> vector<8x1xf32>
    %861 = vector.extract_strided_slice %513 {offsets = [0, 448], sizes = [8, 64], strides = [1, 1]} : vector<24x576xf32> to vector<8x64xf32>
    %862 = vector.broadcast %853 : vector<8x1xf32> to vector<8x64xf32>
    %863 = arith.mulf %862, %861 : vector<8x64xf32>
    %864 = vector.extract_strided_slice %513 {offsets = [8, 448], sizes = [8, 64], strides = [1, 1]} : vector<24x576xf32> to vector<8x64xf32>
    %865 = vector.broadcast %855 : vector<8x1xf32> to vector<8x64xf32>
    %866 = arith.mulf %865, %864 : vector<8x64xf32>
    %867 = arith.addf %863, %866 : vector<8x64xf32>
    %868 = vector.extract_strided_slice %513 {offsets = [16, 448], sizes = [8, 64], strides = [1, 1]} : vector<24x576xf32> to vector<8x64xf32>
    %869 = vector.broadcast %857 : vector<8x1xf32> to vector<8x64xf32>
    %870 = arith.mulf %869, %868 : vector<8x64xf32>
    %871 = arith.addf %867, %870 : vector<8x64xf32>
    %872 = vector.broadcast %860 : vector<8x1xf32> to vector<8x64xf32>
    %873 = arith.mulf %871, %872 : vector<8x64xf32>
    %874 = vector.extract_strided_slice %513 {offsets = [16, 128], sizes = [8, 64], strides = [1, 1]} : vector<24x576xf32> to vector<8x64xf32>
    %875 = vector.extract_strided_slice %513 {offsets = [0, 320], sizes = [8, 64], strides = [1, 1]} : vector<24x576xf32> to vector<8x64xf32>
    %876 = arith.mulf %874, %875 : vector<8x64xf32>
    %cst_135 = arith.constant dense<0.000000e+00> : vector<8xf32>
    %877 = vector.multi_reduction <add>, %876, %cst_135 [1] : vector<8x64xf32> to vector<8xf32>
    %878 = vector.shape_cast %877 : vector<8xf32> to vector<8x1xf32>
    %879 = vector.broadcast %504 : f32 to vector<8x1xf32>
    %880 = arith.addf %878, %879 : vector<8x1xf32>
    %881 = vector.extract_strided_slice %513 {offsets = [8, 320], sizes = [8, 64], strides = [1, 1]} : vector<24x576xf32> to vector<8x64xf32>
    %882 = arith.mulf %874, %881 : vector<8x64xf32>
    %cst_136 = arith.constant dense<0.000000e+00> : vector<8xf32>
    %883 = vector.multi_reduction <add>, %882, %cst_136 [1] : vector<8x64xf32> to vector<8xf32>
    %884 = vector.shape_cast %883 : vector<8xf32> to vector<8x1xf32>
    %885 = vector.broadcast %505 : f32 to vector<8x1xf32>
    %886 = arith.addf %884, %885 : vector<8x1xf32>
    %887 = vector.extract_strided_slice %513 {offsets = [16, 320], sizes = [8, 64], strides = [1, 1]} : vector<24x576xf32> to vector<8x64xf32>
    %888 = arith.mulf %874, %887 : vector<8x64xf32>
    %cst_137 = arith.constant dense<0.000000e+00> : vector<8xf32>
    %889 = vector.multi_reduction <add>, %888, %cst_137 [1] : vector<8x64xf32> to vector<8xf32>
    %890 = vector.shape_cast %889 : vector<8xf32> to vector<8x1xf32>
    %891 = vector.broadcast %506 : f32 to vector<8x1xf32>
    %892 = arith.addf %890, %891 : vector<8x1xf32>
    %893 = arith.maximumf %880, %886 : vector<8x1xf32>
    %894 = arith.maximumf %893, %892 : vector<8x1xf32>
    %895 = arith.subf %880, %894 : vector<8x1xf32>
    %896 = math.exp %895 : vector<8x1xf32>
    %897 = arith.subf %886, %894 : vector<8x1xf32>
    %898 = math.exp %897 : vector<8x1xf32>
    %899 = arith.subf %892, %894 : vector<8x1xf32>
    %900 = math.exp %899 : vector<8x1xf32>
    %901 = arith.addf %896, %898 : vector<8x1xf32>
    %902 = arith.addf %901, %900 : vector<8x1xf32>
    %903 = tpu.reciprocal %902 {approx = true} : vector<8x1xf32> -> vector<8x1xf32>
    %904 = vector.extract_strided_slice %513 {offsets = [0, 512], sizes = [8, 64], strides = [1, 1]} : vector<24x576xf32> to vector<8x64xf32>
    %905 = vector.broadcast %896 : vector<8x1xf32> to vector<8x64xf32>
    %906 = arith.mulf %905, %904 : vector<8x64xf32>
    %907 = vector.extract_strided_slice %513 {offsets = [8, 512], sizes = [8, 64], strides = [1, 1]} : vector<24x576xf32> to vector<8x64xf32>
    %908 = vector.broadcast %898 : vector<8x1xf32> to vector<8x64xf32>
    %909 = arith.mulf %908, %907 : vector<8x64xf32>
    %910 = arith.addf %906, %909 : vector<8x64xf32>
    %911 = vector.extract_strided_slice %513 {offsets = [16, 512], sizes = [8, 64], strides = [1, 1]} : vector<24x576xf32> to vector<8x64xf32>
    %912 = vector.broadcast %900 : vector<8x1xf32> to vector<8x64xf32>
    %913 = arith.mulf %912, %911 : vector<8x64xf32>
    %914 = arith.addf %910, %913 : vector<8x64xf32>
    %915 = vector.broadcast %903 : vector<8x1xf32> to vector<8x64xf32>
    %916 = arith.mulf %914, %915 : vector<8x64xf32>
    %917 = tpu.concatenate %830, %873, %916 in 1 : vector<8x64xf32>, vector<8x64xf32>, vector<8x64xf32> -> vector<8x192xf32>
    %c1_138 = arith.constant 1 : index
    %c0_139 = arith.constant 0 : index
    %c0_140 = arith.constant 0 : index
    %918 = vector.load %arg4[%c1_138, %c0_139, %c0_140] : memref<3x192x64xf32, #tpu.memory_space<vmem>>, vector<1x192x64xf32>
    %919 = vector.shape_cast %918 : vector<1x192x64xf32> to vector<192x64xf32>
    %cst_141 = arith.constant dense<0.000000e+00> : vector<8x64xf32>
    %920 = tpu.matmul %917, %919, %cst_141 {dimension_numbers = #tpu.dot_dimension_numbers<[1], [0], [0], [1], [0, 0, 1, 1], [], []>} : vector<8x192xf32>, vector<192x64xf32>, vector<8x64xf32> -> vector<8x64xf32>
    %c1_142 = arith.constant 1 : index
    %c0_143 = arith.constant 0 : index
    %c0_144 = arith.constant 0 : index
    %921 = vector.load %arg5[%c1_142, %c0_143, %c0_144] : memref<3x1x64xf32, #tpu.memory_space<vmem>>, vector<1x1x64xf32>
    %922 = vector.shape_cast %921 : vector<1x1x64xf32> to vector<1x64xf32>
    %923 = vector.broadcast %922 : vector<1x64xf32> to vector<8x64xf32>
    %924 = arith.addf %920, %923 : vector<8x64xf32>
    %925 = vector.extract_strided_slice %497 {offsets = [0, 0], sizes = [8, 64], strides = [1, 1]} : vector<24x64xf32> to vector<8x64xf32>
    %926 = arith.addf %650, %925 : vector<8x64xf32>
    %927 = vector.extract_strided_slice %497 {offsets = [8, 0], sizes = [8, 64], strides = [1, 1]} : vector<24x64xf32> to vector<8x64xf32>
    %928 = arith.addf %787, %927 : vector<8x64xf32>
    %929 = vector.extract_strided_slice %497 {offsets = [16, 0], sizes = [8, 64], strides = [1, 1]} : vector<24x64xf32> to vector<8x64xf32>
    %930 = arith.addf %924, %929 : vector<8x64xf32>
    %cst_145 = arith.constant dense<0.000000e+00> : vector<8xf32>
    %931 = vector.multi_reduction <add>, %926, %cst_145 [1] : vector<8x64xf32> to vector<8xf32>
    %932 = vector.shape_cast %931 : vector<8xf32> to vector<8x1xf32>
    %cst_146 = arith.constant dense<0.000000e+00> : vector<8xf32>
    %933 = vector.multi_reduction <add>, %928, %cst_146 [1] : vector<8x64xf32> to vector<8xf32>
    %934 = vector.shape_cast %933 : vector<8xf32> to vector<8x1xf32>
    %935 = arith.addf %932, %934 : vector<8x1xf32>
    %cst_147 = arith.constant dense<0.000000e+00> : vector<8xf32>
    %936 = vector.multi_reduction <add>, %930, %cst_147 [1] : vector<8x64xf32> to vector<8xf32>
    %937 = vector.shape_cast %936 : vector<8xf32> to vector<8x1xf32>
    %938 = arith.addf %935, %937 : vector<8x1xf32>
    %cst_148 = arith.constant 0.00520833349 : f32
    %939 = vector.broadcast %cst_148 : f32 to vector<8x1xf32>
    %940 = arith.mulf %938, %939 : vector<8x1xf32>
    %941 = vector.broadcast %940 : vector<8x1xf32> to vector<8x64xf32>
    %942 = arith.subf %926, %941 : vector<8x64xf32>
    %943 = vector.broadcast %940 : vector<8x1xf32> to vector<8x64xf32>
    %944 = arith.subf %928, %943 : vector<8x64xf32>
    %945 = vector.broadcast %940 : vector<8x1xf32> to vector<8x64xf32>
    %946 = arith.subf %930, %945 : vector<8x64xf32>
    %947 = arith.mulf %942, %942 : vector<8x64xf32>
    %cst_149 = arith.constant dense<0.000000e+00> : vector<8xf32>
    %948 = vector.multi_reduction <add>, %947, %cst_149 [1] : vector<8x64xf32> to vector<8xf32>
    %949 = vector.shape_cast %948 : vector<8xf32> to vector<8x1xf32>
    %950 = arith.mulf %944, %944 : vector<8x64xf32>
    %cst_150 = arith.constant dense<0.000000e+00> : vector<8xf32>
    %951 = vector.multi_reduction <add>, %950, %cst_150 [1] : vector<8x64xf32> to vector<8xf32>
    %952 = vector.shape_cast %951 : vector<8xf32> to vector<8x1xf32>
    %953 = arith.addf %949, %952 : vector<8x1xf32>
    %954 = arith.mulf %946, %946 : vector<8x64xf32>
    %cst_151 = arith.constant dense<0.000000e+00> : vector<8xf32>
    %955 = vector.multi_reduction <add>, %954, %cst_151 [1] : vector<8x64xf32> to vector<8xf32>
    %956 = vector.shape_cast %955 : vector<8xf32> to vector<8x1xf32>
    %957 = arith.addf %953, %956 : vector<8x1xf32>
    %cst_152 = arith.constant 0.00520833349 : f32
    %958 = vector.broadcast %cst_152 : f32 to vector<8x1xf32>
    %959 = arith.mulf %957, %958 : vector<8x1xf32>
    %cst_153 = arith.constant 9.99999974E-6 : f32
    %960 = vector.broadcast %cst_153 : f32 to vector<8x1xf32>
    %961 = arith.addf %959, %960 : vector<8x1xf32>
    %962 = math.rsqrt %961 : vector<8x1xf32>
    %963 = vector.broadcast %962 : vector<8x1xf32> to vector<8x64xf32>
    %964 = arith.mulf %942, %963 : vector<8x64xf32>
    %c1_154 = arith.constant 1 : index
    %c0_155 = arith.constant 0 : index
    %c0_156 = arith.constant 0 : index
    %c0_157 = arith.constant 0 : index
    %965 = vector.load %arg7[%c1_154, %c0_155, %c0_156, %c0_157] : memref<3x3x1x64xf32, #tpu.memory_space<vmem>>, vector<1x1x1x64xf32>
    %966 = vector.shape_cast %965 : vector<1x1x1x64xf32> to vector<1x64xf32>
    %967 = vector.broadcast %966 : vector<1x64xf32> to vector<8x64xf32>
    %968 = arith.mulf %964, %967 : vector<8x64xf32>
    %c1_158 = arith.constant 1 : index
    %c0_159 = arith.constant 0 : index
    %c0_160 = arith.constant 0 : index
    %c0_161 = arith.constant 0 : index
    %969 = vector.load %arg8[%c1_158, %c0_159, %c0_160, %c0_161] : memref<3x3x1x64xf32, #tpu.memory_space<vmem>>, vector<1x1x1x64xf32>
    %970 = vector.shape_cast %969 : vector<1x1x1x64xf32> to vector<1x64xf32>
    %971 = vector.broadcast %970 : vector<1x64xf32> to vector<8x64xf32>
    %972 = arith.addf %968, %971 : vector<8x64xf32>
    %973 = vector.broadcast %962 : vector<8x1xf32> to vector<8x64xf32>
    %974 = arith.mulf %944, %973 : vector<8x64xf32>
    %c1_162 = arith.constant 1 : index
    %c1_163 = arith.constant 1 : index
    %c0_164 = arith.constant 0 : index
    %c0_165 = arith.constant 0 : index
    %975 = vector.load %arg7[%c1_162, %c1_163, %c0_164, %c0_165] : memref<3x3x1x64xf32, #tpu.memory_space<vmem>>, vector<1x1x1x64xf32>
    %976 = vector.shape_cast %975 : vector<1x1x1x64xf32> to vector<1x64xf32>
    %977 = vector.broadcast %976 : vector<1x64xf32> to vector<8x64xf32>
    %978 = arith.mulf %974, %977 : vector<8x64xf32>
    %c1_166 = arith.constant 1 : index
    %c1_167 = arith.constant 1 : index
    %c0_168 = arith.constant 0 : index
    %c0_169 = arith.constant 0 : index
    %979 = vector.load %arg8[%c1_166, %c1_167, %c0_168, %c0_169] : memref<3x3x1x64xf32, #tpu.memory_space<vmem>>, vector<1x1x1x64xf32>
    %980 = vector.shape_cast %979 : vector<1x1x1x64xf32> to vector<1x64xf32>
    %981 = vector.broadcast %980 : vector<1x64xf32> to vector<8x64xf32>
    %982 = arith.addf %978, %981 : vector<8x64xf32>
    %983 = vector.broadcast %962 : vector<8x1xf32> to vector<8x64xf32>
    %984 = arith.mulf %946, %983 : vector<8x64xf32>
    %c1_170 = arith.constant 1 : index
    %c2_171 = arith.constant 2 : index
    %c0_172 = arith.constant 0 : index
    %c0_173 = arith.constant 0 : index
    %985 = vector.load %arg7[%c1_170, %c2_171, %c0_172, %c0_173] : memref<3x3x1x64xf32, #tpu.memory_space<vmem>>, vector<1x1x1x64xf32>
    %986 = vector.shape_cast %985 : vector<1x1x1x64xf32> to vector<1x64xf32>
    %987 = vector.broadcast %986 : vector<1x64xf32> to vector<8x64xf32>
    %988 = arith.mulf %984, %987 : vector<8x64xf32>
    %c1_174 = arith.constant 1 : index
    %c2_175 = arith.constant 2 : index
    %c0_176 = arith.constant 0 : index
    %c0_177 = arith.constant 0 : index
    %989 = vector.load %arg8[%c1_174, %c2_175, %c0_176, %c0_177] : memref<3x3x1x64xf32, #tpu.memory_space<vmem>>, vector<1x1x1x64xf32>
    %990 = vector.shape_cast %989 : vector<1x1x1x64xf32> to vector<1x64xf32>
    %991 = vector.broadcast %990 : vector<1x64xf32> to vector<8x64xf32>
    %992 = arith.addf %988, %991 : vector<8x64xf32>
    %993 = tpu.concatenate %972, %982, %992 in 0 : vector<8x64xf32>, vector<8x64xf32>, vector<8x64xf32> -> vector<24x64xf32>
    %c18 = arith.constant 18 : index
    %994 = memref.load %arg6[%c18] : memref<27xf32, #tpu.memory_space<smem>>
    %c19 = arith.constant 19 : index
    %995 = memref.load %arg6[%c19] : memref<27xf32, #tpu.memory_space<smem>>
    %c20 = arith.constant 20 : index
    %996 = memref.load %arg6[%c20] : memref<27xf32, #tpu.memory_space<smem>>
    %c21 = arith.constant 21 : index
    %997 = memref.load %arg6[%c21] : memref<27xf32, #tpu.memory_space<smem>>
    %c22 = arith.constant 22 : index
    %998 = memref.load %arg6[%c22] : memref<27xf32, #tpu.memory_space<smem>>
    %c23 = arith.constant 23 : index
    %999 = memref.load %arg6[%c23] : memref<27xf32, #tpu.memory_space<smem>>
    %c24 = arith.constant 24 : index
    %1000 = memref.load %arg6[%c24] : memref<27xf32, #tpu.memory_space<smem>>
    %c25 = arith.constant 25 : index
    %1001 = memref.load %arg6[%c25] : memref<27xf32, #tpu.memory_space<smem>>
    %c26 = arith.constant 26 : index
    %1002 = memref.load %arg6[%c26] : memref<27xf32, #tpu.memory_space<smem>>
    %c2_178 = arith.constant 2 : index
    %c0_179 = arith.constant 0 : index
    %c0_180 = arith.constant 0 : index
    %1003 = vector.load %arg2[%c2_178, %c0_179, %c0_180] : memref<3x64x576xf32, #tpu.memory_space<vmem>>, vector<1x64x576xf32>
    %1004 = vector.shape_cast %1003 : vector<1x64x576xf32> to vector<64x576xf32>
    %cst_181 = arith.constant dense<0.000000e+00> : vector<24x576xf32>
    %1005 = tpu.matmul %993, %1004, %cst_181 {dimension_numbers = #tpu.dot_dimension_numbers<[1], [0], [0], [1], [0, 0, 1, 1], [], []>} : vector<24x64xf32>, vector<64x576xf32>, vector<24x576xf32> -> vector<24x576xf32>
    %c2_182 = arith.constant 2 : index
    %c0_183 = arith.constant 0 : index
    %c0_184 = arith.constant 0 : index
    %1006 = vector.load %arg3[%c2_182, %c0_183, %c0_184] : memref<3x1x576xf32, #tpu.memory_space<vmem>>, vector<1x1x576xf32>
    %1007 = vector.shape_cast %1006 : vector<1x1x576xf32> to vector<1x576xf32>
    %1008 = vector.broadcast %1007 : vector<1x576xf32> to vector<24x576xf32>
    %1009 = arith.addf %1005, %1008 : vector<24x576xf32>
    %1010 = vector.extract_strided_slice %1009 {offsets = [0, 0], sizes = [8, 64], strides = [1, 1]} : vector<24x576xf32> to vector<8x64xf32>
    %1011 = vector.extract_strided_slice %1009 {offsets = [0, 192], sizes = [8, 64], strides = [1, 1]} : vector<24x576xf32> to vector<8x64xf32>
    %1012 = arith.mulf %1010, %1011 : vector<8x64xf32>
    %cst_185 = arith.constant dense<0.000000e+00> : vector<8xf32>
    %1013 = vector.multi_reduction <add>, %1012, %cst_185 [1] : vector<8x64xf32> to vector<8xf32>
    %1014 = vector.shape_cast %1013 : vector<8xf32> to vector<8x1xf32>
    %1015 = vector.broadcast %994 : f32 to vector<8x1xf32>
    %1016 = arith.addf %1014, %1015 : vector<8x1xf32>
    %1017 = vector.extract_strided_slice %1009 {offsets = [8, 192], sizes = [8, 64], strides = [1, 1]} : vector<24x576xf32> to vector<8x64xf32>
    %1018 = arith.mulf %1010, %1017 : vector<8x64xf32>
    %cst_186 = arith.constant dense<0.000000e+00> : vector<8xf32>
    %1019 = vector.multi_reduction <add>, %1018, %cst_186 [1] : vector<8x64xf32> to vector<8xf32>
    %1020 = vector.shape_cast %1019 : vector<8xf32> to vector<8x1xf32>
    %1021 = vector.broadcast %995 : f32 to vector<8x1xf32>
    %1022 = arith.addf %1020, %1021 : vector<8x1xf32>
    %1023 = vector.extract_strided_slice %1009 {offsets = [16, 192], sizes = [8, 64], strides = [1, 1]} : vector<24x576xf32> to vector<8x64xf32>
    %1024 = arith.mulf %1010, %1023 : vector<8x64xf32>
    %cst_187 = arith.constant dense<0.000000e+00> : vector<8xf32>
    %1025 = vector.multi_reduction <add>, %1024, %cst_187 [1] : vector<8x64xf32> to vector<8xf32>
    %1026 = vector.shape_cast %1025 : vector<8xf32> to vector<8x1xf32>
    %1027 = vector.broadcast %996 : f32 to vector<8x1xf32>
    %1028 = arith.addf %1026, %1027 : vector<8x1xf32>
    %1029 = arith.maximumf %1016, %1022 : vector<8x1xf32>
    %1030 = arith.maximumf %1029, %1028 : vector<8x1xf32>
    %1031 = arith.subf %1016, %1030 : vector<8x1xf32>
    %1032 = math.exp %1031 : vector<8x1xf32>
    %1033 = arith.subf %1022, %1030 : vector<8x1xf32>
    %1034 = math.exp %1033 : vector<8x1xf32>
    %1035 = arith.subf %1028, %1030 : vector<8x1xf32>
    %1036 = math.exp %1035 : vector<8x1xf32>
    %1037 = arith.addf %1032, %1034 : vector<8x1xf32>
    %1038 = arith.addf %1037, %1036 : vector<8x1xf32>
    %1039 = tpu.reciprocal %1038 {approx = true} : vector<8x1xf32> -> vector<8x1xf32>
    %1040 = vector.extract_strided_slice %1009 {offsets = [0, 384], sizes = [8, 64], strides = [1, 1]} : vector<24x576xf32> to vector<8x64xf32>
    %1041 = vector.broadcast %1032 : vector<8x1xf32> to vector<8x64xf32>
    %1042 = arith.mulf %1041, %1040 : vector<8x64xf32>
    %1043 = vector.extract_strided_slice %1009 {offsets = [8, 384], sizes = [8, 64], strides = [1, 1]} : vector<24x576xf32> to vector<8x64xf32>
    %1044 = vector.broadcast %1034 : vector<8x1xf32> to vector<8x64xf32>
    %1045 = arith.mulf %1044, %1043 : vector<8x64xf32>
    %1046 = arith.addf %1042, %1045 : vector<8x64xf32>
    %1047 = vector.extract_strided_slice %1009 {offsets = [16, 384], sizes = [8, 64], strides = [1, 1]} : vector<24x576xf32> to vector<8x64xf32>
    %1048 = vector.broadcast %1036 : vector<8x1xf32> to vector<8x64xf32>
    %1049 = arith.mulf %1048, %1047 : vector<8x64xf32>
    %1050 = arith.addf %1046, %1049 : vector<8x64xf32>
    %1051 = vector.broadcast %1039 : vector<8x1xf32> to vector<8x64xf32>
    %1052 = arith.mulf %1050, %1051 : vector<8x64xf32>
    %1053 = vector.extract_strided_slice %1009 {offsets = [0, 64], sizes = [8, 64], strides = [1, 1]} : vector<24x576xf32> to vector<8x64xf32>
    %1054 = vector.extract_strided_slice %1009 {offsets = [0, 256], sizes = [8, 64], strides = [1, 1]} : vector<24x576xf32> to vector<8x64xf32>
    %1055 = arith.mulf %1053, %1054 : vector<8x64xf32>
    %cst_188 = arith.constant dense<0.000000e+00> : vector<8xf32>
    %1056 = vector.multi_reduction <add>, %1055, %cst_188 [1] : vector<8x64xf32> to vector<8xf32>
    %1057 = vector.shape_cast %1056 : vector<8xf32> to vector<8x1xf32>
    %1058 = vector.broadcast %994 : f32 to vector<8x1xf32>
    %1059 = arith.addf %1057, %1058 : vector<8x1xf32>
    %1060 = vector.extract_strided_slice %1009 {offsets = [8, 256], sizes = [8, 64], strides = [1, 1]} : vector<24x576xf32> to vector<8x64xf32>
    %1061 = arith.mulf %1053, %1060 : vector<8x64xf32>
    %cst_189 = arith.constant dense<0.000000e+00> : vector<8xf32>
    %1062 = vector.multi_reduction <add>, %1061, %cst_189 [1] : vector<8x64xf32> to vector<8xf32>
    %1063 = vector.shape_cast %1062 : vector<8xf32> to vector<8x1xf32>
    %1064 = vector.broadcast %995 : f32 to vector<8x1xf32>
    %1065 = arith.addf %1063, %1064 : vector<8x1xf32>
    %1066 = vector.extract_strided_slice %1009 {offsets = [16, 256], sizes = [8, 64], strides = [1, 1]} : vector<24x576xf32> to vector<8x64xf32>
    %1067 = arith.mulf %1053, %1066 : vector<8x64xf32>
    %cst_190 = arith.constant dense<0.000000e+00> : vector<8xf32>
    %1068 = vector.multi_reduction <add>, %1067, %cst_190 [1] : vector<8x64xf32> to vector<8xf32>
    %1069 = vector.shape_cast %1068 : vector<8xf32> to vector<8x1xf32>
    %1070 = vector.broadcast %996 : f32 to vector<8x1xf32>
    %1071 = arith.addf %1069, %1070 : vector<8x1xf32>
    %1072 = arith.maximumf %1059, %1065 : vector<8x1xf32>
    %1073 = arith.maximumf %1072, %1071 : vector<8x1xf32>
    %1074 = arith.subf %1059, %1073 : vector<8x1xf32>
    %1075 = math.exp %1074 : vector<8x1xf32>
    %1076 = arith.subf %1065, %1073 : vector<8x1xf32>
    %1077 = math.exp %1076 : vector<8x1xf32>
    %1078 = arith.subf %1071, %1073 : vector<8x1xf32>
    %1079 = math.exp %1078 : vector<8x1xf32>
    %1080 = arith.addf %1075, %1077 : vector<8x1xf32>
    %1081 = arith.addf %1080, %1079 : vector<8x1xf32>
    %1082 = tpu.reciprocal %1081 {approx = true} : vector<8x1xf32> -> vector<8x1xf32>
    %1083 = vector.extract_strided_slice %1009 {offsets = [0, 448], sizes = [8, 64], strides = [1, 1]} : vector<24x576xf32> to vector<8x64xf32>
    %1084 = vector.broadcast %1075 : vector<8x1xf32> to vector<8x64xf32>
    %1085 = arith.mulf %1084, %1083 : vector<8x64xf32>
    %1086 = vector.extract_strided_slice %1009 {offsets = [8, 448], sizes = [8, 64], strides = [1, 1]} : vector<24x576xf32> to vector<8x64xf32>
    %1087 = vector.broadcast %1077 : vector<8x1xf32> to vector<8x64xf32>
    %1088 = arith.mulf %1087, %1086 : vector<8x64xf32>
    %1089 = arith.addf %1085, %1088 : vector<8x64xf32>
    %1090 = vector.extract_strided_slice %1009 {offsets = [16, 448], sizes = [8, 64], strides = [1, 1]} : vector<24x576xf32> to vector<8x64xf32>
    %1091 = vector.broadcast %1079 : vector<8x1xf32> to vector<8x64xf32>
    %1092 = arith.mulf %1091, %1090 : vector<8x64xf32>
    %1093 = arith.addf %1089, %1092 : vector<8x64xf32>
    %1094 = vector.broadcast %1082 : vector<8x1xf32> to vector<8x64xf32>
    %1095 = arith.mulf %1093, %1094 : vector<8x64xf32>
    %1096 = vector.extract_strided_slice %1009 {offsets = [0, 128], sizes = [8, 64], strides = [1, 1]} : vector<24x576xf32> to vector<8x64xf32>
    %1097 = vector.extract_strided_slice %1009 {offsets = [0, 320], sizes = [8, 64], strides = [1, 1]} : vector<24x576xf32> to vector<8x64xf32>
    %1098 = arith.mulf %1096, %1097 : vector<8x64xf32>
    %cst_191 = arith.constant dense<0.000000e+00> : vector<8xf32>
    %1099 = vector.multi_reduction <add>, %1098, %cst_191 [1] : vector<8x64xf32> to vector<8xf32>
    %1100 = vector.shape_cast %1099 : vector<8xf32> to vector<8x1xf32>
    %1101 = vector.broadcast %994 : f32 to vector<8x1xf32>
    %1102 = arith.addf %1100, %1101 : vector<8x1xf32>
    %1103 = vector.extract_strided_slice %1009 {offsets = [8, 320], sizes = [8, 64], strides = [1, 1]} : vector<24x576xf32> to vector<8x64xf32>
    %1104 = arith.mulf %1096, %1103 : vector<8x64xf32>
    %cst_192 = arith.constant dense<0.000000e+00> : vector<8xf32>
    %1105 = vector.multi_reduction <add>, %1104, %cst_192 [1] : vector<8x64xf32> to vector<8xf32>
    %1106 = vector.shape_cast %1105 : vector<8xf32> to vector<8x1xf32>
    %1107 = vector.broadcast %995 : f32 to vector<8x1xf32>
    %1108 = arith.addf %1106, %1107 : vector<8x1xf32>
    %1109 = vector.extract_strided_slice %1009 {offsets = [16, 320], sizes = [8, 64], strides = [1, 1]} : vector<24x576xf32> to vector<8x64xf32>
    %1110 = arith.mulf %1096, %1109 : vector<8x64xf32>
    %cst_193 = arith.constant dense<0.000000e+00> : vector<8xf32>
    %1111 = vector.multi_reduction <add>, %1110, %cst_193 [1] : vector<8x64xf32> to vector<8xf32>
    %1112 = vector.shape_cast %1111 : vector<8xf32> to vector<8x1xf32>
    %1113 = vector.broadcast %996 : f32 to vector<8x1xf32>
    %1114 = arith.addf %1112, %1113 : vector<8x1xf32>
    %1115 = arith.maximumf %1102, %1108 : vector<8x1xf32>
    %1116 = arith.maximumf %1115, %1114 : vector<8x1xf32>
    %1117 = arith.subf %1102, %1116 : vector<8x1xf32>
    %1118 = math.exp %1117 : vector<8x1xf32>
    %1119 = arith.subf %1108, %1116 : vector<8x1xf32>
    %1120 = math.exp %1119 : vector<8x1xf32>
    %1121 = arith.subf %1114, %1116 : vector<8x1xf32>
    %1122 = math.exp %1121 : vector<8x1xf32>
    %1123 = arith.addf %1118, %1120 : vector<8x1xf32>
    %1124 = arith.addf %1123, %1122 : vector<8x1xf32>
    %1125 = tpu.reciprocal %1124 {approx = true} : vector<8x1xf32> -> vector<8x1xf32>
    %1126 = vector.extract_strided_slice %1009 {offsets = [0, 512], sizes = [8, 64], strides = [1, 1]} : vector<24x576xf32> to vector<8x64xf32>
    %1127 = vector.broadcast %1118 : vector<8x1xf32> to vector<8x64xf32>
    %1128 = arith.mulf %1127, %1126 : vector<8x64xf32>
    %1129 = vector.extract_strided_slice %1009 {offsets = [8, 512], sizes = [8, 64], strides = [1, 1]} : vector<24x576xf32> to vector<8x64xf32>
    %1130 = vector.broadcast %1120 : vector<8x1xf32> to vector<8x64xf32>
    %1131 = arith.mulf %1130, %1129 : vector<8x64xf32>
    %1132 = arith.addf %1128, %1131 : vector<8x64xf32>
    %1133 = vector.extract_strided_slice %1009 {offsets = [16, 512], sizes = [8, 64], strides = [1, 1]} : vector<24x576xf32> to vector<8x64xf32>
    %1134 = vector.broadcast %1122 : vector<8x1xf32> to vector<8x64xf32>
    %1135 = arith.mulf %1134, %1133 : vector<8x64xf32>
    %1136 = arith.addf %1132, %1135 : vector<8x64xf32>
    %1137 = vector.broadcast %1125 : vector<8x1xf32> to vector<8x64xf32>
    %1138 = arith.mulf %1136, %1137 : vector<8x64xf32>
    %1139 = tpu.concatenate %1052, %1095, %1138 in 1 : vector<8x64xf32>, vector<8x64xf32>, vector<8x64xf32> -> vector<8x192xf32>
    %c2_194 = arith.constant 2 : index
    %c0_195 = arith.constant 0 : index
    %c0_196 = arith.constant 0 : index
    %1140 = vector.load %arg4[%c2_194, %c0_195, %c0_196] : memref<3x192x64xf32, #tpu.memory_space<vmem>>, vector<1x192x64xf32>
    %1141 = vector.shape_cast %1140 : vector<1x192x64xf32> to vector<192x64xf32>
    %cst_197 = arith.constant dense<0.000000e+00> : vector<8x64xf32>
    %1142 = tpu.matmul %1139, %1141, %cst_197 {dimension_numbers = #tpu.dot_dimension_numbers<[1], [0], [0], [1], [0, 0, 1, 1], [], []>} : vector<8x192xf32>, vector<192x64xf32>, vector<8x64xf32> -> vector<8x64xf32>
    %c2_198 = arith.constant 2 : index
    %c0_199 = arith.constant 0 : index
    %c0_200 = arith.constant 0 : index
    %1143 = vector.load %arg5[%c2_198, %c0_199, %c0_200] : memref<3x1x64xf32, #tpu.memory_space<vmem>>, vector<1x1x64xf32>
    %1144 = vector.shape_cast %1143 : vector<1x1x64xf32> to vector<1x64xf32>
    %1145 = vector.broadcast %1144 : vector<1x64xf32> to vector<8x64xf32>
    %1146 = arith.addf %1142, %1145 : vector<8x64xf32>
    %1147 = vector.extract_strided_slice %1009 {offsets = [8, 0], sizes = [8, 64], strides = [1, 1]} : vector<24x576xf32> to vector<8x64xf32>
    %1148 = vector.extract_strided_slice %1009 {offsets = [0, 192], sizes = [8, 64], strides = [1, 1]} : vector<24x576xf32> to vector<8x64xf32>
    %1149 = arith.mulf %1147, %1148 : vector<8x64xf32>
    %cst_201 = arith.constant dense<0.000000e+00> : vector<8xf32>
    %1150 = vector.multi_reduction <add>, %1149, %cst_201 [1] : vector<8x64xf32> to vector<8xf32>
    %1151 = vector.shape_cast %1150 : vector<8xf32> to vector<8x1xf32>
    %1152 = vector.broadcast %997 : f32 to vector<8x1xf32>
    %1153 = arith.addf %1151, %1152 : vector<8x1xf32>
    %1154 = vector.extract_strided_slice %1009 {offsets = [8, 192], sizes = [8, 64], strides = [1, 1]} : vector<24x576xf32> to vector<8x64xf32>
    %1155 = arith.mulf %1147, %1154 : vector<8x64xf32>
    %cst_202 = arith.constant dense<0.000000e+00> : vector<8xf32>
    %1156 = vector.multi_reduction <add>, %1155, %cst_202 [1] : vector<8x64xf32> to vector<8xf32>
    %1157 = vector.shape_cast %1156 : vector<8xf32> to vector<8x1xf32>
    %1158 = vector.broadcast %998 : f32 to vector<8x1xf32>
    %1159 = arith.addf %1157, %1158 : vector<8x1xf32>
    %1160 = vector.extract_strided_slice %1009 {offsets = [16, 192], sizes = [8, 64], strides = [1, 1]} : vector<24x576xf32> to vector<8x64xf32>
    %1161 = arith.mulf %1147, %1160 : vector<8x64xf32>
    %cst_203 = arith.constant dense<0.000000e+00> : vector<8xf32>
    %1162 = vector.multi_reduction <add>, %1161, %cst_203 [1] : vector<8x64xf32> to vector<8xf32>
    %1163 = vector.shape_cast %1162 : vector<8xf32> to vector<8x1xf32>
    %1164 = vector.broadcast %999 : f32 to vector<8x1xf32>
    %1165 = arith.addf %1163, %1164 : vector<8x1xf32>
    %1166 = arith.maximumf %1153, %1159 : vector<8x1xf32>
    %1167 = arith.maximumf %1166, %1165 : vector<8x1xf32>
    %1168 = arith.subf %1153, %1167 : vector<8x1xf32>
    %1169 = math.exp %1168 : vector<8x1xf32>
    %1170 = arith.subf %1159, %1167 : vector<8x1xf32>
    %1171 = math.exp %1170 : vector<8x1xf32>
    %1172 = arith.subf %1165, %1167 : vector<8x1xf32>
    %1173 = math.exp %1172 : vector<8x1xf32>
    %1174 = arith.addf %1169, %1171 : vector<8x1xf32>
    %1175 = arith.addf %1174, %1173 : vector<8x1xf32>
    %1176 = tpu.reciprocal %1175 {approx = true} : vector<8x1xf32> -> vector<8x1xf32>
    %1177 = vector.extract_strided_slice %1009 {offsets = [0, 384], sizes = [8, 64], strides = [1, 1]} : vector<24x576xf32> to vector<8x64xf32>
    %1178 = vector.broadcast %1169 : vector<8x1xf32> to vector<8x64xf32>
    %1179 = arith.mulf %1178, %1177 : vector<8x64xf32>
    %1180 = vector.extract_strided_slice %1009 {offsets = [8, 384], sizes = [8, 64], strides = [1, 1]} : vector<24x576xf32> to vector<8x64xf32>
    %1181 = vector.broadcast %1171 : vector<8x1xf32> to vector<8x64xf32>
    %1182 = arith.mulf %1181, %1180 : vector<8x64xf32>
    %1183 = arith.addf %1179, %1182 : vector<8x64xf32>
    %1184 = vector.extract_strided_slice %1009 {offsets = [16, 384], sizes = [8, 64], strides = [1, 1]} : vector<24x576xf32> to vector<8x64xf32>
    %1185 = vector.broadcast %1173 : vector<8x1xf32> to vector<8x64xf32>
    %1186 = arith.mulf %1185, %1184 : vector<8x64xf32>
    %1187 = arith.addf %1183, %1186 : vector<8x64xf32>
    %1188 = vector.broadcast %1176 : vector<8x1xf32> to vector<8x64xf32>
    %1189 = arith.mulf %1187, %1188 : vector<8x64xf32>
    %1190 = vector.extract_strided_slice %1009 {offsets = [8, 64], sizes = [8, 64], strides = [1, 1]} : vector<24x576xf32> to vector<8x64xf32>
    %1191 = vector.extract_strided_slice %1009 {offsets = [0, 256], sizes = [8, 64], strides = [1, 1]} : vector<24x576xf32> to vector<8x64xf32>
    %1192 = arith.mulf %1190, %1191 : vector<8x64xf32>
    %cst_204 = arith.constant dense<0.000000e+00> : vector<8xf32>
    %1193 = vector.multi_reduction <add>, %1192, %cst_204 [1] : vector<8x64xf32> to vector<8xf32>
    %1194 = vector.shape_cast %1193 : vector<8xf32> to vector<8x1xf32>
    %1195 = vector.broadcast %997 : f32 to vector<8x1xf32>
    %1196 = arith.addf %1194, %1195 : vector<8x1xf32>
    %1197 = vector.extract_strided_slice %1009 {offsets = [8, 256], sizes = [8, 64], strides = [1, 1]} : vector<24x576xf32> to vector<8x64xf32>
    %1198 = arith.mulf %1190, %1197 : vector<8x64xf32>
    %cst_205 = arith.constant dense<0.000000e+00> : vector<8xf32>
    %1199 = vector.multi_reduction <add>, %1198, %cst_205 [1] : vector<8x64xf32> to vector<8xf32>
    %1200 = vector.shape_cast %1199 : vector<8xf32> to vector<8x1xf32>
    %1201 = vector.broadcast %998 : f32 to vector<8x1xf32>
    %1202 = arith.addf %1200, %1201 : vector<8x1xf32>
    %1203 = vector.extract_strided_slice %1009 {offsets = [16, 256], sizes = [8, 64], strides = [1, 1]} : vector<24x576xf32> to vector<8x64xf32>
    %1204 = arith.mulf %1190, %1203 : vector<8x64xf32>
    %cst_206 = arith.constant dense<0.000000e+00> : vector<8xf32>
    %1205 = vector.multi_reduction <add>, %1204, %cst_206 [1] : vector<8x64xf32> to vector<8xf32>
    %1206 = vector.shape_cast %1205 : vector<8xf32> to vector<8x1xf32>
    %1207 = vector.broadcast %999 : f32 to vector<8x1xf32>
    %1208 = arith.addf %1206, %1207 : vector<8x1xf32>
    %1209 = arith.maximumf %1196, %1202 : vector<8x1xf32>
    %1210 = arith.maximumf %1209, %1208 : vector<8x1xf32>
    %1211 = arith.subf %1196, %1210 : vector<8x1xf32>
    %1212 = math.exp %1211 : vector<8x1xf32>
    %1213 = arith.subf %1202, %1210 : vector<8x1xf32>
    %1214 = math.exp %1213 : vector<8x1xf32>
    %1215 = arith.subf %1208, %1210 : vector<8x1xf32>
    %1216 = math.exp %1215 : vector<8x1xf32>
    %1217 = arith.addf %1212, %1214 : vector<8x1xf32>
    %1218 = arith.addf %1217, %1216 : vector<8x1xf32>
    %1219 = tpu.reciprocal %1218 {approx = true} : vector<8x1xf32> -> vector<8x1xf32>
    %1220 = vector.extract_strided_slice %1009 {offsets = [0, 448], sizes = [8, 64], strides = [1, 1]} : vector<24x576xf32> to vector<8x64xf32>
    %1221 = vector.broadcast %1212 : vector<8x1xf32> to vector<8x64xf32>
    %1222 = arith.mulf %1221, %1220 : vector<8x64xf32>
    %1223 = vector.extract_strided_slice %1009 {offsets = [8, 448], sizes = [8, 64], strides = [1, 1]} : vector<24x576xf32> to vector<8x64xf32>
    %1224 = vector.broadcast %1214 : vector<8x1xf32> to vector<8x64xf32>
    %1225 = arith.mulf %1224, %1223 : vector<8x64xf32>
    %1226 = arith.addf %1222, %1225 : vector<8x64xf32>
    %1227 = vector.extract_strided_slice %1009 {offsets = [16, 448], sizes = [8, 64], strides = [1, 1]} : vector<24x576xf32> to vector<8x64xf32>
    %1228 = vector.broadcast %1216 : vector<8x1xf32> to vector<8x64xf32>
    %1229 = arith.mulf %1228, %1227 : vector<8x64xf32>
    %1230 = arith.addf %1226, %1229 : vector<8x64xf32>
    %1231 = vector.broadcast %1219 : vector<8x1xf32> to vector<8x64xf32>
    %1232 = arith.mulf %1230, %1231 : vector<8x64xf32>
    %1233 = vector.extract_strided_slice %1009 {offsets = [8, 128], sizes = [8, 64], strides = [1, 1]} : vector<24x576xf32> to vector<8x64xf32>
    %1234 = vector.extract_strided_slice %1009 {offsets = [0, 320], sizes = [8, 64], strides = [1, 1]} : vector<24x576xf32> to vector<8x64xf32>
    %1235 = arith.mulf %1233, %1234 : vector<8x64xf32>
    %cst_207 = arith.constant dense<0.000000e+00> : vector<8xf32>
    %1236 = vector.multi_reduction <add>, %1235, %cst_207 [1] : vector<8x64xf32> to vector<8xf32>
    %1237 = vector.shape_cast %1236 : vector<8xf32> to vector<8x1xf32>
    %1238 = vector.broadcast %997 : f32 to vector<8x1xf32>
    %1239 = arith.addf %1237, %1238 : vector<8x1xf32>
    %1240 = vector.extract_strided_slice %1009 {offsets = [8, 320], sizes = [8, 64], strides = [1, 1]} : vector<24x576xf32> to vector<8x64xf32>
    %1241 = arith.mulf %1233, %1240 : vector<8x64xf32>
    %cst_208 = arith.constant dense<0.000000e+00> : vector<8xf32>
    %1242 = vector.multi_reduction <add>, %1241, %cst_208 [1] : vector<8x64xf32> to vector<8xf32>
    %1243 = vector.shape_cast %1242 : vector<8xf32> to vector<8x1xf32>
    %1244 = vector.broadcast %998 : f32 to vector<8x1xf32>
    %1245 = arith.addf %1243, %1244 : vector<8x1xf32>
    %1246 = vector.extract_strided_slice %1009 {offsets = [16, 320], sizes = [8, 64], strides = [1, 1]} : vector<24x576xf32> to vector<8x64xf32>
    %1247 = arith.mulf %1233, %1246 : vector<8x64xf32>
    %cst_209 = arith.constant dense<0.000000e+00> : vector<8xf32>
    %1248 = vector.multi_reduction <add>, %1247, %cst_209 [1] : vector<8x64xf32> to vector<8xf32>
    %1249 = vector.shape_cast %1248 : vector<8xf32> to vector<8x1xf32>
    %1250 = vector.broadcast %999 : f32 to vector<8x1xf32>
    %1251 = arith.addf %1249, %1250 : vector<8x1xf32>
    %1252 = arith.maximumf %1239, %1245 : vector<8x1xf32>
    %1253 = arith.maximumf %1252, %1251 : vector<8x1xf32>
    %1254 = arith.subf %1239, %1253 : vector<8x1xf32>
    %1255 = math.exp %1254 : vector<8x1xf32>
    %1256 = arith.subf %1245, %1253 : vector<8x1xf32>
    %1257 = math.exp %1256 : vector<8x1xf32>
    %1258 = arith.subf %1251, %1253 : vector<8x1xf32>
    %1259 = math.exp %1258 : vector<8x1xf32>
    %1260 = arith.addf %1255, %1257 : vector<8x1xf32>
    %1261 = arith.addf %1260, %1259 : vector<8x1xf32>
    %1262 = tpu.reciprocal %1261 {approx = true} : vector<8x1xf32> -> vector<8x1xf32>
    %1263 = vector.extract_strided_slice %1009 {offsets = [0, 512], sizes = [8, 64], strides = [1, 1]} : vector<24x576xf32> to vector<8x64xf32>
    %1264 = vector.broadcast %1255 : vector<8x1xf32> to vector<8x64xf32>
    %1265 = arith.mulf %1264, %1263 : vector<8x64xf32>
    %1266 = vector.extract_strided_slice %1009 {offsets = [8, 512], sizes = [8, 64], strides = [1, 1]} : vector<24x576xf32> to vector<8x64xf32>
    %1267 = vector.broadcast %1257 : vector<8x1xf32> to vector<8x64xf32>
    %1268 = arith.mulf %1267, %1266 : vector<8x64xf32>
    %1269 = arith.addf %1265, %1268 : vector<8x64xf32>
    %1270 = vector.extract_strided_slice %1009 {offsets = [16, 512], sizes = [8, 64], strides = [1, 1]} : vector<24x576xf32> to vector<8x64xf32>
    %1271 = vector.broadcast %1259 : vector<8x1xf32> to vector<8x64xf32>
    %1272 = arith.mulf %1271, %1270 : vector<8x64xf32>
    %1273 = arith.addf %1269, %1272 : vector<8x64xf32>
    %1274 = vector.broadcast %1262 : vector<8x1xf32> to vector<8x64xf32>
    %1275 = arith.mulf %1273, %1274 : vector<8x64xf32>
    %1276 = tpu.concatenate %1189, %1232, %1275 in 1 : vector<8x64xf32>, vector<8x64xf32>, vector<8x64xf32> -> vector<8x192xf32>
    %c2_210 = arith.constant 2 : index
    %c0_211 = arith.constant 0 : index
    %c0_212 = arith.constant 0 : index
    %1277 = vector.load %arg4[%c2_210, %c0_211, %c0_212] : memref<3x192x64xf32, #tpu.memory_space<vmem>>, vector<1x192x64xf32>
    %1278 = vector.shape_cast %1277 : vector<1x192x64xf32> to vector<192x64xf32>
    %cst_213 = arith.constant dense<0.000000e+00> : vector<8x64xf32>
    %1279 = tpu.matmul %1276, %1278, %cst_213 {dimension_numbers = #tpu.dot_dimension_numbers<[1], [0], [0], [1], [0, 0, 1, 1], [], []>} : vector<8x192xf32>, vector<192x64xf32>, vector<8x64xf32> -> vector<8x64xf32>
    %c2_214 = arith.constant 2 : index
    %c0_215 = arith.constant 0 : index
    %c0_216 = arith.constant 0 : index
    %1280 = vector.load %arg5[%c2_214, %c0_215, %c0_216] : memref<3x1x64xf32, #tpu.memory_space<vmem>>, vector<1x1x64xf32>
    %1281 = vector.shape_cast %1280 : vector<1x1x64xf32> to vector<1x64xf32>
    %1282 = vector.broadcast %1281 : vector<1x64xf32> to vector<8x64xf32>
    %1283 = arith.addf %1279, %1282 : vector<8x64xf32>
    %1284 = vector.extract_strided_slice %1009 {offsets = [16, 0], sizes = [8, 64], strides = [1, 1]} : vector<24x576xf32> to vector<8x64xf32>
    %1285 = vector.extract_strided_slice %1009 {offsets = [0, 192], sizes = [8, 64], strides = [1, 1]} : vector<24x576xf32> to vector<8x64xf32>
    %1286 = arith.mulf %1284, %1285 : vector<8x64xf32>
    %cst_217 = arith.constant dense<0.000000e+00> : vector<8xf32>
    %1287 = vector.multi_reduction <add>, %1286, %cst_217 [1] : vector<8x64xf32> to vector<8xf32>
    %1288 = vector.shape_cast %1287 : vector<8xf32> to vector<8x1xf32>
    %1289 = vector.broadcast %1000 : f32 to vector<8x1xf32>
    %1290 = arith.addf %1288, %1289 : vector<8x1xf32>
    %1291 = vector.extract_strided_slice %1009 {offsets = [8, 192], sizes = [8, 64], strides = [1, 1]} : vector<24x576xf32> to vector<8x64xf32>
    %1292 = arith.mulf %1284, %1291 : vector<8x64xf32>
    %cst_218 = arith.constant dense<0.000000e+00> : vector<8xf32>
    %1293 = vector.multi_reduction <add>, %1292, %cst_218 [1] : vector<8x64xf32> to vector<8xf32>
    %1294 = vector.shape_cast %1293 : vector<8xf32> to vector<8x1xf32>
    %1295 = vector.broadcast %1001 : f32 to vector<8x1xf32>
    %1296 = arith.addf %1294, %1295 : vector<8x1xf32>
    %1297 = vector.extract_strided_slice %1009 {offsets = [16, 192], sizes = [8, 64], strides = [1, 1]} : vector<24x576xf32> to vector<8x64xf32>
    %1298 = arith.mulf %1284, %1297 : vector<8x64xf32>
    %cst_219 = arith.constant dense<0.000000e+00> : vector<8xf32>
    %1299 = vector.multi_reduction <add>, %1298, %cst_219 [1] : vector<8x64xf32> to vector<8xf32>
    %1300 = vector.shape_cast %1299 : vector<8xf32> to vector<8x1xf32>
    %1301 = vector.broadcast %1002 : f32 to vector<8x1xf32>
    %1302 = arith.addf %1300, %1301 : vector<8x1xf32>
    %1303 = arith.maximumf %1290, %1296 : vector<8x1xf32>
    %1304 = arith.maximumf %1303, %1302 : vector<8x1xf32>
    %1305 = arith.subf %1290, %1304 : vector<8x1xf32>
    %1306 = math.exp %1305 : vector<8x1xf32>
    %1307 = arith.subf %1296, %1304 : vector<8x1xf32>
    %1308 = math.exp %1307 : vector<8x1xf32>
    %1309 = arith.subf %1302, %1304 : vector<8x1xf32>
    %1310 = math.exp %1309 : vector<8x1xf32>
    %1311 = arith.addf %1306, %1308 : vector<8x1xf32>
    %1312 = arith.addf %1311, %1310 : vector<8x1xf32>
    %1313 = tpu.reciprocal %1312 {approx = true} : vector<8x1xf32> -> vector<8x1xf32>
    %1314 = vector.extract_strided_slice %1009 {offsets = [0, 384], sizes = [8, 64], strides = [1, 1]} : vector<24x576xf32> to vector<8x64xf32>
    %1315 = vector.broadcast %1306 : vector<8x1xf32> to vector<8x64xf32>
    %1316 = arith.mulf %1315, %1314 : vector<8x64xf32>
    %1317 = vector.extract_strided_slice %1009 {offsets = [8, 384], sizes = [8, 64], strides = [1, 1]} : vector<24x576xf32> to vector<8x64xf32>
    %1318 = vector.broadcast %1308 : vector<8x1xf32> to vector<8x64xf32>
    %1319 = arith.mulf %1318, %1317 : vector<8x64xf32>
    %1320 = arith.addf %1316, %1319 : vector<8x64xf32>
    %1321 = vector.extract_strided_slice %1009 {offsets = [16, 384], sizes = [8, 64], strides = [1, 1]} : vector<24x576xf32> to vector<8x64xf32>
    %1322 = vector.broadcast %1310 : vector<8x1xf32> to vector<8x64xf32>
    %1323 = arith.mulf %1322, %1321 : vector<8x64xf32>
    %1324 = arith.addf %1320, %1323 : vector<8x64xf32>
    %1325 = vector.broadcast %1313 : vector<8x1xf32> to vector<8x64xf32>
    %1326 = arith.mulf %1324, %1325 : vector<8x64xf32>
    %1327 = vector.extract_strided_slice %1009 {offsets = [16, 64], sizes = [8, 64], strides = [1, 1]} : vector<24x576xf32> to vector<8x64xf32>
    %1328 = vector.extract_strided_slice %1009 {offsets = [0, 256], sizes = [8, 64], strides = [1, 1]} : vector<24x576xf32> to vector<8x64xf32>
    %1329 = arith.mulf %1327, %1328 : vector<8x64xf32>
    %cst_220 = arith.constant dense<0.000000e+00> : vector<8xf32>
    %1330 = vector.multi_reduction <add>, %1329, %cst_220 [1] : vector<8x64xf32> to vector<8xf32>
    %1331 = vector.shape_cast %1330 : vector<8xf32> to vector<8x1xf32>
    %1332 = vector.broadcast %1000 : f32 to vector<8x1xf32>
    %1333 = arith.addf %1331, %1332 : vector<8x1xf32>
    %1334 = vector.extract_strided_slice %1009 {offsets = [8, 256], sizes = [8, 64], strides = [1, 1]} : vector<24x576xf32> to vector<8x64xf32>
    %1335 = arith.mulf %1327, %1334 : vector<8x64xf32>
    %cst_221 = arith.constant dense<0.000000e+00> : vector<8xf32>
    %1336 = vector.multi_reduction <add>, %1335, %cst_221 [1] : vector<8x64xf32> to vector<8xf32>
    %1337 = vector.shape_cast %1336 : vector<8xf32> to vector<8x1xf32>
    %1338 = vector.broadcast %1001 : f32 to vector<8x1xf32>
    %1339 = arith.addf %1337, %1338 : vector<8x1xf32>
    %1340 = vector.extract_strided_slice %1009 {offsets = [16, 256], sizes = [8, 64], strides = [1, 1]} : vector<24x576xf32> to vector<8x64xf32>
    %1341 = arith.mulf %1327, %1340 : vector<8x64xf32>
    %cst_222 = arith.constant dense<0.000000e+00> : vector<8xf32>
    %1342 = vector.multi_reduction <add>, %1341, %cst_222 [1] : vector<8x64xf32> to vector<8xf32>
    %1343 = vector.shape_cast %1342 : vector<8xf32> to vector<8x1xf32>
    %1344 = vector.broadcast %1002 : f32 to vector<8x1xf32>
    %1345 = arith.addf %1343, %1344 : vector<8x1xf32>
    %1346 = arith.maximumf %1333, %1339 : vector<8x1xf32>
    %1347 = arith.maximumf %1346, %1345 : vector<8x1xf32>
    %1348 = arith.subf %1333, %1347 : vector<8x1xf32>
    %1349 = math.exp %1348 : vector<8x1xf32>
    %1350 = arith.subf %1339, %1347 : vector<8x1xf32>
    %1351 = math.exp %1350 : vector<8x1xf32>
    %1352 = arith.subf %1345, %1347 : vector<8x1xf32>
    %1353 = math.exp %1352 : vector<8x1xf32>
    %1354 = arith.addf %1349, %1351 : vector<8x1xf32>
    %1355 = arith.addf %1354, %1353 : vector<8x1xf32>
    %1356 = tpu.reciprocal %1355 {approx = true} : vector<8x1xf32> -> vector<8x1xf32>
    %1357 = vector.extract_strided_slice %1009 {offsets = [0, 448], sizes = [8, 64], strides = [1, 1]} : vector<24x576xf32> to vector<8x64xf32>
    %1358 = vector.broadcast %1349 : vector<8x1xf32> to vector<8x64xf32>
    %1359 = arith.mulf %1358, %1357 : vector<8x64xf32>
    %1360 = vector.extract_strided_slice %1009 {offsets = [8, 448], sizes = [8, 64], strides = [1, 1]} : vector<24x576xf32> to vector<8x64xf32>
    %1361 = vector.broadcast %1351 : vector<8x1xf32> to vector<8x64xf32>
    %1362 = arith.mulf %1361, %1360 : vector<8x64xf32>
    %1363 = arith.addf %1359, %1362 : vector<8x64xf32>
    %1364 = vector.extract_strided_slice %1009 {offsets = [16, 448], sizes = [8, 64], strides = [1, 1]} : vector<24x576xf32> to vector<8x64xf32>
    %1365 = vector.broadcast %1353 : vector<8x1xf32> to vector<8x64xf32>
    %1366 = arith.mulf %1365, %1364 : vector<8x64xf32>
    %1367 = arith.addf %1363, %1366 : vector<8x64xf32>
    %1368 = vector.broadcast %1356 : vector<8x1xf32> to vector<8x64xf32>
    %1369 = arith.mulf %1367, %1368 : vector<8x64xf32>
    %1370 = vector.extract_strided_slice %1009 {offsets = [16, 128], sizes = [8, 64], strides = [1, 1]} : vector<24x576xf32> to vector<8x64xf32>
    %1371 = vector.extract_strided_slice %1009 {offsets = [0, 320], sizes = [8, 64], strides = [1, 1]} : vector<24x576xf32> to vector<8x64xf32>
    %1372 = arith.mulf %1370, %1371 : vector<8x64xf32>
    %cst_223 = arith.constant dense<0.000000e+00> : vector<8xf32>
    %1373 = vector.multi_reduction <add>, %1372, %cst_223 [1] : vector<8x64xf32> to vector<8xf32>
    %1374 = vector.shape_cast %1373 : vector<8xf32> to vector<8x1xf32>
    %1375 = vector.broadcast %1000 : f32 to vector<8x1xf32>
    %1376 = arith.addf %1374, %1375 : vector<8x1xf32>
    %1377 = vector.extract_strided_slice %1009 {offsets = [8, 320], sizes = [8, 64], strides = [1, 1]} : vector<24x576xf32> to vector<8x64xf32>
    %1378 = arith.mulf %1370, %1377 : vector<8x64xf32>
    %cst_224 = arith.constant dense<0.000000e+00> : vector<8xf32>
    %1379 = vector.multi_reduction <add>, %1378, %cst_224 [1] : vector<8x64xf32> to vector<8xf32>
    %1380 = vector.shape_cast %1379 : vector<8xf32> to vector<8x1xf32>
    %1381 = vector.broadcast %1001 : f32 to vector<8x1xf32>
    %1382 = arith.addf %1380, %1381 : vector<8x1xf32>
    %1383 = vector.extract_strided_slice %1009 {offsets = [16, 320], sizes = [8, 64], strides = [1, 1]} : vector<24x576xf32> to vector<8x64xf32>
    %1384 = arith.mulf %1370, %1383 : vector<8x64xf32>
    %cst_225 = arith.constant dense<0.000000e+00> : vector<8xf32>
    %1385 = vector.multi_reduction <add>, %1384, %cst_225 [1] : vector<8x64xf32> to vector<8xf32>
    %1386 = vector.shape_cast %1385 : vector<8xf32> to vector<8x1xf32>
    %1387 = vector.broadcast %1002 : f32 to vector<8x1xf32>
    %1388 = arith.addf %1386, %1387 : vector<8x1xf32>
    %1389 = arith.maximumf %1376, %1382 : vector<8x1xf32>
    %1390 = arith.maximumf %1389, %1388 : vector<8x1xf32>
    %1391 = arith.subf %1376, %1390 : vector<8x1xf32>
    %1392 = math.exp %1391 : vector<8x1xf32>
    %1393 = arith.subf %1382, %1390 : vector<8x1xf32>
    %1394 = math.exp %1393 : vector<8x1xf32>
    %1395 = arith.subf %1388, %1390 : vector<8x1xf32>
    %1396 = math.exp %1395 : vector<8x1xf32>
    %1397 = arith.addf %1392, %1394 : vector<8x1xf32>
    %1398 = arith.addf %1397, %1396 : vector<8x1xf32>
    %1399 = tpu.reciprocal %1398 {approx = true} : vector<8x1xf32> -> vector<8x1xf32>
    %1400 = vector.extract_strided_slice %1009 {offsets = [0, 512], sizes = [8, 64], strides = [1, 1]} : vector<24x576xf32> to vector<8x64xf32>
    %1401 = vector.broadcast %1392 : vector<8x1xf32> to vector<8x64xf32>
    %1402 = arith.mulf %1401, %1400 : vector<8x64xf32>
    %1403 = vector.extract_strided_slice %1009 {offsets = [8, 512], sizes = [8, 64], strides = [1, 1]} : vector<24x576xf32> to vector<8x64xf32>
    %1404 = vector.broadcast %1394 : vector<8x1xf32> to vector<8x64xf32>
    %1405 = arith.mulf %1404, %1403 : vector<8x64xf32>
    %1406 = arith.addf %1402, %1405 : vector<8x64xf32>
    %1407 = vector.extract_strided_slice %1009 {offsets = [16, 512], sizes = [8, 64], strides = [1, 1]} : vector<24x576xf32> to vector<8x64xf32>
    %1408 = vector.broadcast %1396 : vector<8x1xf32> to vector<8x64xf32>
    %1409 = arith.mulf %1408, %1407 : vector<8x64xf32>
    %1410 = arith.addf %1406, %1409 : vector<8x64xf32>
    %1411 = vector.broadcast %1399 : vector<8x1xf32> to vector<8x64xf32>
    %1412 = arith.mulf %1410, %1411 : vector<8x64xf32>
    %1413 = tpu.concatenate %1326, %1369, %1412 in 1 : vector<8x64xf32>, vector<8x64xf32>, vector<8x64xf32> -> vector<8x192xf32>
    %c2_226 = arith.constant 2 : index
    %c0_227 = arith.constant 0 : index
    %c0_228 = arith.constant 0 : index
    %1414 = vector.load %arg4[%c2_226, %c0_227, %c0_228] : memref<3x192x64xf32, #tpu.memory_space<vmem>>, vector<1x192x64xf32>
    %1415 = vector.shape_cast %1414 : vector<1x192x64xf32> to vector<192x64xf32>
    %cst_229 = arith.constant dense<0.000000e+00> : vector<8x64xf32>
    %1416 = tpu.matmul %1413, %1415, %cst_229 {dimension_numbers = #tpu.dot_dimension_numbers<[1], [0], [0], [1], [0, 0, 1, 1], [], []>} : vector<8x192xf32>, vector<192x64xf32>, vector<8x64xf32> -> vector<8x64xf32>
    %c2_230 = arith.constant 2 : index
    %c0_231 = arith.constant 0 : index
    %c0_232 = arith.constant 0 : index
    %1417 = vector.load %arg5[%c2_230, %c0_231, %c0_232] : memref<3x1x64xf32, #tpu.memory_space<vmem>>, vector<1x1x64xf32>
    %1418 = vector.shape_cast %1417 : vector<1x1x64xf32> to vector<1x64xf32>
    %1419 = vector.broadcast %1418 : vector<1x64xf32> to vector<8x64xf32>
    %1420 = arith.addf %1416, %1419 : vector<8x64xf32>
    %1421 = vector.extract_strided_slice %993 {offsets = [0, 0], sizes = [8, 64], strides = [1, 1]} : vector<24x64xf32> to vector<8x64xf32>
    %1422 = arith.addf %1146, %1421 : vector<8x64xf32>
    %1423 = vector.extract_strided_slice %993 {offsets = [8, 0], sizes = [8, 64], strides = [1, 1]} : vector<24x64xf32> to vector<8x64xf32>
    %1424 = arith.addf %1283, %1423 : vector<8x64xf32>
    %1425 = vector.extract_strided_slice %993 {offsets = [16, 0], sizes = [8, 64], strides = [1, 1]} : vector<24x64xf32> to vector<8x64xf32>
    %1426 = arith.addf %1420, %1425 : vector<8x64xf32>
    %cst_233 = arith.constant dense<0.000000e+00> : vector<8xf32>
    %1427 = vector.multi_reduction <add>, %1422, %cst_233 [1] : vector<8x64xf32> to vector<8xf32>
    %1428 = vector.shape_cast %1427 : vector<8xf32> to vector<8x1xf32>
    %cst_234 = arith.constant dense<0.000000e+00> : vector<8xf32>
    %1429 = vector.multi_reduction <add>, %1424, %cst_234 [1] : vector<8x64xf32> to vector<8xf32>
    %1430 = vector.shape_cast %1429 : vector<8xf32> to vector<8x1xf32>
    %1431 = arith.addf %1428, %1430 : vector<8x1xf32>
    %cst_235 = arith.constant dense<0.000000e+00> : vector<8xf32>
    %1432 = vector.multi_reduction <add>, %1426, %cst_235 [1] : vector<8x64xf32> to vector<8xf32>
    %1433 = vector.shape_cast %1432 : vector<8xf32> to vector<8x1xf32>
    %1434 = arith.addf %1431, %1433 : vector<8x1xf32>
    %cst_236 = arith.constant 0.00520833349 : f32
    %1435 = vector.broadcast %cst_236 : f32 to vector<8x1xf32>
    %1436 = arith.mulf %1434, %1435 : vector<8x1xf32>
    %1437 = vector.broadcast %1436 : vector<8x1xf32> to vector<8x64xf32>
    %1438 = arith.subf %1422, %1437 : vector<8x64xf32>
    %1439 = vector.broadcast %1436 : vector<8x1xf32> to vector<8x64xf32>
    %1440 = arith.subf %1424, %1439 : vector<8x64xf32>
    %1441 = vector.broadcast %1436 : vector<8x1xf32> to vector<8x64xf32>
    %1442 = arith.subf %1426, %1441 : vector<8x64xf32>
    %1443 = arith.mulf %1438, %1438 : vector<8x64xf32>
    %cst_237 = arith.constant dense<0.000000e+00> : vector<8xf32>
    %1444 = vector.multi_reduction <add>, %1443, %cst_237 [1] : vector<8x64xf32> to vector<8xf32>
    %1445 = vector.shape_cast %1444 : vector<8xf32> to vector<8x1xf32>
    %1446 = arith.mulf %1440, %1440 : vector<8x64xf32>
    %cst_238 = arith.constant dense<0.000000e+00> : vector<8xf32>
    %1447 = vector.multi_reduction <add>, %1446, %cst_238 [1] : vector<8x64xf32> to vector<8xf32>
    %1448 = vector.shape_cast %1447 : vector<8xf32> to vector<8x1xf32>
    %1449 = arith.addf %1445, %1448 : vector<8x1xf32>
    %1450 = arith.mulf %1442, %1442 : vector<8x64xf32>
    %cst_239 = arith.constant dense<0.000000e+00> : vector<8xf32>
    %1451 = vector.multi_reduction <add>, %1450, %cst_239 [1] : vector<8x64xf32> to vector<8xf32>
    %1452 = vector.shape_cast %1451 : vector<8xf32> to vector<8x1xf32>
    %1453 = arith.addf %1449, %1452 : vector<8x1xf32>
    %cst_240 = arith.constant 0.00520833349 : f32
    %1454 = vector.broadcast %cst_240 : f32 to vector<8x1xf32>
    %1455 = arith.mulf %1453, %1454 : vector<8x1xf32>
    %cst_241 = arith.constant 9.99999974E-6 : f32
    %1456 = vector.broadcast %cst_241 : f32 to vector<8x1xf32>
    %1457 = arith.addf %1455, %1456 : vector<8x1xf32>
    %1458 = math.rsqrt %1457 : vector<8x1xf32>
    %1459 = vector.broadcast %1458 : vector<8x1xf32> to vector<8x64xf32>
    %1460 = arith.mulf %1438, %1459 : vector<8x64xf32>
    %c2_242 = arith.constant 2 : index
    %c0_243 = arith.constant 0 : index
    %c0_244 = arith.constant 0 : index
    %c0_245 = arith.constant 0 : index
    %1461 = vector.load %arg7[%c2_242, %c0_243, %c0_244, %c0_245] : memref<3x3x1x64xf32, #tpu.memory_space<vmem>>, vector<1x1x1x64xf32>
    %1462 = vector.shape_cast %1461 : vector<1x1x1x64xf32> to vector<1x64xf32>
    %1463 = vector.broadcast %1462 : vector<1x64xf32> to vector<8x64xf32>
    %1464 = arith.mulf %1460, %1463 : vector<8x64xf32>
    %c2_246 = arith.constant 2 : index
    %c0_247 = arith.constant 0 : index
    %c0_248 = arith.constant 0 : index
    %c0_249 = arith.constant 0 : index
    %1465 = vector.load %arg8[%c2_246, %c0_247, %c0_248, %c0_249] : memref<3x3x1x64xf32, #tpu.memory_space<vmem>>, vector<1x1x1x64xf32>
    %1466 = vector.shape_cast %1465 : vector<1x1x1x64xf32> to vector<1x64xf32>
    %1467 = vector.broadcast %1466 : vector<1x64xf32> to vector<8x64xf32>
    %1468 = arith.addf %1464, %1467 : vector<8x64xf32>
    %1469 = vector.broadcast %1458 : vector<8x1xf32> to vector<8x64xf32>
    %1470 = arith.mulf %1440, %1469 : vector<8x64xf32>
    %c2_250 = arith.constant 2 : index
    %c1_251 = arith.constant 1 : index
    %c0_252 = arith.constant 0 : index
    %c0_253 = arith.constant 0 : index
    %1471 = vector.load %arg7[%c2_250, %c1_251, %c0_252, %c0_253] : memref<3x3x1x64xf32, #tpu.memory_space<vmem>>, vector<1x1x1x64xf32>
    %1472 = vector.shape_cast %1471 : vector<1x1x1x64xf32> to vector<1x64xf32>
    %1473 = vector.broadcast %1472 : vector<1x64xf32> to vector<8x64xf32>
    %1474 = arith.mulf %1470, %1473 : vector<8x64xf32>
    %c2_254 = arith.constant 2 : index
    %c1_255 = arith.constant 1 : index
    %c0_256 = arith.constant 0 : index
    %c0_257 = arith.constant 0 : index
    %1475 = vector.load %arg8[%c2_254, %c1_255, %c0_256, %c0_257] : memref<3x3x1x64xf32, #tpu.memory_space<vmem>>, vector<1x1x1x64xf32>
    %1476 = vector.shape_cast %1475 : vector<1x1x1x64xf32> to vector<1x64xf32>
    %1477 = vector.broadcast %1476 : vector<1x64xf32> to vector<8x64xf32>
    %1478 = arith.addf %1474, %1477 : vector<8x64xf32>
    %1479 = vector.broadcast %1458 : vector<8x1xf32> to vector<8x64xf32>
    %1480 = arith.mulf %1442, %1479 : vector<8x64xf32>
    %c2_258 = arith.constant 2 : index
    %c2_259 = arith.constant 2 : index
    %c0_260 = arith.constant 0 : index
    %c0_261 = arith.constant 0 : index
    %1481 = vector.load %arg7[%c2_258, %c2_259, %c0_260, %c0_261] : memref<3x3x1x64xf32, #tpu.memory_space<vmem>>, vector<1x1x1x64xf32>
    %1482 = vector.shape_cast %1481 : vector<1x1x1x64xf32> to vector<1x64xf32>
    %1483 = vector.broadcast %1482 : vector<1x64xf32> to vector<8x64xf32>
    %1484 = arith.mulf %1480, %1483 : vector<8x64xf32>
    %c2_262 = arith.constant 2 : index
    %c2_263 = arith.constant 2 : index
    %c0_264 = arith.constant 0 : index
    %c0_265 = arith.constant 0 : index
    %1485 = vector.load %arg8[%c2_262, %c2_263, %c0_264, %c0_265] : memref<3x3x1x64xf32, #tpu.memory_space<vmem>>, vector<1x1x1x64xf32>
    %1486 = vector.shape_cast %1485 : vector<1x1x1x64xf32> to vector<1x64xf32>
    %1487 = vector.broadcast %1486 : vector<1x64xf32> to vector<8x64xf32>
    %1488 = arith.addf %1484, %1487 : vector<8x64xf32>
    %1489 = arith.addf %1468, %1478 : vector<8x64xf32>
    %1490 = arith.addf %1489, %1488 : vector<8x64xf32>
    %cst_266 = arith.constant 0.333333343 : f32
    %1491 = vector.broadcast %cst_266 : f32 to vector<8x64xf32>
    %1492 = arith.mulf %1490, %1491 : vector<8x64xf32>
    %c0_267 = arith.constant 0 : index
    %c0_268 = arith.constant 0 : index
    %1493 = vector.load %arg9[%c0_267, %c0_268] : memref<8x64xf32, #tpu.memory_space<vmem>>, vector<8x64xf32>
    tpu.vector_store %arg9[%c0_267, %c0_268], %1492 {strides = array<i32>} : memref<8x64xf32, #tpu.memory_space<vmem>>, vector<8x64xf32>,
    return
  }
  func.func @transform_0(%arg0: i32) -> (i32, i32, i32) {
    %c0_i32 = arith.constant 0 : i32
    %c0_i32_0 = arith.constant 0 : i32
    %c0_i32_1 = arith.constant 0 : i32
    return %c0_i32, %arg0, %c0_i32_0 : i32, i32, i32
  }
  func.func @transform_1(%arg0: i32) -> (i32, i32, i32) {
    %c0_i32 = arith.constant 0 : i32
    %c0_i32_0 = arith.constant 0 : i32
    %c0_i32_1 = arith.constant 0 : i32
    %c0_i32_2 = arith.constant 0 : i32
    return %c0_i32, %c0_i32_0, %c0_i32_1 : i32, i32, i32
  }
  func.func @transform_2(%arg0: i32) -> (i32, i32, i32) {
    %c0_i32 = arith.constant 0 : i32
    %c0_i32_0 = arith.constant 0 : i32
    %c0_i32_1 = arith.constant 0 : i32
    %c0_i32_2 = arith.constant 0 : i32
    return %c0_i32, %c0_i32_0, %c0_i32_1 : i32, i32, i32
  }
  func.func @transform_3(%arg0: i32) -> (i32, i32, i32) {
    %c0_i32 = arith.constant 0 : i32
    %c0_i32_0 = arith.constant 0 : i32
    %c0_i32_1 = arith.constant 0 : i32
    %c0_i32_2 = arith.constant 0 : i32
    return %c0_i32, %c0_i32_0, %c0_i32_1 : i32, i32, i32
  }
  func.func @transform_4(%arg0: i32) -> (i32, i32, i32) {
    %c0_i32 = arith.constant 0 : i32
    %c0_i32_0 = arith.constant 0 : i32
    %c0_i32_1 = arith.constant 0 : i32
    %c0_i32_2 = arith.constant 0 : i32
    return %c0_i32, %c0_i32_0, %c0_i32_1 : i32, i32, i32
  }
  func.func @transform_5(%arg0: i32) -> i32 {
    %c0_i32 = arith.constant 0 : i32
    %c0_i32_0 = arith.constant 0 : i32
    return %c0_i32 : i32
  }
  func.func @transform_6(%arg0: i32) -> (i32, i32, i32, i32) {
    %c0_i32 = arith.constant 0 : i32
    %c0_i32_0 = arith.constant 0 : i32
    %c0_i32_1 = arith.constant 0 : i32
    %c0_i32_2 = arith.constant 0 : i32
    %c0_i32_3 = arith.constant 0 : i32
    return %c0_i32, %c0_i32_0, %c0_i32_1, %c0_i32_2 : i32, i32, i32, i32
  }
  func.func @transform_7(%arg0: i32) -> (i32, i32, i32, i32) {
    %c0_i32 = arith.constant 0 : i32
    %c0_i32_0 = arith.constant 0 : i32
    %c0_i32_1 = arith.constant 0 : i32
    %c0_i32_2 = arith.constant 0 : i32
    %c0_i32_3 = arith.constant 0 : i32
    return %c0_i32, %c0_i32_0, %c0_i32_1, %c0_i32_2 : i32, i32, i32, i32
  }
  func.func @transform_8(%arg0: i32) -> (i32, i32) {
    %c0_i32 = arith.constant 0 : i32
    %c0_i32_0 = arith.constant 0 : i32
    return %arg0, %c0_i32 : i32, i32
  }
}

</mosaic_0001>

<bundles_post_ra>
// kernel: tpu_custom_call.1
= control target key start
LH: loop header
LB: loop body
LE: loop exit
PB: predicated region body
PF: predicated region fallthrough
CT: control target
= control target key end

     0   :  { %13 = vsyncpa [#allocation3], 0  ;;  %s6255_s0 = inlined_call_operand.hbm [shape: f32[3,8,64], index: 0, kind: input, shape index: {}]   ;;  %s6256_s1 = inlined_call_operand.vmem [shape: f32[3,64,576], index: 1, kind: input, shape index: {}]   ;;  %s6257_s2 = inlined_call_operand.hbm [shape: f32[3,1,576], index: 2, kind: input, shape index: {}]   ;;  %s6258_s3 = inlined_call_operand.vmem [shape: f32[3,192,64], index: 3, kind: input, shape index: {}]   ;;  %s6259_s4 = inlined_call_operand.hbm [shape: f32[3,1,64], index: 4, kind: input, shape index: {}]   ;;  %s6260_s5 = inlined_call_operand.vmem [shape: f32[27], index: 5, kind: input, shape index: {}]   ;;  %s6261_s6 = inlined_call_operand.vmem [shape: f32[3,3,1,64], index: 6, kind: input, shape index: {}]   ;;  %s6262_s7 = inlined_call_operand.hbm [shape: f32[3,3,1,64], index: 7, kind: input, shape index: {}]   ;;  %s6263_s8 = inlined_call_operand.hbm [shape: f32[8,64], index: 8, kind: output, shape index: {}]  }
   0x1   :  { %14 = vsyncpa [#allocation7], 0 }
   0x2   :  { %15 = vsyncpa [#allocation5], 0 }
   0x3   :  { %16 = vsyncpa [#allocation11], 0 }
   0x4   :  { %17 = vsyncpa [#allocation4], 0  ;;  %s3999_s27 = smov [#allocation6]  }
   0x5   :  { %s37_s28 = sshll.u32 %s3999_s27, 4  ;;  %s38_s28 = int_to_ptr.vmem [resolvable:$true] %s37_s28 }
   0x6   :  { %s3885_s29 = scalar_lea.vmem %s38_s28, 240  ;;  %s3889_s30 = scalar_lea.vmem %s38_s28, 256 }
   0x7   :  { %p3886_p0 = scmp.ne.s32.totalorder %s38_s28, %s3885_s29  ;;  %p3890_p1 = scmp.lt.s32.totalorder %s38_s28, %s38_s28 }
   0x8   :  { %p3891_p2 = scmp.lt.s32.totalorder %s3889_s30, %s3885_s29 }
   0xa   :  { %p3892_p3 = por %p3891_p2, %p3890_p1 }
   0xc   :  { %p3893_p4 = pnand %p3892_p3, %p3886_p0 }
   0xe   :  { %3896 = shalt.err (!%p3893_p4)
}
   0xf   :  { %s4000_s9 = smov 80   ;;  %s4001_s10 = smov 5  }
  0x10   :  { %43 = dma.hbm_to_vmem [thread:$0]  %s6257_s2, 240, %s38_s28, [#allocation7], %s4000_s9, %s4000_s9, %s4001_s10  }
  0x11   :  { %s4002_s13 = smov [#allocation2]  }
  0x12   :  { %s23_s14 = sshll.u32 %s4002_s13, 4  ;;  %s24_s14 = int_to_ptr.vmem [resolvable:$true] %s23_s14 }
  0x13   :  { %s3905_s15 = scalar_lea.vmem %s24_s14, 384  ;;  %p3910_p6 = scmp.lt.s32.totalorder %s24_s14, %s24_s14 }
  0x14   :  { %p3906_p5 = scmp.ne.s32.totalorder %s24_s14, %s3905_s15  ;;  %p3911_p7 = scmp.lt.s32.totalorder %s3905_s15, %s3905_s15 }
  0x16   :  { %p3912_p8 = por %p3911_p7, %p3910_p6 }
  0x18   :  { %p3913_p9 = pnand %p3912_p8, %p3906_p5 }
  0x1a   :  { %3916 = shalt.err (!%p3913_p9)
}
  0x1b   :  { %s4003_s16 = smov 128   ;;  %s4004_s17 = smov 8  }
  0x1c   :  { %29 = dma.hbm_to_vmem [thread:$0]  %s6255_s0, 384, %s24_s14, [#allocation3], %s4003_s16, %s4003_s16, %s4004_s17  }
  0x1d   :  { %s4005_s20 = smov [#allocation8]   ;;  %s64_s23 = sshll.u32 %s6260_s5, 4  ;;  %s65_s23 = int_to_ptr.vmem [resolvable:$true] %s64_s23 }
  0x1e   :  { %s51_s21 = sshll.u32 %s4005_s20, 4  ;;  %s52_s21 = int_to_ptr.vmem [resolvable:$true] %s51_s21 }
  0x1f   :  { %s3925_s24 = scalar_lea.vmem %s52_s21, 48  ;;  %s3929_s25 = scalar_lea.vmem %s52_s21, 64 }
  0x20   :  { %p3926_p10 = scmp.ne.s32.totalorder %s52_s21, %s3925_s24  ;;  %p3930_p11 = scmp.lt.s32.totalorder %s52_s21, %s52_s21 }
  0x21   :  { %p3931_p12 = scmp.lt.s32.totalorder %s3929_s25, %s3925_s24 }
  0x23   :  { %p3932_p13 = por %p3931_p12, %p3930_p11 }
  0x25   :  { %p3933_p0 = pnand %p3932_p13, %p3926_p10 }
  0x27   :  { %3936 = shalt.err (!%p3933_p0)
}
  0x28   :  { %s4006_s26 = smov 16   ;;  %s4007_s27 = smov 1  }
  0x29   :  { %57 = dma.hbm_to_vmem [thread:$0]  %s6259_s4, 48, %s52_s21, [#allocation7], %s4006_s26, %s4006_s26, %s4007_s27  }
  0x2a   :  { %s3937_s0 = scalar_lea.vmem %s65_s23, 16  ;;  %p3942_p2 = scmp.lt.s32.totalorder %s65_s23, %s65_s23 }
  0x2b   :  { %p3938_p1 = scmp.ne.s32.totalorder %s65_s23, %s3937_s0  ;;  %p3943_p3 = scmp.lt.s32.totalorder %s3937_s0, %s3937_s0 }
  0x2d   :  { %p3944_p4 = por %p3943_p3, %p3942_p2 }
  0x2f   :  { %p3945_p5 = pnand %p3944_p4, %p3938_p1 }
  0x31   :  { %3948 = shalt.err (!%p3945_p5)
}
  0x32   :  { %s4008_s5 = smov [#allocation9]   ;;  %s4009_s30 = smov [#allocation10]  }
  0x33   :  { %67 = dma.vmem_to_smem %s65_s23, 16, %s4008_s5, [#allocation5]  }
  0x34   :  { %s75_s9 = sshll.u32 %s4009_s30, 4  ;;  %s76_s9 = int_to_ptr.vmem [resolvable:$true] %s75_s9 }
  0x35   :  { %s3957_s10 = scalar_lea.vmem %s76_s9, 144  ;;  %s3961_s11 = scalar_lea.vmem %s76_s9, 160 }
  0x36   :  { %p3958_p6 = scmp.ne.s32.totalorder %s76_s9, %s3957_s10  ;;  %p3962_p7 = scmp.lt.s32.totalorder %s76_s9, %s76_s9 }
  0x37   :  { %p3963_p8 = scmp.lt.s32.totalorder %s3961_s11, %s3957_s10 }
  0x39   :  { %p3964_p9 = por %p3963_p8, %p3962_p7 }
  0x3b   :  { %p3965_p10 = pnand %p3964_p9, %p3958_p6 }
  0x3d   :  { %3968 = shalt.err (!%p3965_p10)
}
  0x3e   :  { %81 = dma.hbm_to_vmem [thread:$0]  %s6262_s7, 144, %s76_s9, [#allocation11], %s4006_s26, %s4006_s26, %s4007_s27  }
  0x3f   :  { %3989 = dma.done.wait [#allocation3], 384  }
  0x40   :  { %3990 = vsyncadd [#allocation3], 4294966912 }
  0x41   :  { %3991 = dma.done.wait [#allocation7], 288  }
  0x42   :  { %3992 = vsyncadd [#allocation7], 4294967008 }
  0x43   :  { %3993 = dma.done.wait [#allocation5], 16  }
  0x44   :  { %3994 = vsyncadd [#allocation5], 4294967280 }
  0x45   :  { %3995 = dma.done.wait [#allocation11], 144  }
  0x46   :  { %3996 = vsyncadd [#allocation11], 4294967152 }
  0x47   :  { %97 = sfence }
  0x48   :  { %v146_v0 = vld [vmem:[%s6256_s1 + $0x120] sm:$0xff]  ;;  %v145_v1 = vld [vmem:[%s6256_s1 + $0x118] sm:$0xff]  ;;  %v140_v3 = vld [vmem:[%s6256_s1 + $0xf0] sm:$0xff]  ;;  %v6264_v4 = vmov 0.0   ;;  %vm177_vm0 = vcmask 523264   ;;  %v152_v36 = vlaneseq  ;;  %s4011_s2 = smov 64  }
  0x49   :  { %v141_v2 = vld [vmem:[%s6256_s1 + $0xf8] sm:$0xff]  ;;  %203 = vmatprep.subr.mxu0 %v146_v0  ;;  %251 = vmatprep.mubr.f32.mxu0 %v6264_v4  ;;  %v136_v5 = vld [vmem:[%s6256_s1 + $0xd0] sm:$0xff]  ;;  %v135_v6 = vld [vmem:[%s6256_s1 + $0xc8] sm:$0xff]  ;;  %vm4012_vm1 = vmmov 0   ;;  %s3310_s4 = sld [smem:[#allocation9 + $0x1]] }
  0x4a   :  { %204 = vmatpush1.msra.mxu0 %v145_v1  ;;  %612 = vmatprep.subr.mxu1 %v6264_v4  ;;  %v131_v7 = vld [vmem:[%s6256_s1 + $0xa8] sm:$0xff]  ;;  %v130_v8 = vld [vmem:[%s6256_s1 + $0xa0] sm:$0xff]  ;;  %v125_v10 = vld [vmem:[%s6256_s1 + $0x78] sm:$0xff]  ;;  %v4196_v37 = vshrl.u32 %v152_v36, 7  ;;  %s101_s14 = sld [smem:[#allocation9]] }
  0x4b   :  { %205 = vmatprep.subr.mxu0 %v141_v2  ;;  %v126_v9 = vld [vmem:[%s6256_s1 + $0x80] sm:$0xff]  ;;  %v121_v11 = vld [vmem:[%s6256_s1 + $0x58] sm:$0xff]  ;;  %v120_v12 = vld [vmem:[%s6256_s1 + $0x50] sm:$0xff]  ;;  %s3311_s17 = sld [smem:[#allocation9 + $0x2]] }
  0x4c   :  { %206 = vmatpush1.msra.mxu0 %v140_v3  ;;  %v116_v13 = vld [vmem:[%s6256_s1 + $0x30] sm:$0xff]  ;;  %v115_v14 = vld [vmem:[%s6256_s1 + $0x28] sm:$0xff]  ;;  %v110_v16 = vld [vmem:[%s6256_s1] sm:$0xff]  ;;  %v4199_v38 = vsub.s32 1, %v4196_v37  ;;  %v4218_v48 = vsub.s32 2, %v4196_v37  ;;  %v4238_v61 = vsub.s32 0, %v4196_v37 }
  0x4d   :  { %207 = vmatprep.subr.mxu0 %v136_v5  ;;  %v111_v15 = vld [vmem:[%s6256_s1 + $0x8] sm:$0xff]  ;;  %v4124_v17 = vld [vmem:[#allocation2] sm:$0xff]  ;;  %v148_v18 = vld [vmem:[%s6256_s1 + $0x130] sm:$0xff]  ;;  %s3312_s12 = sld [smem:[#allocation9 + $0x3]] }
  0x4e   :  { %208 = vmatpush1.msra.mxu0 %v135_v6  ;;  %v147_v19 = vld [vmem:[%s6256_s1 + $0x128] sm:$0xff]  ;;  %v142_v21 = vld [vmem:[%s6256_s1 + $0x100] sm:$0xff]  ;;  %v137_v24 = vld [vmem:[%s6256_s1 + $0xd8] sm:$0xff]  ;;  %6291 = vst [vmem:[#allocation18_spill] sm:$0xff] %v4199_v38  ;;  %s3313_s13 = sld [smem:[#allocation9 + $0x4]] }
  0x4f   :  { %209 = vmatprep.subr.mxu0 %v131_v7  ;;  %v143_v20 = vld [vmem:[%s6256_s1 + $0x108] sm:$0xff]  ;;  %v138_v23 = vld [vmem:[%s6256_s1 + $0xe0] sm:$0xff]  ;;  %v133_v25 = vld [vmem:[%s6256_s1 + $0xb8] sm:$0xff]  ;;  %6292 = vst [vmem:[#allocation19_spill] sm:$0xff] %v4218_v48  ;;  %s3315_s15 = sld [smem:[#allocation9 + $0x6]] }
  0x50   :  { %210 = vmatpush1.msra.mxu0 %v130_v8  ;;  %v4141_v22 = vld [vmem:[#allocation2 + $0x8] sm:$0xff]  ;;  %v132_v26 = vld [vmem:[%s6256_s1 + $0xb0] sm:$0xff]  ;;  %v122_v31 = vld [vmem:[%s6256_s1 + $0x60] sm:$0xff]  ;;  %6293 = vst [vmem:[#allocation20_spill] sm:$0xff] %v4238_v61  ;;  %s3316_s16 = sld [smem:[#allocation9 + $0x7]] }
  0x51   :  { %211 = vmatprep.subr.mxu0 %v126_v9  ;;  %v4158_v27 = vld [vmem:[#allocation2 + $0x10] sm:$0xff]  ;;  %v127_v29 = vld [vmem:[%s6256_s1 + $0x88] sm:$0xff]  ;;  %v118_v32 = vld [vmem:[%s6256_s1 + $0x40] sm:$0xff]  ;;  %s3339_s25 = sld [smem:[#allocation9 + $0x9]] }
  0x52   :  { %212 = vmatpush1.msra.mxu0 %v125_v10  ;;  %v128_v28 = vld [vmem:[%s6256_s1 + $0x90] sm:$0xff]  ;;  %v123_v30 = vld [vmem:[%s6256_s1 + $0x68] sm:$0xff]  ;;  %v117_v33 = vld [vmem:[%s6256_s1 + $0x38] sm:$0xff]  ;;  %s3340_s26 = sld [smem:[#allocation9 + $0xa]] }
  0x53   :  { %213 = vmatprep.subr.mxu0 %v121_v11  ;;  %v113_v34 = vld [vmem:[%s6256_s1 + $0x18] sm:$0xff]  ;;  %v112_v35 = vld [vmem:[%s6256_s1 + $0x10] sm:$0xff]  ;;  %v139_v63 = vld [vmem:[%s6256_s1 + $0xe8] sm:$0xff]  ;;  %s3341_s27 = sld [smem:[#allocation9 + $0xb]] }
  0x54   :  { %214 = vmatpush1.msra.mxu0 %v120_v12  ;;  %v4201_v39 = vld [vmem:[#allocation6] sm:$0x1f]  ;;  %v144_v62 = vld [vmem:[%s6256_s1 + $0x110] sm:$0xff]  ;;  %v134_v1 = vld [vmem:[%s6256_s1 + $0xc0] sm:$0xff]  ;;  %s3342_s24 = sld [smem:[#allocation9 + $0xc]] }
  0x55   :  { %215 = vmatprep.subr.mxu0 %v116_v13  ;;  %v159_v40 = vrot.slane %v4201_v39, %v4199_v38  ;;  %v163_v51 = vrot.slane %v4201_v39, %v4218_v48  ;;  %v149_v60 = vld [vmem:[%s6256_s1 + $0x138] sm:$0xff]  ;;  %v155_v0 = vrot.slane %v4201_v39, %v4238_v61  ;;  %v124_v6 = vld [vmem:[%s6256_s1 + $0x70] sm:$0xff]  ;;  %v119_v8 = vld [vmem:[%s6256_s1 + $0x48] sm:$0xff]  ;;  %s3346_s28 = sld [smem:[#allocation9 + $0x10]] }
  0x56   :  { %216 = vmatpush1.msra.mxu0 %v115_v14  ;;  %v129_v2 = vld [vmem:[%s6256_s1 + $0x98] sm:$0xff]  ;;  %v114_v11 = vld [vmem:[%s6256_s1 + $0x20] sm:$0xff]  ;;  %s5424_s29 = sld [smem:[#allocation9 + $0x11]] }
  0x57   :  { %217 = vmatprep.subr.mxu0 %v111_v15  ;;  %s3436_s18 = sld [smem:[#allocation9 + $0x14]] }
  0x58   :  { %218 = vmatpush1.msra.mxu0 %v110_v16  ;;  %s3439_s7 = sld [smem:[#allocation9 + $0x17]] }
  0x59   :  { %3318 = vmatmul.mubr.msk.f32.vlgmr.msra.gmra.mxu0 %vm177_vm0, %v4124_v17  ;;  %286 = vmatprep.subr.mxu0 %v148_v18  ;;  %s3442_s19 = sld [smem:[#allocation9 + $0x1a]] }
  0x5a   :  { %287 = vmatpush1.msra.mxu0 %v147_v19  ;;  %257 = vmatprep.mubr.f32.mxu0 %v6264_v4 }
  0x5b   :  { %288 = vmatprep.subr.mxu0 %v143_v20 }
  0x5c   :  { %289 = vmatpush1.msra.mxu0 %v142_v21 }
  0x5d   :  { %3319 = vmatmul.mubr.msk.f32.gmra.mxu0 %vm177_vm0, %v4141_v22  ;;  %290 = vmatprep.subr.mxu0 %v138_v23 }
  0x5e   :  { %291 = vmatpush1.msra.mxu0 %v137_v24  ;;  %263 = vmatprep.mubr.f32.mxu0 %v6264_v4 }
  0x5f   :  { %292 = vmatprep.subr.mxu0 %v133_v25 }
  0x60   :  { %293 = vmatpush1.msra.mxu0 %v132_v26 }
  0x61   :  { %3320 = vmatmul.mubr.msk.f32.gmra.mxu0 %vm177_vm0, %v4158_v27  ;;  %294 = vmatprep.subr.mxu0 %v128_v28 }
  0x62   :  { %295 = vmatpush1.msra.mxu0 %v127_v29  ;;  %334 = vmatprep.mubr.f32.mxu0 %v6264_v4 }
  0x63   :  { %296 = vmatprep.subr.mxu0 %v123_v30 }
  0x64   :  { %297 = vmatpush1.msra.mxu0 %v122_v31 }
  0x65   :  { %298 = vmatprep.subr.mxu0 %v118_v32 }
  0x66   :  { %299 = vmatpush1.msra.mxu0 %v117_v33 }
  0x67   :  { %300 = vmatprep.subr.mxu0 %v113_v34 }
  0x68   :  { %301 = vmatpush1.msra.mxu0 %v112_v35 }
  0x69   :  { %3321 = vmatmul.mubr.msk.f32.vlgmr.msra.gmra.mxu0 %vm177_vm0, %v4124_v17  ;;  %3562 = vmatprep.subr.mxu0 %v6264_v4 }
  0x6a   :  { %340 = vmatprep.mubr.f32.mxu0 %v6264_v4  ;;  %3563 = vmatpush3.msra.mxu0 %v149_v60 }
  0x6b   :  { %3564 = vmatprep.subr.mxu0 %v6264_v4 }
  0x6c   :  { %3565 = vmatpush3.msra.mxu0 %v144_v62 }
  0x6d   :  { %3322 = vmatmul.mubr.msk.f32.gmra.mxu0 %vm177_vm0, %v4141_v22  ;;  %3566 = vmatprep.subr.mxu0 %v6264_v4 }
  0x6e   :  { %346 = vmatprep.mubr.f32.mxu0 %v6264_v4  ;;  %3567 = vmatpush3.msra.mxu0 %v139_v63 }
  0x6f   :  { %3568 = vmatprep.subr.mxu0 %v6264_v4 }
  0x70   :  { %3569 = vmatpush3.msra.mxu0 %v134_v1 }
  0x71   :  { %3323 = vmatmul.mubr.msk.f32.gmra.mxu0 %vm177_vm0, %v4158_v27  ;;  %3570 = vmatprep.subr.mxu0 %v6264_v4 }
  0x72   :  { %3578 = vmatprep.mubr.msk.f32.mxu0 %vm4012_vm1, %v6264_v4  ;;  %3571 = vmatpush3.msra.mxu0 %v129_v2 }
  0x73   :  { %3572 = vmatprep.subr.mxu0 %v6264_v4 }
  0x74   :  { %3573 = vmatpush3.msra.mxu0 %v124_v6 }
  0x75   :  { %3574 = vmatprep.subr.mxu0 %v6264_v4 }
  0x76   :  { %3575 = vmatpush3.msra.mxu0 %v119_v8 }
  0x77   :  { %3576 = vmatprep.subr.mxu0 %v6264_v4 }
  0x78   :  { %3577 = vmatpush3.msra.mxu0 %v114_v11 }
  0x79   :  { %3579 = vmatmul.mubr.msk.f32.vlgmr.msra.gmra.mxu0 %vm177_vm0, %v4124_v17  ;;  %806 = vmatprep.subr.mxu0 %v6264_v4 }
  0x7a   :  { %3581 = vmatprep.mubr.msk.f32.mxu0 %vm4012_vm1, %v6264_v4 }
  0x7d   :  { %3582 = vmatmul.mubr.msk.f32.gmra.mxu0 %vm177_vm0, %v4141_v22 }
  0x7e   :  { %3584 = vmatprep.mubr.msk.f32.mxu0 %vm4012_vm1, %v6264_v4 }
  0x81   :  { %3585 = vmatmul.mubr.msk.f32.gmra.mxu0 %vm177_vm0, %v4158_v27 }
 0x119   :  { %v253_v41 = vpop.f32.mrf.mxu0 }
 0x11a   :  { %v254_v3 = vadd.f32 %v253_v41, %v155_v0 }
 0x11b   :  { %v255_v42 = vpop.f32.mrf.mxu0 }
 0x11c   :  { %v4205_v43 = vadd.f32 %v255_v42, %v159_v40 }
 0x11d   :  { %v4207_v44 = vpop.f32.mrf.mxu0 }
 0x11e   :  { %434 = vrot.lane.b32.xlu1 %v4205_v43, %s4011_s2  ;;  %v4293_v15 = vadd.f32 %v4207_v44, %v155_v0 }
 0x11f   :  { %v261_v45 = vpop.f32.mrf.mxu0 }
 0x120   :  { %v4211_v46 = vadd.f32 %v261_v45, %v159_v40 }
 0x121   :  { %v4213_v47 = vpop.f32.mrf.mxu0 }
 0x122   :  { %444 = vrot.lane.b32.xlu0 %v4211_v46, %s4011_s2  ;;  %v4302_v19 = vadd.f32 %v4213_v47, %v155_v0 }
 0x123   :  { %v267_v49 = vpop.f32.mrf.mxu0 }
 0x124   :  { %v4220_v50 = vadd.f32 %v267_v49, %v159_v40 }
 0x126   :  { %454 = vrot.lane.b32.xlu1 %v4220_v50, %s4011_s2 }
 0x129   :  { %v336_v52 = vpop.f32.mrf.mxu0 }
 0x12a   :  { %v337_v53 = vadd.f32 %v336_v52, %v163_v51 }
 0x12b   :  { %v4226_v54 = vpop.f32.mrf.mxu0 }
 0x12c   :  { %484 = vrot.lane.b32.xlu0 %v337_v53, %s4011_s2 }
 0x12d   :  { %v342_v55 = vpop.f32.mrf.mxu0 }
 0x12e   :  { %v343_v56 = vadd.f32 %v342_v55, %v163_v51 }
 0x12f   :  { %v4229_v57 = vpop.f32.mrf.mxu0 }
 0x130   :  { %497 = vrot.lane.b32.xlu0 %v343_v56, %s4011_s2 }
 0x131   :  { %v348_v58 = vpop.f32.mrf.mxu0 }
 0x132   :  { %v349_v59 = vadd.f32 %v348_v58, %v163_v51 }
 0x133   :  { %v4348_v53 = vpop.f32.mrf.mxu0 }
 0x134   :  { %510 = vrot.lane.b32.xlu1 %v349_v59, %s4011_s2 }
 0x139   :  { %v4350_v56 = vpop.f32.mrf.mxu0 }
 0x13b   :  { %v3580_v59 = vpop.f32.mrf.mxu0 }
 0x13c   :  { %v4517_v59 = vld [vmem:[%s6258_s3 + $0x10] sm:$0xff] }
 0x13d   :  { %v4357_v63 = vpop.f32.mrf.mxu0 }
 0x13f   :  { %v3583_v0 = vpop.f32.mrf.mxu0 }
 0x140   :  { %v4544_v0 = vstv %s101_s14  ;;  %s3314_s14 = sld [smem:[#allocation9 + $0x5]] }
 0x141   :  { %v4365_v8 = vpop.f32.mrf.mxu0 }
 0x190   :  { %v4258_v5 = vpop.permute.xlu1 %434 }
 0x191   :  { %v437_v7 = vmul.f32 %v4258_v5, %v254_v3  ;;  %v876_v6 = vmul.f32 %v4258_v5, %v4302_v19 }
 0x193   :  { %v438_v9 = vsel %vm177_vm0, %v437_v7, 0.0  ;;  %v682_v7 = vmul.f32 %v4258_v5, %v4293_v15  ;;  %v877_v11 = vsel %vm177_vm0, %v876_v6, 0.0  ;;  %v4563_v6 = vld [vmem:[%s6258_s3 + $0xb0] sm:$0xff] }
 0x194   :  { %v4270_v10 = vpop.permute.xlu0 %444  ;;  %439 = vadd.xlane.f32.xlu1 %v438_v9  ;;  %v3586_v9 = vpop.f32.mrf.mxu0 }
 0x195   :  { %v447_v12 = vmul.f32 %v4270_v10, %v254_v3  ;;  %v688_v51 = vmul.f32 %v4270_v10, %v4293_v15  ;;  %v4574_v9 = vld [vmem:[%s6258_s3 + $0xa8] sm:$0xff] }
 0x197   :  { %v448_v13 = vsel %vm177_vm0, %v447_v12, 0.0  ;;  %v689_v52 = vsel %vm177_vm0, %v688_v51, 0.0  ;;  %v683_v12 = vsel %vm177_vm0, %v682_v7, 0.0  ;;  %v4480_v51 = vld [vmem:[%s6258_s3 + $0x30] sm:$0xff] }
 0x198   :  { %449 = vadd.xlane.f32.xlu0 %v448_v13  ;;  %v4319_v27 = vpop.permute.xlu1 %454 }
 0x199   :  { %v457_v32 = vmul.f32 %v4319_v27, %v254_v3 }
 0x19b   :  { %v458_v33 = vsel %vm177_vm0, %v457_v32, 0.0  ;;  %v4425_v32 = vld [vmem:[%s6258_s3 + $0x58] sm:$0xff] }
 0x19e   :  { %v4288_v14 = vpop.permute.xlu0 %484 }
 0x19f   :  { %v720_v16 = vmul.f32 %v4288_v14, %v4293_v15  ;;  %v487_v21 = vmul.f32 %v4288_v14, %v254_v3  ;;  %v914_v22 = vmul.f32 %v4288_v14, %v4302_v19  ;;  %v542_v23 = vmul.f32 %v4288_v14, %v4205_v43 }
 0x1a1   :  { %v543_v25 = vsel %vm177_vm0, %v542_v23, 0.0 }
 0x1a2   :  { %v4297_v17 = vpop.permute.xlu0 %497 }
 0x1a3   :  { %v500_v18 = vmul.f32 %v4297_v17, %v254_v3  ;;  %v923_v20 = vmul.f32 %v4297_v17, %v4302_v19  ;;  %v547_v24 = vmul.f32 %v4297_v17, %v4205_v43  ;;  %v729_v30 = vmul.f32 %v4297_v17, %v4293_v15 }
 0x1a4   :  { %v772_v62 = vmul.f32 %v4297_v17, %v4211_v46 }
 0x1a5   :  { %722 = vrot.lane.b32.xlu1 %v720_v16, %s4011_s2  ;;  %v548_v26 = vsel %vm177_vm0, %v547_v24, 0.0  ;;  %v4374_v16 = vld [vmem:[%s6258_s3 + $0x78] sm:$0xff] }
 0x1a6   :  { %v4321_v28 = vpop.permute.xlu1 %510  ;;  %v773_v2 = vsel %vm177_vm0, %v772_v62, 0.0  ;;  %613 = vmatpush1.msra.mxu1 %v4374_v16  ;;  %807 = vmatpush1.msra.mxu0 %v4374_v16  ;;  %v4539_v62 = vld [vmem:[%s6258_s3] sm:$0xff] }
 0x1a7   :  { %v738_v29 = vmul.f32 %v4321_v28, %v4293_v15  ;;  %v513_v31 = vmul.f32 %v4321_v28, %v254_v3  ;;  %v932_v35 = vmul.f32 %v4321_v28, %v4302_v19  ;;  %v552_v47 = vmul.f32 %v4321_v28, %v4205_v43  ;;  %614 = vmatprep.subr.mxu1 %v6264_v4 }
 0x1a8   :  { %808 = vmatprep.subr.mxu0 %v6264_v4 }
 0x1a9   :  { %502 = vrot.lane.b32.xlu1 %v500_v18, %s4011_s2  ;;  %v553_v49 = vsel %vm177_vm0, %v552_v47, 0.0 }
 0x1ad   :  { %925 = vrot.lane.b32.xlu1 %v923_v20, %s4011_s2  ;;  %v961_v20 = vmul.f32 %v4288_v14, %v4220_v50 }
 0x1ae   :  { %489 = vrot.lane.b32.xlu0 %v487_v21, %s4011_s2  ;;  %v767_v21 = vmul.f32 %v4288_v14, %v4211_v46 }
 0x1af   :  { %v962_v14 = vsel %vm177_vm0, %v961_v20, 0.0 }
 0x1b0   :  { %v768_v24 = vsel %vm177_vm0, %v767_v21, 0.0 }
 0x1b2   :  { %916 = vrot.lane.b32.xlu0 %v914_v22, %s4011_s2  ;;  %v4386_v22 = vld [vmem:[%s6258_s3 + $0x70] sm:$0xff] }
 0x1b3   :  { %615 = vmatpush1.msra.mxu1 %v4386_v22  ;;  %809 = vmatpush1.msra.mxu0 %v4386_v22 }
 0x1b4   :  { %616 = vmatprep.subr.mxu1 %v6264_v4  ;;  %810 = vmatprep.subr.mxu0 %v6264_v4 }
 0x1d1   :  { %544 = vadd.xlane.f32.xlu0 %v543_v25  ;;  %549 = vadd.xlane.f32.xlu1 %v548_v26  ;;  %v888_v25 = vmul.f32 %v4319_v27, %v4302_v19  ;;  %v694_v26 = vmul.f32 %v4319_v27, %v4293_v15 }
 0x1d3   :  { %v889_v15 = vsel %vm177_vm0, %v888_v25, 0.0  ;;  %v695_v27 = vsel %vm177_vm0, %v694_v26, 0.0 }
 0x1e2   :  { %740 = vrot.lane.b32.xlu1 %v738_v29, %s4011_s2  ;;  %v4405_v29 = vld [vmem:[%s6258_s3 + $0x68] sm:$0xff] }
 0x1e3   :  { %617 = vmatpush1.msra.mxu1 %v4405_v29  ;;  %811 = vmatpush1.msra.mxu0 %v4405_v29 }
 0x1e4   :  { %618 = vmatprep.subr.mxu1 %v6264_v4  ;;  %812 = vmatprep.subr.mxu0 %v6264_v4 }
 0x1e7   :  { %731 = vrot.lane.b32.xlu0 %v729_v30, %s4011_s2  ;;  %v4412_v30 = vld [vmem:[%s6258_s3 + $0x60] sm:$0xff] }
 0x1e8   :  { %619 = vmatpush1.msra.mxu1 %v4412_v30  ;;  %813 = vmatpush1.msra.mxu0 %v4412_v30 }
 0x1e9   :  { %620 = vmatprep.subr.mxu1 %v6264_v4  ;;  %814 = vmatprep.subr.mxu0 %v6264_v4 }
 0x1ea   :  { %621 = vmatpush1.msra.mxu1 %v4425_v32  ;;  %815 = vmatpush1.msra.mxu0 %v4425_v32 }
 0x1eb   :  { %515 = vrot.lane.b32.xlu0 %v513_v31, %s4011_s2  ;;  %v777_v31 = vmul.f32 %v4321_v28, %v4211_v46  ;;  %v4434_v46 = vld [vmem:[%s6258_s3 + $0x50] sm:$0xff]  ;;  %622 = vmatprep.subr.mxu1 %v6264_v4 }
 0x1ec   :  { %816 = vmatprep.subr.mxu0 %v6264_v4  ;;  %623 = vmatpush1.msra.mxu1 %v4434_v46 }
 0x1ed   :  { %817 = vmatpush1.msra.mxu0 %v4434_v46  ;;  %624 = vmatprep.subr.mxu1 %v6264_v4 }
 0x1ee   :  { %818 = vmatprep.subr.mxu0 %v6264_v4 }
 0x20a   :  { %459 = vadd.xlane.f32.xlu0 %v458_v33 }
 0x21d   :  { %v4333_v34 = vpop.xlane.xlu1 %439 }
 0x21e   :  { %v442_v7 = vadd.f32 %v4544_v0, %v4333_v34  ;;  %v4586_v34 = vld [vmem:[%s6258_s3 + $0xa0] sm:$0xff] }
 0x21f   :  { %6294 = vst [vmem:[#allocation21_spill] sm:$0xff] %v4586_v34 }
 0x220   :  { %934 = vrot.lane.b32.xlu0 %v932_v35, %s4011_s2  ;;  %v778_v35 = vsel %vm177_vm0, %v777_v31, 0.0  ;;  %v4635_v31 = vsub.s32 3, %v4196_v37 }
 0x221   :  { %v723_v36 = vpop.permute.xlu1 %722  ;;  %v4339_v42 = vpop.xlane.xlu0 %449 }
 0x222   :  { %v725_v18 = vsel %vm177_vm0, %v723_v36, 0.0  ;;  %6299 = vst [vmem:[#allocation26_spill] sm:$0xff] %v4635_v31 }
 0x225   :  { %v503_v40 = vpop.permute.xlu1 %502  ;;  %v490_v44 = vpop.permute.xlu0 %489 }
 0x226   :  { %v505_v41 = vsel %vm177_vm0, %v503_v40, 0.0  ;;  %v492_v45 = vsel %vm177_vm0, %v490_v44, 0.0  ;;  %v882_v40 = vmul.f32 %v4270_v10, %v4302_v19  ;;  %v4448_v44 = vld [vmem:[%s6258_s3 + $0x48] sm:$0xff] }
 0x227   :  { %506 = vadd.xlane.f32.xlu1 %v505_v41  ;;  %v971_v41 = vmul.f32 %v4321_v28, %v4220_v50  ;;  %625 = vmatpush1.msra.mxu1 %v4448_v44  ;;  %v4460_v28 = vld [vmem:[%s6258_s3 + $0x40] sm:$0xff] }
 0x228   :  { %v883_v10 = vsel %vm177_vm0, %v882_v40, 0.0  ;;  %819 = vmatpush1.msra.mxu0 %v4448_v44  ;;  %626 = vmatprep.subr.mxu1 %v6264_v4 }
 0x229   :  { %v917_v55 = vpop.permute.xlu0 %916  ;;  %v4369_v13 = vpop.permute.xlu1 %925  ;;  %v972_v19 = vsel %vm177_vm0, %v971_v41, 0.0  ;;  %820 = vmatprep.subr.mxu0 %v6264_v4  ;;  %627 = vmatpush1.msra.mxu1 %v4460_v28 }
 0x22a   :  { %v919_v5 = vsel %vm177_vm0, %v917_v55, 0.0  ;;  %821 = vmatpush1.msra.mxu0 %v4460_v28  ;;  %v928_v47 = vsel %vm177_vm0, %v4369_v13, 0.0  ;;  %628 = vmatprep.subr.mxu1 %v6264_v4  ;;  %v4508_v55 = vld [vmem:[%s6258_s3 + $0x18] sm:$0xff] }
 0x22b   :  { %822 = vmatprep.subr.mxu0 %v6264_v4 }
 0x23f   :  { %493 = vadd.xlane.f32.xlu0 %v492_v45  ;;  %v4467_v45 = vld [vmem:[%s6258_s3 + $0x38] sm:$0xff] }
 0x240   :  { %629 = vmatpush1.msra.mxu1 %v4467_v45  ;;  %823 = vmatpush1.msra.mxu0 %v4467_v45 }
 0x241   :  { %630 = vmatprep.subr.mxu1 %v6264_v4  ;;  %824 = vmatprep.subr.mxu0 %v6264_v4 }
 0x242   :  { %631 = vmatpush1.msra.mxu1 %v4480_v51  ;;  %825 = vmatpush1.msra.mxu0 %v4480_v51 }
 0x243   :  { %554 = vadd.xlane.f32.xlu0 %v553_v49  ;;  %v966_v49 = vmul.f32 %v4297_v17, %v4220_v50  ;;  %632 = vmatprep.subr.mxu1 %v6264_v4  ;;  %v4498_v17 = vld [vmem:[%s6258_s3 + $0x20] sm:$0xff] }
 0x244   :  { %826 = vmatprep.subr.mxu0 %v6264_v4 }
 0x245   :  { %v967_v50 = vsel %vm177_vm0, %v966_v49, 0.0 }
 0x247   :  { %690 = vadd.xlane.f32.xlu0 %v689_v52  ;;  %v4488_v52 = vld [vmem:[%s6258_s3 + $0x28] sm:$0xff] }
 0x248   :  { %633 = vmatpush1.msra.mxu1 %v4488_v52  ;;  %827 = vmatpush1.msra.mxu0 %v4488_v52 }
 0x249   :  { %634 = vmatprep.subr.mxu1 %v6264_v4  ;;  %828 = vmatprep.subr.mxu0 %v6264_v4 }
 0x24a   :  { %635 = vmatpush1.msra.mxu1 %v4498_v17  ;;  %829 = vmatpush1.msra.mxu0 %v4498_v17 }
 0x24b   :  { %636 = vmatprep.subr.mxu1 %v6264_v4  ;;  %830 = vmatprep.subr.mxu0 %v6264_v4 }
 0x24c   :  { %637 = vmatpush1.msra.mxu1 %v4508_v55  ;;  %831 = vmatpush1.msra.mxu0 %v4508_v55 }
 0x24d   :  { %638 = vmatprep.subr.mxu1 %v6264_v4  ;;  %832 = vmatprep.subr.mxu0 %v6264_v4 }
 0x24e   :  { %639 = vmatpush1.msra.mxu1 %v4517_v59  ;;  %833 = vmatpush1.msra.mxu0 %v4517_v59 }
 0x24f   :  { %640 = vmatprep.subr.mxu1 %v6264_v4  ;;  %834 = vmatprep.subr.mxu0 %v6264_v4 }
 0x25a   :  { %v4352_v58 = vpop.xlane.xlu0 %544  ;;  %v4391_v23 = vpop.xlane.xlu1 %549 }
 0x25e   :  { %v732_v60 = vpop.permute.xlu0 %731  ;;  %v741_v33 = vpop.permute.xlu1 %740 }
 0x25f   :  { %v734_v43 = vsel %vm177_vm0, %v732_v60, 0.0  ;;  %v743_v36 = vsel %vm177_vm0, %v741_v33, 0.0  ;;  %v4528_v60 = vld [vmem:[%s6258_s3 + $0x8] sm:$0xff]  ;;  %v4641_v33 = vrot.slane %v4201_v39, %v4635_v31 }
 0x260   :  { %735 = vadd.xlane.f32.xlu0 %v734_v43  ;;  %641 = vmatpush1.msra.mxu1 %v4528_v60  ;;  %v4533_v43 = vstv %s3310_s4 }
 0x261   :  { %642 = vmatprep.subr.mxu1 %v6264_v4  ;;  %835 = vmatpush1.msra.mxu0 %v4528_v60  ;;  %v4651_v40 = vadd.f32 %v4229_v57, %v4641_v33 }
 0x262   :  { %v516_v1 = vpop.permute.xlu0 %515  ;;  %643 = vmatpush1.msra.mxu1 %v4539_v62  ;;  %836 = vmatprep.subr.mxu0 %v6264_v4 }
 0x263   :  { %v518_v3 = vsel %vm177_vm0, %v516_v1, 0.0  ;;  %660 = vmatprep.subr.mxu1 %v6264_v4  ;;  %v4550_v1 = vld [vmem:[%s6258_s3 + $0xb8] sm:$0xff]  ;;  %837 = vmatpush1.msra.mxu0 %v4539_v62 }
 0x264   :  { %774 = vadd.xlane.f32.xlu0 %v773_v2  ;;  %519 = vadd.xlane.f32.xlu1 %v518_v3  ;;  %v452_v2 = vadd.f32 %v4533_v43, %v4339_v42  ;;  %v4557_v3 = vstv %s3311_s17  ;;  %s4702_s17 = sld [smem:[#allocation9 + $0x8]] }
 0x265   :  { %661 = vmatpush2.msra.mxu1 %v4550_v1  ;;  %854 = vmatprep.subr.mxu0 %v6264_v4 }
 0x266   :  { %662 = vmatprep.subr.mxu1 %v6264_v4  ;;  %855 = vmatpush2.msra.mxu0 %v4550_v1 }
 0x267   :  { %663 = vmatpush2.msra.mxu1 %v4563_v6  ;;  %856 = vmatprep.subr.mxu0 %v6264_v4 }
 0x268   :  { %878 = vadd.xlane.f32.xlu0 %v877_v11  ;;  %684 = vadd.xlane.f32.xlu1 %v683_v12  ;;  %v463_v11 = vmax.f32 %v442_v7, %v452_v2 }
 0x269   :  { %664 = vmatprep.subr.mxu1 %v6264_v4  ;;  %857 = vmatpush2.msra.mxu0 %v4563_v6 }
 0x26a   :  { %665 = vmatpush2.msra.mxu1 %v4574_v9  ;;  %858 = vmatprep.subr.mxu0 %v6264_v4 }
 0x26b   :  { %666 = vmatprep.subr.mxu1 %v6264_v4  ;;  %859 = vmatpush2.msra.mxu0 %v4574_v9 }
 0x26c   :  { %920 = vadd.xlane.f32.xlu0 %v919_v5  ;;  %726 = vadd.xlane.f32.xlu1 %v725_v18  ;;  %v4598_v18 = vld [vmem:[%s6258_s3 + $0x98] sm:$0xff] }
 0x26d   :  { %667 = vmatpush2.msra.mxu1 %v4586_v34  ;;  %6295 = vst [vmem:[#allocation22_spill] sm:$0xff] %v4598_v18  ;;  %860 = vmatprep.subr.mxu0 %v6264_v4 }
 0x26e   :  { %668 = vmatprep.subr.mxu1 %v6264_v4  ;;  %861 = vmatpush2.msra.mxu0 %v4586_v34 }
 0x26f   :  { %669 = vmatpush2.msra.mxu1 %v4598_v18  ;;  %862 = vmatprep.subr.mxu0 %v6264_v4 }
 0x270   :  { %963 = vadd.xlane.f32.xlu0 %v962_v14  ;;  %769 = vadd.xlane.f32.xlu1 %v768_v24  ;;  %v4610_v24 = vld [vmem:[%s6258_s3 + $0x90] sm:$0xff] }
 0x271   :  { %670 = vmatprep.subr.mxu1 %v6264_v4  ;;  %6296 = vst [vmem:[#allocation23_spill] sm:$0xff] %v4610_v24  ;;  %863 = vmatpush2.msra.mxu0 %v4598_v18 }
 0x272   :  { %671 = vmatpush2.msra.mxu1 %v4610_v24  ;;  %864 = vmatprep.subr.mxu0 %v6264_v4 }
 0x273   :  { %672 = vmatprep.subr.mxu1 %v6264_v4  ;;  %865 = vmatpush2.msra.mxu0 %v4610_v24 }
 0x274   :  { %890 = vadd.xlane.f32.xlu0 %v889_v15  ;;  %696 = vadd.xlane.f32.xlu1 %v695_v27  ;;  %v4618_v15 = vld [vmem:[%s6258_s3 + $0x88] sm:$0xff]  ;;  %v4627_v27 = vld [vmem:[%s6258_s3 + $0x80] sm:$0xff] }
 0x275   :  { %6297 = vst [vmem:[#allocation24_spill] sm:$0xff] %v4618_v15  ;;  %673 = vmatpush2.msra.mxu1 %v4618_v15  ;;  %6298 = vst [vmem:[#allocation25_spill] sm:$0xff] %v4627_v27  ;;  %866 = vmatprep.subr.mxu0 %v6264_v4 }
 0x276   :  { %674 = vmatprep.subr.mxu1 %v6264_v4  ;;  %867 = vmatpush2.msra.mxu0 %v4618_v15 }
 0x277   :  { %675 = vmatpush2.msra.mxu1 %v4627_v27  ;;  %868 = vmatprep.subr.mxu0 %v6264_v4 }
 0x278   :  { %779 = vadd.xlane.f32.xlu1 %v778_v35  ;;  %744 = vadd.xlane.f32.xlu0 %v743_v36  ;;  %v4645_v35 = vadd.f32 %v4226_v54, %v4641_v33  ;;  %v546_v54 = vadd.f32 %v4352_v58, %v4544_v0 }
 0x279   :  { %1000 = vmatprep.subr.mxu1 %v6264_v4  ;;  %869 = vmatpush2.msra.mxu0 %v4627_v27 }
 0x27c   :  { %884 = vadd.xlane.f32.xlu1 %v883_v10  ;;  %973 = vadd.xlane.f32.xlu0 %v972_v19 }
 0x280   :  { %929 = vadd.xlane.f32.xlu1 %v928_v47 }
 0x284   :  { %968 = vadd.xlane.f32.xlu1 %v967_v50  ;;  %v551_v50 = vadd.f32 %v4391_v23, %v4533_v43 }
 0x286   :  { %v557_v57 = vmax.f32 %v546_v54, %v551_v50 }
 0x293   :  { %v460_v42 = vpop.xlane.xlu0 %459 }
 0x294   :  { %v4578_v12 = vadd.f32 %v4557_v3, %v460_v42 }
 0x296   :  { %v4590_v13 = vmax.f32 %v463_v11, %v4578_v12 }
 0x297   :  { %v935_v5 = vpop.permute.xlu0 %934 }
 0x298   :  { %v465_v20 = vsub.f32 %v442_v7, %v4590_v13  ;;  %v468_v21 = vsub.f32 %v452_v2, %v4590_v13  ;;  %v937_v14 = vsel %vm177_vm0, %v935_v5, 0.0 }
 0x299   :  { %938 = vadd.xlane.f32.xlu1 %v937_v14 }
 0x29a   :  { %v466_v25 = vmul.f32 1.442695, %v465_v20  ;;  %v469_v26 = vmul.f32 1.442695, %v468_v21 }
 0x29c   :  { %3652 = vpow2.f32 %v466_v25 }
 0x29d   :  { %3654 = vpow2.f32 %v469_v26  ;;  %v4667_v26 = vsub.s32 4, %v4196_v37  ;;  %v471_v37 = vsub.f32 %v4578_v12, %v4590_v13 }
 0x29f   :  { %6300 = vst [vmem:[#allocation27_spill] sm:$0xff] %v4667_v26  ;;  %v171_v23 = vrot.slane %v4201_v39, %v4667_v26 }
 0x2a9   :  { %v4647_v36 = vpop.eup %3652 }
 0x2aa   :  { %v4653_v41 = vpop.eup %3654  ;;  %v477_v10 = vmul.f32 %v4647_v36, %v4645_v35 }
 0x2ab   :  { %v478_v19 = vmul.f32 %v4653_v41, %v4651_v40 }
 0x2ad   :  { %v4659_v47 = vadd.f32 %v478_v19, %v477_v10 }
 0x2c8   :  { %v494_v49 = vpop.xlane.xlu0 %493 }
 0x2cc   :  { %v555_v2 = vpop.xlane.xlu0 %554 }
 0x2cd   :  { %v556_v7 = vadd.f32 %v555_v2, %v4557_v3 }
 0x2cf   :  { %v558_v42 = vmax.f32 %v557_v57, %v556_v7 }
 0x2d0   :  { %v691_v57 = vpop.xlane.xlu0 %690 }
 0x2d1   :  { %v559_v11 = vsub.f32 %v546_v54, %v558_v42  ;;  %v562_v5 = vsub.f32 %v551_v50, %v558_v42  ;;  %v565_v20 = vsub.f32 %v556_v7, %v558_v42  ;;  %v4672_v50 = vadd.f32 %v4350_v56, %v171_v23  ;;  %v507_v42 = vpop.xlane.xlu1 %506 }
 0x2d2   :  { %v4675_v7 = vadd.f32 %v4357_v63, %v171_v23  ;;  %v508_v39 = vadd.f32 %v507_v42, %v4533_v43  ;;  %v4684_v63 = vadd.f32 %v4365_v8, %v171_v23 }
 0x2d3   :  { %v560_v21 = vmul.f32 1.442695, %v559_v11  ;;  %v563_v14 = vmul.f32 1.442695, %v562_v5  ;;  %v566_v25 = vmul.f32 1.442695, %v565_v20  ;;  %v495_v5 = vadd.f32 %v494_v49, %v4544_v0 }
 0x2d5   :  { %3656 = vpow2.f32 %v560_v21 }
 0x2d6   :  { %3658 = vpow2.f32 %v563_v14  ;;  %v472_v14 = vmul.f32 1.442695, %v471_v37 }
 0x2d7   :  { %3660 = vpow2.f32 %v566_v25 }
 0x2e2   :  { %v3657_v58 = vpop.eup %3656 }
 0x2e3   :  { %v3659_v10 = vpop.eup %3658  ;;  %v571_v20 = vmul.f32 %v3657_v58, %v4672_v50 }
 0x2e4   :  { %v568_v19 = vadd.f32 %v3659_v10, %v3657_v58  ;;  %v3661_v2 = vpop.eup %3660  ;;  %v572_v21 = vmul.f32 %v3659_v10, %v4675_v7 }
 0x2e5   :  { %v574_v49 = vmul.f32 %v3661_v2, %v4684_v63 }
 0x2e6   :  { %v569_v54 = vadd.f32 %v3661_v2, %v568_v19  ;;  %v522_v19 = vmax.f32 %v495_v5, %v508_v39  ;;  %v573_v13 = vadd.f32 %v572_v21, %v571_v20  ;;  %v686_v21 = vstv %s3312_s12 }
 0x2e8   :  { %3662 = vrcp.f32 %v569_v54  ;;  %v575_v8 = vadd.f32 %v574_v49, %v573_v13 }
 0x2e9   :  { %v736_v11 = vpop.xlane.xlu0 %735  ;;  %3664 = vpow2.f32 %v472_v14  ;;  %v692_v14 = vstv %s3313_s13  ;;  %s3435_s13 = sld [smem:[#allocation9 + $0x13]] }
 0x2ed   :  { %v775_v56 = vpop.xlane.xlu0 %774  ;;  %v520_v25 = vpop.xlane.xlu1 %519 }
 0x2ee   :  { %v521_v54 = vadd.f32 %v520_v25, %v4557_v3 }
 0x2f0   :  { %v523_v12 = vmax.f32 %v522_v19, %v521_v54  ;;  %v474_v19 = vadd.f32 %v4653_v41, %v4647_v36 }
 0x2f1   :  { %v4687_v0 = vpop.xlane.xlu0 %878  ;;  %v685_v43 = vpop.xlane.xlu1 %684 }
 0x2f2   :  { %v524_v58 = vsub.f32 %v495_v5, %v523_v12  ;;  %v527_v10 = vsub.f32 %v508_v39, %v523_v12  ;;  %v530_v37 = vsub.f32 %v521_v54, %v523_v12  ;;  %v687_v39 = vadd.f32 %v686_v21, %v685_v43 }
 0x2f3   :  { %v698_v54 = vstv %s3314_s14  ;;  %v693_v12 = vadd.f32 %v692_v14, %v691_v57  ;;  %v4700_v43 = vstv %s3315_s15  ;;  %s3437_s14 = sld [smem:[#allocation9 + $0x15]] }
 0x2f4   :  { %v525_v42 = vmul.f32 1.442695, %v524_v58  ;;  %v528_v4 = vmul.f32 1.442695, %v527_v10  ;;  %v531_v26 = vmul.f32 1.442695, %v530_v37 }
 0x2f5   :  { %v3663_v23 = vpop.eup %3662  ;;  %v4690_v3 = vpop.xlane.xlu0 %920  ;;  %v700_v10 = vmax.f32 %v687_v39, %v693_v12  ;;  %s3438_s15 = sld [smem:[#allocation9 + $0x16]] }
 0x2f6   :  { %v727_v25 = vpop.xlane.xlu1 %726  ;;  %3666 = vpow2.f32 %v525_v42  ;;  %v576_v20 = vmul.f32 %v3663_v23, %v575_v8  ;;  %v737_v42 = vadd.f32 %v736_v11, %v692_v14 }
 0x2f7   :  { %3668 = vpow2.f32 %v528_v4  ;;  %v728_v13 = vadd.f32 %v727_v25, %v686_v21  ;;  %v4697_v4 = vpop.eup %3664 }
 0x2f8   :  { %3328 = vmatprep.mubr.msk.f32.mxu1 %vm177_vm0, %v576_v20  ;;  %3670 = vpow2.f32 %v531_v26  ;;  %v475_v26 = vadd.f32 %v4697_v4, %v474_v19  ;;  %v776_v20 = vadd.f32 %v775_v56, %v692_v14  ;;  %v4704_v19 = vstv %s3316_s16  ;;  %s3440_s16 = sld [smem:[#allocation9 + $0x18]] }
 0x2f9   :  { %v4693_v2 = vpop.xlane.xlu0 %963  ;;  %v747_v31 = vmax.f32 %v728_v13, %v737_v42 }
 0x2fa   :  { %v770_v5 = vpop.xlane.xlu1 %769  ;;  %3672 = vrcp.f32 %v475_v26 }
 0x2fb   :  { %v771_v8 = vadd.f32 %v770_v5, %v686_v21 }
 0x2fd   :  { %v891_v49 = vpop.xlane.xlu0 %890 }
 0x2fe   :  { %v697_v58 = vpop.xlane.xlu1 %696 }
 0x2ff   :  { %v699_v37 = vadd.f32 %v698_v54, %v697_v58  ;;  %v782_v58 = vmax.f32 %v771_v8, %v776_v20 }
 0x301   :  { %v701_v23 = vmax.f32 %v700_v10, %v699_v37  ;;  %v745_v36 = vpop.xlane.xlu0 %744 }
 0x302   :  { %v780_v41 = vpop.xlane.xlu1 %779  ;;  %v746_v48 = vadd.f32 %v745_v36, %v698_v54 }
 0x303   :  { %v702_v57 = vsub.f32 %v687_v39, %v701_v23  ;;  %v705_v25 = vsub.f32 %v693_v12, %v701_v23  ;;  %v708_v61 = vsub.f32 %v699_v37, %v701_v23  ;;  %v3667_v38 = vpop.eup %3666  ;;  %v781_v27 = vadd.f32 %v780_v41, %v698_v54 }
 0x304   :  { %v3669_v11 = vpop.eup %3668  ;;  %v748_v5 = vmax.f32 %v747_v31, %v746_v48  ;;  %v536_v18 = vmul.f32 %v3667_v38, %v4645_v35 }
 0x305   :  { %v703_v21 = vmul.f32 1.442695, %v702_v57  ;;  %v706_v56 = vmul.f32 1.442695, %v705_v25  ;;  %v709_v14 = vmul.f32 1.442695, %v708_v61  ;;  %v533_v10 = vadd.f32 %v3669_v11, %v3667_v38  ;;  %v3671_v12 = vpop.eup %3670 }
 0x306   :  { %v783_v15 = vmax.f32 %v782_v58, %v781_v27  ;;  %v885_v24 = vpop.xlane.xlu1 %884  ;;  %v537_v39 = vmul.f32 %v3669_v11, %v4651_v40  ;;  %v749_v37 = vsub.f32 %v728_v13, %v748_v5  ;;  %v752_v26 = vsub.f32 %v737_v42, %v748_v5 }
 0x307   :  { %3674 = vpow2.f32 %v703_v21  ;;  %v755_v54 = vsub.f32 %v746_v48, %v748_v5  ;;  %v534_v23 = vadd.f32 %v3671_v12, %v533_v10  ;;  %v4709_v25 = vstv %s4702_s17  ;;  %v974_v21 = vpop.xlane.xlu0 %973  ;;  %s3441_s17 = sld [smem:[#allocation9 + $0x19]] }
 0x308   :  { %3676 = vpow2.f32 %v706_v56  ;;  %v784_v36 = vsub.f32 %v771_v8, %v783_v15  ;;  %v787_v41 = vsub.f32 %v776_v20, %v783_v15  ;;  %v750_v61 = vmul.f32 1.442695, %v749_v37 }
 0x309   :  { %3678 = vpow2.f32 %v709_v14  ;;  %v753_v31 = vmul.f32 1.442695, %v752_v26  ;;  %v756_v57 = vmul.f32 1.442695, %v755_v54  ;;  %v790_v58 = vsub.f32 %v781_v27, %v783_v15  ;;  %v3673_v14 = vpop.eup %3672 }
 0x30a   :  { %3680 = vrcp.f32 %v534_v23  ;;  %v785_v38 = vmul.f32 1.442695, %v784_v36  ;;  %v4711_v34 = vpop.xlane.xlu1 %929  ;;  %v881_v13 = vadd.f32 %v4700_v43, %v4687_v0  ;;  %v788_v48 = vmul.f32 1.442695, %v787_v41 }
 0x30b   :  { %3682 = vpow2.f32 %v750_v61  ;;  %v887_v42 = vadd.f32 %v4704_v19, %v885_v24  ;;  %v538_v8 = vadd.f32 %v537_v39, %v536_v18  ;;  %v4717_v20 = vadd.f32 %v4709_v25, %v891_v49 }
 0x30c   :  { %3684 = vpow2.f32 %v753_v31  ;;  %v791_v11 = vmul.f32 1.442695, %v790_v58  ;;  %v965_v27 = vadd.f32 %v4693_v2, %v4700_v43  ;;  %v4727_v18 = vadd.f32 %v4348_v53, %v4641_v33 }
 0x30d   :  { %3686 = vpow2.f32 %v756_v57  ;;  %v894_v56 = vmax.f32 %v881_v13, %v887_v42  ;;  %v975_v49 = vadd.f32 %v974_v21, %v4709_v25 }
 0x30e   :  { %3688 = vpow2.f32 %v785_v38  ;;  %v969_v15 = vpop.xlane.xlu1 %968  ;;  %v480_v2 = vmul.f32 %v4697_v4, %v4727_v18  ;;  %v539_v37 = vmul.f32 %v3671_v12, %v4727_v18 }
 0x30f   :  { %3690 = vpow2.f32 %v788_v48  ;;  %v4722_v0 = vmax.f32 %v894_v56, %v4717_v20  ;;  %v970_v24 = vadd.f32 %v969_v15, %v4704_v19 }
 0x310   :  { %3692 = vpow2.f32 %v791_v11  ;;  %v481_v53 = vadd.f32 %v480_v2, %v4659_v47  ;;  %v540_v33 = vadd.f32 %v539_v37, %v538_v8 }
 0x311   :  { %v896_v5 = vsub.f32 %v881_v13, %v4722_v0  ;;  %v899_v10 = vsub.f32 %v887_v42, %v4722_v0  ;;  %v976_v39 = vmax.f32 %v965_v27, %v970_v24 }
 0x312   :  { %v482_v56 = vmul.f32 %v3673_v14, %v481_v53 }
 0x313   :  { %v897_v26 = vmul.f32 1.442695, %v896_v5  ;;  %v900_v54 = vmul.f32 1.442695, %v899_v10  ;;  %v977_v23 = vmax.f32 %v976_v39, %v975_v49 }
 0x314   :  { %v3675_v36 = vpop.eup %3674 }
 0x315   :  { %v3677_v41 = vpop.eup %3676  ;;  %3694 = vpow2.f32 %v897_v26  ;;  %v978_v61 = vsub.f32 %v965_v27, %v977_v23  ;;  %v981_v31 = vsub.f32 %v970_v24, %v977_v23  ;;  %v984_v57 = vsub.f32 %v975_v49, %v977_v23 }
 0x316   :  { %v3679_v38 = vpop.eup %3678  ;;  %v711_v58 = vadd.f32 %v3677_v41, %v3675_v36  ;;  %3696 = vpow2.f32 %v900_v54  ;;  %v714_v13 = vmul.f32 %v3675_v36, %v4645_v35  ;;  %v715_v4 = vmul.f32 %v3677_v41, %v4651_v40 }
 0x317   :  { %v3681_v12 = vpop.eup %3680  ;;  %v979_v48 = vmul.f32 1.442695, %v978_v61  ;;  %v982_v42 = vmul.f32 1.442695, %v981_v31  ;;  %v985_v27 = vmul.f32 1.442695, %v984_v57  ;;  %v922_v41 = vadd.f32 %v4690_v3, %v4700_v43 }
 0x318   :  { %v3683_v11 = vpop.eup %3682  ;;  %v712_v21 = vadd.f32 %v3679_v38, %v711_v58  ;;  %v541_v47 = vmul.f32 %v3681_v12, %v540_v33  ;;  %v4738_v8 = vadd.f32 %v715_v4, %v714_v13  ;;  %v6301_v54 = vmov 0.0  }
 0x319   :  { %v3685_v15 = vpop.eup %3684  ;;  %3698 = vpow2.f32 %v979_v48  ;;  %v761_v24 = vmul.f32 %v3683_v11, %v4645_v35  ;;  %v931_v33 = vadd.f32 %v4711_v34, %v4704_v19 }
 0x31a   :  { %v3687_v49 = vpop.eup %3686  ;;  %v758_v5 = vadd.f32 %v3685_v15, %v3683_v11  ;;  %v577_v10 = vsel %vm177_vm0, %v482_v56, %v541_v47  ;;  %3700 = vpow2.f32 %v982_v42  ;;  %v762_v2 = vmul.f32 %v3685_v15, %v4651_v40 }
 0x31b   :  { %v3689_v39 = vpop.eup %3688  ;;  %677 = vmatmul.mubr.f32.vlgmr.msra.gmra.mxu1 %v577_v10  ;;  %3702 = vrcp.f32 %v712_v21  ;;  %v941_v34 = vmax.f32 %v922_v41, %v931_v33  ;;  %v764_v48 = vmul.f32 %v3687_v49, %v4727_v18 }
 0x31c   :  { %v3691_v37 = vpop.eup %3690  ;;  %v759_v14 = vadd.f32 %v3687_v49, %v758_v5  ;;  %1001 = vmatpush1.msra.mxu1 %v4374_v16  ;;  %3704 = vpow2.f32 %v985_v27  ;;  %v763_v23 = vadd.f32 %v762_v2, %v761_v24 }
 0x31d   :  { %v793_v26 = vadd.f32 %v3691_v37, %v3689_v39  ;;  %1002 = vmatprep.subr.mxu1 %v6301_v54  ;;  %v3693_v36 = vpop.eup %3692  ;;  %v797_v43 = vmul.f32 %v3691_v37, %v4675_v7 }
 0x31e   :  { %3706 = vrcp.f32 %v759_v14  ;;  %1003 = vmatpush1.msra.mxu1 %v4386_v22  ;;  %v902_v22 = vsub.f32 %v4717_v20, %v4722_v0  ;;  %v765_v27 = vadd.f32 %v764_v48, %v763_v23 }
 0x31f   :  { %v794_v53 = vadd.f32 %v3693_v36, %v793_v26  ;;  %1004 = vmatprep.subr.mxu1 %v6301_v54 }
 0x320   :  { %1005 = vmatpush1.msra.mxu1 %v4405_v29  ;;  %v903_v58 = vmul.f32 1.442695, %v902_v22 }
 0x321   :  { %3708 = vrcp.f32 %v794_v53  ;;  %1006 = vmatprep.subr.mxu1 %v6301_v54 }
 0x322   :  { %v4751_v16 = vpop.eup %3694  ;;  %1007 = vmatpush1.msra.mxu1 %v4412_v30  ;;  %v939_v31 = vpop.xlane.xlu1 %938  ;;  %v796_v30 = vmul.f32 %v3689_v39, %v4672_v50  ;;  %3710 = vpow2.f32 %v903_v58  ;;  %v3874_v58 = vld [vmem:[#allocation2] sm:$0xff] }
 0x323   :  { %v4756_v61 = vpop.eup %3696  ;;  %1008 = vmatprep.subr.mxu1 %v6301_v54  ;;  %v908_v29 = vmul.f32 %v4751_v16, %v4645_v35  ;;  %v940_v19 = vadd.f32 %v939_v31, %v4709_v25 }
 0x324   :  { %1009 = vmatpush1.msra.mxu1 %v4425_v32  ;;  %v909_v3 = vmul.f32 %v4756_v61, %v4651_v40  ;;  %v717_v32 = vmul.f32 %v3679_v38, %v4727_v18  ;;  %v798_v21 = vadd.f32 %v797_v43, %v796_v30  ;;  %v3327_v30 = vld [vmem:[#allocation8] ss:$0 sm:$0xff] }
 0x325   :  { %1010 = vmatprep.subr.mxu1 %v6301_v54  ;;  %v942_v0 = vmax.f32 %v941_v34, %v940_v19 }
 0x326   :  { %v3699_v20 = vpop.eup %3698  ;;  %1011 = vmatpush1.msra.mxu1 %v4434_v46  ;;  %v4771_v57 = vadd.f32 %v909_v3, %v908_v29  ;;  %v718_v15 = vadd.f32 %v717_v32, %v4738_v8 }
 0x327   :  { %1012 = vmatprep.subr.mxu1 %v6301_v54  ;;  %v3701_v25 = vpop.eup %3700  ;;  %v943_v13 = vsub.f32 %v922_v41, %v942_v0  ;;  %v946_v4 = vsub.f32 %v931_v33, %v942_v0  ;;  %v949_v12 = vsub.f32 %v940_v19, %v942_v0 }
 0x328   :  { %1013 = vmatpush1.msra.mxu1 %v4448_v44  ;;  %v3703_v42 = vpop.eup %3702  ;;  %v987_v11 = vadd.f32 %v3701_v25, %v3699_v20  ;;  %v799_v44 = vmul.f32 %v3693_v36, %v4684_v63  ;;  %v991_v37 = vmul.f32 %v3701_v25, %v4675_v7 }
 0x329   :  { %1014 = vmatprep.subr.mxu1 %v6301_v54  ;;  %v3705_v46 = vpop.eup %3704  ;;  %v944_v56 = vmul.f32 1.442695, %v943_v13  ;;  %v947_v47 = vmul.f32 1.442695, %v946_v4  ;;  %v950_v49 = vmul.f32 1.442695, %v949_v12  ;;  %v719_v5 = vmul.f32 %v3703_v42, %v718_v15 }
 0x32a   :  { %1015 = vmatpush1.msra.mxu1 %v4460_v28  ;;  %v988_v24 = vadd.f32 %v3705_v46, %v987_v11  ;;  %v800_v39 = vadd.f32 %v799_v44, %v798_v21 }
 0x32b   :  { %v3707_v38 = vpop.eup %3706  ;;  %1016 = vmatprep.subr.mxu1 %v6301_v54  ;;  %3712 = vpow2.f32 %v944_v56 }
 0x32c   :  { %v766_v10 = vmul.f32 %v3707_v38, %v765_v27  ;;  %1017 = vmatpush1.msra.mxu1 %v4467_v45  ;;  %3714 = vrcp.f32 %v988_v24  ;;  %v990_v45 = vmul.f32 %v3699_v20, %v4672_v50  ;;  %v993_v50 = vmul.f32 %v3705_v46, %v4684_v63  ;;  %v3876_v46 = vld [vmem:[#allocation2 + $0x10] sm:$0xff] }
 0x32d   :  { %1018 = vmatprep.subr.mxu1 %v6301_v54  ;;  %3716 = vpow2.f32 %v947_v47 }
 0x32e   :  { %v3709_v8 = vpop.eup %3708  ;;  %v802_v28 = vsel %vm177_vm0, %v719_v5, %v766_v10  ;;  %1019 = vmatpush1.msra.mxu1 %v4480_v51  ;;  %3718 = vpow2.f32 %v950_v49  ;;  %v992_v51 = vadd.f32 %v991_v37, %v990_v45 }
 0x32f   :  { %v801_v2 = vmul.f32 %v3709_v8, %v800_v39  ;;  %1020 = vmatprep.subr.mxu1 %v6301_v54  ;;  %v3711_v7 = vpop.eup %3710 }
 0x330   :  { %1021 = vmatpush1.msra.mxu1 %v4488_v52  ;;  %v905_v52 = vadd.f32 %v4756_v61, %v4751_v16  ;;  %v994_v14 = vadd.f32 %v993_v50, %v992_v51  ;;  %v6306_v16 = vld [vmem:[#allocation25_spill] sm:$0xff] }
 0x331   :  { %3329 = vmatprep.mubr.msk.f32.mxu0 %vm177_vm0, %v801_v2  ;;  %1022 = vmatprep.subr.mxu1 %v6301_v54  ;;  %v3383_v50 = vld [vmem:[%s6256_s1 + $0x258] sm:$0xff] }
 0x332   :  { %871 = vmatmul.mubr.f32.vlgmr.msra.gmra.mxu0 %v802_v28  ;;  %1023 = vmatpush1.msra.mxu1 %v4498_v17  ;;  %v906_v26 = vadd.f32 %v3711_v7, %v905_v52  ;;  %v3384_v52 = vld [vmem:[%s6256_s1 + $0x260] sm:$0xff] }
 0x333   :  { %1024 = vmatprep.subr.mxu1 %v6301_v54  ;;  %1311 = vmatprep.mubr.f32.mxu0 %v6301_v54 }
 0x334   :  { %1025 = vmatpush1.msra.mxu1 %v4508_v55  ;;  %3720 = vrcp.f32 %v906_v26  ;;  %1263 = vmatprep.subr.mxu0 %v3384_v52  ;;  %v3369_v26 = vld [vmem:[%s6256_s1 + $0x1e8] sm:$0xff]  ;;  %v5008_v52 = vld [vmem:[#allocation6 + $0x5] sm:$0x1f] }
 0x335   :  { %1026 = vmatprep.subr.mxu1 %v6301_v54  ;;  %1264 = vmatpush1.msra.mxu0 %v3383_v50  ;;  %v6310_v50 = vld [vmem:[#allocation18_spill] sm:$0xff] }
 0x336   :  { %1027 = vmatpush1.msra.mxu1 %v4517_v59 }
 0x337   :  { %1028 = vmatprep.subr.mxu1 %v6301_v54 }
 0x338   :  { %1029 = vmatpush1.msra.mxu1 %v4528_v60  ;;  %v3713_v17 = vpop.eup %3712 }
 0x339   :  { %1030 = vmatprep.subr.mxu1 %v6301_v54  ;;  %v3715_v55 = vpop.eup %3714  ;;  %v955_v23 = vmul.f32 %v3713_v17, %v4645_v35  ;;  %v6303_v35 = vld [vmem:[#allocation22_spill] sm:$0xff] }
 0x33a   :  { %1031 = vmatpush1.msra.mxu1 %v4539_v62  ;;  %v3717_v36 = vpop.eup %3716  ;;  %v995_v53 = vmul.f32 %v3715_v55, %v994_v14  ;;  %v3374_v14 = vld [vmem:[%s6256_s1 + $0x210] sm:$0xff]  ;;  %v3373_v55 = vld [vmem:[%s6256_s1 + $0x208] sm:$0xff] }
 0x33b   :  { %1048 = vmatprep.subr.mxu1 %v6301_v54  ;;  %v952_v59 = vadd.f32 %v3717_v36, %v3713_v17  ;;  %v956_v63 = vmul.f32 %v3717_v36, %v4651_v40  ;;  %v3719_v60 = vpop.eup %3718  ;;  %v6304_v40 = vld [vmem:[#allocation23_spill] sm:$0xff]  ;;  %v3378_v17 = vld [vmem:[%s6256_s1 + $0x230] sm:$0xff] }
 0x33c   :  { %1049 = vmatpush2.msra.mxu1 %v4550_v1  ;;  %3330 = vmatprep.mubr.msk.f32.mxu1 %vm177_vm0, %v995_v53  ;;  %v6302_v1 = vld [vmem:[#allocation21_spill] sm:$0xff]  ;;  %v958_v41 = vmul.f32 %v3719_v60, %v4727_v18  ;;  %v3364_v36 = vld [vmem:[%s6256_s1 + $0x1c0] sm:$0xff] }
 0x33d   :  { %1050 = vmatprep.subr.mxu1 %v6301_v54  ;;  %v953_v33 = vadd.f32 %v3719_v60, %v952_v59  ;;  %v957_v62 = vadd.f32 %v956_v63, %v955_v23  ;;  %v3368_v23 = vld [vmem:[%s6256_s1 + $0x1e0] sm:$0xff]  ;;  %v3363_v53 = vld [vmem:[%s6256_s1 + $0x1b8] sm:$0xff]  ;;  %v3358_v63 = vld [vmem:[%s6256_s1 + $0x190] sm:$0xff] }
 0x33e   :  { %1051 = vmatpush2.msra.mxu1 %v4563_v6  ;;  %v6305_v6 = vld [vmem:[#allocation24_spill] sm:$0xff]  ;;  %v3359_v59 = vld [vmem:[%s6256_s1 + $0x198] sm:$0xff] }
 0x33f   :  { %1052 = vmatprep.subr.mxu1 %v6301_v54  ;;  %3722 = vrcp.f32 %v953_v33  ;;  %v959_v31 = vadd.f32 %v958_v41, %v957_v62  ;;  %v3354_v60 = vld [vmem:[%s6256_s1 + $0x170] sm:$0xff]  ;;  %v3353_v33 = vld [vmem:[%s6256_s1 + $0x168] sm:$0xff] }
 0x340   :  { %1053 = vmatpush2.msra.mxu1 %v4574_v9  ;;  %v911_v9 = vmul.f32 %v3711_v7, %v4727_v18  ;;  %v3379_v7 = vld [vmem:[%s6256_s1 + $0x238] sm:$0xff]  ;;  %v3349_v62 = vld [vmem:[%s6256_s1 + $0x148] sm:$0xff] }
 0x341   :  { %1054 = vmatprep.subr.mxu1 %v6301_v54  ;;  %v3721_v61 = vpop.eup %3720  ;;  %1265 = vmatprep.subr.mxu0 %v3379_v7  ;;  %v1220_v7 = vrot.slane %v5008_v52, %v6310_v50 }
 0x342   :  { %1055 = vmatpush2.msra.mxu1 %v6302_v1  ;;  %v912_v22 = vadd.f32 %v911_v9, %v4771_v57  ;;  %v3875_v57 = vld [vmem:[#allocation2 + $0x8] sm:$0xff]  ;;  %1266 = vmatpush1.msra.mxu0 %v3378_v17  ;;  %v3348_v1 = vld [vmem:[%s6256_s1 + $0x140] sm:$0xff] }
 0x343   :  { %1056 = vmatprep.subr.mxu1 %v6301_v54  ;;  %1267 = vmatprep.subr.mxu0 %v3374_v14 }
 0x344   :  { %1057 = vmatpush2.msra.mxu1 %v6303_v35  ;;  %v913_v34 = vmul.f32 %v3721_v61, %v912_v22  ;;  %1268 = vmatpush1.msra.mxu0 %v3373_v55  ;;  %v3386_v35 = vld [vmem:[%s6256_s1 + $0x270] sm:$0xff] }
 0x345   :  { %1058 = vmatprep.subr.mxu1 %v6301_v54  ;;  %1269 = vmatprep.subr.mxu0 %v3369_v26 }
 0x346   :  { %1059 = vmatpush2.msra.mxu1 %v6304_v40  ;;  %1270 = vmatpush1.msra.mxu0 %v3368_v23 }
 0x347   :  { %1060 = vmatprep.subr.mxu1 %v6301_v54  ;;  %1271 = vmatprep.subr.mxu0 %v3364_v36 }
 0x348   :  { %1061 = vmatpush2.msra.mxu1 %v6305_v6  ;;  %1272 = vmatpush1.msra.mxu0 %v3363_v53 }
 0x349   :  { %1062 = vmatprep.subr.mxu1 %v6301_v54  ;;  %1273 = vmatprep.subr.mxu0 %v3359_v59 }
 0x34a   :  { %1063 = vmatpush2.msra.mxu1 %v6306_v16  ;;  %1274 = vmatpush1.msra.mxu0 %v3358_v63 }
 0x34b   :  { %1674 = vmatprep.subr.mxu1 %v6301_v54  ;;  %1275 = vmatprep.subr.mxu0 %v3354_v60  ;;  %v6311_v60 = vld [vmem:[#allocation19_spill] sm:$0xff] }
 0x34c   :  { %v3723_v29 = vpop.eup %3722  ;;  %1276 = vmatpush1.msra.mxu0 %v3353_v33  ;;  %v1224_v33 = vrot.slane %v5008_v52, %v6311_v60 }
 0x34d   :  { %v960_v19 = vmul.f32 %v3723_v29, %v959_v31  ;;  %1277 = vmatprep.subr.mxu0 %v3349_v62  ;;  %v3331_v29 = vld [vmem:[%s6261_s6] ss:$0 sm:$0xff] }
 0x34e   :  { %1278 = vmatpush1.msra.mxu0 %v3348_v1 }
 0x34f   :  { %v996_v3 = vsel %vm177_vm0, %v913_v34, %v960_v19  ;;  %1346 = vmatprep.subr.mxu0 %v3386_v35 }
 0x350   :  { %1065 = vmatmul.mubr.f32.vlgmr.msra.gmra.mxu1 %v996_v3  ;;  %v3332_v3 = vld [vmem:[#allocation10] ss:$0 sm:$0xff] }
 0x3db   :  { %v678_v43 = vpop.f32.mrf.mxu1 }
 0x3dc   :  { %v679_v20 = vadd.f32 %v3327_v30, %v678_v43 }
 0x3dd   :  { %v680_v0 = vpop.f32.mrf.mxu1 }
 0x3de   :  { %v1070_v32 = vadd.f32 %v3874_v58, %v679_v20  ;;  %v3385_v0 = vld [vmem:[%s6256_s1 + $0x268] sm:$0xff] }
 0x3e0   :  { %v1073_v18 = vsel %vm177_vm0, %v1070_v32, 0.0 }
 0x3e1   :  { %1074 = vadd.xlane.f32.xlu1 %v1073_v18  ;;  %v3381_v18 = vld [vmem:[%s6256_s1 + $0x248] sm:$0xff] }
 0x3f2   :  { %v872_v25 = vpop.f32.mrf.mxu0 }
 0x3f3   :  { %v873_v13 = vadd.f32 %v3327_v30, %v872_v25  ;;  %v3335_v25 = vld [vmem:[#allocation10 + $0x1] ss:$0 sm:$0xff] }
 0x3f4   :  { %v874_v4 = vpop.f32.mrf.mxu0 }
 0x3f5   :  { %v1071_v12 = vadd.f32 %v3875_v57, %v873_v13  ;;  %v3337_v13 = vld [vmem:[%s6261_s6 + $0x2] ss:$0 sm:$0xff] }
 0x3f6   :  { %v3380_v4 = vld [vmem:[%s6256_s1 + $0x240] sm:$0xff] }
 0x3f7   :  { %v1076_v48 = vsel %vm177_vm0, %v1071_v12, 0.0  ;;  %v3376_v57 = vld [vmem:[%s6256_s1 + $0x220] sm:$0xff] }
 0x3f8   :  { %1077 = vadd.xlane.f32.xlu0 %v1076_v48  ;;  %v3375_v48 = vld [vmem:[%s6256_s1 + $0x218] sm:$0xff] }
 0x410   :  { %v1066_v42 = vpop.f32.mrf.mxu1 }
 0x411   :  { %v1067_v11 = vadd.f32 %v3327_v30, %v1066_v42  ;;  %v3334_v30 = vld [vmem:[%s6261_s6 + $0x1] ss:$0 sm:$0xff] }
 0x412   :  { %v1068_v21 = vpop.f32.mrf.mxu1 }
 0x413   :  { %v1072_v56 = vadd.f32 %v3876_v46, %v1067_v11  ;;  %v3371_v11 = vld [vmem:[%s6256_s1 + $0x1f8] sm:$0xff]  ;;  %v3338_v21 = vld [vmem:[#allocation10 + $0x2] ss:$0 sm:$0xff]  ;;  %v3370_v46 = vld [vmem:[%s6256_s1 + $0x1f0] sm:$0xff] }
 0x415   :  { %v1080_v47 = vsel %vm177_vm0, %v1072_v56, 0.0 }
 0x416   :  { %1081 = vadd.xlane.f32.xlu1 %v1080_v47 }
 0x46a   :  { %v1075_v15 = vpop.xlane.xlu1 %1074 }
 0x481   :  { %v1078_v27 = vpop.xlane.xlu0 %1077 }
 0x482   :  { %v1079_v38 = vadd.f32 %v1078_v27, %v1075_v15  ;;  %v3365_v15 = vld [vmem:[%s6256_s1 + $0x1c8] sm:$0xff] }
 0x483   :  { %v3361_v27 = vld [vmem:[%s6256_s1 + $0x1a8] sm:$0xff] }
 0x49f   :  { %v1082_v24 = vpop.xlane.xlu1 %1081 }
 0x4a0   :  { %v1083_v44 = vadd.f32 %v1082_v24, %v1079_v38  ;;  %v3360_v38 = vld [vmem:[%s6256_s1 + $0x1a0] sm:$0xff] }
 0x4a1   :  { %v3356_v24 = vld [vmem:[%s6256_s1 + $0x180] sm:$0xff] }
 0x4a2   :  { %v1084_v49 = vmul.f32 0.0052083335, %v1083_v44  ;;  %v3355_v44 = vld [vmem:[%s6256_s1 + $0x178] sm:$0xff] }
 0x4a4   :  { %v1086_v5 = vsub.f32 %v1071_v12, %v1084_v49  ;;  %v1085_v10 = vsub.f32 %v1070_v32, %v1084_v49  ;;  %v1087_v39 = vsub.f32 %v1072_v56, %v1084_v49  ;;  %v3366_v56 = vld [vmem:[%s6256_s1 + $0x1d0] sm:$0xff]  ;;  %v3351_v49 = vld [vmem:[%s6256_s1 + $0x158] sm:$0xff] }
 0x4a6   :  { %v1092_v8 = vmul.f32 %v1086_v5, %v1086_v5  ;;  %v1088_v28 = vmul.f32 %v1085_v10, %v1085_v10  ;;  %v1097_v37 = vmul.f32 %v1087_v39, %v1087_v39 }
 0x4a8   :  { %v1093_v2 = vsel %vm177_vm0, %v1092_v8, 0.0  ;;  %v1089_v45 = vsel %vm177_vm0, %v1088_v28, 0.0  ;;  %v1098_v51 = vsel %vm177_vm0, %v1097_v37, 0.0  ;;  %v3377_v8 = vld [vmem:[%s6256_s1 + $0x228] sm:$0xff]  ;;  %v3372_v28 = vld [vmem:[%s6256_s1 + $0x200] sm:$0xff] }
 0x4a9   :  { %1094 = vadd.xlane.f32.xlu1 %v1093_v2  ;;  %1090 = vadd.xlane.f32.xlu0 %v1089_v45  ;;  %v3367_v2 = vld [vmem:[%s6256_s1 + $0x1d8] sm:$0xff]  ;;  %v3362_v45 = vld [vmem:[%s6256_s1 + $0x1b0] sm:$0xff]  ;;  %v3357_v37 = vld [vmem:[%s6256_s1 + $0x188] sm:$0xff] }
 0x4ad   :  { %1099 = vadd.xlane.f32.xlu0 %v1098_v51  ;;  %v3352_v51 = vld [vmem:[%s6256_s1 + $0x160] sm:$0xff] }
 0x532   :  { %v1095_v40 = vpop.xlane.xlu1 %1094  ;;  %v1091_v6 = vpop.xlane.xlu0 %1090 }
 0x533   :  { %v1096_v16 = vadd.f32 %v1095_v40, %v1091_v6 }
 0x536   :  { %v1100_v9 = vpop.xlane.xlu0 %1099 }
 0x537   :  { %v1101_v41 = vadd.f32 %v1100_v9, %v1096_v16 }
 0x539   :  { %v1102_v61 = vmul.f32 0.0052083335, %v1101_v41 }
 0x53b   :  { %v1103_v22 = vadd.f32 1e-05, %v1102_v61 }
 0x53d   :  { %3724 = vrsqrt.f32 %v1103_v22 }
 0x54a   :  { %v3725_v31 = vpop.eup %3724 }
 0x54b   :  { %v1105_v34 = vmul.f32 %v3725_v31, %v1085_v10  ;;  %v1122_v19 = vmul.f32 %v3725_v31, %v1086_v5  ;;  %v1141_v32 = vmul.f32 %v3725_v31, %v1087_v39  ;;  %v3350_v5 = vld [vmem:[%s6256_s1 + $0x150] sm:$0xff]  ;;  %v3387_v10 = vld [vmem:[%s6256_s1 + $0x278] sm:$0xff] }
 0x54c   :  { %v3382_v39 = vld [vmem:[%s6256_s1 + $0x250] sm:$0xff] }
 0x54d   :  { %v1113_v43 = vmul.f32 %v3331_v29, %v1105_v34  ;;  %v1131_v58 = vmul.f32 %v3334_v30, %v1122_v19  ;;  %v1150_v42 = vmul.f32 %v3337_v13, %v1141_v32  ;;  %v6312_v30 = vld [vmem:[#allocation20_spill] sm:$0xff] }
 0x54f   :  { %v4892_v20 = vadd.f32 %v3332_v3, %v1113_v43  ;;  %v4912_v12 = vadd.f32 %v3335_v25, %v1131_v58  ;;  %v4929_v47 = vadd.f32 %v3338_v21, %v1150_v42  ;;  %v1216_v43 = vrot.slane %v5008_v52, %v6312_v30 }
 0x551   :  { %6307 = vst [vmem:[#allocation21_spill] sm:$0xff] %v4892_v20  ;;  %3388 = vmatmul.mubr.msk.f32.vlgmr.msra.gmra.mxu0 %vm177_vm0, %v4892_v20  ;;  %6308 = vst [vmem:[#allocation22_spill] sm:$0xff] %v4912_v12 }
 0x552   :  { %1347 = vmatpush1.msra.mxu0 %v3385_v0  ;;  %1317 = vmatprep.mubr.f32.mxu0 %v6301_v54  ;;  %6309 = vst [vmem:[#allocation23_spill] sm:$0xff] %v4929_v47 }
 0x553   :  { %1348 = vmatprep.subr.mxu0 %v3381_v18 }
 0x554   :  { %1349 = vmatpush1.msra.mxu0 %v3380_v4 }
 0x555   :  { %1350 = vmatprep.subr.mxu0 %v3376_v57  ;;  %3389 = vmatmul.mubr.msk.f32.gmra.mxu0 %vm177_vm0, %v4912_v12 }
 0x556   :  { %1351 = vmatpush1.msra.mxu0 %v3375_v48  ;;  %1323 = vmatprep.mubr.f32.mxu0 %v6301_v54 }
 0x557   :  { %1352 = vmatprep.subr.mxu0 %v3371_v11 }
 0x558   :  { %1353 = vmatpush1.msra.mxu0 %v3370_v46 }
 0x559   :  { %1354 = vmatprep.subr.mxu0 %v3366_v56  ;;  %3390 = vmatmul.mubr.msk.f32.gmra.mxu0 %vm177_vm0, %v4929_v47 }
 0x55a   :  { %1355 = vmatpush1.msra.mxu0 %v3365_v15  ;;  %1394 = vmatprep.mubr.f32.mxu0 %v6301_v54 }
 0x55b   :  { %1356 = vmatprep.subr.mxu0 %v3361_v27 }
 0x55c   :  { %1357 = vmatpush1.msra.mxu0 %v3360_v38 }
 0x55d   :  { %1358 = vmatprep.subr.mxu0 %v3356_v24 }
 0x55e   :  { %1359 = vmatpush1.msra.mxu0 %v3355_v44 }
 0x55f   :  { %1360 = vmatprep.subr.mxu0 %v3351_v49 }
 0x560   :  { %1361 = vmatpush1.msra.mxu0 %v3350_v5 }
 0x561   :  { %3391 = vmatmul.mubr.msk.f32.vlgmr.msra.gmra.mxu0 %vm177_vm0, %v4892_v20  ;;  %3587 = vmatprep.subr.mxu0 %v6301_v54 }
 0x562   :  { %3588 = vmatpush3.msra.mxu0 %v3387_v10  ;;  %1400 = vmatprep.mubr.f32.mxu0 %v6301_v54 }
 0x563   :  { %3589 = vmatprep.subr.mxu0 %v6301_v54 }
 0x564   :  { %3590 = vmatpush3.msra.mxu0 %v3382_v39 }
 0x565   :  { %3392 = vmatmul.mubr.msk.f32.gmra.mxu0 %vm177_vm0, %v4912_v12  ;;  %3591 = vmatprep.subr.mxu0 %v6301_v54 }
 0x566   :  { %3592 = vmatpush3.msra.mxu0 %v3377_v8  ;;  %1406 = vmatprep.mubr.f32.mxu0 %v6301_v54 }
 0x567   :  { %3593 = vmatprep.subr.mxu0 %v6301_v54 }
 0x568   :  { %3594 = vmatpush3.msra.mxu0 %v3372_v28 }
 0x569   :  { %3393 = vmatmul.mubr.msk.f32.gmra.mxu0 %vm177_vm0, %v4929_v47  ;;  %3595 = vmatprep.subr.mxu0 %v6301_v54 }
 0x56a   :  { %3596 = vmatpush3.msra.mxu0 %v3367_v2  ;;  %3603 = vmatprep.mubr.msk.f32.mxu0 %vm4012_vm1, %v6301_v54 }
 0x56b   :  { %3597 = vmatprep.subr.mxu0 %v6301_v54 }
 0x56c   :  { %3598 = vmatpush3.msra.mxu0 %v3362_v45 }
 0x56d   :  { %3599 = vmatprep.subr.mxu0 %v6301_v54 }
 0x56e   :  { %3600 = vmatpush3.msra.mxu0 %v3357_v37 }
 0x56f   :  { %3601 = vmatprep.subr.mxu0 %v6301_v54 }
 0x570   :  { %3602 = vmatpush3.msra.mxu0 %v3352_v51 }
 0x571   :  { %3604 = vmatmul.mubr.msk.f32.vlgmr.msra.gmra.mxu0 %vm177_vm0, %v4892_v20  ;;  %1868 = vmatprep.subr.mxu0 %v6301_v54  ;;  %v5428_v20 = vstv %s3346_s28 }
 0x572   :  { %3606 = vmatprep.mubr.msk.f32.mxu0 %vm4012_vm1, %v6301_v54 }
 0x575   :  { %3607 = vmatmul.mubr.msk.f32.gmra.mxu0 %vm177_vm0, %v4912_v12 }
 0x576   :  { %3609 = vmatprep.mubr.msk.f32.mxu0 %vm4012_vm1, %v6301_v54 }
 0x579   :  { %3610 = vmatmul.mubr.msk.f32.gmra.mxu0 %vm177_vm0, %v4929_v47 }
 0x611   :  { %v1313_v17 = vpop.f32.mrf.mxu0 }
 0x612   :  { %v1314_v0 = vadd.f32 %v1313_v17, %v1216_v43 }
 0x613   :  { %v1315_v14 = vpop.f32.mrf.mxu0 }
 0x614   :  { %v5012_v55 = vadd.f32 %v1315_v14, %v1220_v7 }
 0x615   :  { %v1319_v26 = vpop.f32.mrf.mxu0 }
 0x616   :  { %1494 = vrot.lane.b32.xlu1 %v5012_v55, %s4011_s2  ;;  %v1320_v58 = vadd.f32 %v1319_v26, %v1216_v43 }
 0x617   :  { %v1321_v23 = vpop.f32.mrf.mxu0 }
 0x618   :  { %v5016_v36 = vadd.f32 %v1321_v23, %v1220_v7 }
 0x619   :  { %v1325_v53 = vpop.f32.mrf.mxu0 }
 0x61a   :  { %1504 = vrot.lane.b32.xlu0 %v5016_v36, %s4011_s2  ;;  %v5043_v32 = vadd.f32 %v1325_v53, %v1216_v43  ;;  %v5109_v43 = vstv %s3340_s26  ;;  %s3344_s26 = sld [smem:[#allocation9 + $0xe]] }
 0x61b   :  { %v1327_v59 = vpop.f32.mrf.mxu0 }
 0x61c   :  { %v5020_v63 = vadd.f32 %v1327_v59, %v1220_v7 }
 0x61e   :  { %1514 = vrot.lane.b32.xlu1 %v5020_v63, %s4011_s2 }
 0x621   :  { %v1396_v62 = vpop.f32.mrf.mxu0 }
 0x622   :  { %v1397_v1 = vadd.f32 %v1396_v62, %v1224_v33 }
 0x623   :  { %v5026_v35 = vpop.f32.mrf.mxu0 }
 0x624   :  { %1544 = vrot.lane.b32.xlu1 %v1397_v1, %s4011_s2 }
 0x625   :  { %v1402_v40 = vpop.f32.mrf.mxu0 }
 0x626   :  { %v1403_v6 = vadd.f32 %v1402_v40, %v1224_v33 }
 0x627   :  { %v5029_v16 = vpop.f32.mrf.mxu0 }
 0x628   :  { %1557 = vrot.lane.b32.xlu0 %v1403_v6, %s4011_s2 }
 0x629   :  { %v1408_v9 = vpop.f32.mrf.mxu0 }
 0x62a   :  { %v1409_v41 = vadd.f32 %v1408_v9, %v1224_v33 }
 0x62b   :  { %v5033_v61 = vpop.f32.mrf.mxu0 }
 0x62c   :  { %1570 = vrot.lane.b32.xlu1 %v1409_v41, %s4011_s2 }
 0x631   :  { %v5035_v22 = vpop.f32.mrf.mxu0 }
 0x633   :  { %v3605_v31 = vpop.f32.mrf.mxu0 }
 0x635   :  { %v5037_v29 = vpop.f32.mrf.mxu0 }
 0x637   :  { %v3608_v34 = vpop.f32.mrf.mxu0 }
 0x639   :  { %v5039_v19 = vpop.f32.mrf.mxu0 }
 0x63b   :  { %v3611_v3 = vpop.f32.mrf.mxu0 }
 0x63c   :  { %v5107_v3 = vstv %s3339_s25  ;;  %s3343_s25 = sld [smem:[#allocation9 + $0xd]] }
 0x688   :  { %v1495_v18 = vpop.permute.xlu1 %1494 }
 0x689   :  { %v1497_v25 = vmul.f32 %v1495_v18, %v1314_v0  ;;  %v5046_v13 = vmul.f32 %v1495_v18, %v5043_v32  ;;  %v5048_v4 = vmul.f32 %v1495_v18, %v1320_v58 }
 0x68b   :  { %v1498_v57 = vsel %vm177_vm0, %v1497_v25, 0.0 }
 0x68c   :  { %v5051_v48 = vpop.permute.xlu0 %1504  ;;  %1499 = vadd.xlane.f32.xlu1 %v1498_v57 }
 0x68d   :  { %v1507_v42 = vmul.f32 %v5051_v48, %v1314_v0  ;;  %v1750_v9 = vmul.f32 %v5051_v48, %v1320_v58 }
 0x68f   :  { %v1508_v11 = vsel %vm177_vm0, %v1507_v42, 0.0  ;;  %v1751_v41 = vsel %vm177_vm0, %v1750_v9, 0.0  ;;  %v5232_v9 = vld [vmem:[%s6258_s3 + $0xf0] sm:$0xff] }
 0x690   :  { %v1515_v21 = vpop.permute.xlu1 %1514  ;;  %1509 = vadd.xlane.f32.xlu0 %v1508_v11 }
 0x691   :  { %v1517_v46 = vmul.f32 %v1515_v21, %v1314_v0  ;;  %v5056_v56 = vmul.f32 %v1515_v21, %v5043_v32  ;;  %v5058_v15 = vmul.f32 %v1515_v21, %v1320_v58 }
 0x693   :  { %v1518_v17 = vsel %vm177_vm0, %v1517_v46, 0.0 }
 0x696   :  { %v5060_v27 = vpop.permute.xlu1 %1544 }
 0x697   :  { %v1782_v38 = vmul.f32 %v5060_v27, %v1320_v58  ;;  %v1547_v5 = vmul.f32 %v5060_v27, %v1314_v0  ;;  %v1976_v10 = vmul.f32 %v5060_v27, %v5043_v32  ;;  %v1602_v39 = vmul.f32 %v5060_v27, %v5012_v55 }
 0x699   :  { %v1603_v28 = vsel %vm177_vm0, %v1602_v39, 0.0 }
 0x69a   :  { %v5063_v24 = vpop.permute.xlu0 %1557 }
 0x69b   :  { %v1560_v44 = vmul.f32 %v5063_v24, %v1314_v0  ;;  %v1985_v49 = vmul.f32 %v5063_v24, %v5043_v32  ;;  %v1607_v8 = vmul.f32 %v5063_v24, %v5012_v55  ;;  %v1791_v51 = vmul.f32 %v5063_v24, %v1320_v58 }
 0x69c   :  { %v1834_v11 = vmul.f32 %v5063_v24, %v5016_v36 }
 0x69d   :  { %1784 = vrot.lane.b32.xlu1 %v1782_v38, %s4011_s2  ;;  %v1608_v2 = vsel %vm177_vm0, %v1607_v8, 0.0  ;;  %v2023_v8 = vmul.f32 %v5060_v27, %v5020_v63 }
 0x69e   :  { %v5082_v45 = vpop.permute.xlu1 %1570  ;;  %v1835_v46 = vsel %vm177_vm0, %v1834_v11, 0.0  ;;  %v5302_v11 = vstv %s3341_s27  ;;  %s3345_s27 = sld [smem:[#allocation9 + $0xf]] }
 0x69f   :  { %v1800_v37 = vmul.f32 %v5082_v45, %v1320_v58  ;;  %v1573_v7 = vmul.f32 %v5082_v45, %v1314_v0  ;;  %v1994_v26 = vmul.f32 %v5082_v45, %v5043_v32  ;;  %v1612_v40 = vmul.f32 %v5082_v45, %v5012_v55 }
 0x6a1   :  { %1562 = vrot.lane.b32.xlu1 %v1560_v44, %s4011_s2  ;;  %v1613_v6 = vsel %vm177_vm0, %v1612_v40, 0.0  ;;  %v1939_v44 = vsel %vm177_vm0, %v5046_v13, 0.0  ;;  %v1829_v13 = vmul.f32 %v5060_v27, %v5016_v36  ;;  %v2024_v27 = vsel %vm177_vm0, %v2023_v8, 0.0  ;;  %v5338_v8 = vld [vmem:[%s6258_s3 + $0x158] sm:$0xff] }
 0x6a2   :  { %v2028_v40 = vmul.f32 %v5063_v24, %v5020_v63  ;;  %v5242_v24 = vld [vmem:[%s6258_s3 + $0xe8] sm:$0xff]  ;;  %6313 = vst [vmem:[#allocation24_spill] sm:$0xff] %v5338_v8 }
 0x6a5   :  { %1987 = vrot.lane.b32.xlu1 %v1985_v49, %s4011_s2  ;;  %v1745_v49 = vsel %vm177_vm0, %v5048_v4, 0.0  ;;  %v5143_v4 = vld [vmem:[%s6258_s3 + $0x130] sm:$0xff] }
 0x6a6   :  { %1549 = vrot.lane.b32.xlu0 %v1547_v5, %s4011_s2  ;;  %v5131_v5 = vld [vmem:[%s6258_s3 + $0x138] sm:$0xff] }
 0x6a7   :  { %1675 = vmatpush1.msra.mxu1 %v5131_v5  ;;  %1869 = vmatpush1.msra.mxu0 %v5131_v5 }
 0x6a8   :  { %1676 = vmatprep.subr.mxu1 %v6301_v54  ;;  %1870 = vmatprep.subr.mxu0 %v6301_v54 }
 0x6a9   :  { %1677 = vmatpush1.msra.mxu1 %v5143_v4  ;;  %1871 = vmatpush1.msra.mxu0 %v5143_v4 }
 0x6aa   :  { %1978 = vrot.lane.b32.xlu0 %v1976_v10, %s4011_s2  ;;  %1678 = vmatprep.subr.mxu1 %v6301_v54 }
 0x6ab   :  { %1872 = vmatprep.subr.mxu0 %v6301_v54 }
 0x6c9   :  { %1604 = vadd.xlane.f32.xlu0 %v1603_v28  ;;  %1609 = vadd.xlane.f32.xlu1 %v1608_v2  ;;  %v1830_v28 = vsel %vm177_vm0, %v1829_v13, 0.0  ;;  %v5157_v2 = vld [vmem:[%s6258_s3 + $0x128] sm:$0xff] }
 0x6ca   :  { %1679 = vmatpush1.msra.mxu1 %v5157_v2  ;;  %1873 = vmatpush1.msra.mxu0 %v5157_v2 }
 0x6cb   :  { %1680 = vmatprep.subr.mxu1 %v6301_v54  ;;  %1874 = vmatprep.subr.mxu0 %v6301_v54 }
 0x6da   :  { %1802 = vrot.lane.b32.xlu1 %v1800_v37, %s4011_s2  ;;  %v1951_v37 = vsel %vm177_vm0, %v5056_v56, 0.0 }
 0x6df   :  { %1793 = vrot.lane.b32.xlu0 %v1791_v51, %s4011_s2  ;;  %v1757_v51 = vsel %vm177_vm0, %v5058_v15, 0.0 }
 0x6e3   :  { %1575 = vrot.lane.b32.xlu0 %v1573_v7, %s4011_s2  ;;  %v1839_v7 = vmul.f32 %v5082_v45, %v5016_v36  ;;  %v5178_v36 = vld [vmem:[%s6258_s3 + $0x118] sm:$0xff] }
 0x6e5   :  { %v1840_v56 = vsel %vm177_vm0, %v1839_v7, 0.0 }
 0x702   :  { %1519 = vadd.xlane.f32.xlu0 %v1518_v17 }
 0x715   :  { %v5091_v14 = vpop.xlane.xlu1 %1499 }
 0x718   :  { %1996 = vrot.lane.b32.xlu0 %v1994_v26, %s4011_s2  ;;  %v5170_v26 = vld [vmem:[%s6258_s3 + $0x120] sm:$0xff] }
 0x719   :  { %v1785_v23 = vpop.permute.xlu1 %1784  ;;  %v5097_v33 = vpop.xlane.xlu0 %1509  ;;  %1681 = vmatpush1.msra.mxu1 %v5170_v26  ;;  %1875 = vmatpush1.msra.mxu0 %v5170_v26 }
 0x71a   :  { %v1787_v39 = vsel %vm177_vm0, %v1785_v23, 0.0  ;;  %v1944_v23 = vmul.f32 %v5051_v48, %v5043_v32  ;;  %1682 = vmatprep.subr.mxu1 %v6301_v54  ;;  %1876 = vmatprep.subr.mxu0 %v6301_v54 }
 0x71b   :  { %1683 = vmatpush1.msra.mxu1 %v5178_v36  ;;  %1877 = vmatpush1.msra.mxu0 %v5178_v36 }
 0x71c   :  { %1684 = vmatprep.subr.mxu1 %v6301_v54  ;;  %1878 = vmatprep.subr.mxu0 %v6301_v54  ;;  %v1945_v32 = vsel %vm177_vm0, %v1944_v23, 0.0  ;;  %v5365_v23 = vld [vmem:[%s6258_s3 + $0x140] sm:$0xff] }
 0x71d   :  { %v1563_v53 = vpop.permute.xlu1 %1562  ;;  %v1550_v62 = vpop.permute.xlu0 %1549  ;;  %6316 = vst [vmem:[#allocation29_spill] sm:$0xff] %v5365_v23 }
 0x71e   :  { %v1565_v59 = vsel %vm177_vm0, %v1563_v53, 0.0  ;;  %v1552_v1 = vsel %vm177_vm0, %v1550_v62, 0.0  ;;  %v2033_v53 = vmul.f32 %v5082_v45, %v5020_v63  ;;  %v5204_v45 = vld [vmem:[%s6258_s3 + $0x108] sm:$0xff]  ;;  %v5211_v62 = vld [vmem:[%s6258_s3 + $0x100] sm:$0xff]  ;;  %v2029_v63 = vsel %vm177_vm0, %v2028_v40, 0.0 }
 0x71f   :  { %1566 = vadd.xlane.f32.xlu1 %v1565_v59  ;;  %v5192_v59 = vld [vmem:[%s6258_s3 + $0x110] sm:$0xff] }
 0x720   :  { %v2034_v48 = vsel %vm177_vm0, %v2033_v53, 0.0  ;;  %1685 = vmatpush1.msra.mxu1 %v5192_v59  ;;  %1879 = vmatpush1.msra.mxu0 %v5192_v59  ;;  %v6317_v53 = vld [vmem:[#allocation26_spill] sm:$0xff] }
 0x721   :  { %v1979_v31 = vpop.permute.xlu0 %1978  ;;  %v5105_v34 = vpop.permute.xlu1 %1987  ;;  %1686 = vmatprep.subr.mxu1 %v6301_v54  ;;  %1880 = vmatprep.subr.mxu0 %v6301_v54 }
 0x722   :  { %v1981_v10 = vsel %vm177_vm0, %v1979_v31, 0.0  ;;  %1687 = vmatpush1.msra.mxu1 %v5204_v45  ;;  %1881 = vmatpush1.msra.mxu0 %v5204_v45  ;;  %v5259_v31 = vld [vmem:[%s6258_s3 + $0xd8] sm:$0xff] }
 0x723   :  { %1688 = vmatprep.subr.mxu1 %v6301_v54  ;;  %1882 = vmatprep.subr.mxu0 %v6301_v54 }
 0x724   :  { %1689 = vmatpush1.msra.mxu1 %v5211_v62  ;;  %1883 = vmatpush1.msra.mxu0 %v5211_v62 }
 0x725   :  { %1690 = vmatprep.subr.mxu1 %v6301_v54  ;;  %1884 = vmatprep.subr.mxu0 %v6301_v54 }
 0x737   :  { %1553 = vadd.xlane.f32.xlu0 %v1552_v1  ;;  %v1990_v1 = vsel %vm177_vm0, %v5105_v34, 0.0  ;;  %v5268_v34 = vld [vmem:[%s6258_s3 + $0xd0] sm:$0xff] }
 0x73b   :  { %1614 = vadd.xlane.f32.xlu0 %v1613_v6  ;;  %v5224_v6 = vld [vmem:[%s6258_s3 + $0xf8] sm:$0xff] }
 0x73c   :  { %1691 = vmatpush1.msra.mxu1 %v5224_v6  ;;  %1885 = vmatpush1.msra.mxu0 %v5224_v6 }
 0x73d   :  { %1692 = vmatprep.subr.mxu1 %v6301_v54  ;;  %1886 = vmatprep.subr.mxu0 %v6301_v54 }
 0x73e   :  { %1693 = vmatpush1.msra.mxu1 %v5232_v9  ;;  %1887 = vmatpush1.msra.mxu0 %v5232_v9 }
 0x73f   :  { %1752 = vadd.xlane.f32.xlu0 %v1751_v41  ;;  %1694 = vmatprep.subr.mxu1 %v6301_v54  ;;  %v5250_v41 = vld [vmem:[%s6258_s3 + $0xe0] sm:$0xff] }
 0x740   :  { %1695 = vmatpush1.msra.mxu1 %v5242_v24  ;;  %1888 = vmatprep.subr.mxu0 %v6301_v54 }
 0x741   :  { %1696 = vmatprep.subr.mxu1 %v6301_v54  ;;  %1889 = vmatpush1.msra.mxu0 %v5242_v24 }
 0x742   :  { %1697 = vmatpush1.msra.mxu1 %v5250_v41  ;;  %1890 = vmatprep.subr.mxu0 %v6301_v54 }
 0x743   :  { %1698 = vmatprep.subr.mxu1 %v6301_v54  ;;  %1891 = vmatpush1.msra.mxu0 %v5250_v41 }
 0x744   :  { %1699 = vmatpush1.msra.mxu1 %v5259_v31  ;;  %1892 = vmatprep.subr.mxu0 %v6301_v54 }
 0x745   :  { %1700 = vmatprep.subr.mxu1 %v6301_v54  ;;  %1893 = vmatpush1.msra.mxu0 %v5259_v31 }
 0x746   :  { %1701 = vmatpush1.msra.mxu1 %v5268_v34  ;;  %1894 = vmatprep.subr.mxu0 %v6301_v54 }
 0x747   :  { %1702 = vmatprep.subr.mxu1 %v6301_v54  ;;  %1895 = vmatpush1.msra.mxu0 %v5268_v34 }
 0x748   :  { %1896 = vmatprep.subr.mxu0 %v6301_v54 }
 0x752   :  { %v1605_v0 = vpop.xlane.xlu0 %1604  ;;  %v1610_v55 = vpop.xlane.xlu1 %1609 }
 0x753   :  { %v5112_v18 = vadd.f32 %v1605_v0, %v5107_v3  ;;  %v5115_v58 = vadd.f32 %v1610_v55, %v5109_v43  ;;  %v5277_v0 = vld [vmem:[%s6258_s3 + $0xc8] sm:$0xff]  ;;  %v5286_v55 = vld [vmem:[%s6258_s3 + $0xc0] sm:$0xff] }
 0x754   :  { %1703 = vmatpush1.msra.mxu1 %v5277_v0  ;;  %1897 = vmatpush1.msra.mxu0 %v5277_v0 }
 0x755   :  { %v1617_v25 = vmax.f32 %v5112_v18, %v5115_v58  ;;  %1704 = vmatprep.subr.mxu1 %v6301_v54  ;;  %1898 = vmatprep.subr.mxu0 %v6301_v54 }
 0x756   :  { %v1794_v57 = vpop.permute.xlu0 %1793  ;;  %v1803_v17 = vpop.permute.xlu1 %1802  ;;  %1705 = vmatpush1.msra.mxu1 %v5286_v55  ;;  %1899 = vmatpush1.msra.mxu0 %v5286_v55 }
 0x757   :  { %v1796_v42 = vsel %vm177_vm0, %v1794_v57, 0.0  ;;  %v1805_v15 = vsel %vm177_vm0, %v1803_v17, 0.0  ;;  %v5295_v57 = vld [vmem:[%s6258_s3 + $0x178] sm:$0xff]  ;;  %1722 = vmatprep.subr.mxu1 %v6301_v54  ;;  %1916 = vmatprep.subr.mxu0 %v6301_v54 }
 0x758   :  { %1797 = vadd.xlane.f32.xlu0 %v1796_v42  ;;  %v1512_v42 = vadd.f32 %v5109_v43, %v5097_v33  ;;  %1723 = vmatpush2.msra.mxu1 %v5295_v57 }
 0x759   :  { %1724 = vmatprep.subr.mxu1 %v6301_v54  ;;  %1917 = vmatpush2.msra.mxu0 %v5295_v57 }
 0x75a   :  { %v1576_v21 = vpop.permute.xlu0 %1575  ;;  %1918 = vmatprep.subr.mxu0 %v6301_v54 }
 0x75b   :  { %v1578_v38 = vsel %vm177_vm0, %v1576_v21, 0.0  ;;  %v5308_v21 = vld [vmem:[%s6258_s3 + $0x170] sm:$0xff] }
 0x75c   :  { %1836 = vadd.xlane.f32.xlu0 %v1835_v46  ;;  %1579 = vadd.xlane.f32.xlu1 %v1578_v38  ;;  %v1502_v46 = vadd.f32 %v5107_v3, %v5091_v14  ;;  %v5319_v38 = vld [vmem:[%s6258_s3 + $0x168] sm:$0xff]  ;;  %v5329_v14 = vld [vmem:[%s6258_s3 + $0x160] sm:$0xff] }
 0x75d   :  { %1725 = vmatpush2.msra.mxu1 %v5308_v21  ;;  %1919 = vmatpush2.msra.mxu0 %v5308_v21 }
 0x75e   :  { %1726 = vmatprep.subr.mxu1 %v6301_v54  ;;  %1920 = vmatprep.subr.mxu0 %v6301_v54 }
 0x75f   :  { %1727 = vmatpush2.msra.mxu1 %v5319_v38  ;;  %1921 = vmatpush2.msra.mxu0 %v5319_v38 }
 0x760   :  { %1940 = vadd.xlane.f32.xlu0 %v1939_v44  ;;  %1746 = vadd.xlane.f32.xlu1 %v1745_v49  ;;  %v1523_v44 = vmax.f32 %v1502_v46, %v1512_v42 }
 0x761   :  { %1728 = vmatprep.subr.mxu1 %v6301_v54  ;;  %1922 = vmatprep.subr.mxu0 %v6301_v54 }
 0x762   :  { %1729 = vmatpush2.msra.mxu1 %v5329_v14  ;;  %1923 = vmatpush2.msra.mxu0 %v5329_v14 }
 0x763   :  { %1730 = vmatprep.subr.mxu1 %v6301_v54  ;;  %1924 = vmatprep.subr.mxu0 %v6301_v54 }
 0x764   :  { %1982 = vadd.xlane.f32.xlu0 %v1981_v10  ;;  %1788 = vadd.xlane.f32.xlu1 %v1787_v39 }
 0x765   :  { %1731 = vmatpush2.msra.mxu1 %v5338_v8  ;;  %1925 = vmatpush2.msra.mxu0 %v5338_v8 }
 0x766   :  { %1732 = vmatprep.subr.mxu1 %v6301_v54  ;;  %1926 = vmatprep.subr.mxu0 %v6301_v54 }
 0x768   :  { %2025 = vadd.xlane.f32.xlu0 %v2024_v27  ;;  %1831 = vadd.xlane.f32.xlu1 %v1830_v28 }
 0x76c   :  { %1952 = vadd.xlane.f32.xlu0 %v1951_v37  ;;  %1758 = vadd.xlane.f32.xlu1 %v1757_v51  ;;  %v5348_v51 = vld [vmem:[%s6258_s3 + $0x150] sm:$0xff] }
 0x76d   :  { %6314 = vst [vmem:[#allocation25_spill] sm:$0xff] %v5348_v51  ;;  %1733 = vmatpush2.msra.mxu1 %v5348_v51  ;;  %1927 = vmatpush2.msra.mxu0 %v5348_v51 }
 0x76e   :  { %1734 = vmatprep.subr.mxu1 %v6301_v54  ;;  %1928 = vmatprep.subr.mxu0 %v6301_v54 }
 0x770   :  { %1841 = vadd.xlane.f32.xlu1 %v1840_v56  ;;  %1806 = vadd.xlane.f32.xlu0 %v1805_v15  ;;  %v5356_v15 = vld [vmem:[%s6258_s3 + $0x148] sm:$0xff] }
 0x771   :  { %6315 = vst [vmem:[#allocation28_spill] sm:$0xff] %v5356_v15  ;;  %1735 = vmatpush2.msra.mxu1 %v5356_v15  ;;  %1929 = vmatpush2.msra.mxu0 %v5356_v15 }
 0x772   :  { %1736 = vmatprep.subr.mxu1 %v6301_v54  ;;  %1930 = vmatprep.subr.mxu0 %v6301_v54 }
 0x773   :  { %1737 = vmatpush2.msra.mxu1 %v5365_v23  ;;  %1931 = vmatpush2.msra.mxu0 %v5365_v23 }
 0x774   :  { %1946 = vadd.xlane.f32.xlu1 %v1945_v32  ;;  %2035 = vadd.xlane.f32.xlu0 %v2034_v48  ;;  %v1228_v32 = vrot.slane %v5008_v52, %v6317_v53 }
 0x775   :  { %2062 = vmatprep.subr.mxu1 %v6301_v54 }
 0x776   :  { %v5381_v48 = vadd.f32 %v5026_v35, %v1228_v32  ;;  %v5384_v40 = vadd.f32 %v5029_v16, %v1228_v32 }
 0x778   :  { %1991 = vadd.xlane.f32.xlu1 %v1990_v1 }
 0x77c   :  { %2030 = vadd.xlane.f32.xlu1 %v2029_v63 }
 0x78b   :  { %v1520_v33 = vpop.xlane.xlu0 %1519 }
 0x78c   :  { %v1522_v49 = vadd.f32 %v5302_v11, %v1520_v33 }
 0x78e   :  { %v1524_v10 = vmax.f32 %v1523_v44, %v1522_v49 }
 0x78f   :  { %v1997_v39 = vpop.permute.xlu0 %1996 }
 0x790   :  { %v1525_v13 = vsub.f32 %v1502_v46, %v1524_v10  ;;  %v1528_v27 = vsub.f32 %v1512_v42, %v1524_v10  ;;  %v1531_v28 = vsub.f32 %v1522_v49, %v1524_v10  ;;  %v1999_v37 = vsel %vm177_vm0, %v1997_v39, 0.0 }
 0x791   :  { %2000 = vadd.xlane.f32.xlu1 %v1999_v37  ;;  %v5387_v42 = vadd.f32 %v5033_v61, %v1228_v32 }
 0x792   :  { %v1526_v7 = vmul.f32 1.442695, %v1525_v13  ;;  %v1529_v17 = vmul.f32 1.442695, %v1528_v27  ;;  %v1532_v56 = vmul.f32 1.442695, %v1531_v28 }
 0x794   :  { %3726 = vpow2.f32 %v1526_v7 }
 0x795   :  { %3728 = vpow2.f32 %v1529_v17 }
 0x796   :  { %3730 = vpow2.f32 %v1532_v56 }
 0x7a1   :  { %v3727_v1 = vpop.eup %3726 }
 0x7a2   :  { %v3729_v63 = vpop.eup %3728  ;;  %v1537_v46 = vmul.f32 %v3727_v1, %v5381_v48 }
 0x7a3   :  { %v3731_v33 = vpop.eup %3730  ;;  %v1534_v44 = vadd.f32 %v3729_v63, %v3727_v1  ;;  %v1538_v49 = vmul.f32 %v3729_v63, %v5384_v40 }
 0x7a4   :  { %v1540_v10 = vmul.f32 %v3731_v33, %v5387_v42 }
 0x7a5   :  { %v1535_v39 = vadd.f32 %v3731_v33, %v1534_v44  ;;  %v1539_v13 = vadd.f32 %v1538_v49, %v1537_v46  ;;  %v6318_v33 = vld [vmem:[#allocation27_spill] sm:$0xff] }
 0x7a6   :  { %v1232_v44 = vrot.slane %v5008_v52, %v6318_v33 }
 0x7a7   :  { %3732 = vrcp.f32 %v1535_v39  ;;  %v1541_v35 = vadd.f32 %v1540_v10, %v1539_v13 }
 0x7a8   :  { %v5403_v49 = vadd.f32 %v5035_v22, %v1232_v44  ;;  %v5410_v13 = vadd.f32 %v5039_v19, %v1232_v44 }
 0x7b4   :  { %v3733_v27 = vpop.eup %3732 }
 0x7b5   :  { %v5392_v28 = vmul.f32 %v3733_v27, %v1541_v35 }
 0x7c0   :  { %v1554_v16 = vpop.xlane.xlu0 %1553 }
 0x7c4   :  { %v1615_v37 = vpop.xlane.xlu0 %1614 }
 0x7c5   :  { %v1616_v61 = vadd.f32 %v1615_v37, %v5302_v11 }
 0x7c7   :  { %v1618_v7 = vmax.f32 %v1617_v25, %v1616_v61  ;;  %v5406_v25 = vadd.f32 %v5037_v29, %v1232_v44 }
 0x7c8   :  { %v1753_v37 = vpop.xlane.xlu0 %1752 }
 0x7c9   :  { %v1619_v17 = vsub.f32 %v5112_v18, %v1618_v7  ;;  %v1622_v56 = vsub.f32 %v5115_v58, %v1618_v7  ;;  %v1625_v32 = vsub.f32 %v1616_v61, %v1618_v7 }
 0x7cb   :  { %v1620_v1 = vmul.f32 1.442695, %v1619_v17  ;;  %v1623_v63 = vmul.f32 1.442695, %v1622_v56  ;;  %v1626_v46 = vmul.f32 1.442695, %v1625_v32  ;;  %v1567_v17 = vpop.xlane.xlu1 %1566  ;;  %v1555_v56 = vadd.f32 %v1554_v16, %v5107_v3 }
 0x7cc   :  { %v1568_v32 = vadd.f32 %v1567_v17, %v5109_v43  ;;  %v1754_v17 = vstv %s3343_s25 }
 0x7cd   :  { %3734 = vpow2.f32 %v1620_v1 }
 0x7ce   :  { %3736 = vpow2.f32 %v1623_v63  ;;  %v1582_v19 = vmax.f32 %v1555_v56, %v1568_v32 }
 0x7cf   :  { %3738 = vpow2.f32 %v1626_v46 }
 0x7da   :  { %v3735_v10 = vpop.eup %3734 }
 0x7db   :  { %v3737_v18 = vpop.eup %3736  ;;  %v1631_v58 = vmul.f32 %v3735_v10, %v5403_v49 }
 0x7dc   :  { %v3739_v39 = vpop.eup %3738  ;;  %v1628_v35 = vadd.f32 %v3737_v18, %v3735_v10  ;;  %v1632_v27 = vmul.f32 %v3737_v18, %v5406_v25 }
 0x7dd   :  { %v1634_v22 = vmul.f32 %v3739_v39, %v5410_v13 }
 0x7de   :  { %v1629_v61 = vadd.f32 %v3739_v39, %v1628_v35  ;;  %v1633_v52 = vadd.f32 %v1632_v27, %v1631_v58 }
 0x7e0   :  { %3740 = vrcp.f32 %v1629_v61  ;;  %v1635_v7 = vadd.f32 %v1634_v22, %v1633_v52 }
 0x7e1   :  { %v1798_v29 = vpop.xlane.xlu0 %1797 }
 0x7e5   :  { %v1837_v1 = vpop.xlane.xlu0 %1836  ;;  %v1580_v63 = vpop.xlane.xlu1 %1579 }
 0x7e6   :  { %v1581_v46 = vadd.f32 %v1580_v63, %v5302_v11  ;;  %v1748_v11 = vstv %s3342_s24  ;;  %v1838_v33 = vadd.f32 %v1837_v1, %v1754_v17 }
 0x7e8   :  { %v1583_v44 = vmax.f32 %v1582_v19, %v1581_v46  ;;  %v1760_v19 = vstv %s3344_s26 }
 0x7e9   :  { %v5417_v10 = vpop.xlane.xlu0 %1940  ;;  %v1747_v18 = vpop.xlane.xlu1 %1746 }
 0x7ea   :  { %v1584_v58 = vsub.f32 %v1555_v56, %v1583_v44  ;;  %v1587_v39 = vsub.f32 %v1568_v32, %v1583_v44  ;;  %v1590_v35 = vsub.f32 %v1581_v46, %v1583_v44  ;;  %v1749_v32 = vadd.f32 %v1748_v11, %v1747_v18 }
 0x7eb   :  { %v1755_v46 = vadd.f32 %v1754_v17, %v1753_v37  ;;  %v5426_v37 = vstv %s3345_s27 }
 0x7ec   :  { %v1585_v27 = vmul.f32 1.442695, %v1584_v58  ;;  %v1588_v61 = vmul.f32 1.442695, %v1587_v39  ;;  %v1591_v16 = vmul.f32 1.442695, %v1590_v35 }
 0x7ed   :  { %v3741_v3 = vpop.eup %3740  ;;  %v5419_v43 = vpop.xlane.xlu0 %1982  ;;  %v1762_v35 = vmax.f32 %v1749_v32, %v1755_v46 }
 0x7ee   :  { %v1789_v52 = vpop.xlane.xlu1 %1788  ;;  %3742 = vpow2.f32 %v1585_v27  ;;  %v1636_v22 = vmul.f32 %v3741_v3, %v1635_v7  ;;  %v1799_v7 = vadd.f32 %v1798_v29, %v1754_v17 }
 0x7ef   :  { %3744 = vpow2.f32 %v1588_v61  ;;  %v1790_v44 = vadd.f32 %v1789_v52, %v1748_v11 }
 0x7f0   :  { %3422 = vmatprep.mubr.msk.f32.mxu1 %vm177_vm0, %v1636_v22  ;;  %3746 = vpow2.f32 %v1591_v16 }
 0x7f1   :  { %v5422_v63 = vpop.xlane.xlu0 %2025  ;;  %v1809_v22 = vmax.f32 %v1790_v44, %v1799_v7 }
 0x7f2   :  { %v1832_v56 = vpop.xlane.xlu1 %1831 }
 0x7f3   :  { %v1833_v61 = vadd.f32 %v1832_v56, %v1748_v11 }
 0x7f5   :  { %v1953_v58 = vpop.xlane.xlu0 %1952  ;;  %v1844_v52 = vmax.f32 %v1833_v61, %v1838_v33 }
 0x7f6   :  { %v1759_v39 = vpop.xlane.xlu1 %1758 }
 0x7f7   :  { %v1761_v27 = vadd.f32 %v1760_v19, %v1759_v39 }
 0x7f9   :  { %v1763_v3 = vmax.f32 %v1762_v35, %v1761_v27  ;;  %v1807_v16 = vpop.xlane.xlu0 %1806 }
 0x7fa   :  { %v1842_v53 = vpop.xlane.xlu1 %1841  ;;  %v1808_v50 = vadd.f32 %v1807_v16, %v1760_v19 }
 0x7fb   :  { %v1764_v30 = vsub.f32 %v1749_v32, %v1763_v3  ;;  %v1767_v60 = vsub.f32 %v1755_v46, %v1763_v3  ;;  %v1770_v18 = vsub.f32 %v1761_v27, %v1763_v3  ;;  %v3743_v47 = vpop.eup %3742  ;;  %v1843_v12 = vadd.f32 %v1842_v53, %v1760_v19 }
 0x7fc   :  { %v3745_v29 = vpop.eup %3744  ;;  %v1810_v17 = vmax.f32 %v1809_v22, %v1808_v50  ;;  %v1596_v32 = vmul.f32 %v3743_v47, %v5381_v48 }
 0x7fd   :  { %v1765_v11 = vmul.f32 1.442695, %v1764_v30  ;;  %v1768_v56 = vmul.f32 1.442695, %v1767_v60  ;;  %v1771_v1 = vmul.f32 1.442695, %v1770_v18  ;;  %v1593_v39 = vadd.f32 %v3745_v29, %v3743_v47  ;;  %v3747_v27 = vpop.eup %3746 }
 0x7fe   :  { %v1845_v35 = vmax.f32 %v1844_v52, %v1843_v12  ;;  %v1947_v23 = vpop.xlane.xlu1 %1946  ;;  %v1597_v46 = vmul.f32 %v3745_v29, %v5384_v40  ;;  %v1811_v3 = vsub.f32 %v1790_v44, %v1810_v17  ;;  %v1814_v16 = vsub.f32 %v1799_v7, %v1810_v17 }
 0x7ff   :  { %3748 = vpow2.f32 %v1765_v11  ;;  %v1817_v53 = vsub.f32 %v1808_v50, %v1810_v17  ;;  %v1594_v19 = vadd.f32 %v3747_v27, %v1593_v39  ;;  %v5433_v52 = vstv %s5424_s29 }
 0x800   :  { %3750 = vpow2.f32 %v1768_v56  ;;  %v1846_v15 = vsub.f32 %v1833_v61, %v1845_v35  ;;  %v1849_v30 = vsub.f32 %v1838_v33, %v1845_v35  ;;  %v1812_v60 = vmul.f32 1.442695, %v1811_v3  ;;  %v2036_v56 = vpop.xlane.xlu0 %2035 }
 0x801   :  { %3752 = vpow2.f32 %v1771_v1  ;;  %v1815_v22 = vmul.f32 1.442695, %v1814_v16  ;;  %v1818_v18 = vmul.f32 1.442695, %v1817_v53  ;;  %v1852_v51 = vsub.f32 %v1843_v12, %v1845_v35 }
 0x802   :  { %3754 = vrcp.f32 %v1594_v19  ;;  %v1847_v47 = vmul.f32 1.442695, %v1846_v15  ;;  %v5435_v8 = vpop.xlane.xlu1 %1991  ;;  %v1943_v44 = vadd.f32 %v5426_v37, %v5417_v10  ;;  %v1850_v50 = vmul.f32 1.442695, %v1849_v30 }
 0x803   :  { %3756 = vpow2.f32 %v1812_v60  ;;  %v1949_v7 = vadd.f32 %v5428_v20, %v1947_v23  ;;  %v1853_v33 = vmul.f32 1.442695, %v1852_v51  ;;  %v1598_v61 = vadd.f32 %v1597_v46, %v1596_v32 }
 0x804   :  { %3758 = vpow2.f32 %v1815_v22  ;;  %v1599_v29 = vmul.f32 %v3747_v27, %v5387_v42  ;;  %v1955_v11 = vadd.f32 %v5433_v52, %v1953_v58  ;;  %v2027_v10 = vadd.f32 %v5422_v63, %v5426_v37 }
 0x805   :  { %3760 = vpow2.f32 %v1818_v18  ;;  %v1956_v15 = vmax.f32 %v1943_v44, %v1949_v7  ;;  %v2037_v51 = vadd.f32 %v2036_v56, %v5433_v52 }
 0x806   :  { %3762 = vpow2.f32 %v1847_v47  ;;  %v2031_v12 = vpop.xlane.xlu1 %2030  ;;  %v1600_v1 = vadd.f32 %v1599_v29, %v1598_v61 }
 0x807   :  { %3764 = vpow2.f32 %v1850_v50  ;;  %v1957_v17 = vmax.f32 %v1956_v15, %v1955_v11  ;;  %v2032_v23 = vadd.f32 %v2031_v12, %v5428_v20 }
 0x808   :  { %3766 = vpow2.f32 %v1853_v33 }
 0x809   :  { %v1958_v39 = vsub.f32 %v1943_v44, %v1957_v17  ;;  %v1961_v35 = vsub.f32 %v1949_v7, %v1957_v17  ;;  %v1964_v32 = vsub.f32 %v1955_v11, %v1957_v17  ;;  %v2038_v58 = vmax.f32 %v2027_v10, %v2032_v23 }
 0x80b   :  { %v1959_v46 = vmul.f32 1.442695, %v1958_v39  ;;  %v1962_v27 = vmul.f32 1.442695, %v1961_v35  ;;  %v1965_v3 = vmul.f32 1.442695, %v1964_v32  ;;  %v2039_v16 = vmax.f32 %v2038_v58, %v2037_v51 }
 0x80c   :  { %v3749_v53 = vpop.eup %3748 }
 0x80d   :  { %v3751_v19 = vpop.eup %3750  ;;  %3768 = vpow2.f32 %v1959_v46  ;;  %v2040_v30 = vsub.f32 %v2027_v10, %v2039_v16  ;;  %v2043_v63 = vsub.f32 %v2032_v23, %v2039_v16  ;;  %v2046_v60 = vsub.f32 %v2037_v51, %v2039_v16 }
 0x80e   :  { %v3753_v22 = vpop.eup %3752  ;;  %v1773_v18 = vadd.f32 %v3751_v19, %v3749_v53  ;;  %3770 = vpow2.f32 %v1962_v27  ;;  %v1776_v47 = vmul.f32 %v3749_v53, %v5381_v48  ;;  %v1777_v44 = vmul.f32 %v3751_v19, %v5384_v40 }
 0x80f   :  { %v3755_v50 = vpop.eup %3754  ;;  %3772 = vpow2.f32 %v1965_v3  ;;  %v2041_v7 = vmul.f32 1.442695, %v2040_v30  ;;  %v2044_v33 = vmul.f32 1.442695, %v2043_v63  ;;  %v1779_v15 = vmul.f32 %v3753_v22, %v5387_v42 }
 0x810   :  { %v3757_v61 = vpop.eup %3756  ;;  %v1774_v29 = vadd.f32 %v3753_v22, %v1773_v18  ;;  %v1601_v11 = vmul.f32 %v3755_v50, %v1600_v1  ;;  %v1778_v56 = vadd.f32 %v1777_v44, %v1776_v47  ;;  %v2047_v10 = vmul.f32 1.442695, %v2046_v60 }
 0x811   :  { %v3759_v12 = vpop.eup %3758  ;;  %3774 = vpow2.f32 %v2041_v7  ;;  %v1823_v17 = vmul.f32 %v3757_v61, %v5381_v48  ;;  %v1993_v30 = vadd.f32 %v5435_v8, %v5428_v20  ;;  %v1984_v63 = vadd.f32 %v5419_v43, %v5426_v37 }
 0x812   :  { %v3761_v23 = vpop.eup %3760  ;;  %v1820_v51 = vadd.f32 %v3759_v12, %v3757_v61  ;;  %v1637_v39 = vsel %vm177_vm0, %v5392_v28, %v1601_v11  ;;  %v5452_v35 = vadd.f32 %v1779_v15, %v1778_v56  ;;  %3776 = vpow2.f32 %v2044_v33 }
 0x813   :  { %v3763_v32 = vpop.eup %3762  ;;  %1739 = vmatmul.mubr.f32.vlgmr.msra.gmra.mxu1 %v1637_v39  ;;  %v1824_v1 = vmul.f32 %v3759_v12, %v5384_v40  ;;  %3778 = vrcp.f32 %v1774_v29  ;;  %v1826_v28 = vmul.f32 %v3761_v23, %v5387_v42 }
 0x814   :  { %v3765_v58 = vpop.eup %3764  ;;  %v1821_v46 = vadd.f32 %v3761_v23, %v1820_v51  ;;  %2063 = vmatpush1.msra.mxu1 %v5131_v5  ;;  %3780 = vpow2.f32 %v2047_v10 }
 0x815   :  { %v3767_v27 = vpop.eup %3766  ;;  %v1855_v3 = vadd.f32 %v3765_v58, %v3763_v32  ;;  %2064 = vmatprep.subr.mxu1 %v6301_v54  ;;  %v1825_v16 = vadd.f32 %v1824_v1, %v1823_v17  ;;  %v1859_v37 = vmul.f32 %v3765_v58, %v5406_v25 }
 0x816   :  { %3782 = vrcp.f32 %v1821_v46  ;;  %2065 = vmatpush1.msra.mxu1 %v5143_v4  ;;  %v1861_v51 = vmul.f32 %v3767_v27, %v5410_v13 }
 0x817   :  { %v1856_v53 = vadd.f32 %v3767_v27, %v1855_v3  ;;  %2066 = vmatprep.subr.mxu1 %v6301_v54  ;;  %v1827_v19 = vadd.f32 %v1826_v28, %v1825_v16 }
 0x818   :  { %2067 = vmatpush1.msra.mxu1 %v5157_v2  ;;  %v2003_v2 = vmax.f32 %v1984_v63, %v1993_v30 }
 0x819   :  { %3784 = vrcp.f32 %v1856_v53  ;;  %2068 = vmatprep.subr.mxu1 %v6301_v54 }
 0x81a   :  { %v5464_v5 = vpop.eup %3768  ;;  %2069 = vmatpush1.msra.mxu1 %v5170_v26  ;;  %v2001_v60 = vpop.xlane.xlu1 %2000  ;;  %v1858_v26 = vmul.f32 %v3763_v32, %v5403_v49 }
 0x81b   :  { %v5469_v4 = vpop.eup %3770  ;;  %2070 = vmatprep.subr.mxu1 %v6301_v54  ;;  %v1970_v20 = vmul.f32 %v5464_v5, %v5381_v48  ;;  %v2002_v22 = vadd.f32 %v2001_v60, %v5433_v52 }
 0x81c   :  { %v5474_v8 = vpop.eup %3772  ;;  %2071 = vmatpush1.msra.mxu1 %v5178_v36  ;;  %v1971_v43 = vmul.f32 %v5469_v4, %v5384_v40  ;;  %v1860_v11 = vadd.f32 %v1859_v37, %v1858_v26 }
 0x81d   :  { %2072 = vmatprep.subr.mxu1 %v6301_v54  ;;  %v2004_v47 = vmax.f32 %v2003_v2, %v2002_v22  ;;  %v1973_v52 = vmul.f32 %v5474_v8, %v5387_v42 }
 0x81e   :  { %v3775_v18 = vpop.eup %3774  ;;  %2073 = vmatpush1.msra.mxu1 %v5192_v59  ;;  %v1972_v44 = vadd.f32 %v1971_v43, %v1970_v20  ;;  %v1862_v32 = vadd.f32 %v1861_v51, %v1860_v11 }
 0x81f   :  { %2074 = vmatprep.subr.mxu1 %v6301_v54  ;;  %v3777_v36 = vpop.eup %3776  ;;  %v2005_v50 = vsub.f32 %v1984_v63, %v2004_v47  ;;  %v2008_v7 = vsub.f32 %v1993_v30, %v2004_v47  ;;  %v2011_v33 = vsub.f32 %v2002_v22, %v2004_v47  ;;  %v3421_v63 = vld [vmem:[#allocation8 + $0x1] ss:$0 sm:$0xff] }
 0x820   :  { %2075 = vmatpush1.msra.mxu1 %v5204_v45  ;;  %v3779_v61 = vpop.eup %3778  ;;  %v2049_v29 = vadd.f32 %v3777_v36, %v3775_v18  ;;  %v5489_v56 = vadd.f32 %v1973_v52, %v1972_v44 }
 0x821   :  { %2076 = vmatprep.subr.mxu1 %v6301_v54  ;;  %v3781_v59 = vpop.eup %3780  ;;  %v2006_v15 = vmul.f32 1.442695, %v2005_v50  ;;  %v2009_v12 = vmul.f32 1.442695, %v2008_v7  ;;  %v2012_v23 = vmul.f32 1.442695, %v2011_v33  ;;  %v1781_v45 = vmul.f32 %v3779_v61, %v5452_v35 }
 0x822   :  { %2077 = vmatpush1.msra.mxu1 %v5211_v62  ;;  %v2050_v17 = vadd.f32 %v3781_v59, %v2049_v29  ;;  %v2053_v35 = vmul.f32 %v3777_v36, %v5406_v25  ;;  %v6325_v7 = vld [vmem:[#allocation23_spill] sm:$0xff] }
 0x823   :  { %v3783_v10 = vpop.eup %3782  ;;  %2078 = vmatprep.subr.mxu1 %v6301_v54  ;;  %3786 = vpow2.f32 %v2006_v15 }
 0x824   :  { %v1828_v39 = vmul.f32 %v3783_v10, %v1827_v19  ;;  %2079 = vmatpush1.msra.mxu1 %v5224_v6  ;;  %3788 = vrcp.f32 %v2050_v17  ;;  %v2052_v6 = vmul.f32 %v3775_v18, %v5403_v49  ;;  %v2055_v49 = vmul.f32 %v3781_v59, %v5410_v13  ;;  %v6324_v18 = vld [vmem:[#allocation22_spill] sm:$0xff] }
 0x825   :  { %2080 = vmatprep.subr.mxu1 %v6301_v54  ;;  %3790 = vpow2.f32 %v2009_v12 }
 0x826   :  { %v3785_v1 = vpop.eup %3784  ;;  %v1864_v62 = vsel %vm177_vm0, %v1781_v45, %v1828_v39  ;;  %2081 = vmatpush1.msra.mxu1 %v5232_v9  ;;  %3792 = vpow2.f32 %v2012_v23  ;;  %v2054_v9 = vadd.f32 %v2053_v35, %v2052_v6  ;;  %v3478_v6 = vld [vmem:[%s6256_s1 + $0x398] sm:$0xff] }
 0x827   :  { %v1863_v58 = vmul.f32 %v3785_v1, %v1862_v32  ;;  %2082 = vmatprep.subr.mxu1 %v6301_v54  ;;  %v3474_v35 = vld [vmem:[%s6256_s1 + $0x378] sm:$0xff] }
 0x828   :  { %2083 = vmatpush1.msra.mxu1 %v5242_v24  ;;  %v1967_v24 = vadd.f32 %v5469_v4, %v5464_v5  ;;  %v2056_v25 = vadd.f32 %v2055_v49, %v2054_v9  ;;  %v3473_v9 = vld [vmem:[%s6256_s1 + $0x370] sm:$0xff]  ;;  %v3468_v49 = vld [vmem:[%s6256_s1 + $0x348] sm:$0xff] }
 0x829   :  { %3423 = vmatprep.mubr.msk.f32.mxu0 %vm177_vm0, %v1863_v58  ;;  %2084 = vmatprep.subr.mxu1 %v6301_v54  ;;  %v3479_v58 = vld [vmem:[%s6256_s1 + $0x3a0] sm:$0xff] }
 0x82a   :  { %1933 = vmatmul.mubr.f32.vlgmr.msra.gmra.mxu0 %v1864_v62  ;;  %2085 = vmatpush1.msra.mxu1 %v5250_v41 }
 0x82b   :  { %2086 = vmatprep.subr.mxu1 %v6301_v54  ;;  %2375 = vmatprep.mubr.f32.mxu0 %v6301_v54 }
 0x82c   :  { %2087 = vmatpush1.msra.mxu1 %v5259_v31  ;;  %v1968_v31 = vadd.f32 %v5474_v8, %v1967_v24  ;;  %v6323_v8 = vld [vmem:[#allocation21_spill] sm:$0xff]  ;;  %2327 = vmatprep.subr.mxu0 %v3479_v58  ;;  %v5724_v58 = vld [vmem:[#allocation6 + $0xa] sm:$0x1f] }
 0x82d   :  { %2088 = vmatprep.subr.mxu1 %v6301_v54  ;;  %2328 = vmatpush1.msra.mxu0 %v3478_v6  ;;  %v3469_v24 = vld [vmem:[%s6256_s1 + $0x350] sm:$0xff]  ;;  %v6329_v6 = vld [vmem:[#allocation18_spill] sm:$0xff] }
 0x82e   :  { %2089 = vmatpush1.msra.mxu1 %v5268_v34  ;;  %3794 = vrcp.f32 %v1968_v31  ;;  %2329 = vmatprep.subr.mxu0 %v3474_v35  ;;  %v3458_v31 = vld [vmem:[%s6256_s1 + $0x2f8] sm:$0xff]  ;;  %v2284_v35 = vrot.slane %v5724_v58, %v6329_v6 }
 0x82f   :  { %2090 = vmatprep.subr.mxu1 %v6301_v54  ;;  %2330 = vmatpush1.msra.mxu0 %v3473_v9 }
 0x830   :  { %2091 = vmatpush1.msra.mxu1 %v5277_v0  ;;  %v3787_v41 = vpop.eup %3786  ;;  %2331 = vmatprep.subr.mxu0 %v3469_v24 }
 0x831   :  { %2092 = vmatprep.subr.mxu1 %v6301_v54  ;;  %v3789_v46 = vpop.eup %3788  ;;  %v2017_v27 = vmul.f32 %v3787_v41, %v5381_v48  ;;  %2332 = vmatpush1.msra.mxu0 %v3468_v49 }
 0x832   :  { %2093 = vmatpush1.msra.mxu1 %v5286_v55  ;;  %v3791_v3 = vpop.eup %3790  ;;  %v2057_v16 = vmul.f32 %v3789_v46, %v2056_v25  ;;  %v3463_v25 = vld [vmem:[%s6256_s1 + $0x320] sm:$0xff] }
 0x833   :  { %2110 = vmatprep.subr.mxu1 %v6301_v54  ;;  %v3793_v34 = vpop.eup %3792  ;;  %v2014_v28 = vadd.f32 %v3791_v3, %v3787_v41  ;;  %v2018_v0 = vmul.f32 %v3791_v3, %v5384_v40  ;;  %v6321_v40 = vld [vmem:[#allocation28_spill] sm:$0xff]  ;;  %v3459_v46 = vld [vmem:[%s6256_s1 + $0x300] sm:$0xff] }
 0x834   :  { %2111 = vmatpush2.msra.mxu1 %v5295_v57  ;;  %3424 = vmatprep.mubr.msk.f32.mxu1 %vm177_vm0, %v2057_v16  ;;  %v2020_v48 = vmul.f32 %v3793_v34, %v5387_v42  ;;  %v6319_v57 = vld [vmem:[#allocation24_spill] sm:$0xff] }
 0x835   :  { %2112 = vmatprep.subr.mxu1 %v6301_v54  ;;  %v2015_v13 = vadd.f32 %v3793_v34, %v2014_v28  ;;  %v2019_v55 = vadd.f32 %v2018_v0, %v2017_v27  ;;  %v3464_v41 = vld [vmem:[%s6256_s1 + $0x328] sm:$0xff]  ;;  %v3454_v27 = vld [vmem:[%s6256_s1 + $0x2d8] sm:$0xff]  ;;  %v3453_v3 = vld [vmem:[%s6256_s1 + $0x2d0] sm:$0xff] }
 0x836   :  { %2113 = vmatpush2.msra.mxu1 %v5308_v21  ;;  %v6320_v21 = vld [vmem:[#allocation25_spill] sm:$0xff]  ;;  %2333 = vmatprep.subr.mxu0 %v3464_v41  ;;  %v3448_v34 = vld [vmem:[%s6256_s1 + $0x2a8] sm:$0xff]  ;;  %v3443_v0 = vld [vmem:[%s6256_s1 + $0x280] sm:$0xff] }
 0x837   :  { %2114 = vmatprep.subr.mxu1 %v6301_v54  ;;  %3796 = vrcp.f32 %v2015_v13  ;;  %v2021_v53 = vadd.f32 %v2020_v48, %v2019_v55  ;;  %2334 = vmatpush1.msra.mxu0 %v3463_v25  ;;  %v3449_v16 = vld [vmem:[%s6256_s1 + $0x2b0] sm:$0xff]  ;;  %v3444_v28 = vld [vmem:[%s6256_s1 + $0x288] sm:$0xff] }
 0x838   :  { %2115 = vmatpush2.msra.mxu1 %v5319_v38  ;;  %v6322_v38 = vld [vmem:[#allocation29_spill] sm:$0xff]  ;;  %2335 = vmatprep.subr.mxu0 %v3459_v46 }
 0x839   :  { %2116 = vmatprep.subr.mxu1 %v6301_v54  ;;  %2336 = vmatpush1.msra.mxu0 %v3458_v31  ;;  %v3481_v13 = vld [vmem:[%s6256_s1 + $0x3b0] sm:$0xff] }
 0x83a   :  { %2117 = vmatpush2.msra.mxu1 %v5329_v14  ;;  %2337 = vmatprep.subr.mxu0 %v3454_v27 }
 0x83b   :  { %2118 = vmatprep.subr.mxu1 %v6301_v54  ;;  %v3795_v42 = vpop.eup %3794  ;;  %2338 = vmatpush1.msra.mxu0 %v3453_v3 }
 0x83c   :  { %2119 = vmatpush2.msra.mxu1 %v6319_v57  ;;  %v1975_v19 = vmul.f32 %v3795_v42, %v5489_v56  ;;  %2339 = vmatprep.subr.mxu0 %v3449_v16  ;;  %v6330_v16 = vld [vmem:[#allocation19_spill] sm:$0xff] }
 0x83d   :  { %2120 = vmatprep.subr.mxu1 %v6301_v54  ;;  %2340 = vmatpush1.msra.mxu0 %v3448_v34  ;;  %v2288_v34 = vrot.slane %v5724_v58, %v6330_v16 }
 0x83e   :  { %2121 = vmatpush2.msra.mxu1 %v6320_v21  ;;  %2341 = vmatprep.subr.mxu0 %v3444_v28 }
 0x83f   :  { %2122 = vmatprep.subr.mxu1 %v6301_v54  ;;  %2342 = vmatpush1.msra.mxu0 %v3443_v0 }
 0x840   :  { %2123 = vmatpush2.msra.mxu1 %v6321_v40  ;;  %2410 = vmatprep.subr.mxu0 %v3481_v13 }
 0x841   :  { %2124 = vmatprep.subr.mxu1 %v6301_v54 }
 0x842   :  { %2125 = vmatpush2.msra.mxu1 %v6322_v38 }
 0x843   :  { %2738 = vmatprep.subr.mxu1 %v6301_v54 }
 0x844   :  { %v3797_v14 = vpop.eup %3796 }
 0x845   :  { %v2022_v30 = vmul.f32 %v3797_v14, %v2021_v53  ;;  %v3426_v14 = vld [vmem:[%s6261_s6 + $0x3] ss:$0 sm:$0xff] }
 0x847   :  { %v2058_v5 = vsel %vm177_vm0, %v1975_v19, %v2022_v30 }
 0x848   :  { %2127 = vmatmul.mubr.f32.vlgmr.msra.gmra.mxu1 %v2058_v5  ;;  %v3427_v5 = vld [vmem:[#allocation10 + $0x3] ss:$0 sm:$0xff] }
 0x8d3   :  { %v1740_v4 = vpop.f32.mrf.mxu1 }
 0x8d4   :  { %v1741_v60 = vadd.f32 %v3421_v63, %v1740_v4 }
 0x8d5   :  { %v1742_v20 = vpop.f32.mrf.mxu1 }
 0x8d6   :  { %v2132_v2 = vadd.f32 %v1741_v60, %v6323_v8  ;;  %v3480_v20 = vld [vmem:[%s6256_s1 + $0x3a8] sm:$0xff] }
 0x8d8   :  { %v2135_v22 = vsel %vm177_vm0, %v2132_v2, 0.0 }
 0x8d9   :  { %2136 = vadd.xlane.f32.xlu1 %v2135_v22  ;;  %v3476_v22 = vld [vmem:[%s6256_s1 + $0x388] sm:$0xff] }
 0x8ea   :  { %v1934_v43 = vpop.f32.mrf.mxu0 }
 0x8eb   :  { %v1935_v26 = vadd.f32 %v3421_v63, %v1934_v43  ;;  %v3430_v43 = vld [vmem:[#allocation10 + $0x4] ss:$0 sm:$0xff] }
 0x8ec   :  { %v1936_v37 = vpop.f32.mrf.mxu0 }
 0x8ed   :  { %v2133_v47 = vadd.f32 %v1935_v26, %v6324_v18  ;;  %v3432_v26 = vld [vmem:[%s6261_s6 + $0x5] ss:$0 sm:$0xff] }
 0x8ee   :  { %v3475_v37 = vld [vmem:[%s6256_s1 + $0x380] sm:$0xff] }
 0x8ef   :  { %v2138_v44 = vsel %vm177_vm0, %v2133_v47, 0.0  ;;  %v3471_v18 = vld [vmem:[%s6256_s1 + $0x360] sm:$0xff] }
 0x8f0   :  { %2139 = vadd.xlane.f32.xlu0 %v2138_v44  ;;  %v3470_v44 = vld [vmem:[%s6256_s1 + $0x358] sm:$0xff] }
 0x908   :  { %v2128_v52 = vpop.f32.mrf.mxu1 }
 0x909   :  { %v2129_v36 = vadd.f32 %v3421_v63, %v2128_v52  ;;  %v3429_v63 = vld [vmem:[%s6261_s6 + $0x4] ss:$0 sm:$0xff] }
 0x90a   :  { %v2130_v50 = vpop.f32.mrf.mxu1 }
 0x90b   :  { %v2134_v33 = vadd.f32 %v2129_v36, %v6325_v7  ;;  %v3466_v36 = vld [vmem:[%s6256_s1 + $0x338] sm:$0xff]  ;;  %v3433_v50 = vld [vmem:[#allocation10 + $0x5] ss:$0 sm:$0xff] }
 0x90c   :  { %v3465_v7 = vld [vmem:[%s6256_s1 + $0x330] sm:$0xff] }
 0x90d   :  { %v2142_v61 = vsel %vm177_vm0, %v2134_v33, 0.0 }
 0x90e   :  { %2143 = vadd.xlane.f32.xlu1 %v2142_v61 }
 0x962   :  { %v2137_v29 = vpop.xlane.xlu1 %2136 }
 0x979   :  { %v2140_v11 = vpop.xlane.xlu0 %2139 }
 0x97a   :  { %v2141_v56 = vadd.f32 %v2140_v11, %v2137_v29  ;;  %v3460_v29 = vld [vmem:[%s6256_s1 + $0x308] sm:$0xff] }
 0x97b   :  { %v3456_v11 = vld [vmem:[%s6256_s1 + $0x2e8] sm:$0xff] }
 0x997   :  { %v2144_v59 = vpop.xlane.xlu1 %2143 }
 0x998   :  { %v2145_v15 = vadd.f32 %v2144_v59, %v2141_v56  ;;  %v3455_v56 = vld [vmem:[%s6256_s1 + $0x2e0] sm:$0xff] }
 0x999   :  { %v3451_v59 = vld [vmem:[%s6256_s1 + $0x2c0] sm:$0xff] }
 0x99a   :  { %v2146_v12 = vmul.f32 0.0052083335, %v2145_v15  ;;  %v3450_v15 = vld [vmem:[%s6256_s1 + $0x2b8] sm:$0xff] }
 0x99c   :  { %v2148_v10 = vsub.f32 %v2133_v47, %v2146_v12  ;;  %v2147_v17 = vsub.f32 %v2132_v2, %v2146_v12  ;;  %v2149_v23 = vsub.f32 %v2134_v33, %v2146_v12  ;;  %v3461_v33 = vld [vmem:[%s6256_s1 + $0x310] sm:$0xff]  ;;  %v3446_v12 = vld [vmem:[%s6256_s1 + $0x298] sm:$0xff] }
 0x99e   :  { %v2154_v51 = vmul.f32 %v2148_v10, %v2148_v10  ;;  %v2150_v45 = vmul.f32 %v2147_v17, %v2147_v17  ;;  %v2159_v1 = vmul.f32 %v2149_v23, %v2149_v23 }
 0x9a0   :  { %v2155_v39 = vsel %vm177_vm0, %v2154_v51, 0.0  ;;  %v2151_v32 = vsel %vm177_vm0, %v2150_v45, 0.0  ;;  %v2160_v62 = vsel %vm177_vm0, %v2159_v1, 0.0  ;;  %v3472_v51 = vld [vmem:[%s6256_s1 + $0x368] sm:$0xff]  ;;  %v3467_v45 = vld [vmem:[%s6256_s1 + $0x340] sm:$0xff] }
 0x9a1   :  { %2156 = vadd.xlane.f32.xlu1 %v2155_v39  ;;  %2152 = vadd.xlane.f32.xlu0 %v2151_v32  ;;  %v3462_v39 = vld [vmem:[%s6256_s1 + $0x318] sm:$0xff]  ;;  %v3457_v32 = vld [vmem:[%s6256_s1 + $0x2f0] sm:$0xff]  ;;  %v3452_v1 = vld [vmem:[%s6256_s1 + $0x2c8] sm:$0xff] }
 0x9a5   :  { %2161 = vadd.xlane.f32.xlu0 %v2160_v62  ;;  %v3447_v62 = vld [vmem:[%s6256_s1 + $0x2a0] sm:$0xff] }
 0xa2a   :  { %v2157_v55 = vpop.xlane.xlu1 %2156  ;;  %v2153_v48 = vpop.xlane.xlu0 %2152 }
 0xa2b   :  { %v2158_v53 = vadd.f32 %v2157_v55, %v2153_v48 }
 0xa2e   :  { %v2162_v57 = vpop.xlane.xlu0 %2161 }
 0xa2f   :  { %v2163_v21 = vadd.f32 %v2162_v57, %v2158_v53 }
 0xa31   :  { %v2164_v40 = vmul.f32 0.0052083335, %v2163_v21 }
 0xa33   :  { %v2165_v38 = vadd.f32 1e-05, %v2164_v40 }
 0xa35   :  { %3798 = vrsqrt.f32 %v2165_v38 }
 0xa42   :  { %v3799_v42 = vpop.eup %3798 }
 0xa43   :  { %v2167_v19 = vmul.f32 %v3799_v42, %v2147_v17  ;;  %v2186_v30 = vmul.f32 %v3799_v42, %v2148_v10  ;;  %v2205_v2 = vmul.f32 %v3799_v42, %v2149_v23  ;;  %v3445_v10 = vld [vmem:[%s6256_s1 + $0x290] sm:$0xff]  ;;  %v3482_v17 = vld [vmem:[%s6256_s1 + $0x3b8] sm:$0xff] }
 0xa44   :  { %v3477_v23 = vld [vmem:[%s6256_s1 + $0x390] sm:$0xff]  ;;  %s3434_s1 = sld [smem:[#allocation9 + $0x12]] }
 0xa45   :  { %v2176_v4 = vmul.f32 %v3426_v14, %v2167_v19  ;;  %v2195_v8 = vmul.f32 %v3429_v63, %v2186_v30  ;;  %v2214_v52 = vmul.f32 %v3432_v26, %v2205_v2  ;;  %v6331_v63 = vld [vmem:[#allocation20_spill] sm:$0xff] }
 0xa47   :  { %v5608_v60 = vadd.f32 %v3427_v5, %v2176_v4  ;;  %v5628_v47 = vadd.f32 %v3430_v43, %v2195_v8  ;;  %v5645_v61 = vadd.f32 %v3433_v50, %v2214_v52  ;;  %v2280_v4 = vrot.slane %v5724_v58, %v6331_v63 }
 0xa49   :  { %6326 = vst [vmem:[#allocation24_spill] sm:$0xff] %v5608_v60  ;;  %3483 = vmatmul.mubr.msk.f32.vlgmr.msra.gmra.mxu0 %vm177_vm0, %v5608_v60  ;;  %6327 = vst [vmem:[#allocation25_spill] sm:$0xff] %v5628_v47 }
 0xa4a   :  { %2411 = vmatpush1.msra.mxu0 %v3480_v20  ;;  %2381 = vmatprep.mubr.f32.mxu0 %v6301_v54  ;;  %6328 = vst [vmem:[#allocation28_spill] sm:$0xff] %v5645_v61 }
 0xa4b   :  { %2412 = vmatprep.subr.mxu0 %v3476_v22 }
 0xa4c   :  { %2413 = vmatpush1.msra.mxu0 %v3475_v37 }
 0xa4d   :  { %2414 = vmatprep.subr.mxu0 %v3471_v18  ;;  %3484 = vmatmul.mubr.msk.f32.gmra.mxu0 %vm177_vm0, %v5628_v47 }
 0xa4e   :  { %2415 = vmatpush1.msra.mxu0 %v3470_v44  ;;  %2387 = vmatprep.mubr.f32.mxu0 %v6301_v54 }
 0xa4f   :  { %2416 = vmatprep.subr.mxu0 %v3466_v36 }
 0xa50   :  { %2417 = vmatpush1.msra.mxu0 %v3465_v7 }
 0xa51   :  { %2418 = vmatprep.subr.mxu0 %v3461_v33  ;;  %3485 = vmatmul.mubr.msk.f32.gmra.mxu0 %vm177_vm0, %v5645_v61 }
 0xa52   :  { %2419 = vmatpush1.msra.mxu0 %v3460_v29  ;;  %2458 = vmatprep.mubr.f32.mxu0 %v6301_v54 }
 0xa53   :  { %2420 = vmatprep.subr.mxu0 %v3456_v11 }
 0xa54   :  { %2421 = vmatpush1.msra.mxu0 %v3455_v56 }
 0xa55   :  { %2422 = vmatprep.subr.mxu0 %v3451_v59 }
 0xa56   :  { %2423 = vmatpush1.msra.mxu0 %v3450_v15 }
 0xa57   :  { %2424 = vmatprep.subr.mxu0 %v3446_v12 }
 0xa58   :  { %2425 = vmatpush1.msra.mxu0 %v3445_v10 }
 0xa59   :  { %3486 = vmatmul.mubr.msk.f32.vlgmr.msra.gmra.mxu0 %vm177_vm0, %v5608_v60  ;;  %3612 = vmatprep.subr.mxu0 %v6301_v54 }
 0xa5a   :  { %3613 = vmatpush3.msra.mxu0 %v3482_v17  ;;  %2464 = vmatprep.mubr.f32.mxu0 %v6301_v54 }
 0xa5b   :  { %3614 = vmatprep.subr.mxu0 %v6301_v54 }
 0xa5c   :  { %3615 = vmatpush3.msra.mxu0 %v3477_v23 }
 0xa5d   :  { %3487 = vmatmul.mubr.msk.f32.gmra.mxu0 %vm177_vm0, %v5628_v47  ;;  %3616 = vmatprep.subr.mxu0 %v6301_v54 }
 0xa5e   :  { %3617 = vmatpush3.msra.mxu0 %v3472_v51  ;;  %2470 = vmatprep.mubr.f32.mxu0 %v6301_v54 }
 0xa5f   :  { %3618 = vmatprep.subr.mxu0 %v6301_v54 }
 0xa60   :  { %3619 = vmatpush3.msra.mxu0 %v3467_v45 }
 0xa61   :  { %3488 = vmatmul.mubr.msk.f32.gmra.mxu0 %vm177_vm0, %v5645_v61  ;;  %3620 = vmatprep.subr.mxu0 %v6301_v54 }
 0xa62   :  { %3621 = vmatpush3.msra.mxu0 %v3462_v39  ;;  %3628 = vmatprep.mubr.msk.f32.mxu0 %vm4012_vm1, %v6301_v54 }
 0xa63   :  { %3622 = vmatprep.subr.mxu0 %v6301_v54 }
 0xa64   :  { %3623 = vmatpush3.msra.mxu0 %v3457_v32 }
 0xa65   :  { %3624 = vmatprep.subr.mxu0 %v6301_v54 }
 0xa66   :  { %3625 = vmatpush3.msra.mxu0 %v3452_v1 }
 0xa67   :  { %3626 = vmatprep.subr.mxu0 %v6301_v54 }
 0xa68   :  { %3627 = vmatpush3.msra.mxu0 %v3447_v62 }
 0xa69   :  { %3629 = vmatmul.mubr.msk.f32.vlgmr.msra.gmra.mxu0 %vm177_vm0, %v5608_v60  ;;  %2932 = vmatprep.subr.mxu0 %v6301_v54 }
 0xa6a   :  { %3631 = vmatprep.mubr.msk.f32.mxu0 %vm4012_vm1, %v6301_v54 }
 0xa6d   :  { %3632 = vmatmul.mubr.msk.f32.gmra.mxu0 %vm177_vm0, %v5628_v47 }
 0xa6e   :  { %3634 = vmatprep.mubr.msk.f32.mxu0 %vm4012_vm1, %v6301_v54 }
 0xa71   :  { %3635 = vmatmul.mubr.msk.f32.gmra.mxu0 %vm177_vm0, %v5645_v61 }
 0xb09   :  { %v2377_v9 = vpop.f32.mrf.mxu0 }
 0xb0a   :  { %v2378_v20 = vadd.f32 %v2377_v9, %v2280_v4 }
 0xb0b   :  { %v2379_v24 = vpop.f32.mrf.mxu0 }
 0xb0c   :  { %v5728_v49 = vadd.f32 %v2379_v24, %v2284_v35 }
 0xb0d   :  { %v2383_v41 = vpop.f32.mrf.mxu0 }
 0xb0e   :  { %2558 = vrot.lane.b32.xlu1 %v5728_v49, %s4011_s2  ;;  %v2384_v2 = vadd.f32 %v2383_v41, %v2280_v4 }
 0xb0f   :  { %v2385_v25 = vpop.f32.mrf.mxu0 }
 0xb10   :  { %v5732_v46 = vadd.f32 %v2385_v25, %v2284_v35 }
 0xb11   :  { %v2389_v31 = vpop.f32.mrf.mxu0 }
 0xb12   :  { %2568 = vrot.lane.b32.xlu0 %v5732_v46, %s4011_s2  ;;  %v5760_v18 = vadd.f32 %v2389_v31, %v2280_v4 }
 0xb13   :  { %v2391_v27 = vpop.f32.mrf.mxu0 }
 0xb14   :  { %v5736_v3 = vadd.f32 %v2391_v27, %v2284_v35 }
 0xb16   :  { %2578 = vrot.lane.b32.xlu0 %v5736_v3, %s4011_s2 }
 0xb19   :  { %v2460_v28 = vpop.f32.mrf.mxu0 }
 0xb1a   :  { %v2461_v0 = vadd.f32 %v2460_v28, %v2288_v34 }
 0xb1b   :  { %v5742_v13 = vpop.f32.mrf.mxu0 }
 0xb1c   :  { %2608 = vrot.lane.b32.xlu1 %v2461_v0, %s4011_s2 }
 0xb1d   :  { %v2466_v55 = vpop.f32.mrf.mxu0 }
 0xb1e   :  { %v2467_v48 = vadd.f32 %v2466_v55, %v2288_v34 }
 0xb1f   :  { %v5745_v53 = vpop.f32.mrf.mxu0 }
 0xb20   :  { %2621 = vrot.lane.b32.xlu0 %v2467_v48, %s4011_s2  ;;  %v5806_v48 = vstv %s3434_s1 }
 0xb21   :  { %v2472_v57 = vpop.f32.mrf.mxu0 }
 0xb22   :  { %v2473_v21 = vadd.f32 %v2472_v57, %v2288_v34  ;;  %v5808_v57 = vstv %s3435_s13 }
 0xb23   :  { %v5749_v40 = vpop.f32.mrf.mxu0 }
 0xb24   :  { %2634 = vrot.lane.b32.xlu1 %v2473_v21, %s4011_s2 }
 0xb29   :  { %v5751_v38 = vpop.f32.mrf.mxu0 }
 0xb2b   :  { %v3630_v42 = vpop.f32.mrf.mxu0 }
 0xb2d   :  { %v5753_v14 = vpop.f32.mrf.mxu0 }
 0xb2f   :  { %v3633_v19 = vpop.f32.mrf.mxu0 }
 0xb31   :  { %v5755_v30 = vpop.f32.mrf.mxu0 }
 0xb33   :  { %v3636_v5 = vpop.f32.mrf.mxu0 }
 0xb80   :  { %v2559_v8 = vpop.permute.xlu1 %2558 }
 0xb81   :  { %v2561_v22 = vmul.f32 %v2559_v8, %v2378_v20  ;;  %v2808_v43 = vmul.f32 %v2559_v8, %v2384_v2  ;;  %v3002_v52 = vmul.f32 %v2559_v8, %v5760_v18 }
 0xb83   :  { %v2562_v26 = vsel %vm177_vm0, %v2561_v22, 0.0  ;;  %v2809_v50 = vsel %vm177_vm0, %v2808_v43, 0.0  ;;  %v3003_v33 = vsel %vm177_vm0, %v3002_v52, 0.0  ;;  %v5818_v43 = vstv %s3437_s14 }
 0xb84   :  { %v2569_v37 = vpop.permute.xlu0 %2568  ;;  %2563 = vadd.xlane.f32.xlu0 %v2562_v26  ;;  %v5820_v26 = vstv %s3438_s15 }
 0xb85   :  { %v2571_v44 = vmul.f32 %v2569_v37, %v2378_v20  ;;  %v2814_v7 = vmul.f32 %v2569_v37, %v2384_v2  ;;  %v3008_v11 = vmul.f32 %v2569_v37, %v5760_v18 }
 0xb87   :  { %v2572_v36 = vsel %vm177_vm0, %v2571_v44, 0.0  ;;  %v2815_v56 = vsel %vm177_vm0, %v2814_v7, 0.0  ;;  %v3009_v23 = vsel %vm177_vm0, %v3008_v11, 0.0 }
 0xb88   :  { %2573 = vadd.xlane.f32.xlu1 %v2572_v36  ;;  %2810 = vadd.xlane.f32.xlu0 %v2809_v50  ;;  %v2579_v15 = vpop.permute.xlu0 %2578  ;;  %v5825_v36 = vstv %s3440_s16  ;;  %v5827_v50 = vstv %s3441_s17 }
 0xb89   :  { %v2581_v17 = vmul.f32 %v2579_v15, %v2378_v20  ;;  %v2820_v51 = vmul.f32 %v2579_v15, %v2384_v2  ;;  %v3014_v39 = vmul.f32 %v2579_v15, %v5760_v18 }
 0xb8b   :  { %v2582_v45 = vsel %vm177_vm0, %v2581_v17, 0.0  ;;  %v2821_v32 = vsel %vm177_vm0, %v2820_v51, 0.0  ;;  %v3015_v62 = vsel %vm177_vm0, %v3014_v39, 0.0  ;;  %v5834_v17 = vstv %s3439_s7 }
 0xb8c   :  { %3004 = vadd.xlane.f32.xlu0 %v3003_v33 }
 0xb8e   :  { %v5766_v29 = vpop.permute.xlu1 %2608 }
 0xb8f   :  { %v2666_v59 = vmul.f32 %v5766_v29, %v5728_v49  ;;  %v5774_v12 = vmul.f32 %v5766_v29, %v5760_v18  ;;  %v2611_v41 = vmul.f32 %v5766_v29, %v2378_v20  ;;  %v2846_v25 = vmul.f32 %v5766_v29, %v2384_v2 }
 0xb90   :  { %2816 = vadd.xlane.f32.xlu0 %v2815_v56  ;;  %v2893_v31 = vmul.f32 %v5766_v29, %v5732_v46  ;;  %v5831_v56 = vstv %s3436_s18  ;;  %s4013_s18 = smov [#allocation12]  }
 0xb91   :  { %v2667_v10 = vsel %vm177_vm0, %v2666_v59, 0.0  ;;  %s3298_s7 = sshll.u32 %s4013_s18, 4  ;;  %s3299_s7 = int_to_ptr.vmem [resolvable:$true] %s3298_s7 }
 0xb92   :  { %2668 = vadd.xlane.f32.xlu1 %v2667_v10  ;;  %v5781_v1 = vpop.permute.xlu0 %2621  ;;  %v2894_v27 = vsel %vm177_vm0, %v2893_v31, 0.0  ;;  %p3974_p12 = scmp.lt.s32.totalorder %s3299_s7, %s3299_s7 }
 0xb93   :  { %v2855_v6 = vmul.f32 %v5781_v1, %v2384_v2  ;;  %v2624_v16 = vmul.f32 %v5781_v1, %v2378_v20  ;;  %v2671_v34 = vmul.f32 %v5781_v1, %v5728_v49  ;;  %v2898_v55 = vmul.f32 %v5781_v1, %v5732_v46 }
 0xb94   :  { %3010 = vadd.xlane.f32.xlu0 %v3009_v23 }
 0xb95   :  { %v2672_v0 = vsel %vm177_vm0, %v2671_v34, 0.0  ;;  %v2899_v19 = vsel %vm177_vm0, %v2898_v55, 0.0 }
 0xb96   :  { %v5785_v35 = vpop.permute.xlu1 %2634 }
 0xb97   :  { %v2637_v9 = vmul.f32 %v5785_v35, %v2378_v20  ;;  %v2864_v24 = vmul.f32 %v5785_v35, %v2384_v2  ;;  %v2676_v5 = vmul.f32 %v5785_v35, %v5728_v49  ;;  %v2903_v22 = vmul.f32 %v5785_v35, %v5732_v46 }
 0xb98   :  { %2583 = vadd.xlane.f32.xlu0 %v2582_v45 }
 0xb99   :  { %v2677_v2 = vsel %vm177_vm0, %v2676_v5, 0.0  ;;  %v2904_v37 = vsel %vm177_vm0, %v2903_v22, 0.0 }
 0xb9c   :  { %2822 = vadd.xlane.f32.xlu0 %v2821_v32 }
 0xba0   :  { %3016 = vadd.xlane.f32.xlu0 %v3015_v62 }
 0xba3   :  { %2857 = vrot.lane.b32.xlu1 %v2855_v6, %s4011_s2  ;;  %v5837_v6 = vstv %s3442_s19 }
 0xba7   :  { %2639 = vrot.lane.b32.xlu1 %v2637_v9, %s4011_s2 }
 0xbab   :  { %2866 = vrot.lane.b32.xlu1 %v2864_v24, %s4011_s2 }
 0xbb6   :  { %2613 = vrot.lane.b32.xlu0 %v2611_v41, %s4011_s2 }
 0xbba   :  { %2848 = vrot.lane.b32.xlu0 %v2846_v25, %s4011_s2 }
 0xbd9   :  { %2895 = vadd.xlane.f32.xlu0 %v2894_v27 }
 0xbef   :  { %2626 = vrot.lane.b32.xlu0 %v2624_v16, %s4011_s2 }
 0xc0d   :  { %v2564_v28 = vpop.xlane.xlu0 %2563 }
 0xc0e   :  { %2673 = vadd.xlane.f32.xlu0 %v2672_v0  ;;  %v2566_v63 = vadd.f32 %v5806_v48, %v2564_v28 }
 0xc11   :  { %v2574_v21 = vpop.xlane.xlu1 %2573  ;;  %v2811_v42 = vpop.xlane.xlu0 %2810 }
 0xc12   :  { %v2576_v4 = vadd.f32 %v5808_v57, %v2574_v21  ;;  %2900 = vadd.xlane.f32.xlu0 %v2899_v19  ;;  %v2813_v44 = vadd.f32 %v5818_v43, %v2811_v42 }
 0xc14   :  { %v2587_v20 = vmax.f32 %v2566_v63, %v2576_v4 }
 0xc15   :  { %v3005_v8 = vpop.xlane.xlu0 %3004 }
 0xc16   :  { %2678 = vadd.xlane.f32.xlu0 %v2677_v2  ;;  %v3007_v33 = vadd.f32 %v5825_v36, %v3005_v8 }
 0xc19   :  { %v2817_v49 = vpop.xlane.xlu0 %2816 }
 0xc1a   :  { %v2819_v52 = vadd.f32 %v5820_v26, %v2817_v49  ;;  %2905 = vadd.xlane.f32.xlu0 %v2904_v37  ;;  %v6332_v37 = vld [vmem:[#allocation26_spill] sm:$0xff] }
 0xc1c   :  { %v2826_v46 = vmax.f32 %v2813_v44, %v2819_v52 }
 0xc1d   :  { %v3011_v7 = vpop.xlane.xlu0 %3010 }
 0xc1e   :  { %v3013_v11 = vadd.f32 %v5827_v50, %v3011_v7 }
 0xc20   :  { %v3020_v59 = vmax.f32 %v3007_v33, %v3013_v11 }
 0xc21   :  { %v2584_v15 = vpop.xlane.xlu0 %2583 }
 0xc22   :  { %v2586_v10 = vadd.f32 %v5831_v56, %v2584_v15 }
 0xc24   :  { %v2588_v23 = vmax.f32 %v2587_v20, %v2586_v10 }
 0xc25   :  { %v2823_v51 = vpop.xlane.xlu0 %2822 }
 0xc26   :  { %v2589_v45 = vsub.f32 %v2566_v63, %v2588_v23  ;;  %v2592_v39 = vsub.f32 %v2576_v4, %v2588_v23  ;;  %v2595_v32 = vsub.f32 %v2586_v10, %v2588_v23  ;;  %v2825_v62 = vadd.f32 %v5834_v17, %v2823_v51 }
 0xc27   :  { %v3049_v63 = vmul.f32 %v5781_v1, %v5760_v18 }
 0xc28   :  { %v2590_v9 = vmul.f32 1.442695, %v2589_v45  ;;  %v2593_v24 = vmul.f32 1.442695, %v2592_v39  ;;  %v2596_v41 = vmul.f32 1.442695, %v2595_v32  ;;  %v2827_v25 = vmax.f32 %v2826_v46, %v2825_v62 }
 0xc29   :  { %v3017_v31 = vpop.xlane.xlu0 %3016 }
 0xc2a   :  { %3800 = vpow2.f32 %v2590_v9  ;;  %v2828_v27 = vsub.f32 %v2813_v44, %v2827_v25  ;;  %v2831_v16 = vsub.f32 %v2819_v52, %v2827_v25  ;;  %v2834_v34 = vsub.f32 %v2825_v62, %v2827_v25 }
 0xc2b   :  { %3802 = vpow2.f32 %v2593_v24  ;;  %v3019_v28 = vadd.f32 %v5837_v6, %v3017_v31  ;;  %v2292_v44 = vrot.slane %v5724_v58, %v6332_v37 }
 0xc2c   :  { %3804 = vpow2.f32 %v2596_v41  ;;  %v2829_v0 = vmul.f32 1.442695, %v2828_v27  ;;  %v2832_v55 = vmul.f32 1.442695, %v2831_v16  ;;  %v2835_v21 = vmul.f32 1.442695, %v2834_v34 }
 0xc2d   :  { %v3021_v42 = vmax.f32 %v3020_v59, %v3019_v28  ;;  %v2614_v19 = vpop.permute.xlu0 %2613  ;;  %v5847_v52 = vadd.f32 %v5742_v13, %v2292_v44  ;;  %v5850_v7 = vadd.f32 %v5745_v53, %v2292_v44  ;;  %v5854_v15 = vadd.f32 %v5749_v40, %v2292_v44 }
 0xc2e   :  { %3806 = vpow2.f32 %v2829_v0  ;;  %v2616_v5 = vsel %vm177_vm0, %v2614_v19, 0.0 }
 0xc2f   :  { %3808 = vpow2.f32 %v2832_v55  ;;  %v3022_v4 = vsub.f32 %v3007_v33, %v3021_v42  ;;  %v3025_v20 = vsub.f32 %v3013_v11, %v3021_v42  ;;  %v3028_v8 = vsub.f32 %v3019_v28, %v3021_v42  ;;  %2617 = vadd.xlane.f32.xlu1 %v2616_v5 }
 0xc30   :  { %3810 = vpow2.f32 %v2835_v21  ;;  %3051 = vrot.lane.b32.xlu0 %v3049_v63, %s4011_s2 }
 0xc31   :  { %v3023_v2 = vmul.f32 1.442695, %v3022_v4  ;;  %v3026_v22 = vmul.f32 1.442695, %v3025_v20  ;;  %v3029_v49 = vmul.f32 1.442695, %v3028_v8 }
 0xc33   :  { %3812 = vpow2.f32 %v3023_v2 }
 0xc34   :  { %3814 = vpow2.f32 %v3026_v22 }
 0xc35   :  { %3816 = vpow2.f32 %v3029_v49  ;;  %v2849_v49 = vpop.permute.xlu0 %2848 }
 0xc36   :  { %v2851_v37 = vsel %vm177_vm0, %v2849_v49, 0.0 }
 0xc37   :  { %v3801_v46 = vpop.eup %3800 }
 0xc38   :  { %v3803_v33 = vpop.eup %3802  ;;  %v2601_v11 = vmul.f32 %v3801_v46, %v5847_v52 }
 0xc39   :  { %v3805_v59 = vpop.eup %3804  ;;  %v2598_v10 = vadd.f32 %v3803_v33, %v3801_v46  ;;  %v2602_v23 = vmul.f32 %v3803_v33, %v5850_v7 }
 0xc3a   :  { %v2604_v13 = vmul.f32 %v3805_v59, %v5854_v15 }
 0xc3b   :  { %v3807_v51 = vpop.eup %3806  ;;  %v2599_v45 = vadd.f32 %v3805_v59, %v2598_v10  ;;  %v2603_v39 = vadd.f32 %v2602_v23, %v2601_v11  ;;  %v2669_v11 = vpop.xlane.xlu1 %2668 }
 0xc3c   :  { %v3809_v32 = vpop.eup %3808  ;;  %v2840_v62 = vmul.f32 %v3807_v51, %v5847_v52  ;;  %v2670_v23 = vadd.f32 %v2669_v11, %v5806_v48 }
 0xc3d   :  { %v3811_v53 = vpop.eup %3810  ;;  %3818 = vrcp.f32 %v2599_v45  ;;  %v2837_v9 = vadd.f32 %v3809_v32, %v3807_v51  ;;  %v2841_v24 = vmul.f32 %v3809_v32, %v5850_v7  ;;  %v2605_v41 = vadd.f32 %v2604_v13, %v2603_v39 }
 0xc3e   :  { %v2843_v31 = vmul.f32 %v3811_v53, %v5854_v15 }
 0xc3f   :  { %v2838_v25 = vadd.f32 %v3811_v53, %v2837_v9  ;;  %v2842_v40 = vadd.f32 %v2841_v24, %v2840_v62  ;;  %v5877_v51 = vpop.permute.xlu1 %2857 }
 0xc40   :  { %v3813_v27 = vpop.eup %3812  ;;  %3042 = vrot.lane.b32.xlu1 %v5774_v12, %s4011_s2 }
 0xc41   :  { %v3815_v16 = vpop.eup %3814  ;;  %3820 = vrcp.f32 %v2838_v25  ;;  %v2844_v34 = vadd.f32 %v2843_v31, %v2842_v40  ;;  %v3034_v28 = vmul.f32 %v3813_v27, %v5847_v52 }
 0xc42   :  { %v3817_v0 = vpop.eup %3816  ;;  %v3031_v55 = vadd.f32 %v3815_v16, %v3813_v27  ;;  %v3035_v21 = vmul.f32 %v3815_v16, %v5850_v7 }
 0xc43   :  { %v3037_v5 = vmul.f32 %v3817_v0, %v5854_v15 }
 0xc44   :  { %v3032_v42 = vadd.f32 %v3817_v0, %v3031_v55  ;;  %v3036_v19 = vadd.f32 %v3035_v21, %v3034_v28 }
 0xc46   :  { %3822 = vrcp.f32 %v3032_v42  ;;  %v3038_v63 = vadd.f32 %v3037_v5, %v3036_v19 }
 0xc4a   :  { %v3819_v4 = vpop.eup %3818 }
 0xc4b   :  { %v5866_v20 = vmul.f32 %v3819_v4, %v2605_v41  ;;  %v5882_v41 = vpop.permute.xlu1 %2639 }
 0xc4e   :  { %v3821_v8 = vpop.eup %3820 }
 0xc4f   :  { %v5868_v12 = vmul.f32 %v3821_v8, %v2844_v34 }
 0xc53   :  { %v3823_v2 = vpop.eup %3822 }
 0xc54   :  { %v5870_v22 = vmul.f32 %v3823_v2, %v3038_v63  ;;  %v2867_v63 = vpop.permute.xlu1 %2866 }
 0xc55   :  { %v2869_v49 = vsel %vm177_vm0, %v2867_v63, 0.0 }
 0xc56   :  { %6333 = vst [vmem:[#allocation29_spill] sm:$0xff] %v5870_v22 }
 0xc62   :  { %v2896_v44 = vpop.xlane.xlu0 %2895 }
 0xc63   :  { %v2897_v62 = vadd.f32 %v2896_v44, %v5818_v43 }
 0xc64   :  { %2852 = vadd.xlane.f32.xlu1 %v2851_v37  ;;  %v3087_v37 = vmul.f32 %v5766_v29, %v5736_v3 }
 0xc66   :  { %v5873_v46 = vpop.permute.xlu0 %2626  ;;  %v3088_v44 = vsel %vm177_vm0, %v3087_v37, 0.0  ;;  %v5944_v37 = vld [vmem:[%s6258_s3 + $0x1e8] sm:$0xff] }
 0xc97   :  { %v2674_v33 = vpop.xlane.xlu0 %2673 }
 0xc98   :  { %v2675_v10 = vadd.f32 %v2674_v33, %v5808_v57  ;;  %v3092_v33 = vmul.f32 %v5781_v1, %v5736_v3 }
 0xc9a   :  { %v2681_v13 = vmax.f32 %v2670_v23, %v2675_v10 }
 0xc9b   :  { %v2901_v59 = vpop.xlane.xlu0 %2900 }
 0xc9c   :  { %v2902_v45 = vadd.f32 %v2901_v59, %v5820_v26  ;;  %v3093_v59 = vsel %vm177_vm0, %v3092_v33, 0.0  ;;  %v5962_v33 = vld [vmem:[%s6258_s3 + $0x1d8] sm:$0xff] }
 0xc9e   :  { %v2908_v9 = vmax.f32 %v2897_v62, %v2902_v45 }
 0xc9f   :  { %v2679_v39 = vpop.xlane.xlu0 %2678 }
 0xca0   :  { %v2680_v32 = vadd.f32 %v2679_v39, %v5831_v56 }
 0xca2   :  { %v2682_v53 = vmax.f32 %v2681_v13, %v2680_v32 }
 0xca3   :  { %v2906_v24 = vpop.xlane.xlu0 %2905 }
 0xca4   :  { %v2683_v25 = vsub.f32 %v2670_v23, %v2682_v53  ;;  %v2686_v40 = vsub.f32 %v2675_v10, %v2682_v53  ;;  %v2689_v31 = vsub.f32 %v2680_v32, %v2682_v53  ;;  %v2907_v27 = vadd.f32 %v2906_v24, %v5834_v17  ;;  %v6334_v32 = vld [vmem:[#allocation27_spill] sm:$0xff] }
 0xca5   :  { %v3097_v10 = vmul.f32 %v5785_v35, %v5736_v3 }
 0xca6   :  { %v2684_v16 = vmul.f32 1.442695, %v2683_v25  ;;  %v2687_v34 = vmul.f32 1.442695, %v2686_v40  ;;  %v2909_v28 = vmax.f32 %v2908_v9, %v2907_v27  ;;  %v2690_v0 = vmul.f32 1.442695, %v2689_v31 }
 0xca7   :  { %v3052_v55 = vpop.permute.xlu0 %3051  ;;  %v3098_v1 = vsel %vm177_vm0, %v3097_v10, 0.0  ;;  %v5982_v10 = vld [vmem:[%s6258_s3 + $0x1c8] sm:$0xff] }
 0xca8   :  { %3824 = vpow2.f32 %v2684_v16  ;;  %v2910_v21 = vsub.f32 %v2897_v62, %v2909_v28  ;;  %v2913_v42 = vsub.f32 %v2902_v45, %v2909_v28  ;;  %v2916_v19 = vsub.f32 %v2907_v27, %v2909_v28 }
 0xca9   :  { %3826 = vpow2.f32 %v2687_v34  ;;  %v3054_v5 = vsel %vm177_vm0, %v3052_v55, 0.0  ;;  %v2296_v62 = vrot.slane %v5724_v58, %v6334_v32  ;;  %v2629_v28 = vsel %vm177_vm0, %v5873_v46, 0.0  ;;  %v6046_v32 = vld [vmem:[%s6258_s3 + $0x190] sm:$0xff] }
 0xcaa   :  { %v2911_v4 = vmul.f32 1.442695, %v2910_v21  ;;  %v2914_v8 = vmul.f32 1.442695, %v2913_v42  ;;  %3055 = vadd.xlane.f32.xlu1 %v3054_v5  ;;  %3828 = vpow2.f32 %v2690_v0  ;;  %v2917_v2 = vmul.f32 1.442695, %v2916_v19 }
 0xcab   :  { %v5901_v3 = vadd.f32 %v5751_v38, %v2296_v62  ;;  %v5904_v31 = vadd.f32 %v5753_v14, %v2296_v62  ;;  %v5912_v0 = vadd.f32 %v5755_v30, %v2296_v62  ;;  %v2860_v21 = vsel %vm177_vm0, %v5877_v51, 0.0  ;;  %v5927_v51 = vld [vmem:[%s6258_s3 + $0x1f8] sm:$0xff]  ;;  %v6055_v62 = vld [vmem:[%s6258_s3 + $0x188] sm:$0xff] }
 0xcac   :  { %3830 = vpow2.f32 %v2911_v4  ;;  %v2642_v46 = vsel %vm177_vm0, %v5882_v41, 0.0  ;;  %2933 = vmatpush1.msra.mxu0 %v5927_v51  ;;  %2739 = vmatpush1.msra.mxu1 %v5927_v51  ;;  %v5935_v41 = vld [vmem:[%s6258_s3 + $0x1f0] sm:$0xff] }
 0xcad   :  { %3832 = vpow2.f32 %v2914_v8  ;;  %2934 = vmatprep.subr.mxu0 %v6301_v54  ;;  %2740 = vmatprep.subr.mxu1 %v6301_v54 }
 0xcae   :  { %2870 = vadd.xlane.f32.xlu1 %v2869_v49  ;;  %3834 = vpow2.f32 %v2917_v2  ;;  %2935 = vmatpush1.msra.mxu0 %v5935_v41 }
 0xcaf   :  { %2741 = vmatpush1.msra.mxu1 %v5935_v41  ;;  %2936 = vmatprep.subr.mxu0 %v6301_v54 }
 0xcb0   :  { %2742 = vmatprep.subr.mxu1 %v6301_v54  ;;  %2937 = vmatpush1.msra.mxu0 %v5944_v37 }
 0xcb1   :  { %2743 = vmatpush1.msra.mxu1 %v5944_v37  ;;  %2938 = vmatprep.subr.mxu0 %v6301_v54 }
 0xcb2   :  { %3089 = vadd.xlane.f32.xlu1 %v3088_v44  ;;  %v5953_v44 = vld [vmem:[%s6258_s3 + $0x1e0] sm:$0xff]  ;;  %2744 = vmatprep.subr.mxu1 %v6301_v54 }
 0xcb3   :  { %2939 = vmatpush1.msra.mxu0 %v5953_v44  ;;  %2745 = vmatpush1.msra.mxu1 %v5953_v44 }
 0xcb4   :  { %2940 = vmatprep.subr.mxu0 %v6301_v54  ;;  %2746 = vmatprep.subr.mxu1 %v6301_v54 }
 0xcb5   :  { %v3825_v11 = vpop.eup %3824  ;;  %2941 = vmatpush1.msra.mxu0 %v5962_v33  ;;  %2747 = vmatpush1.msra.mxu1 %v5962_v33 }
 0xcb6   :  { %v3827_v23 = vpop.eup %3826  ;;  %3094 = vadd.xlane.f32.xlu1 %v3093_v59  ;;  %v2695_v58 = vmul.f32 %v3825_v11, %v5901_v3  ;;  %2942 = vmatprep.subr.mxu0 %v6301_v54  ;;  %v3058_v59 = vmul.f32 %v5785_v35, %v5760_v18  ;;  %v5992_v18 = vld [vmem:[%s6258_s3 + $0x1c0] sm:$0xff]  ;;  %v6001_v35 = vld [vmem:[%s6258_s3 + $0x1b8] sm:$0xff] }
 0xcb7   :  { %v2692_v45 = vadd.f32 %v3827_v23, %v3825_v11  ;;  %v3829_v39 = vpop.eup %3828  ;;  %v2696_v34 = vmul.f32 %v3827_v23, %v5904_v31  ;;  %v5971_v11 = vld [vmem:[%s6258_s3 + $0x1d0] sm:$0xff]  ;;  %2748 = vmatprep.subr.mxu1 %v6301_v54 }
 0xcb8   :  { %v5895_v13 = vpop.xlane.xlu1 %2617  ;;  %v2698_v42 = vmul.f32 %v3829_v39, %v5912_v0  ;;  %2943 = vmatpush1.msra.mxu0 %v5971_v11  ;;  %2749 = vmatpush1.msra.mxu1 %v5971_v11  ;;  %v6010_v23 = vld [vmem:[%s6258_s3 + $0x1b0] sm:$0xff] }
 0xcb9   :  { %v3831_v29 = vpop.eup %3830  ;;  %v2693_v53 = vadd.f32 %v3829_v39, %v2692_v45  ;;  %v2697_v38 = vadd.f32 %v2696_v34, %v2695_v58  ;;  %2944 = vmatprep.subr.mxu0 %v6301_v54  ;;  %2750 = vmatprep.subr.mxu1 %v6301_v54  ;;  %v6019_v45 = vld [vmem:[%s6258_s3 + $0x1a8] sm:$0xff]  ;;  %v6028_v39 = vld [vmem:[%s6258_s3 + $0x1a0] sm:$0xff] }
 0xcba   :  { %v3833_v9 = vpop.eup %3832  ;;  %3099 = vadd.xlane.f32.xlu1 %v3098_v1  ;;  %v2922_v14 = vmul.f32 %v3831_v29, %v5901_v3  ;;  %2945 = vmatpush1.msra.mxu0 %v5982_v10  ;;  %v6069_v1 = vld [vmem:[%s6258_s3 + $0x238] sm:$0xff]  ;;  %v6132_v58 = vld [vmem:[%s6258_s3 + $0x200] sm:$0xff] }
 0xcbb   :  { %3836 = vrcp.f32 %v2693_v53  ;;  %v2919_v24 = vadd.f32 %v3833_v9, %v3831_v29  ;;  %v3835_v25 = vpop.eup %3834  ;;  %v2923_v55 = vmul.f32 %v3833_v9, %v5904_v31  ;;  %v2699_v19 = vadd.f32 %v2698_v42, %v2697_v38  ;;  %2751 = vmatpush1.msra.mxu1 %v5982_v10  ;;  %2946 = vmatprep.subr.mxu0 %v6301_v54  ;;  %v6037_v29 = vld [vmem:[%s6258_s3 + $0x198] sm:$0xff]  ;;  %v6064_v53 = vld [vmem:[%s6258_s3 + $0x180] sm:$0xff]  ;;  %v6078_v9 = vld [vmem:[%s6258_s3 + $0x230] sm:$0xff] }
 0xcbc   :  { %v3043_v40 = vpop.permute.xlu1 %3042  ;;  %v2925_v30 = vmul.f32 %v3835_v25, %v5912_v0  ;;  %2947 = vmatpush1.msra.mxu0 %v5992_v18  ;;  %2752 = vmatprep.subr.mxu1 %v6301_v54 }
 0xcbd   :  { %v2920_v27 = vadd.f32 %v3835_v25, %v2919_v24  ;;  %v3045_v16 = vsel %vm177_vm0, %v3043_v40, 0.0  ;;  %v2924_v5 = vadd.f32 %v2923_v55, %v2922_v14  ;;  %2948 = vmatprep.subr.mxu0 %v6301_v54  ;;  %2753 = vmatpush1.msra.mxu1 %v5992_v18  ;;  %v6087_v24 = vld [vmem:[%s6258_s3 + $0x228] sm:$0xff]  ;;  %v6096_v25 = vld [vmem:[%s6258_s3 + $0x220] sm:$0xff]  ;;  %v6105_v40 = vld [vmem:[%s6258_s3 + $0x218] sm:$0xff] }
 0xcbe   :  { %3046 = vadd.xlane.f32.xlu0 %v3045_v16  ;;  %2949 = vmatpush1.msra.mxu0 %v6001_v35  ;;  %v6123_v16 = vld [vmem:[%s6258_s3 + $0x208] sm:$0xff] }
 0xcbf   :  { %3838 = vrcp.f32 %v2920_v27  ;;  %v2926_v8 = vadd.f32 %v2925_v30, %v2924_v5  ;;  %2754 = vmatprep.subr.mxu1 %v6301_v54  ;;  %2950 = vmatprep.subr.mxu0 %v6301_v54  ;;  %v6114_v27 = vld [vmem:[%s6258_s3 + $0x210] sm:$0xff] }
 0xcc0   :  { %2755 = vmatpush1.msra.mxu1 %v6001_v35  ;;  %2951 = vmatpush1.msra.mxu0 %v6010_v23 }
 0xcc1   :  { %2756 = vmatprep.subr.mxu1 %v6301_v54  ;;  %2952 = vmatprep.subr.mxu0 %v6301_v54 }
 0xcc2   :  { %2630 = vadd.xlane.f32.xlu0 %v2629_v28  ;;  %2757 = vmatpush1.msra.mxu1 %v6010_v23 }
 0xcc3   :  { %2953 = vmatpush1.msra.mxu0 %v6019_v45  ;;  %2758 = vmatprep.subr.mxu1 %v6301_v54 }
 0xcc4   :  { %2954 = vmatprep.subr.mxu0 %v6301_v54  ;;  %2759 = vmatpush1.msra.mxu1 %v6019_v45 }
 0xcc5   :  { %2955 = vmatpush1.msra.mxu0 %v6028_v39  ;;  %2760 = vmatprep.subr.mxu1 %v6301_v54 }
 0xcc6   :  { %2861 = vadd.xlane.f32.xlu0 %v2860_v21  ;;  %2956 = vmatprep.subr.mxu0 %v6301_v54 }
 0xcc7   :  { %2761 = vmatpush1.msra.mxu1 %v6028_v39  ;;  %2957 = vmatpush1.msra.mxu0 %v6037_v29 }
 0xcc8   :  { %v3837_v63 = vpop.eup %3836  ;;  %2762 = vmatprep.subr.mxu1 %v6301_v54  ;;  %2958 = vmatprep.subr.mxu0 %v6301_v54 }
 0xcc9   :  { %v2700_v4 = vmul.f32 %v3837_v63, %v2699_v19  ;;  %2763 = vmatpush1.msra.mxu1 %v6037_v29  ;;  %2959 = vmatpush1.msra.mxu0 %v6046_v32 }
 0xcca   :  { %2643 = vadd.xlane.f32.xlu0 %v2642_v46  ;;  %2764 = vmatprep.subr.mxu1 %v6301_v54 }
 0xccb   :  { %3517 = vmatprep.mubr.msk.f32.mxu1 %vm177_vm0, %v2700_v4  ;;  %2960 = vmatprep.subr.mxu0 %v6301_v54 }
 0xccc   :  { %v3839_v2 = vpop.eup %3838  ;;  %2765 = vmatpush1.msra.mxu1 %v6046_v32  ;;  %2961 = vmatpush1.msra.mxu0 %v6055_v62 }
 0xccd   :  { %v2927_v49 = vmul.f32 %v3839_v2, %v2926_v8  ;;  %2766 = vmatprep.subr.mxu1 %v6301_v54  ;;  %2962 = vmatprep.subr.mxu0 %v6301_v54 }
 0xcce   :  { %2767 = vmatpush1.msra.mxu1 %v6055_v62  ;;  %2963 = vmatpush1.msra.mxu0 %v6064_v53 }
 0xccf   :  { %3518 = vmatprep.mubr.msk.f32.mxu0 %vm177_vm0, %v2927_v49  ;;  %2768 = vmatprep.subr.mxu1 %v6301_v54 }
 0xcd0   :  { %2980 = vmatprep.subr.mxu0 %v6301_v54  ;;  %2769 = vmatpush1.msra.mxu1 %v6064_v53 }
 0xcd1   :  { %2981 = vmatpush2.msra.mxu0 %v6069_v1  ;;  %2786 = vmatprep.subr.mxu1 %v6301_v54 }
 0xcd2   :  { %2982 = vmatprep.subr.mxu0 %v6301_v54  ;;  %2787 = vmatpush2.msra.mxu1 %v6069_v1 }
 0xcd3   :  { %2983 = vmatpush2.msra.mxu0 %v6078_v9  ;;  %2788 = vmatprep.subr.mxu1 %v6301_v54 }
 0xcd4   :  { %2984 = vmatprep.subr.mxu0 %v6301_v54  ;;  %2789 = vmatpush2.msra.mxu1 %v6078_v9 }
 0xcd5   :  { %2985 = vmatpush2.msra.mxu0 %v6087_v24  ;;  %2790 = vmatprep.subr.mxu1 %v6301_v54 }
 0xcd6   :  { %2986 = vmatprep.subr.mxu0 %v6301_v54  ;;  %2791 = vmatpush2.msra.mxu1 %v6087_v24 }
 0xcd7   :  { %2987 = vmatpush2.msra.mxu0 %v6096_v25  ;;  %2792 = vmatprep.subr.mxu1 %v6301_v54 }
 0xcd8   :  { %2988 = vmatprep.subr.mxu0 %v6301_v54  ;;  %2793 = vmatpush2.msra.mxu1 %v6096_v25 }
 0xcd9   :  { %2989 = vmatpush2.msra.mxu0 %v6105_v40  ;;  %2794 = vmatprep.subr.mxu1 %v6301_v54 }
 0xcda   :  { %2990 = vmatprep.subr.mxu0 %v6301_v54  ;;  %2795 = vmatpush2.msra.mxu1 %v6105_v40 }
 0xcdb   :  { %2991 = vmatpush2.msra.mxu0 %v6114_v27  ;;  %2796 = vmatprep.subr.mxu1 %v6301_v54 }
 0xcdc   :  { %2992 = vmatprep.subr.mxu0 %v6301_v54  ;;  %2797 = vmatpush2.msra.mxu1 %v6114_v27 }
 0xcdd   :  { %2993 = vmatpush2.msra.mxu0 %v6123_v16  ;;  %2798 = vmatprep.subr.mxu1 %v6301_v54 }
 0xcde   :  { %2994 = vmatprep.subr.mxu0 %v6301_v54  ;;  %2799 = vmatpush2.msra.mxu1 %v6123_v16 }
 0xcdf   :  { %2995 = vmatpush2.msra.mxu0 %v6132_v58  ;;  %2800 = vmatprep.subr.mxu1 %v6301_v54 }
 0xce0   :  { %3060 = vrot.lane.b32.xlu0 %v3058_v59, %s4011_s2  ;;  %2801 = vmatpush2.msra.mxu1 %v6132_v58 }
 0xce1   :  { %3126 = vmatprep.subr.mxu1 %v6301_v54 }
 0xced   :  { %v2853_v34 = vpop.xlane.xlu1 %2852 }
 0xd33   :  { %v3056_v28 = vpop.xlane.xlu1 %3055 }
 0xd34   :  { %v6146_v4 = vadd.f32 %v3056_v28, %v5827_v50 }
 0xd37   :  { %v2871_v38 = vpop.xlane.xlu1 %2870 }
 0xd38   :  { %v2872_v28 = vadd.f32 %v2871_v38, %v5834_v17 }
 0xd3b   :  { %v3090_v14 = vpop.xlane.xlu1 %3089 }
 0xd3c   :  { %v3091_v19 = vadd.f32 %v3090_v14, %v5825_v36  ;;  %v2854_v14 = vadd.f32 %v2853_v34, %v5818_v43 }
 0xd3f   :  { %v3095_v55 = vpop.xlane.xlu1 %3094 }
 0xd40   :  { %v3096_v21 = vadd.f32 %v3095_v55, %v5827_v50 }
 0xd42   :  { %v3102_v63 = vmax.f32 %v3091_v19, %v3096_v21 }
 0xd43   :  { %v3100_v42 = vpop.xlane.xlu1 %3099 }
 0xd44   :  { %v3101_v5 = vadd.f32 %v3100_v42, %v5837_v6 }
 0xd46   :  { %v3103_v8 = vmax.f32 %v3102_v63, %v3101_v5 }
 0xd47   :  { %v3047_v46 = vpop.xlane.xlu0 %3046 }
 0xd48   :  { %v6149_v30 = vadd.f32 %v3047_v46, %v5825_v36  ;;  %v3104_v59 = vsub.f32 %v3091_v19, %v3103_v8  ;;  %v3107_v55 = vsub.f32 %v3096_v21, %v3103_v8  ;;  %v3110_v50 = vsub.f32 %v3101_v5, %v3103_v8 }
 0xd49   :  { %v2619_v36 = vadd.f32 %v5895_v13, %v5806_v48 }
 0xd4a   :  { %v3105_v47 = vmul.f32 1.442695, %v3104_v59  ;;  %v3108_v46 = vmul.f32 1.442695, %v3107_v55  ;;  %v3111_v43 = vmul.f32 1.442695, %v3110_v50 }
 0xd4b   :  { %v2631_v49 = vpop.xlane.xlu0 %2630 }
 0xd4c   :  { %v2632_v42 = vadd.f32 %v2631_v49, %v5808_v57  ;;  %3840 = vpow2.f32 %v3105_v47 }
 0xd4d   :  { %3842 = vpow2.f32 %v3108_v46 }
 0xd4e   :  { %v2646_v22 = vmax.f32 %v2619_v36, %v2632_v42  ;;  %3844 = vpow2.f32 %v3111_v43 }
 0xd4f   :  { %v2862_v61 = vpop.xlane.xlu0 %2861 }
 0xd50   :  { %v2863_v60 = vadd.f32 %v2862_v61, %v5820_v26 }
 0xd52   :  { %v2873_v63 = vmax.f32 %v2854_v14, %v2863_v60 }
 0xd53   :  { %v2644_v2 = vpop.xlane.xlu0 %2643 }
 0xd54   :  { %v2874_v19 = vmax.f32 %v2873_v63, %v2872_v28  ;;  %v2645_v21 = vadd.f32 %v2644_v2, %v5831_v56 }
 0xd56   :  { %v2875_v34 = vsub.f32 %v2854_v14, %v2874_v19  ;;  %v2878_v57 = vsub.f32 %v2863_v60, %v2874_v19  ;;  %v2881_v49 = vsub.f32 %v2872_v28, %v2874_v19  ;;  %v2647_v61 = vmax.f32 %v2646_v22, %v2645_v21 }
 0xd57   :  { %v3061_v26 = vpop.permute.xlu0 %3060 }
 0xd58   :  { %v2876_v5 = vmul.f32 1.442695, %v2875_v34  ;;  %v2879_v8 = vmul.f32 1.442695, %v2878_v57  ;;  %v2882_v48 = vmul.f32 1.442695, %v2881_v49  ;;  %v2648_v13 = vsub.f32 %v2619_v36, %v2647_v61 }
 0xd59   :  { %v2651_v17 = vsub.f32 %v2632_v42, %v2647_v61  ;;  %v2654_v38 = vsub.f32 %v2645_v21, %v2647_v61  ;;  %v3063_v59 = vsel %vm177_vm0, %v3061_v26, 0.0  ;;  %v3841_v56 = vpop.eup %3840 }
 0xd5a   :  { %3846 = vpow2.f32 %v2876_v5  ;;  %v2649_v55 = vmul.f32 1.442695, %v2648_v13  ;;  %3064 = vadd.xlane.f32.xlu0 %v3063_v59  ;;  %v3843_v22 = vpop.eup %3842 }
 0xd5b   :  { %3848 = vpow2.f32 %v2879_v8  ;;  %v2652_v47 = vmul.f32 1.442695, %v2651_v17  ;;  %v2655_v60 = vmul.f32 1.442695, %v2654_v38  ;;  %v3845_v2 = vpop.eup %3844  ;;  %v3113_v50 = vadd.f32 %v3843_v22, %v3841_v56 }
 0xd5c   :  { %3850 = vpow2.f32 %v2882_v48  ;;  %v3116_v48 = vmul.f32 %v3841_v56, %v5901_v3  ;;  %v3117_v13 = vmul.f32 %v3843_v22, %v5904_v31 }
 0xd5d   :  { %3852 = vpow2.f32 %v2649_v55  ;;  %v3114_v19 = vadd.f32 %v3845_v2, %v3113_v50 }
 0xd5e   :  { %3854 = vpow2.f32 %v2652_v47 }
 0xd5f   :  { %3856 = vpow2.f32 %v2655_v60  ;;  %v3118_v60 = vadd.f32 %v3117_v13, %v3116_v48 }
 0xd67   :  { %v3847_v14 = vpop.eup %3846 }
 0xd68   :  { %v3849_v36 = vpop.eup %3848  ;;  %v2887_v49 = vmul.f32 %v3847_v14, %v5847_v52 }
 0xd69   :  { %v3851_v42 = vpop.eup %3850  ;;  %v2884_v28 = vadd.f32 %v3849_v36, %v3847_v14  ;;  %v2888_v61 = vmul.f32 %v3849_v36, %v5850_v7 }
 0xd6a   :  { %v3853_v63 = vpop.eup %3852  ;;  %v2890_v17 = vmul.f32 %v3851_v42, %v5854_v15 }
 0xd6b   :  { %v3855_v46 = vpop.eup %3854  ;;  %v2885_v21 = vadd.f32 %v3851_v42, %v2884_v28  ;;  %v2660_v26 = vmul.f32 %v3853_v63, %v5847_v52  ;;  %v2889_v8 = vadd.f32 %v2888_v61, %v2887_v49  ;;  %v3119_v28 = vmul.f32 %v3845_v2, %v5912_v0 }
 0xd6c   :  { %v2657_v43 = vadd.f32 %v3855_v46, %v3853_v63  ;;  %v3857_v34 = vpop.eup %3856  ;;  %v2661_v5 = vmul.f32 %v3855_v46, %v5850_v7  ;;  %v6335_v0 = vmax.f32 %v6149_v30, %v6146_v4 }
 0xd6d   :  { %3858 = vrcp.f32 %v2885_v21  ;;  %v2891_v59 = vadd.f32 %v2890_v17, %v2889_v8  ;;  %v2663_v47 = vmul.f32 %v3857_v34, %v5854_v15  ;;  %v3120_v31 = vadd.f32 %v3119_v28, %v3118_v60 }
 0xd6e   :  { %v2658_v57 = vadd.f32 %v3857_v34, %v2657_v43  ;;  %3860 = vrcp.f32 %v3114_v19  ;;  %v2662_v38 = vadd.f32 %v2661_v5, %v2660_v26 }
 0xd70   :  { %3862 = vrcp.f32 %v2658_v57  ;;  %v2664_v36 = vadd.f32 %v2663_v47, %v2662_v38  ;;  %v6339_v57 = vld [vmem:[#allocation28_spill] sm:$0xff] }
 0xd7a   :  { %v3859_v55 = vpop.eup %3858 }
 0xd7b   :  { %v2892_v14 = vmul.f32 %v3859_v55, %v2891_v59  ;;  %v3861_v50 = vpop.eup %3860 }
 0xd7c   :  { %v3121_v22 = vmul.f32 %v3861_v50, %v3120_v31 }
 0xd7d   :  { %v3863_v63 = vpop.eup %3862  ;;  %v2928_v46 = vsel %vm177_vm0, %v5868_v12, %v2892_v14 }
 0xd7e   :  { %2997 = vmatmul.mubr.f32.vlgmr.msra.gmra.mxu0 %v2928_v46  ;;  %v2665_v3 = vmul.f32 %v3863_v63, %v2664_v36 }
 0xd80   :  { %v2701_v56 = vsel %vm177_vm0, %v5866_v20, %v2665_v3 }
 0xd81   :  { %2803 = vmatmul.mubr.f32.vlgmr.msra.gmra.mxu1 %v2701_v56 }
 0xd82   :  { %3519 = vmatprep.mubr.msk.f32.mxu1 %vm177_vm0, %v3121_v22  ;;  %3127 = vmatpush1.msra.mxu1 %v5927_v51 }
 0xd83   :  { %3128 = vmatprep.subr.mxu1 %v6301_v54 }
 0xd84   :  { %3129 = vmatpush1.msra.mxu1 %v5935_v41 }
 0xd85   :  { %3130 = vmatprep.subr.mxu1 %v6301_v54 }
 0xd86   :  { %3131 = vmatpush1.msra.mxu1 %v5944_v37 }
 0xd87   :  { %3132 = vmatprep.subr.mxu1 %v6301_v54 }
 0xd88   :  { %3133 = vmatpush1.msra.mxu1 %v5953_v44 }
 0xd89   :  { %3134 = vmatprep.subr.mxu1 %v6301_v54 }
 0xd8a   :  { %3135 = vmatpush1.msra.mxu1 %v5962_v33 }
 0xd8b   :  { %3136 = vmatprep.subr.mxu1 %v6301_v54 }
 0xd8c   :  { %3137 = vmatpush1.msra.mxu1 %v5971_v11 }
 0xd8d   :  { %3138 = vmatprep.subr.mxu1 %v6301_v54 }
 0xd8e   :  { %3139 = vmatpush1.msra.mxu1 %v5982_v10 }
 0xd8f   :  { %3140 = vmatprep.subr.mxu1 %v6301_v54 }
 0xd90   :  { %3141 = vmatpush1.msra.mxu1 %v5992_v18 }
 0xd91   :  { %3142 = vmatprep.subr.mxu1 %v6301_v54 }
 0xd92   :  { %3143 = vmatpush1.msra.mxu1 %v6001_v35 }
 0xd93   :  { %3144 = vmatprep.subr.mxu1 %v6301_v54 }
 0xd94   :  { %3145 = vmatpush1.msra.mxu1 %v6010_v23 }
 0xd95   :  { %3146 = vmatprep.subr.mxu1 %v6301_v54 }
 0xd96   :  { %3147 = vmatpush1.msra.mxu1 %v6019_v45 }
 0xd97   :  { %3148 = vmatprep.subr.mxu1 %v6301_v54 }
 0xd98   :  { %3149 = vmatpush1.msra.mxu1 %v6028_v39 }
 0xd99   :  { %3150 = vmatprep.subr.mxu1 %v6301_v54 }
 0xd9a   :  { %3151 = vmatpush1.msra.mxu1 %v6037_v29 }
 0xd9b   :  { %3152 = vmatprep.subr.mxu1 %v6301_v54 }
 0xd9c   :  { %3153 = vmatpush1.msra.mxu1 %v6046_v32 }
 0xd9d   :  { %3154 = vmatprep.subr.mxu1 %v6301_v54 }
 0xd9e   :  { %3155 = vmatpush1.msra.mxu1 %v6055_v62 }
 0xd9f   :  { %3156 = vmatprep.subr.mxu1 %v6301_v54 }
 0xda0   :  { %3157 = vmatpush1.msra.mxu1 %v6064_v53 }
 0xda1   :  { %3174 = vmatprep.subr.mxu1 %v6301_v54 }
 0xda2   :  { %3175 = vmatpush2.msra.mxu1 %v6069_v1 }
 0xda3   :  { %3176 = vmatprep.subr.mxu1 %v6301_v54 }
 0xda4   :  { %3177 = vmatpush2.msra.mxu1 %v6078_v9  ;;  %v6336_v9 = vld [vmem:[#allocation29_spill] sm:$0xff] }
 0xda5   :  { %3178 = vmatprep.subr.mxu1 %v6301_v54 }
 0xda6   :  { %3179 = vmatpush2.msra.mxu1 %v6087_v24 }
 0xda7   :  { %3180 = vmatprep.subr.mxu1 %v6301_v54 }
 0xda8   :  { %3181 = vmatpush2.msra.mxu1 %v6096_v25  ;;  %v3516_v25 = vld [vmem:[#allocation8 + $0x2] ss:$0 sm:$0xff] }
 0xda9   :  { %3182 = vmatprep.subr.mxu1 %v6301_v54 }
 0xdaa   :  { %3183 = vmatpush2.msra.mxu1 %v6105_v40 }
 0xdab   :  { %3184 = vmatprep.subr.mxu1 %v6301_v54 }
 0xdac   :  { %3185 = vmatpush2.msra.mxu1 %v6114_v27 }
 0xdad   :  { %3186 = vmatprep.subr.mxu1 %v6301_v54 }
 0xdae   :  { %3187 = vmatpush2.msra.mxu1 %v6123_v16  ;;  %v6337_v16 = vld [vmem:[#allocation25_spill] sm:$0xff] }
 0xdaf   :  { %3188 = vmatprep.subr.mxu1 %v6301_v54 }
 0xdb0   :  { %3189 = vmatpush2.msra.mxu1 %v6132_v58 }
 0xde3   :  { %v3065_v20 = vpop.xlane.xlu0 %3064 }
 0xde4   :  { %v3066_v12 = vadd.f32 %v3065_v20, %v5837_v6 }
 0xde6   :  { %v3068_v51 = vmax.f32 %v6335_v0, %v3066_v12  ;;  %v3521_v0 = vld [vmem:[%s6261_s6 + $0x6] ss:$0 sm:$0xff] }
 0xde8   :  { %v3069_v41 = vsub.f32 %v6149_v30, %v3068_v51  ;;  %v3072_v37 = vsub.f32 %v6146_v4, %v3068_v51  ;;  %v3075_v44 = vsub.f32 %v3066_v12, %v3068_v51  ;;  %v3524_v51 = vld [vmem:[%s6261_s6 + $0x7] ss:$0 sm:$0xff] }
 0xdea   :  { %v3070_v33 = vmul.f32 1.442695, %v3069_v41  ;;  %v3073_v11 = vmul.f32 1.442695, %v3072_v37  ;;  %v3076_v10 = vmul.f32 1.442695, %v3075_v44 }
 0xdeb   :  { %v3527_v41 = vld [vmem:[%s6261_s6 + $0x8] ss:$0 sm:$0xff]  ;;  %s3969_s6 = scalar_lea.vmem %s3299_s7, 128 }
 0xdec   :  { %3864 = vpow2.f32 %v3070_v33  ;;  %p3970_p11 = scmp.ne.s32.totalorder %s3299_s7, %s3969_s6  ;;  %p3975_p13 = scmp.lt.s32.totalorder %s3969_s6, %s3969_s6 }
 0xded   :  { %3866 = vpow2.f32 %v3073_v11  ;;  %v3522_v11 = vld [vmem:[#allocation10 + $0x6] ss:$0 sm:$0xff] }
 0xdee   :  { %3868 = vpow2.f32 %v3076_v10  ;;  %v3525_v10 = vld [vmem:[#allocation10 + $0x7] ss:$0 sm:$0xff]  ;;  %p3976_p0 = por %p3975_p13, %p3974_p12 }
 0xdf0   :  { %p3977_p1 = pnand %p3976_p0, %p3970_p11 }
 0xdf9   :  { %v3865_v54 = vpop.eup %3864 }
 0xdfa   :  { %v3867_v18 = vpop.eup %3866  ;;  %v3081_v35 = vmul.f32 %v3865_v54, %v5847_v52 }
 0xdfb   :  { %v3869_v6 = vpop.eup %3868  ;;  %v3078_v23 = vadd.f32 %v3867_v18, %v3865_v54  ;;  %v3082_v45 = vmul.f32 %v3867_v18, %v5850_v7 }
 0xdfc   :  { %v3084_v32 = vmul.f32 %v3869_v6, %v5854_v15  ;;  %v6338_v15 = vld [vmem:[#allocation24_spill] sm:$0xff] }
 0xdfd   :  { %v3079_v39 = vadd.f32 %v3869_v6, %v3078_v23  ;;  %v3083_v29 = vadd.f32 %v3082_v45, %v3081_v35  ;;  %v3528_v6 = vld [vmem:[#allocation10 + $0x8] ss:$0 sm:$0xff] }
 0xdff   :  { %3870 = vrcp.f32 %v3079_v39  ;;  %v3085_v62 = vadd.f32 %v3084_v32, %v3083_v29 }
 0xe0c   :  { %v3871_v53 = vpop.eup %3870 }
 0xe0d   :  { %v3086_v1 = vmul.f32 %v3871_v53, %v3085_v62 }
 0xe0f   :  { %v3122_v24 = vsel %vm177_vm0, %v6336_v9, %v3086_v1 }
 0xe10   :  { %3191 = vmatmul.mubr.f32.vlgmr.msra.gmra.mxu1 %v3122_v24 }
 0xe3e   :  { %v2998_v40 = vpop.f32.mrf.mxu0 }
 0xe3f   :  { %v2999_v27 = vadd.f32 %v3516_v25, %v2998_v40 }
 0xe40   :  { %v3000_v52 = vpop.f32.mrf.mxu0 }
 0xe41   :  { %v3197_v58 = vadd.f32 %v2999_v27, %v6337_v16  ;;  %v2804_v4 = vpop.f32.mrf.mxu1 }
 0xe42   :  { %v2805_v7 = vadd.f32 %v3516_v25, %v2804_v4 }
 0xe43   :  { %v2806_v30 = vpop.f32.mrf.mxu1  ;;  %v3202_v2 = vsel %vm177_vm0, %v3197_v58, 0.0 }
 0xe44   :  { %v3196_v42 = vadd.f32 %v2805_v7, %v6338_v15  ;;  %3203 = vadd.xlane.f32.xlu1 %v3202_v2 }
 0xe46   :  { %v3199_v19 = vsel %vm177_vm0, %v3196_v42, 0.0 }
 0xe47   :  { %3200 = vadd.xlane.f32.xlu0 %v3199_v19 }
 0xecd   :  { %v3204_v5 = vpop.xlane.xlu1 %3203 }
 0xed0   :  { %v3192_v21 = vpop.f32.mrf.mxu1  ;;  %v3201_v26 = vpop.xlane.xlu0 %3200 }
 0xed1   :  { %v3193_v43 = vadd.f32 %v3516_v25, %v3192_v21  ;;  %v3205_v8 = vadd.f32 %v3204_v5, %v3201_v26 }
 0xed2   :  { %v3194_v34 = vpop.f32.mrf.mxu1 }
 0xed3   :  { %v3198_v49 = vadd.f32 %v3193_v43, %v6339_v57 }
 0xed5   :  { %v3206_v61 = vsel %vm177_vm0, %v3198_v49, 0.0 }
 0xed6   :  { %3207 = vadd.xlane.f32.xlu0 %v3206_v61 }
 0xf5f   :  { %v3208_v48 = vpop.xlane.xlu0 %3207 }
 0xf60   :  { %v3209_v13 = vadd.f32 %v3208_v48, %v3205_v8 }
 0xf62   :  { %v3210_v17 = vmul.f32 0.0052083335, %v3209_v13 }
 0xf64   :  { %v3211_v38 = vsub.f32 %v3196_v42, %v3210_v17  ;;  %v3212_v59 = vsub.f32 %v3197_v58, %v3210_v17  ;;  %v3213_v55 = vsub.f32 %v3198_v49, %v3210_v17 }
 0xf66   :  { %v3218_v47 = vmul.f32 %v3212_v59, %v3212_v59  ;;  %v3214_v60 = vmul.f32 %v3211_v38, %v3211_v38  ;;  %v3223_v36 = vmul.f32 %v3213_v55, %v3213_v55 }
 0xf68   :  { %v3219_v14 = vsel %vm177_vm0, %v3218_v47, 0.0  ;;  %v3215_v50 = vsel %vm177_vm0, %v3214_v60, 0.0  ;;  %v3224_v28 = vsel %vm177_vm0, %v3223_v36, 0.0 }
 0xf69   :  { %3220 = vadd.xlane.f32.xlu0 %v3219_v14  ;;  %3216 = vadd.xlane.f32.xlu1 %v3215_v50 }
 0xf6d   :  { %3225 = vadd.xlane.f32.xlu1 %v3224_v28 }
 0xff2   :  { %v3221_v63 = vpop.xlane.xlu0 %3220  ;;  %v3217_v46 = vpop.xlane.xlu1 %3216 }
 0xff3   :  { %v3222_v3 = vadd.f32 %v3221_v63, %v3217_v46 }
 0xff6   :  { %v3226_v31 = vpop.xlane.xlu1 %3225 }
 0xff7   :  { %v3227_v56 = vadd.f32 %v3226_v31, %v3222_v3 }
 0xff9   :  { %v3228_v22 = vmul.f32 0.0052083335, %v3227_v56 }
 0xffb   :  { %v3229_v20 = vadd.f32 1e-05, %v3228_v22 }
 0xffd   :  { %3872 = vrsqrt.f32 %v3229_v20 }
0x100a   :  { %v3873_v12 = vpop.eup %3872 }
0x100b   :  { %v3231_v37 = vmul.f32 %v3873_v12, %v3211_v38  ;;  %v3250_v44 = vmul.f32 %v3873_v12, %v3212_v59  ;;  %v3269_v33 = vmul.f32 %v3873_v12, %v3213_v55 }
0x100d   :  { %v3240_v54 = vmul.f32 %v3521_v0, %v3231_v37  ;;  %v3259_v18 = vmul.f32 %v3524_v51, %v3250_v44  ;;  %v3278_v35 = vmul.f32 %v3527_v41, %v3269_v33 }
0x100f   :  { %v3249_v23 = vadd.f32 %v3522_v11, %v3240_v54  ;;  %v3268_v45 = vadd.f32 %v3525_v10, %v3259_v18  ;;  %v3287_v39 = vadd.f32 %v3528_v6, %v3278_v35 }
0x1011   :  { %v3288_v29 = vadd.f32 %v3268_v45, %v3249_v23 }
0x1013   :  { %v3289_v32 = vadd.f32 %v3288_v29, %v3287_v39 }
0x1015   :  { %v3290_v62 = vmul.f32 0.33333334, %v3289_v32 }
0x1017   :  { %3291 = vst.msk [vmem:[#allocation12] sm:$0xff] %vm177_vm0, %v3290_v62 }
0x1018   :  { %3980 = shalt.err (!%p3977_p1)
}
0x1019   :  { %3301 = dma.vmem_to_hbm [thread:$0]  %s3299_s7, 128, %s6263_s8, [#allocation4]  }
0x101a   :  { %3997 = dma.done.wait [#allocation4], 128  }
0x101b   :  { %3998 = vsyncadd [#allocation4], 4294967168 }
0x101c   :  { %3305 = vsyncpa [#allocation3], 1 }
0x101d   :  { %3306 = vsyncpa [#allocation7], 1 }
0x101e   :  { %3307 = vsyncpa [#allocation11], 1 }
0x101f   :  { %3308 = vsyncpa [#allocation4], 1 }
0x1020   :  { %3309 = vsyncpa [#allocation5], 1 }

</bundles_post_ra>
